<compile_context>
chip_gen: v7x
topology: tpu7x:2x2x1
jax: 0.10.0
libtpu: 0.0.40
codegen_flags: <defaults>
</compile_context>

<pallas_src>
import jax
import jax.numpy as jnp
from jax.experimental import pallas as pl
from jax.experimental.pallas import tpu as pltpu


def _round_up(x, m):
    return -(-x // m) * m


def _device_kind():
    try:
        return jax.devices()[0].device_kind.lower()
    except Exception:
        return ""


def _default_batch_tile():
    # 256 fills the 2x256 MXU M dim on v6e/v7x; v5e's 4x128 MXU prefers 128.
    return 128 if "v5" in _device_kind() else 256


def _is_v7x():
    k = _device_kind()
    return ("v7" in k) or ("7x" in k)


def lstm_encoder_kernel(emb_ref, wih_ref, b_ref, whh_ref, wlin_ref, blin_ref,
                        out_ref, gx_ref, seq_ref):
    # Transposed layout everywhere: rows = hidden/gate channels (sublanes),
    # columns = batch lanes.
    E, TTB = emb_ref.shape                 # (E, T*TB)
    H = whh_ref.shape[1] // 2              # hidden size
    TB = out_ref.shape[1]                  # batch tile (lanes)
    T = TTB // TB
    H3, H4 = 3 * H, 4 * H

    # ---- fused input projection, both directions, all timesteps: ONE matmul ----
    # Row order: [fwd i,f,o,g | bwd i,f,o,g]; column order: t*TB + lane.
    # TODO(synk): store this slab in bf16 on v5e to halve vst traffic.
    gx_ref[...] = (jnp.dot(wih_ref[...], emb_ref[...],
                           preferred_element_type=jnp.float32)
                   + b_ref[...])                              # (8H, T*TB) f32

    whh = whh_ref[...]                     # (8H, 2H) bf16, block-diagonal, resident

    h = jnp.zeros((2 * H, TB), jnp.bfloat16)                  # [h_f ; h_b]
    c_f = jnp.zeros((H, TB), jnp.float32)
    c_b = jnp.zeros((H, TB), jnp.float32)

    # Interleaved bidirectional recurrence: forward handles t = s, backward handles
    # t = T-1-s.  One fused (8H, 2H) @ (2H, TB) recurrent matmul per step.
    # T is small & static -> unrolled Python loop.
    # TODO(synk): switch to lax.fori_loop carrying (h, c_f, c_b) once T >~ 16.
    for s in range(T):
        tb = T - 1 - s
        gx_f = gx_ref[0:H4, s * TB:(s + 1) * TB]              # (4H, TB) f32
        gx_b = gx_ref[H4:2 * H4, tb * TB:(tb + 1) * TB]

        rec = jnp.dot(whh, h, preferred_element_type=jnp.float32)   # (8H, TB) f32
        pre_f = rec[0:H4] + gx_f
        pre_b = rec[H4:2 * H4] + gx_b

        sg_f = jax.nn.sigmoid(pre_f[0:H3])   # [i, f, o] in one contiguous EUP pass
        sg_b = jax.nn.sigmoid(pre_b[0:H3])
        g_f = jnp.tanh(pre_f[H3:H4])         # g gate only
        g_b = jnp.tanh(pre_b[H3:H4])

        c_f = sg_f[H:2 * H] * c_f + sg_f[0:H] * g_f
        c_b = sg_b[H:2 * H] * c_b + sg_b[0:H] * g_b
        h_f = (sg_f[2 * H:H3] * jnp.tanh(c_f)).astype(jnp.bfloat16)
        h_b = (sg_b[2 * H:H3] * jnp.tanh(c_b)).astype(jnp.bfloat16)
        h = jnp.concatenate([h_f, h_b], axis=0)               # (2H, TB) bf16

        # torch.flatten order on (B, T, 2H): flat index = t*2H + dir*H + h
        seq_ref[s * 2 * H: s * 2 * H + H, :] = h_f
        seq_ref[tb * 2 * H + H: (tb + 1) * 2 * H, :] = h_b

    # ---- deferred flatten + linear: ONE (Fpad, T*2H) @ (T*2H, TB) matmul ----
    # Dropout is identity in eval/inference mode -> no-op.
    out_ref[...] = (jnp.dot(wlin_ref[...], seq_ref[...],
                            preferred_element_type=jnp.float32)
                    + blin_ref[...])


def init_params(key, vocab_size, emb_dim, feature_dim, seq_len, hidden_dim):
    """PyTorch-layout parameters (what nn.Embedding / nn.LSTM / nn.Linear hold)."""
    flat_dim = hidden_dim * 2 * seq_len
    ks = jax.random.split(key, 11)
    s_lstm = 1.0 / (hidden_dim ** 0.5)
    s_lin = 1.0 / (flat_dim ** 0.5)

    def u(k, shape, scale):
        return jax.random.uniform(k, shape, jnp.float32, -scale, scale)

    emb = jax.random.normal(ks[0], (vocab_size, emb_dim), jnp.float32)
    emb = emb.at[0].set(0.0)  # padding_idx=0 row is zero in nn.Embedding
    return dict(
        emb=emb,
        wih_f=u(ks[1], (4 * hidden_dim, emb_dim), s_lstm),
        whh_f=u(ks[2], (4 * hidden_dim, hidden_dim), s_lstm),
        bih_f=u(ks[3], (4 * hidden_dim,), s_lstm),
        bhh_f=u(ks[4], (4 * hidden_dim,), s_lstm),
        wih_b=u(ks[5], (4 * hidden_dim, emb_dim), s_lstm),
        whh_b=u(ks[6], (4 * hidden_dim, hidden_dim), s_lstm),
        bih_b=u(ks[7], (4 * hidden_dim,), s_lstm),
        bhh_b=u(ks[8], (4 * hidden_dim,), s_lstm),
        wlin=u(ks[9], (feature_dim, flat_dim), s_lin),
        blin=u(ks[10], (feature_dim,), s_lin),
    )


def prepare_params(params):
    """One-time weight folding: gate reorder [i,f,g,o]->[i,f,o,g], fwd/bwd fusion
    (block-diagonal recurrent weight), pre-summed biases, lane/sublane-friendly
    orientations, output-row padding to 128, bf16 casts for every MXU operand."""
    H4 = params["whh_f"].shape[0]
    H = H4 // 4
    feature_dim, flat_dim = params["wlin"].shape
    fpad = _round_up(max(feature_dim, 1), 128)

    def reorder(w):   # PyTorch [i, f, g, o] -> [i, f, o, g] along dim 0
        return jnp.concatenate([w[:2 * H], w[3 * H:4 * H], w[2 * H:3 * H]], axis=0)

    wih_fused = jnp.concatenate([reorder(params["wih_f"]),
                                 reorder(params["wih_b"])], axis=0)          # (8H, E)
    b_fused = jnp.concatenate([reorder(params["bih_f"] + params["bhh_f"]),
                               reorder(params["bih_b"] + params["bhh_b"])])[:, None]

    whh_f = reorder(params["whh_f"])                                          # (4H, H)
    whh_b = reorder(params["whh_b"])
    z = jnp.zeros((H4, H), jnp.float32)
    whh_fused = jnp.concatenate(
        [jnp.concatenate([whh_f, z], axis=1),
         jnp.concatenate([z, whh_b], axis=1)], axis=0)                        # (8H, 2H)

    wlin_p = jnp.zeros((fpad, flat_dim), jnp.float32).at[:feature_dim].set(params["wlin"])
    blin_p = jnp.zeros((fpad, 1), jnp.float32).at[:feature_dim, 0].set(params["blin"])

    return dict(
        emb=params["emb"],                              # f32 table; gather then cast
        wih=wih_fused.astype(jnp.bfloat16),             # (8H, E)   rows [fwd|bwd]
        b=b_fused.astype(jnp.float32),                  # (8H, 1)   bih+bhh pre-summed
        whh=whh_fused.astype(jnp.bfloat16),             # (8H, 2H)  block-diagonal
        wlin=wlin_p.astype(jnp.bfloat16),               # (Fpad, T*2H)
        blin=blin_p,                                    # (Fpad, 1) f32
        feature_dim=int(feature_dim),
        hidden_dim=int(H),
    )


def lstm_encoder_forward(x, prep, *, batch_tile=None):
    """x: (B, T) int32 token ids -> (B, feature_dim) f32."""
    emb_tbl = prep["emb"]
    B, T = x.shape
    E = emb_tbl.shape[1]
    H = prep["hidden_dim"]
    Fpad = prep["wlin"].shape[0]
    feature_dim = prep["feature_dim"]

    if batch_tile is None:
        batch_tile = _default_batch_tile()
    tile = min(batch_tile, _round_up(B, 128))       # lane-dense multiple of 128
    b_pad = _round_up(B, tile)
    # v7x has 2 TensorCores: if everything fits in one 256-wide step, split into
    # two 128-wide steps so both cores get work under dimension_semantics=parallel.
    if _is_v7x() and (b_pad // tile) == 1 and tile > 128:
        tile = 128
        b_pad = _round_up(B, tile)
    n_tiles = b_pad // tile

    # Glue: embedding gather (padding rows use token 0 -> zero embedding row).
    # TODO(synk): fuse the gather in-kernel via scalar-prefetched ids + DMA once E/B grow.
    x_pad = jnp.pad(x, ((0, b_pad - B), (0, 0)))
    emb = jnp.take(emb_tbl, x_pad, axis=0).astype(jnp.bfloat16)       # (B_pad, T, E)
    # Per-tile slabs in the transposed layout: emb_slab[i, e, t*tile + p].
    emb_slab = (emb.reshape(n_tiles, tile, T, E)
                   .transpose(0, 3, 2, 1)
                   .reshape(n_tiles, E, T * tile))

    out_padded = pl.pallas_call(
        lstm_encoder_kernel,
        out_shape=jax.ShapeDtypeStruct((Fpad, b_pad), jnp.float32),
        grid_spec=pltpu.PrefetchScalarGridSpec(
            num_scalar_prefetch=0,
            grid=(n_tiles,),
            in_specs=[
                pl.BlockSpec((None, E, T * tile), lambda b: (b, 0, 0)),   # emb slab
                pl.BlockSpec((8 * H, E), lambda b: (0, 0)),               # wih fused
                pl.BlockSpec((8 * H, 1), lambda b: (0, 0)),               # bias fused
                pl.BlockSpec((8 * H, 2 * H), lambda b: (0, 0)),           # whh block-diag
                pl.BlockSpec((Fpad, T * 2 * H), lambda b: (0, 0)),        # wlin (padded)
                pl.BlockSpec((Fpad, 1), lambda b: (0, 0)),                # blin (padded)
            ],
            out_specs=pl.BlockSpec((Fpad, tile), lambda b: (0, b)),
            scratch_shapes=[
                pltpu.VMEM((8 * H, T * tile), jnp.float32),    # gx slab
                pltpu.VMEM((T * 2 * H, tile), jnp.bfloat16),   # bidir series (flatten order)
            ],
        ),
        compiler_params=pltpu.CompilerParams(
            dimension_semantics=("parallel",)),
    )(emb_slab, prep["wih"], prep["b"], prep["whh"], prep["wlin"], prep["blin"])

    return out_padded[:feature_dim, :B].T


def lstm_encoder_reference(x, params):
    """Pure-JAX f32 reference matching the PyTorch module (eval mode)."""
    emb = params["emb"][x]                               # (B, T, E)
    B, T, _ = emb.shape
    H = params["whh_f"].shape[1]

    def run(emb_seq, wih, whh, bih, bhh):                # emb_seq: (T, B, E)
        def step(carry, e_t):
            h, c = carry
            gates = e_t @ wih.T + h @ whh.T + bih + bhh  # (B, 4H) [i, f, g, o]
            i = jax.nn.sigmoid(gates[:, 0:H])
            f = jax.nn.sigmoid(gates[:, H:2 * H])
            g = jnp.tanh(gates[:, 2 * H:3 * H])
            o = jax.nn.sigmoid(gates[:, 3 * H:4 * H])
            c = f * c + i * g
            h = o * jnp.tanh(c)
            return (h, c), h
        init = (jnp.zeros((B, H), jnp.float32), jnp.zeros((B, H), jnp.float32))
        _, hs = jax.lax.scan(step, init, emb_seq)
        return hs                                        # (T, B, H)

    e_tm = jnp.transpose(emb, (1, 0, 2))
    h_f = run(e_tm, params["wih_f"], params["whh_f"], params["bih_f"], params["bhh_f"])
    h_b = run(e_tm[::-1], params["wih_b"], params["whh_b"],
              params["bih_b"], params["bhh_b"])[::-1]
    series = jnp.concatenate([h_f, h_b], axis=-1)                     # (T, B, 2H)
    flat = jnp.transpose(series, (1, 0, 2)).reshape(B, -1)            # torch flatten order
    return flat @ params["wlin"].T + params["blin"]


if __name__ == "__main__":
    vocab_size, emb_dim, feature_dim, seq_len, hidden_dim = 50, 16, 16, 8, 32
    batch = 2

    key = jax.random.PRNGKey(0)
    k_params, k_x = jax.random.split(key)
    params = init_params(k_params, vocab_size, emb_dim, feature_dim,
                         seq_len, hidden_dim)
    prep = prepare_params(params)          # one-time weight folding / padding / bf16
    x = jax.random.randint(k_x, (batch, seq_len), 0, vocab_size, dtype=jnp.int32)

    out = lstm_encoder_forward(x, prep)
    jax.block_until_ready(out)
    assert out.shape == (batch, feature_dim)
    assert bool(jnp.all(jnp.isfinite(out)))

    # bf16 MXU operands -> small drift vs the f32 reference; generous tolerance.
    ref = lstm_encoder_reference(x, params)
    err = float(jnp.max(jnp.abs(out - ref)))
    assert err < 7.5e-2, f"kernel vs f32 reference mismatch: max abs err = {err}"
    print("KERNEL_OK")
</pallas_src>

<mosaic_0001>
module attributes {stable_mosaic.version = 11 : i64} {
  func.func @lstm_encoder_kernel(%arg0: i32, %arg1: memref<1x16x1024xbf16, #tpu.memory_space<vmem>>, %arg2: memref<256x16xbf16, #tpu.memory_space<vmem>>, %arg3: memref<256x1xf32, #tpu.memory_space<vmem>>, %arg4: memref<256x64xbf16, #tpu.memory_space<vmem>>, %arg5: memref<128x512xbf16, #tpu.memory_space<vmem>>, %arg6: memref<128x1xf32, #tpu.memory_space<vmem>>, %arg7: memref<128x128xf32, #tpu.memory_space<vmem>>, %arg8: memref<256x1024xf32, #tpu.memory_space<vmem>>, %arg9: memref<512x128xbf16, #tpu.memory_space<vmem>>) attributes {dimension_semantics = [#tpu.dimension_semantics<parallel>], iteration_bounds = array<i64: 1>, scalar_prefetch = 0 : i64, scratch_operands = 2 : i64, tpu.core_type = #tpu.core_type<tc>, window_params = [{transform_indices = @transform_0, window_bounds = array<i64: 1, 16, 1024>}, {pipeline_mode = #tpu.pipeline_mode<synchronous>, transform_indices = @transform_1, window_bounds = array<i64: 256, 16>}, {pipeline_mode = #tpu.pipeline_mode<synchronous>, transform_indices = @transform_2, window_bounds = array<i64: 256, 1>}, {pipeline_mode = #tpu.pipeline_mode<synchronous>, transform_indices = @transform_3, window_bounds = array<i64: 256, 64>}, {pipeline_mode = #tpu.pipeline_mode<synchronous>, transform_indices = @transform_4, window_bounds = array<i64: 128, 512>}, {pipeline_mode = #tpu.pipeline_mode<synchronous>, transform_indices = @transform_5, window_bounds = array<i64: 128, 1>}, {transform_indices = @transform_6, window_bounds = array<i64: 128, 128>}]} {
    %c0 = arith.constant 0 : index
    %c0_0 = arith.constant 0 : index
    %0 = vector.load %arg2[%c0, %c0_0] : memref<256x16xbf16, #tpu.memory_space<vmem>>, vector<256x16xbf16>
    %c0_1 = arith.constant 0 : index
    %c0_2 = arith.constant 0 : index
    %c0_3 = arith.constant 0 : index
    %1 = vector.load %arg1[%c0_1, %c0_2, %c0_3] : memref<1x16x1024xbf16, #tpu.memory_space<vmem>>, vector<1x16x1024xbf16>
    %2 = vector.shape_cast %1 : vector<1x16x1024xbf16> to vector<16x1024xbf16>
    %cst = arith.constant dense<0.000000e+00> : vector<256x1024xf32>
    %3 = tpu.matmul %0, %2, %cst {dimension_numbers = #tpu.dot_dimension_numbers<[1], [0], [0], [1], [0, 0, 1, 1], [], []>} : vector<256x16xbf16>, vector<16x1024xbf16>, vector<256x1024xf32> -> vector<256x1024xf32>
    %c0_4 = arith.constant 0 : index
    %c0_5 = arith.constant 0 : index
    %4 = vector.load %arg3[%c0_4, %c0_5] : memref<256x1xf32, #tpu.memory_space<vmem>>, vector<256x1xf32>
    %5 = vector.broadcast %4 : vector<256x1xf32> to vector<256x1024xf32>
    %6 = arith.addf %3, %5 : vector<256x1024xf32>
    %c0_6 = arith.constant 0 : index
    %c0_7 = arith.constant 0 : index
    %7 = vector.load %arg8[%c0_6, %c0_7] : memref<256x1024xf32, #tpu.memory_space<vmem>>, vector<256x1024xf32>
    tpu.vector_store %arg8[%c0_6, %c0_7], %6 {strides = array<i32>} : memref<256x1024xf32, #tpu.memory_space<vmem>>, vector<256x1024xf32>,
    %c0_8 = arith.constant 0 : index
    %c0_9 = arith.constant 0 : index
    %8 = vector.load %arg4[%c0_8, %c0_9] : memref<256x64xbf16, #tpu.memory_space<vmem>>, vector<256x64xbf16>
    %cst_10 = arith.constant 0.000000e+00 : bf16
    %9 = vector.broadcast %cst_10 : bf16 to vector<64x128xbf16>
    %cst_11 = arith.constant 0.000000e+00 : f32
    %10 = vector.broadcast %cst_11 : f32 to vector<32x128xf32>
    %cst_12 = arith.constant 0.000000e+00 : f32
    %11 = vector.broadcast %cst_12 : f32 to vector<32x128xf32>
    %c0_13 = arith.constant 0 : index
    %c0_14 = arith.constant 0 : index
    %12 = vector.load %arg8[%c0_13, %c0_14] : memref<256x1024xf32, #tpu.memory_space<vmem>>, vector<128x128xf32>
    %c128 = arith.constant 128 : index
    %c896 = arith.constant 896 : index
    %13 = vector.load %arg8[%c128, %c896] : memref<256x1024xf32, #tpu.memory_space<vmem>>, vector<128x128xf32>
    %cst_15 = arith.constant dense<0.000000e+00> : vector<256x128xf32>
    %14 = tpu.matmul %8, %9, %cst_15 {dimension_numbers = #tpu.dot_dimension_numbers<[1], [0], [0], [1], [0, 0, 1, 1], [], []>} : vector<256x64xbf16>, vector<64x128xbf16>, vector<256x128xf32> -> vector<256x128xf32>
    %15 = vector.extract_strided_slice %14 {offsets = [0, 0], sizes = [128, 128], strides = [1, 1]} : vector<256x128xf32> to vector<128x128xf32>
    %16 = arith.addf %15, %12 : vector<128x128xf32>
    %17 = vector.extract_strided_slice %14 {offsets = [128, 0], sizes = [128, 128], strides = [1, 1]} : vector<256x128xf32> to vector<128x128xf32>
    %18 = arith.addf %17, %13 : vector<128x128xf32>
    %19 = vector.extract_strided_slice %16 {offsets = [0, 0], sizes = [96, 128], strides = [1, 1]} : vector<128x128xf32> to vector<96x128xf32>
    %20 = arith.negf %19 : vector<96x128xf32>
    %21 = math.exp %20 : vector<96x128xf32>
    %cst_16 = arith.constant 1.000000e+00 : f32
    %22 = vector.broadcast %cst_16 : f32 to vector<96x128xf32>
    %23 = arith.addf %22, %21 : vector<96x128xf32>
    %24 = arith.divf %22, %23 : vector<96x128xf32>
    %25 = vector.extract_strided_slice %18 {offsets = [0, 0], sizes = [96, 128], strides = [1, 1]} : vector<128x128xf32> to vector<96x128xf32>
    %26 = arith.negf %25 : vector<96x128xf32>
    %27 = math.exp %26 : vector<96x128xf32>
    %cst_17 = arith.constant 1.000000e+00 : f32
    %28 = vector.broadcast %cst_17 : f32 to vector<96x128xf32>
    %29 = arith.addf %28, %27 : vector<96x128xf32>
    %30 = arith.divf %28, %29 : vector<96x128xf32>
    %31 = vector.extract_strided_slice %16 {offsets = [96, 0], sizes = [32, 128], strides = [1, 1]} : vector<128x128xf32> to vector<32x128xf32>
    %32 = math.tanh %31 : vector<32x128xf32>
    %33 = vector.extract_strided_slice %18 {offsets = [96, 0], sizes = [32, 128], strides = [1, 1]} : vector<128x128xf32> to vector<32x128xf32>
    %34 = math.tanh %33 : vector<32x128xf32>
    %35 = vector.extract_strided_slice %24 {offsets = [32, 0], sizes = [32, 128], strides = [1, 1]} : vector<96x128xf32> to vector<32x128xf32>
    %36 = arith.mulf %35, %10 : vector<32x128xf32>
    %37 = vector.extract_strided_slice %24 {offsets = [0, 0], sizes = [32, 128], strides = [1, 1]} : vector<96x128xf32> to vector<32x128xf32>
    %38 = arith.mulf %37, %32 : vector<32x128xf32>
    %39 = arith.addf %36, %38 : vector<32x128xf32>
    %40 = vector.extract_strided_slice %30 {offsets = [32, 0], sizes = [32, 128], strides = [1, 1]} : vector<96x128xf32> to vector<32x128xf32>
    %41 = arith.mulf %40, %11 : vector<32x128xf32>
    %42 = vector.extract_strided_slice %30 {offsets = [0, 0], sizes = [32, 128], strides = [1, 1]} : vector<96x128xf32> to vector<32x128xf32>
    %43 = arith.mulf %42, %34 : vector<32x128xf32>
    %44 = arith.addf %41, %43 : vector<32x128xf32>
    %45 = vector.extract_strided_slice %24 {offsets = [64, 0], sizes = [32, 128], strides = [1, 1]} : vector<96x128xf32> to vector<32x128xf32>
    %46 = math.tanh %39 : vector<32x128xf32>
    %47 = arith.mulf %45, %46 : vector<32x128xf32>
    %48 = arith.truncf %47 : vector<32x128xf32> to vector<32x128xbf16>
    %49 = vector.extract_strided_slice %30 {offsets = [64, 0], sizes = [32, 128], strides = [1, 1]} : vector<96x128xf32> to vector<32x128xf32>
    %50 = math.tanh %44 : vector<32x128xf32>
    %51 = arith.mulf %49, %50 : vector<32x128xf32>
    %52 = arith.truncf %51 : vector<32x128xf32> to vector<32x128xbf16>
    %53 = tpu.concatenate %48, %52 in 0 : vector<32x128xbf16>, vector<32x128xbf16> -> vector<64x128xbf16>
    %c0_18 = arith.constant 0 : index
    %c0_19 = arith.constant 0 : index
    %54 = vector.load %arg9[%c0_18, %c0_19] : memref<512x128xbf16, #tpu.memory_space<vmem>>, vector<32x128xbf16>
    tpu.vector_store %arg9[%c0_18, %c0_19], %48 {strides = array<i32>} : memref<512x128xbf16, #tpu.memory_space<vmem>>, vector<32x128xbf16>,
    %c480 = arith.constant 480 : index
    %c0_20 = arith.constant 0 : index
    %55 = vector.load %arg9[%c480, %c0_20] : memref<512x128xbf16, #tpu.memory_space<vmem>>, vector<32x128xbf16>
    tpu.vector_store %arg9[%c480, %c0_20], %52 {strides = array<i32>} : memref<512x128xbf16, #tpu.memory_space<vmem>>, vector<32x128xbf16>,
    %c0_21 = arith.constant 0 : index
    %c128_22 = arith.constant 128 : index
    %56 = vector.load %arg8[%c0_21, %c128_22] : memref<256x1024xf32, #tpu.memory_space<vmem>>, vector<128x128xf32>
    %c128_23 = arith.constant 128 : index
    %c768 = arith.constant 768 : index
    %57 = vector.load %arg8[%c128_23, %c768] : memref<256x1024xf32, #tpu.memory_space<vmem>>, vector<128x128xf32>
    %cst_24 = arith.constant dense<0.000000e+00> : vector<256x128xf32>
    %58 = tpu.matmul %8, %53, %cst_24 {dimension_numbers = #tpu.dot_dimension_numbers<[1], [0], [0], [1], [0, 0, 1, 1], [], []>} : vector<256x64xbf16>, vector<64x128xbf16>, vector<256x128xf32> -> vector<256x128xf32>
    %59 = vector.extract_strided_slice %58 {offsets = [0, 0], sizes = [128, 128], strides = [1, 1]} : vector<256x128xf32> to vector<128x128xf32>
    %60 = arith.addf %59, %56 : vector<128x128xf32>
    %61 = vector.extract_strided_slice %58 {offsets = [128, 0], sizes = [128, 128], strides = [1, 1]} : vector<256x128xf32> to vector<128x128xf32>
    %62 = arith.addf %61, %57 : vector<128x128xf32>
    %63 = vector.extract_strided_slice %60 {offsets = [0, 0], sizes = [96, 128], strides = [1, 1]} : vector<128x128xf32> to vector<96x128xf32>
    %64 = arith.negf %63 : vector<96x128xf32>
    %65 = math.exp %64 : vector<96x128xf32>
    %cst_25 = arith.constant 1.000000e+00 : f32
    %66 = vector.broadcast %cst_25 : f32 to vector<96x128xf32>
    %67 = arith.addf %66, %65 : vector<96x128xf32>
    %68 = arith.divf %66, %67 : vector<96x128xf32>
    %69 = vector.extract_strided_slice %62 {offsets = [0, 0], sizes = [96, 128], strides = [1, 1]} : vector<128x128xf32> to vector<96x128xf32>
    %70 = arith.negf %69 : vector<96x128xf32>
    %71 = math.exp %70 : vector<96x128xf32>
    %cst_26 = arith.constant 1.000000e+00 : f32
    %72 = vector.broadcast %cst_26 : f32 to vector<96x128xf32>
    %73 = arith.addf %72, %71 : vector<96x128xf32>
    %74 = arith.divf %72, %73 : vector<96x128xf32>
    %75 = vector.extract_strided_slice %60 {offsets = [96, 0], sizes = [32, 128], strides = [1, 1]} : vector<128x128xf32> to vector<32x128xf32>
    %76 = math.tanh %75 : vector<32x128xf32>
    %77 = vector.extract_strided_slice %62 {offsets = [96, 0], sizes = [32, 128], strides = [1, 1]} : vector<128x128xf32> to vector<32x128xf32>
    %78 = math.tanh %77 : vector<32x128xf32>
    %79 = vector.extract_strided_slice %68 {offsets = [32, 0], sizes = [32, 128], strides = [1, 1]} : vector<96x128xf32> to vector<32x128xf32>
    %80 = arith.mulf %79, %39 : vector<32x128xf32>
    %81 = vector.extract_strided_slice %68 {offsets = [0, 0], sizes = [32, 128], strides = [1, 1]} : vector<96x128xf32> to vector<32x128xf32>
    %82 = arith.mulf %81, %76 : vector<32x128xf32>
    %83 = arith.addf %80, %82 : vector<32x128xf32>
    %84 = vector.extract_strided_slice %74 {offsets = [32, 0], sizes = [32, 128], strides = [1, 1]} : vector<96x128xf32> to vector<32x128xf32>
    %85 = arith.mulf %84, %44 : vector<32x128xf32>
    %86 = vector.extract_strided_slice %74 {offsets = [0, 0], sizes = [32, 128], strides = [1, 1]} : vector<96x128xf32> to vector<32x128xf32>
    %87 = arith.mulf %86, %78 : vector<32x128xf32>
    %88 = arith.addf %85, %87 : vector<32x128xf32>
    %89 = vector.extract_strided_slice %68 {offsets = [64, 0], sizes = [32, 128], strides = [1, 1]} : vector<96x128xf32> to vector<32x128xf32>
    %90 = math.tanh %83 : vector<32x128xf32>
    %91 = arith.mulf %89, %90 : vector<32x128xf32>
    %92 = arith.truncf %91 : vector<32x128xf32> to vector<32x128xbf16>
    %93 = vector.extract_strided_slice %74 {offsets = [64, 0], sizes = [32, 128], strides = [1, 1]} : vector<96x128xf32> to vector<32x128xf32>
    %94 = math.tanh %88 : vector<32x128xf32>
    %95 = arith.mulf %93, %94 : vector<32x128xf32>
    %96 = arith.truncf %95 : vector<32x128xf32> to vector<32x128xbf16>
    %97 = tpu.concatenate %92, %96 in 0 : vector<32x128xbf16>, vector<32x128xbf16> -> vector<64x128xbf16>
    %c64 = arith.constant 64 : index
    %c0_27 = arith.constant 0 : index
    %98 = vector.load %arg9[%c64, %c0_27] : memref<512x128xbf16, #tpu.memory_space<vmem>>, vector<32x128xbf16>
    tpu.vector_store %arg9[%c64, %c0_27], %92 {strides = array<i32>} : memref<512x128xbf16, #tpu.memory_space<vmem>>, vector<32x128xbf16>,
    %c416 = arith.constant 416 : index
    %c0_28 = arith.constant 0 : index
    %99 = vector.load %arg9[%c416, %c0_28] : memref<512x128xbf16, #tpu.memory_space<vmem>>, vector<32x128xbf16>
    tpu.vector_store %arg9[%c416, %c0_28], %96 {strides = array<i32>} : memref<512x128xbf16, #tpu.memory_space<vmem>>, vector<32x128xbf16>,
    %c0_29 = arith.constant 0 : index
    %c256 = arith.constant 256 : index
    %100 = vector.load %arg8[%c0_29, %c256] : memref<256x1024xf32, #tpu.memory_space<vmem>>, vector<128x128xf32>
    %c128_30 = arith.constant 128 : index
    %c640 = arith.constant 640 : index
    %101 = vector.load %arg8[%c128_30, %c640] : memref<256x1024xf32, #tpu.memory_space<vmem>>, vector<128x128xf32>
    %cst_31 = arith.constant dense<0.000000e+00> : vector<256x128xf32>
    %102 = tpu.matmul %8, %97, %cst_31 {dimension_numbers = #tpu.dot_dimension_numbers<[1], [0], [0], [1], [0, 0, 1, 1], [], []>} : vector<256x64xbf16>, vector<64x128xbf16>, vector<256x128xf32> -> vector<256x128xf32>
    %103 = vector.extract_strided_slice %102 {offsets = [0, 0], sizes = [128, 128], strides = [1, 1]} : vector<256x128xf32> to vector<128x128xf32>
    %104 = arith.addf %103, %100 : vector<128x128xf32>
    %105 = vector.extract_strided_slice %102 {offsets = [128, 0], sizes = [128, 128], strides = [1, 1]} : vector<256x128xf32> to vector<128x128xf32>
    %106 = arith.addf %105, %101 : vector<128x128xf32>
    %107 = vector.extract_strided_slice %104 {offsets = [0, 0], sizes = [96, 128], strides = [1, 1]} : vector<128x128xf32> to vector<96x128xf32>
    %108 = arith.negf %107 : vector<96x128xf32>
    %109 = math.exp %108 : vector<96x128xf32>
    %cst_32 = arith.constant 1.000000e+00 : f32
    %110 = vector.broadcast %cst_32 : f32 to vector<96x128xf32>
    %111 = arith.addf %110, %109 : vector<96x128xf32>
    %112 = arith.divf %110, %111 : vector<96x128xf32>
    %113 = vector.extract_strided_slice %106 {offsets = [0, 0], sizes = [96, 128], strides = [1, 1]} : vector<128x128xf32> to vector<96x128xf32>
    %114 = arith.negf %113 : vector<96x128xf32>
    %115 = math.exp %114 : vector<96x128xf32>
    %cst_33 = arith.constant 1.000000e+00 : f32
    %116 = vector.broadcast %cst_33 : f32 to vector<96x128xf32>
    %117 = arith.addf %116, %115 : vector<96x128xf32>
    %118 = arith.divf %116, %117 : vector<96x128xf32>
    %119 = vector.extract_strided_slice %104 {offsets = [96, 0], sizes = [32, 128], strides = [1, 1]} : vector<128x128xf32> to vector<32x128xf32>
    %120 = math.tanh %119 : vector<32x128xf32>
    %121 = vector.extract_strided_slice %106 {offsets = [96, 0], sizes = [32, 128], strides = [1, 1]} : vector<128x128xf32> to vector<32x128xf32>
    %122 = math.tanh %121 : vector<32x128xf32>
    %123 = vector.extract_strided_slice %112 {offsets = [32, 0], sizes = [32, 128], strides = [1, 1]} : vector<96x128xf32> to vector<32x128xf32>
    %124 = arith.mulf %123, %83 : vector<32x128xf32>
    %125 = vector.extract_strided_slice %112 {offsets = [0, 0], sizes = [32, 128], strides = [1, 1]} : vector<96x128xf32> to vector<32x128xf32>
    %126 = arith.mulf %125, %120 : vector<32x128xf32>
    %127 = arith.addf %124, %126 : vector<32x128xf32>
    %128 = vector.extract_strided_slice %118 {offsets = [32, 0], sizes = [32, 128], strides = [1, 1]} : vector<96x128xf32> to vector<32x128xf32>
    %129 = arith.mulf %128, %88 : vector<32x128xf32>
    %130 = vector.extract_strided_slice %118 {offsets = [0, 0], sizes = [32, 128], strides = [1, 1]} : vector<96x128xf32> to vector<32x128xf32>
    %131 = arith.mulf %130, %122 : vector<32x128xf32>
    %132 = arith.addf %129, %131 : vector<32x128xf32>
    %133 = vector.extract_strided_slice %112 {offsets = [64, 0], sizes = [32, 128], strides = [1, 1]} : vector<96x128xf32> to vector<32x128xf32>
    %134 = math.tanh %127 : vector<32x128xf32>
    %135 = arith.mulf %133, %134 : vector<32x128xf32>
    %136 = arith.truncf %135 : vector<32x128xf32> to vector<32x128xbf16>
    %137 = vector.extract_strided_slice %118 {offsets = [64, 0], sizes = [32, 128], strides = [1, 1]} : vector<96x128xf32> to vector<32x128xf32>
    %138 = math.tanh %132 : vector<32x128xf32>
    %139 = arith.mulf %137, %138 : vector<32x128xf32>
    %140 = arith.truncf %139 : vector<32x128xf32> to vector<32x128xbf16>
    %141 = tpu.concatenate %136, %140 in 0 : vector<32x128xbf16>, vector<32x128xbf16> -> vector<64x128xbf16>
    %c128_34 = arith.constant 128 : index
    %c0_35 = arith.constant 0 : index
    %142 = vector.load %arg9[%c128_34, %c0_35] : memref<512x128xbf16, #tpu.memory_space<vmem>>, vector<32x128xbf16>
    tpu.vector_store %arg9[%c128_34, %c0_35], %136 {strides = array<i32>} : memref<512x128xbf16, #tpu.memory_space<vmem>>, vector<32x128xbf16>,
    %c352 = arith.constant 352 : index
    %c0_36 = arith.constant 0 : index
    %143 = vector.load %arg9[%c352, %c0_36] : memref<512x128xbf16, #tpu.memory_space<vmem>>, vector<32x128xbf16>
    tpu.vector_store %arg9[%c352, %c0_36], %140 {strides = array<i32>} : memref<512x128xbf16, #tpu.memory_space<vmem>>, vector<32x128xbf16>,
    %c0_37 = arith.constant 0 : index
    %c384 = arith.constant 384 : index
    %144 = vector.load %arg8[%c0_37, %c384] : memref<256x1024xf32, #tpu.memory_space<vmem>>, vector<128x128xf32>
    %c128_38 = arith.constant 128 : index
    %c512 = arith.constant 512 : index
    %145 = vector.load %arg8[%c128_38, %c512] : memref<256x1024xf32, #tpu.memory_space<vmem>>, vector<128x128xf32>
    %cst_39 = arith.constant dense<0.000000e+00> : vector<256x128xf32>
    %146 = tpu.matmul %8, %141, %cst_39 {dimension_numbers = #tpu.dot_dimension_numbers<[1], [0], [0], [1], [0, 0, 1, 1], [], []>} : vector<256x64xbf16>, vector<64x128xbf16>, vector<256x128xf32> -> vector<256x128xf32>
    %147 = vector.extract_strided_slice %146 {offsets = [0, 0], sizes = [128, 128], strides = [1, 1]} : vector<256x128xf32> to vector<128x128xf32>
    %148 = arith.addf %147, %144 : vector<128x128xf32>
    %149 = vector.extract_strided_slice %146 {offsets = [128, 0], sizes = [128, 128], strides = [1, 1]} : vector<256x128xf32> to vector<128x128xf32>
    %150 = arith.addf %149, %145 : vector<128x128xf32>
    %151 = vector.extract_strided_slice %148 {offsets = [0, 0], sizes = [96, 128], strides = [1, 1]} : vector<128x128xf32> to vector<96x128xf32>
    %152 = arith.negf %151 : vector<96x128xf32>
    %153 = math.exp %152 : vector<96x128xf32>
    %cst_40 = arith.constant 1.000000e+00 : f32
    %154 = vector.broadcast %cst_40 : f32 to vector<96x128xf32>
    %155 = arith.addf %154, %153 : vector<96x128xf32>
    %156 = arith.divf %154, %155 : vector<96x128xf32>
    %157 = vector.extract_strided_slice %150 {offsets = [0, 0], sizes = [96, 128], strides = [1, 1]} : vector<128x128xf32> to vector<96x128xf32>
    %158 = arith.negf %157 : vector<96x128xf32>
    %159 = math.exp %158 : vector<96x128xf32>
    %cst_41 = arith.constant 1.000000e+00 : f32
    %160 = vector.broadcast %cst_41 : f32 to vector<96x128xf32>
    %161 = arith.addf %160, %159 : vector<96x128xf32>
    %162 = arith.divf %160, %161 : vector<96x128xf32>
    %163 = vector.extract_strided_slice %148 {offsets = [96, 0], sizes = [32, 128], strides = [1, 1]} : vector<128x128xf32> to vector<32x128xf32>
    %164 = math.tanh %163 : vector<32x128xf32>
    %165 = vector.extract_strided_slice %150 {offsets = [96, 0], sizes = [32, 128], strides = [1, 1]} : vector<128x128xf32> to vector<32x128xf32>
    %166 = math.tanh %165 : vector<32x128xf32>
    %167 = vector.extract_strided_slice %156 {offsets = [32, 0], sizes = [32, 128], strides = [1, 1]} : vector<96x128xf32> to vector<32x128xf32>
    %168 = arith.mulf %167, %127 : vector<32x128xf32>
    %169 = vector.extract_strided_slice %156 {offsets = [0, 0], sizes = [32, 128], strides = [1, 1]} : vector<96x128xf32> to vector<32x128xf32>
    %170 = arith.mulf %169, %164 : vector<32x128xf32>
    %171 = arith.addf %168, %170 : vector<32x128xf32>
    %172 = vector.extract_strided_slice %162 {offsets = [32, 0], sizes = [32, 128], strides = [1, 1]} : vector<96x128xf32> to vector<32x128xf32>
    %173 = arith.mulf %172, %132 : vector<32x128xf32>
    %174 = vector.extract_strided_slice %162 {offsets = [0, 0], sizes = [32, 128], strides = [1, 1]} : vector<96x128xf32> to vector<32x128xf32>
    %175 = arith.mulf %174, %166 : vector<32x128xf32>
    %176 = arith.addf %173, %175 : vector<32x128xf32>
    %177 = vector.extract_strided_slice %156 {offsets = [64, 0], sizes = [32, 128], strides = [1, 1]} : vector<96x128xf32> to vector<32x128xf32>
    %178 = math.tanh %171 : vector<32x128xf32>
    %179 = arith.mulf %177, %178 : vector<32x128xf32>
    %180 = arith.truncf %179 : vector<32x128xf32> to vector<32x128xbf16>
    %181 = vector.extract_strided_slice %162 {offsets = [64, 0], sizes = [32, 128], strides = [1, 1]} : vector<96x128xf32> to vector<32x128xf32>
    %182 = math.tanh %176 : vector<32x128xf32>
    %183 = arith.mulf %181, %182 : vector<32x128xf32>
    %184 = arith.truncf %183 : vector<32x128xf32> to vector<32x128xbf16>
    %185 = tpu.concatenate %180, %184 in 0 : vector<32x128xbf16>, vector<32x128xbf16> -> vector<64x128xbf16>
    %c192 = arith.constant 192 : index
    %c0_42 = arith.constant 0 : index
    %186 = vector.load %arg9[%c192, %c0_42] : memref<512x128xbf16, #tpu.memory_space<vmem>>, vector<32x128xbf16>
    tpu.vector_store %arg9[%c192, %c0_42], %180 {strides = array<i32>} : memref<512x128xbf16, #tpu.memory_space<vmem>>, vector<32x128xbf16>,
    %c288 = arith.constant 288 : index
    %c0_43 = arith.constant 0 : index
    %187 = vector.load %arg9[%c288, %c0_43] : memref<512x128xbf16, #tpu.memory_space<vmem>>, vector<32x128xbf16>
    tpu.vector_store %arg9[%c288, %c0_43], %184 {strides = array<i32>} : memref<512x128xbf16, #tpu.memory_space<vmem>>, vector<32x128xbf16>,
    %c0_44 = arith.constant 0 : index
    %c512_45 = arith.constant 512 : index
    %188 = vector.load %arg8[%c0_44, %c512_45] : memref<256x1024xf32, #tpu.memory_space<vmem>>, vector<128x128xf32>
    %c128_46 = arith.constant 128 : index
    %c384_47 = arith.constant 384 : index
    %189 = vector.load %arg8[%c128_46, %c384_47] : memref<256x1024xf32, #tpu.memory_space<vmem>>, vector<128x128xf32>
    %cst_48 = arith.constant dense<0.000000e+00> : vector<256x128xf32>
    %190 = tpu.matmul %8, %185, %cst_48 {dimension_numbers = #tpu.dot_dimension_numbers<[1], [0], [0], [1], [0, 0, 1, 1], [], []>} : vector<256x64xbf16>, vector<64x128xbf16>, vector<256x128xf32> -> vector<256x128xf32>
    %191 = vector.extract_strided_slice %190 {offsets = [0, 0], sizes = [128, 128], strides = [1, 1]} : vector<256x128xf32> to vector<128x128xf32>
    %192 = arith.addf %191, %188 : vector<128x128xf32>
    %193 = vector.extract_strided_slice %190 {offsets = [128, 0], sizes = [128, 128], strides = [1, 1]} : vector<256x128xf32> to vector<128x128xf32>
    %194 = arith.addf %193, %189 : vector<128x128xf32>
    %195 = vector.extract_strided_slice %192 {offsets = [0, 0], sizes = [96, 128], strides = [1, 1]} : vector<128x128xf32> to vector<96x128xf32>
    %196 = arith.negf %195 : vector<96x128xf32>
    %197 = math.exp %196 : vector<96x128xf32>
    %cst_49 = arith.constant 1.000000e+00 : f32
    %198 = vector.broadcast %cst_49 : f32 to vector<96x128xf32>
    %199 = arith.addf %198, %197 : vector<96x128xf32>
    %200 = arith.divf %198, %199 : vector<96x128xf32>
    %201 = vector.extract_strided_slice %194 {offsets = [0, 0], sizes = [96, 128], strides = [1, 1]} : vector<128x128xf32> to vector<96x128xf32>
    %202 = arith.negf %201 : vector<96x128xf32>
    %203 = math.exp %202 : vector<96x128xf32>
    %cst_50 = arith.constant 1.000000e+00 : f32
    %204 = vector.broadcast %cst_50 : f32 to vector<96x128xf32>
    %205 = arith.addf %204, %203 : vector<96x128xf32>
    %206 = arith.divf %204, %205 : vector<96x128xf32>
    %207 = vector.extract_strided_slice %192 {offsets = [96, 0], sizes = [32, 128], strides = [1, 1]} : vector<128x128xf32> to vector<32x128xf32>
    %208 = math.tanh %207 : vector<32x128xf32>
    %209 = vector.extract_strided_slice %194 {offsets = [96, 0], sizes = [32, 128], strides = [1, 1]} : vector<128x128xf32> to vector<32x128xf32>
    %210 = math.tanh %209 : vector<32x128xf32>
    %211 = vector.extract_strided_slice %200 {offsets = [32, 0], sizes = [32, 128], strides = [1, 1]} : vector<96x128xf32> to vector<32x128xf32>
    %212 = arith.mulf %211, %171 : vector<32x128xf32>
    %213 = vector.extract_strided_slice %200 {offsets = [0, 0], sizes = [32, 128], strides = [1, 1]} : vector<96x128xf32> to vector<32x128xf32>
    %214 = arith.mulf %213, %208 : vector<32x128xf32>
    %215 = arith.addf %212, %214 : vector<32x128xf32>
    %216 = vector.extract_strided_slice %206 {offsets = [32, 0], sizes = [32, 128], strides = [1, 1]} : vector<96x128xf32> to vector<32x128xf32>
    %217 = arith.mulf %216, %176 : vector<32x128xf32>
    %218 = vector.extract_strided_slice %206 {offsets = [0, 0], sizes = [32, 128], strides = [1, 1]} : vector<96x128xf32> to vector<32x128xf32>
    %219 = arith.mulf %218, %210 : vector<32x128xf32>
    %220 = arith.addf %217, %219 : vector<32x128xf32>
    %221 = vector.extract_strided_slice %200 {offsets = [64, 0], sizes = [32, 128], strides = [1, 1]} : vector<96x128xf32> to vector<32x128xf32>
    %222 = math.tanh %215 : vector<32x128xf32>
    %223 = arith.mulf %221, %222 : vector<32x128xf32>
    %224 = arith.truncf %223 : vector<32x128xf32> to vector<32x128xbf16>
    %225 = vector.extract_strided_slice %206 {offsets = [64, 0], sizes = [32, 128], strides = [1, 1]} : vector<96x128xf32> to vector<32x128xf32>
    %226 = math.tanh %220 : vector<32x128xf32>
    %227 = arith.mulf %225, %226 : vector<32x128xf32>
    %228 = arith.truncf %227 : vector<32x128xf32> to vector<32x128xbf16>
    %229 = tpu.concatenate %224, %228 in 0 : vector<32x128xbf16>, vector<32x128xbf16> -> vector<64x128xbf16>
    %c256_51 = arith.constant 256 : index
    %c0_52 = arith.constant 0 : index
    %230 = vector.load %arg9[%c256_51, %c0_52] : memref<512x128xbf16, #tpu.memory_space<vmem>>, vector<32x128xbf16>
    tpu.vector_store %arg9[%c256_51, %c0_52], %224 {strides = array<i32>} : memref<512x128xbf16, #tpu.memory_space<vmem>>, vector<32x128xbf16>,
    %c224 = arith.constant 224 : index
    %c0_53 = arith.constant 0 : index
    %231 = vector.load %arg9[%c224, %c0_53] : memref<512x128xbf16, #tpu.memory_space<vmem>>, vector<32x128xbf16>
    tpu.vector_store %arg9[%c224, %c0_53], %228 {strides = array<i32>} : memref<512x128xbf16, #tpu.memory_space<vmem>>, vector<32x128xbf16>,
    %c0_54 = arith.constant 0 : index
    %c640_55 = arith.constant 640 : index
    %232 = vector.load %arg8[%c0_54, %c640_55] : memref<256x1024xf32, #tpu.memory_space<vmem>>, vector<128x128xf32>
    %c128_56 = arith.constant 128 : index
    %c256_57 = arith.constant 256 : index
    %233 = vector.load %arg8[%c128_56, %c256_57] : memref<256x1024xf32, #tpu.memory_space<vmem>>, vector<128x128xf32>
    %cst_58 = arith.constant dense<0.000000e+00> : vector<256x128xf32>
    %234 = tpu.matmul %8, %229, %cst_58 {dimension_numbers = #tpu.dot_dimension_numbers<[1], [0], [0], [1], [0, 0, 1, 1], [], []>} : vector<256x64xbf16>, vector<64x128xbf16>, vector<256x128xf32> -> vector<256x128xf32>
    %235 = vector.extract_strided_slice %234 {offsets = [0, 0], sizes = [128, 128], strides = [1, 1]} : vector<256x128xf32> to vector<128x128xf32>
    %236 = arith.addf %235, %232 : vector<128x128xf32>
    %237 = vector.extract_strided_slice %234 {offsets = [128, 0], sizes = [128, 128], strides = [1, 1]} : vector<256x128xf32> to vector<128x128xf32>
    %238 = arith.addf %237, %233 : vector<128x128xf32>
    %239 = vector.extract_strided_slice %236 {offsets = [0, 0], sizes = [96, 128], strides = [1, 1]} : vector<128x128xf32> to vector<96x128xf32>
    %240 = arith.negf %239 : vector<96x128xf32>
    %241 = math.exp %240 : vector<96x128xf32>
    %cst_59 = arith.constant 1.000000e+00 : f32
    %242 = vector.broadcast %cst_59 : f32 to vector<96x128xf32>
    %243 = arith.addf %242, %241 : vector<96x128xf32>
    %244 = arith.divf %242, %243 : vector<96x128xf32>
    %245 = vector.extract_strided_slice %238 {offsets = [0, 0], sizes = [96, 128], strides = [1, 1]} : vector<128x128xf32> to vector<96x128xf32>
    %246 = arith.negf %245 : vector<96x128xf32>
    %247 = math.exp %246 : vector<96x128xf32>
    %cst_60 = arith.constant 1.000000e+00 : f32
    %248 = vector.broadcast %cst_60 : f32 to vector<96x128xf32>
    %249 = arith.addf %248, %247 : vector<96x128xf32>
    %250 = arith.divf %248, %249 : vector<96x128xf32>
    %251 = vector.extract_strided_slice %236 {offsets = [96, 0], sizes = [32, 128], strides = [1, 1]} : vector<128x128xf32> to vector<32x128xf32>
    %252 = math.tanh %251 : vector<32x128xf32>
    %253 = vector.extract_strided_slice %238 {offsets = [96, 0], sizes = [32, 128], strides = [1, 1]} : vector<128x128xf32> to vector<32x128xf32>
    %254 = math.tanh %253 : vector<32x128xf32>
    %255 = vector.extract_strided_slice %244 {offsets = [32, 0], sizes = [32, 128], strides = [1, 1]} : vector<96x128xf32> to vector<32x128xf32>
    %256 = arith.mulf %255, %215 : vector<32x128xf32>
    %257 = vector.extract_strided_slice %244 {offsets = [0, 0], sizes = [32, 128], strides = [1, 1]} : vector<96x128xf32> to vector<32x128xf32>
    %258 = arith.mulf %257, %252 : vector<32x128xf32>
    %259 = arith.addf %256, %258 : vector<32x128xf32>
    %260 = vector.extract_strided_slice %250 {offsets = [32, 0], sizes = [32, 128], strides = [1, 1]} : vector<96x128xf32> to vector<32x128xf32>
    %261 = arith.mulf %260, %220 : vector<32x128xf32>
    %262 = vector.extract_strided_slice %250 {offsets = [0, 0], sizes = [32, 128], strides = [1, 1]} : vector<96x128xf32> to vector<32x128xf32>
    %263 = arith.mulf %262, %254 : vector<32x128xf32>
    %264 = arith.addf %261, %263 : vector<32x128xf32>
    %265 = vector.extract_strided_slice %244 {offsets = [64, 0], sizes = [32, 128], strides = [1, 1]} : vector<96x128xf32> to vector<32x128xf32>
    %266 = math.tanh %259 : vector<32x128xf32>
    %267 = arith.mulf %265, %266 : vector<32x128xf32>
    %268 = arith.truncf %267 : vector<32x128xf32> to vector<32x128xbf16>
    %269 = vector.extract_strided_slice %250 {offsets = [64, 0], sizes = [32, 128], strides = [1, 1]} : vector<96x128xf32> to vector<32x128xf32>
    %270 = math.tanh %264 : vector<32x128xf32>
    %271 = arith.mulf %269, %270 : vector<32x128xf32>
    %272 = arith.truncf %271 : vector<32x128xf32> to vector<32x128xbf16>
    %273 = tpu.concatenate %268, %272 in 0 : vector<32x128xbf16>, vector<32x128xbf16> -> vector<64x128xbf16>
    %c320 = arith.constant 320 : index
    %c0_61 = arith.constant 0 : index
    %274 = vector.load %arg9[%c320, %c0_61] : memref<512x128xbf16, #tpu.memory_space<vmem>>, vector<32x128xbf16>
    tpu.vector_store %arg9[%c320, %c0_61], %268 {strides = array<i32>} : memref<512x128xbf16, #tpu.memory_space<vmem>>, vector<32x128xbf16>,
    %c160 = arith.constant 160 : index
    %c0_62 = arith.constant 0 : index
    %275 = vector.load %arg9[%c160, %c0_62] : memref<512x128xbf16, #tpu.memory_space<vmem>>, vector<32x128xbf16>
    tpu.vector_store %arg9[%c160, %c0_62], %272 {strides = array<i32>} : memref<512x128xbf16, #tpu.memory_space<vmem>>, vector<32x128xbf16>,
    %c0_63 = arith.constant 0 : index
    %c768_64 = arith.constant 768 : index
    %276 = vector.load %arg8[%c0_63, %c768_64] : memref<256x1024xf32, #tpu.memory_space<vmem>>, vector<128x128xf32>
    %c128_65 = arith.constant 128 : index
    %c128_66 = arith.constant 128 : index
    %277 = vector.load %arg8[%c128_65, %c128_66] : memref<256x1024xf32, #tpu.memory_space<vmem>>, vector<128x128xf32>
    %cst_67 = arith.constant dense<0.000000e+00> : vector<256x128xf32>
    %278 = tpu.matmul %8, %273, %cst_67 {dimension_numbers = #tpu.dot_dimension_numbers<[1], [0], [0], [1], [0, 0, 1, 1], [], []>} : vector<256x64xbf16>, vector<64x128xbf16>, vector<256x128xf32> -> vector<256x128xf32>
    %279 = vector.extract_strided_slice %278 {offsets = [0, 0], sizes = [128, 128], strides = [1, 1]} : vector<256x128xf32> to vector<128x128xf32>
    %280 = arith.addf %279, %276 : vector<128x128xf32>
    %281 = vector.extract_strided_slice %278 {offsets = [128, 0], sizes = [128, 128], strides = [1, 1]} : vector<256x128xf32> to vector<128x128xf32>
    %282 = arith.addf %281, %277 : vector<128x128xf32>
    %283 = vector.extract_strided_slice %280 {offsets = [0, 0], sizes = [96, 128], strides = [1, 1]} : vector<128x128xf32> to vector<96x128xf32>
    %284 = arith.negf %283 : vector<96x128xf32>
    %285 = math.exp %284 : vector<96x128xf32>
    %cst_68 = arith.constant 1.000000e+00 : f32
    %286 = vector.broadcast %cst_68 : f32 to vector<96x128xf32>
    %287 = arith.addf %286, %285 : vector<96x128xf32>
    %288 = arith.divf %286, %287 : vector<96x128xf32>
    %289 = vector.extract_strided_slice %282 {offsets = [0, 0], sizes = [96, 128], strides = [1, 1]} : vector<128x128xf32> to vector<96x128xf32>
    %290 = arith.negf %289 : vector<96x128xf32>
    %291 = math.exp %290 : vector<96x128xf32>
    %cst_69 = arith.constant 1.000000e+00 : f32
    %292 = vector.broadcast %cst_69 : f32 to vector<96x128xf32>
    %293 = arith.addf %292, %291 : vector<96x128xf32>
    %294 = arith.divf %292, %293 : vector<96x128xf32>
    %295 = vector.extract_strided_slice %280 {offsets = [96, 0], sizes = [32, 128], strides = [1, 1]} : vector<128x128xf32> to vector<32x128xf32>
    %296 = math.tanh %295 : vector<32x128xf32>
    %297 = vector.extract_strided_slice %282 {offsets = [96, 0], sizes = [32, 128], strides = [1, 1]} : vector<128x128xf32> to vector<32x128xf32>
    %298 = math.tanh %297 : vector<32x128xf32>
    %299 = vector.extract_strided_slice %288 {offsets = [32, 0], sizes = [32, 128], strides = [1, 1]} : vector<96x128xf32> to vector<32x128xf32>
    %300 = arith.mulf %299, %259 : vector<32x128xf32>
    %301 = vector.extract_strided_slice %288 {offsets = [0, 0], sizes = [32, 128], strides = [1, 1]} : vector<96x128xf32> to vector<32x128xf32>
    %302 = arith.mulf %301, %296 : vector<32x128xf32>
    %303 = arith.addf %300, %302 : vector<32x128xf32>
    %304 = vector.extract_strided_slice %294 {offsets = [32, 0], sizes = [32, 128], strides = [1, 1]} : vector<96x128xf32> to vector<32x128xf32>
    %305 = arith.mulf %304, %264 : vector<32x128xf32>
    %306 = vector.extract_strided_slice %294 {offsets = [0, 0], sizes = [32, 128], strides = [1, 1]} : vector<96x128xf32> to vector<32x128xf32>
    %307 = arith.mulf %306, %298 : vector<32x128xf32>
    %308 = arith.addf %305, %307 : vector<32x128xf32>
    %309 = vector.extract_strided_slice %288 {offsets = [64, 0], sizes = [32, 128], strides = [1, 1]} : vector<96x128xf32> to vector<32x128xf32>
    %310 = math.tanh %303 : vector<32x128xf32>
    %311 = arith.mulf %309, %310 : vector<32x128xf32>
    %312 = arith.truncf %311 : vector<32x128xf32> to vector<32x128xbf16>
    %313 = vector.extract_strided_slice %294 {offsets = [64, 0], sizes = [32, 128], strides = [1, 1]} : vector<96x128xf32> to vector<32x128xf32>
    %314 = math.tanh %308 : vector<32x128xf32>
    %315 = arith.mulf %313, %314 : vector<32x128xf32>
    %316 = arith.truncf %315 : vector<32x128xf32> to vector<32x128xbf16>
    %317 = tpu.concatenate %312, %316 in 0 : vector<32x128xbf16>, vector<32x128xbf16> -> vector<64x128xbf16>
    %c384_70 = arith.constant 384 : index
    %c0_71 = arith.constant 0 : index
    %318 = vector.load %arg9[%c384_70, %c0_71] : memref<512x128xbf16, #tpu.memory_space<vmem>>, vector<32x128xbf16>
    tpu.vector_store %arg9[%c384_70, %c0_71], %312 {strides = array<i32>} : memref<512x128xbf16, #tpu.memory_space<vmem>>, vector<32x128xbf16>,
    %c96 = arith.constant 96 : index
    %c0_72 = arith.constant 0 : index
    %319 = vector.load %arg9[%c96, %c0_72] : memref<512x128xbf16, #tpu.memory_space<vmem>>, vector<32x128xbf16>
    tpu.vector_store %arg9[%c96, %c0_72], %316 {strides = array<i32>} : memref<512x128xbf16, #tpu.memory_space<vmem>>, vector<32x128xbf16>,
    %c0_73 = arith.constant 0 : index
    %c896_74 = arith.constant 896 : index
    %320 = vector.load %arg8[%c0_73, %c896_74] : memref<256x1024xf32, #tpu.memory_space<vmem>>, vector<128x128xf32>
    %c128_75 = arith.constant 128 : index
    %c0_76 = arith.constant 0 : index
    %321 = vector.load %arg8[%c128_75, %c0_76] : memref<256x1024xf32, #tpu.memory_space<vmem>>, vector<128x128xf32>
    %cst_77 = arith.constant dense<0.000000e+00> : vector<256x128xf32>
    %322 = tpu.matmul %8, %317, %cst_77 {dimension_numbers = #tpu.dot_dimension_numbers<[1], [0], [0], [1], [0, 0, 1, 1], [], []>} : vector<256x64xbf16>, vector<64x128xbf16>, vector<256x128xf32> -> vector<256x128xf32>
    %323 = vector.extract_strided_slice %322 {offsets = [0, 0], sizes = [128, 128], strides = [1, 1]} : vector<256x128xf32> to vector<128x128xf32>
    %324 = arith.addf %323, %320 : vector<128x128xf32>
    %325 = vector.extract_strided_slice %322 {offsets = [128, 0], sizes = [128, 128], strides = [1, 1]} : vector<256x128xf32> to vector<128x128xf32>
    %326 = arith.addf %325, %321 : vector<128x128xf32>
    %327 = vector.extract_strided_slice %324 {offsets = [0, 0], sizes = [96, 128], strides = [1, 1]} : vector<128x128xf32> to vector<96x128xf32>
    %328 = arith.negf %327 : vector<96x128xf32>
    %329 = math.exp %328 : vector<96x128xf32>
    %cst_78 = arith.constant 1.000000e+00 : f32
    %330 = vector.broadcast %cst_78 : f32 to vector<96x128xf32>
    %331 = arith.addf %330, %329 : vector<96x128xf32>
    %332 = arith.divf %330, %331 : vector<96x128xf32>
    %333 = vector.extract_strided_slice %326 {offsets = [0, 0], sizes = [96, 128], strides = [1, 1]} : vector<128x128xf32> to vector<96x128xf32>
    %334 = arith.negf %333 : vector<96x128xf32>
    %335 = math.exp %334 : vector<96x128xf32>
    %cst_79 = arith.constant 1.000000e+00 : f32
    %336 = vector.broadcast %cst_79 : f32 to vector<96x128xf32>
    %337 = arith.addf %336, %335 : vector<96x128xf32>
    %338 = arith.divf %336, %337 : vector<96x128xf32>
    %339 = vector.extract_strided_slice %324 {offsets = [96, 0], sizes = [32, 128], strides = [1, 1]} : vector<128x128xf32> to vector<32x128xf32>
    %340 = math.tanh %339 : vector<32x128xf32>
    %341 = vector.extract_strided_slice %326 {offsets = [96, 0], sizes = [32, 128], strides = [1, 1]} : vector<128x128xf32> to vector<32x128xf32>
    %342 = math.tanh %341 : vector<32x128xf32>
    %343 = vector.extract_strided_slice %332 {offsets = [32, 0], sizes = [32, 128], strides = [1, 1]} : vector<96x128xf32> to vector<32x128xf32>
    %344 = arith.mulf %343, %303 : vector<32x128xf32>
    %345 = vector.extract_strided_slice %332 {offsets = [0, 0], sizes = [32, 128], strides = [1, 1]} : vector<96x128xf32> to vector<32x128xf32>
    %346 = arith.mulf %345, %340 : vector<32x128xf32>
    %347 = arith.addf %344, %346 : vector<32x128xf32>
    %348 = vector.extract_strided_slice %338 {offsets = [32, 0], sizes = [32, 128], strides = [1, 1]} : vector<96x128xf32> to vector<32x128xf32>
    %349 = arith.mulf %348, %308 : vector<32x128xf32>
    %350 = vector.extract_strided_slice %338 {offsets = [0, 0], sizes = [32, 128], strides = [1, 1]} : vector<96x128xf32> to vector<32x128xf32>
    %351 = arith.mulf %350, %342 : vector<32x128xf32>
    %352 = arith.addf %349, %351 : vector<32x128xf32>
    %353 = vector.extract_strided_slice %332 {offsets = [64, 0], sizes = [32, 128], strides = [1, 1]} : vector<96x128xf32> to vector<32x128xf32>
    %354 = math.tanh %347 : vector<32x128xf32>
    %355 = arith.mulf %353, %354 : vector<32x128xf32>
    %356 = arith.truncf %355 : vector<32x128xf32> to vector<32x128xbf16>
    %357 = vector.extract_strided_slice %338 {offsets = [64, 0], sizes = [32, 128], strides = [1, 1]} : vector<96x128xf32> to vector<32x128xf32>
    %358 = math.tanh %352 : vector<32x128xf32>
    %359 = arith.mulf %357, %358 : vector<32x128xf32>
    %360 = arith.truncf %359 : vector<32x128xf32> to vector<32x128xbf16>
    %c448 = arith.constant 448 : index
    %c0_80 = arith.constant 0 : index
    %361 = vector.load %arg9[%c448, %c0_80] : memref<512x128xbf16, #tpu.memory_space<vmem>>, vector<32x128xbf16>
    tpu.vector_store %arg9[%c448, %c0_80], %356 {strides = array<i32>} : memref<512x128xbf16, #tpu.memory_space<vmem>>, vector<32x128xbf16>,
    %c32 = arith.constant 32 : index
    %c0_81 = arith.constant 0 : index
    %362 = vector.load %arg9[%c32, %c0_81] : memref<512x128xbf16, #tpu.memory_space<vmem>>, vector<32x128xbf16>
    tpu.vector_store %arg9[%c32, %c0_81], %360 {strides = array<i32>} : memref<512x128xbf16, #tpu.memory_space<vmem>>, vector<32x128xbf16>,
    %c0_82 = arith.constant 0 : index
    %c0_83 = arith.constant 0 : index
    %363 = vector.load %arg5[%c0_82, %c0_83] : memref<128x512xbf16, #tpu.memory_space<vmem>>, vector<128x512xbf16>
    %c0_84 = arith.constant 0 : index
    %c0_85 = arith.constant 0 : index
    %364 = vector.load %arg9[%c0_84, %c0_85] : memref<512x128xbf16, #tpu.memory_space<vmem>>, vector<512x128xbf16>
    %cst_86 = arith.constant dense<0.000000e+00> : vector<128x128xf32>
    %365 = tpu.matmul %363, %364, %cst_86 {dimension_numbers = #tpu.dot_dimension_numbers<[1], [0], [0], [1], [0, 0, 1, 1], [], []>} : vector<128x512xbf16>, vector<512x128xbf16>, vector<128x128xf32> -> vector<128x128xf32>
    %c0_87 = arith.constant 0 : index
    %c0_88 = arith.constant 0 : index
    %366 = vector.load %arg6[%c0_87, %c0_88] : memref<128x1xf32, #tpu.memory_space<vmem>>, vector<128x1xf32>
    %367 = vector.broadcast %366 : vector<128x1xf32> to vector<128x128xf32>
    %368 = arith.addf %365, %367 : vector<128x128xf32>
    %c0_89 = arith.constant 0 : index
    %c0_90 = arith.constant 0 : index
    %369 = vector.load %arg7[%c0_89, %c0_90] : memref<128x128xf32, #tpu.memory_space<vmem>>, vector<128x128xf32>
    tpu.vector_store %arg7[%c0_89, %c0_90], %368 {strides = array<i32>} : memref<128x128xf32, #tpu.memory_space<vmem>>, vector<128x128xf32>,
    return
  }
  func.func @transform_0(%arg0: i32) -> (i32, i32, i32) {
    %c0_i32 = arith.constant 0 : i32
    %c0_i32_0 = arith.constant 0 : i32
    %c0_i32_1 = arith.constant 0 : i32
    return %arg0, %c0_i32, %c0_i32_0 : i32, i32, i32
  }
  func.func @transform_1(%arg0: i32) -> (i32, i32) {
    %c0_i32 = arith.constant 0 : i32
    %c0_i32_0 = arith.constant 0 : i32
    %c0_i32_1 = arith.constant 0 : i32
    return %c0_i32, %c0_i32_0 : i32, i32
  }
  func.func @transform_2(%arg0: i32) -> (i32, i32) {
    %c0_i32 = arith.constant 0 : i32
    %c0_i32_0 = arith.constant 0 : i32
    %c0_i32_1 = arith.constant 0 : i32
    return %c0_i32, %c0_i32_0 : i32, i32
  }
  func.func @transform_3(%arg0: i32) -> (i32, i32) {
    %c0_i32 = arith.constant 0 : i32
    %c0_i32_0 = arith.constant 0 : i32
    %c0_i32_1 = arith.constant 0 : i32
    return %c0_i32, %c0_i32_0 : i32, i32
  }
  func.func @transform_4(%arg0: i32) -> (i32, i32) {
    %c0_i32 = arith.constant 0 : i32
    %c0_i32_0 = arith.constant 0 : i32
    %c0_i32_1 = arith.constant 0 : i32
    return %c0_i32, %c0_i32_0 : i32, i32
  }
  func.func @transform_5(%arg0: i32) -> (i32, i32) {
    %c0_i32 = arith.constant 0 : i32
    %c0_i32_0 = arith.constant 0 : i32
    %c0_i32_1 = arith.constant 0 : i32
    return %c0_i32, %c0_i32_0 : i32, i32
  }
  func.func @transform_6(%arg0: i32) -> (i32, i32) {
    %c0_i32 = arith.constant 0 : i32
    %c0_i32_0 = arith.constant 0 : i32
    return %c0_i32, %arg0 : i32, i32
  }
}

</mosaic_0001>

<bundles_post_ra>
// kernel: tpu_custom_call.1
= control target key start
LH: loop header
LB: loop body
LE: loop exit
PB: predicated region body
PF: predicated region fallthrough
CT: control target
= control target key end

     0   :  { %v7813_v6 = vmov 0   ;;  %vm377_vm0 = vcmask 130048   ;;  %s10472_s0 = inlined_call_operand.vmem [shape: bf16[1,16,1024], index: 0, kind: input, shape index: {}]   ;;  %s10473_s1 = inlined_call_operand.vmem [shape: bf16[256,16], index: 1, kind: input, shape index: {}]   ;;  %s10474_s2 = inlined_call_operand.vmem [shape: f32[256,1], index: 2, kind: input, shape index: {}]   ;;  %s10475_s3 = inlined_call_operand.vmem [shape: bf16[256,64], index: 3, kind: input, shape index: {}]   ;;  %s10476_s4 = inlined_call_operand.vmem [shape: bf16[128,512], index: 4, kind: input, shape index: {}]   ;;  %s10477_s5 = inlined_call_operand.vmem [shape: f32[128,1], index: 5, kind: input, shape index: {}]   ;;  %s10478_s6 = inlined_call_operand.hbm [shape: f32[128,128], index: 6, kind: output, shape index: {}]  }
   0x1   :  { %v57_v0 = vld [vmem:[%s10472_s0] sm:$0xff]  ;;  %v58_v2 = vld [vmem:[%s10472_s0 + $0x8] sm:$0xff]  ;;  %458 = vmatprep.mubr.bf16.mxu0 %v7813_v6  ;;  %651 = vmatprep.mubr.bf16.mxu1 %v7813_v6  ;;  %v59_v14 = vld [vmem:[%s10472_s0 + $0x10] sm:$0xff] }
   0x2   :  { %v61_v1 = vld [vmem:[%s10472_s0 + $0x20] sm:$0xff]  ;;  %v62_v4 = vld [vmem:[%s10472_s0 + $0x28] sm:$0xff]  ;;  %6620 = vset.pattern.permute.xlu0 %v7813_v6  ;;  %6621 = vset.pattern.permute.xlu1 %v7813_v6  ;;  %v63_v15 = vld [vmem:[%s10472_s0 + $0x30] sm:$0xff] }
   0x3   :  { %v5578_v3 = vcombine.high %v57_v0, %v61_v1  ;;  %v5577_v5 = vcombine.low %v57_v0, %v61_v1  ;;  %v5580_v7 = vcombine.high %v58_v2, %v62_v4  ;;  %v5579_v8 = vcombine.low %v58_v2, %v62_v4  ;;  %v7871_v9 = vld [vmem:[%s10473_s1] sm:$0xff]   ;;  %v7882_v10 = vld [vmem:[%s10473_s1 + $0x8] sm:$0xff]   ;;  %v67_v19 = vld [vmem:[%s10474_s2 + $0x10] sm:$0xff] }
   0x4   :  { %v65_v11 = vld [vmem:[%s10474_s2] sm:$0xff]  ;;  %v66_v13 = vld [vmem:[%s10474_s2 + $0x8] sm:$0xff]  ;;  %v5581_v16 = vcombine.low %v59_v14, %v63_v15  ;;  %v5582_v17 = vcombine.high %v59_v14, %v63_v15  ;;  %v7914_v20 = vld [vmem:[%s10473_s1 + $0x10] sm:$0xff]  }
   0x5   :  { %426 = vmatprep.subr.bf16.mxu0 %v5578_v3  ;;  %619 = vmatprep.subr.bf16.mxu1 %v5580_v7  ;;  %v69_v12 = vld [vmem:[%s10474_s2 + $0x20] sm:$0xff]  ;;  %v70_v18 = vld [vmem:[%s10474_s2 + $0x28] sm:$0xff]  ;;  %v68_v21 = vld [vmem:[%s10474_s2 + $0x18] sm:$0xff] }
   0x6   :  { %427 = vmatpush1.bf16.msra.mxu0 %v5577_v5  ;;  %620 = vmatpush1.bf16.msra.mxu1 %v5579_v8  ;;  %v71_v22 = vld [vmem:[%s10474_s2 + $0x30] sm:$0xff]  ;;  %v72_v23 = vld [vmem:[%s10474_s2 + $0x38] sm:$0xff]  ;;  %v81_v27 = vld [vmem:[%s10474_s2 + $0x80] sm:$0xff] }
   0x7   :  { %99 = vperm.xlu0 %6620, %v65_v11   ;;  %119 = vperm.xlu1 %6621, %v69_v12   ;;  %v7935_v24 = vld [vmem:[%s10473_s1 + $0x18] sm:$0xff]   ;;  %v82_v28 = vld [vmem:[%s10474_s2 + $0x88] sm:$0xff]  ;;  %v85_v31 = vld [vmem:[%s10474_s2 + $0xa0] sm:$0xff] }
   0x8   :  { %812 = vmatprep.subr.bf16.mxu0 %v5582_v17  ;;  %v60_v25 = vld [vmem:[%s10472_s0 + $0x18] sm:$0xff]  ;;  %v86_v32 = vld [vmem:[%s10474_s2 + $0xa8] sm:$0xff]  ;;  %v83_v33 = vld [vmem:[%s10474_s2 + $0x90] sm:$0xff] }
   0x9   :  { %5585 = vmatmul.mubr.msk.bf16.vlgmr.msra.gmra.mrb[0].mxu0 %vm377_vm0, %v7871_v9  ;;  %5601 = vmatmul.mubr.msk.bf16.vlgmr.msra.gmra.mrb[0].mxu1 %vm377_vm0, %v7871_v9  ;;  %v64_v26 = vld [vmem:[%s10472_s0 + $0x38] sm:$0xff]  ;;  %v7967_v34 = vld [vmem:[%s10473_s1 + $0x20] sm:$0xff]   ;;  %v87_v36 = vld [vmem:[%s10474_s2 + $0xb0] sm:$0xff] }
   0xa   :  { %468 = vmatprep.mubr.bf16.mxu0 %v7813_v6  ;;  %661 = vmatprep.mubr.bf16.mxu1 %v7813_v6  ;;  %v5583_v29 = vcombine.low %v60_v25, %v64_v26  ;;  %v5584_v30 = vcombine.high %v60_v25, %v64_v26  ;;  %v84_v35 = vld [vmem:[%s10474_s2 + $0x98] sm:$0xff]  ;;  %v73_v38 = vld [vmem:[%s10474_s2 + $0x40] sm:$0xff]  ;;  %v7990_v39 = vld [vmem:[%s10473_s1 + $0x28] sm:$0xff]  }
   0xb   :  { %104 = vperm.xlu0 %6620, %v66_v13   ;;  %124 = vperm.xlu1 %6621, %v70_v18   ;;  %v88_v37 = vld [vmem:[%s10474_s2 + $0xb8] sm:$0xff]  ;;  %v74_v40 = vld [vmem:[%s10474_s2 + $0x48] sm:$0xff]  ;;  %v77_v41 = vld [vmem:[%s10474_s2 + $0x60] sm:$0xff] }
   0xc   :  { %813 = vmatpush1.bf16.msra.mxu0 %v5581_v16  ;;  %1005 = vmatprep.subr.bf16.mxu1 %v5584_v30  ;;  %v78_v42 = vld [vmem:[%s10474_s2 + $0x68] sm:$0xff] }
   0xd   :  { %6302 = vmatprep.subr.bf16.mxu0 %v7813_v6  ;;  %1006 = vmatpush1.bf16.msra.mxu1 %v5583_v29 }
   0xf   :  { %109 = vperm.xlu0 %6620, %v67_v19   ;;  %114 = vperm.xlu1 %6621, %v68_v21  }
  0x11   :  { %5586 = vmatmul.mubr.msk.bf16.gmra.mrb[4].mxu0 %vm377_vm0, %v7882_v10  ;;  %5602 = vmatmul.mubr.msk.bf16.gmra.mrb[4].mxu1 %vm377_vm0, %v7882_v10 }
  0x12   :  { %478 = vmatprep.mubr.bf16.mxu0 %v7813_v6  ;;  %671 = vmatprep.mubr.bf16.mxu1 %v7813_v6 }
  0x13   :  { %129 = vperm.xlu0 %6620, %v71_v22   ;;  %134 = vperm.xlu1 %6621, %v72_v23  }
  0x17   :  { %179 = vperm.xlu0 %6620, %v81_v27   ;;  %184 = vperm.xlu1 %6621, %v82_v28  }
  0x19   :  { %5587 = vmatmul.mubr.msk.bf16.gmra.mrb[8].mxu0 %vm377_vm0, %v7914_v20  ;;  %5603 = vmatmul.mubr.msk.bf16.gmra.mrb[8].mxu1 %vm377_vm0, %v7914_v20 }
  0x1a   :  { %488 = vmatprep.mubr.bf16.mxu0 %v7813_v6  ;;  %681 = vmatprep.mubr.bf16.mxu1 %v7813_v6 }
  0x1b   :  { %199 = vperm.xlu0 %6620, %v85_v31   ;;  %204 = vperm.xlu1 %6621, %v86_v32  }
  0x1f   :  { %189 = vperm.xlu0 %6620, %v83_v33   ;;  %194 = vperm.xlu1 %6621, %v84_v35  }
  0x21   :  { %5588 = vmatmul.mubr.msk.bf16.gmra.mrb[12].mxu0 %vm377_vm0, %v7935_v24  ;;  %5604 = vmatmul.mubr.msk.bf16.gmra.mrb[12].mxu1 %vm377_vm0, %v7935_v24 }
  0x22   :  { %498 = vmatprep.mubr.bf16.mxu0 %v7813_v6  ;;  %691 = vmatprep.mubr.bf16.mxu1 %v7813_v6 }
  0x23   :  { %209 = vperm.xlu0 %6620, %v87_v36   ;;  %214 = vperm.xlu1 %6621, %v88_v37  }
  0x27   :  { %139 = vperm.xlu0 %6620, %v73_v38   ;;  %144 = vperm.xlu1 %6621, %v74_v40  }
  0x29   :  { %5589 = vmatmul.mubr.msk.bf16.gmra.mrb[16].mxu0 %vm377_vm0, %v7967_v34  ;;  %5605 = vmatmul.mubr.msk.bf16.gmra.mrb[16].mxu1 %vm377_vm0, %v7967_v34 }
  0x2a   :  { %508 = vmatprep.mubr.bf16.mxu0 %v7813_v6  ;;  %701 = vmatprep.mubr.bf16.mxu1 %v7813_v6 }
  0x31   :  { %5590 = vmatmul.mubr.msk.bf16.gmra.mrb[20].mxu0 %vm377_vm0, %v7990_v39  ;;  %5606 = vmatmul.mubr.msk.bf16.gmra.mrb[20].mxu1 %vm377_vm0, %v7990_v39 }
  0x32   :  { %518 = vmatprep.mubr.bf16.mxu0 %v7813_v6 }
  0x33   :  { %11 = vsyncpa [#allocation5], 0  ;;  %711 = vmatprep.mubr.bf16.mxu1 %v7813_v6  ;;  %159 = vperm.xlu0 %6620, %v77_v41   ;;  %v75_v43 = vld [vmem:[%s10474_s2 + $0x50] sm:$0xff]  ;;  %v76_v45 = vld [vmem:[%s10474_s2 + $0x58] sm:$0xff]  ;;  %vm1598_vm1 = vcmask 523264  }
  0x34   :  { %164 = vperm.xlu1 %6621, %v78_v42   ;;  %v8013_v44 = vld [vmem:[%s10473_s1 + $0x30] sm:$0xff]   ;;  %v80_v47 = vld [vmem:[%s10474_s2 + $0x78] sm:$0xff]  ;;  %v89_v48 = vld [vmem:[%s10474_s2 + $0xc0] sm:$0xff] }
  0x35   :  { %v79_v46 = vld [vmem:[%s10474_s2 + $0x70] sm:$0xff]  ;;  %v8036_v49 = vld [vmem:[%s10473_s1 + $0x38] sm:$0xff]   ;;  %v90_v50 = vld [vmem:[%s10474_s2 + $0xc8] sm:$0xff] }
  0x36   :  { %v93_v51 = vld [vmem:[%s10474_s2 + $0xe0] sm:$0xff]  ;;  %v94_v52 = vld [vmem:[%s10474_s2 + $0xe8] sm:$0xff]  ;;  %v91_v53 = vld [vmem:[%s10474_s2 + $0xd0] sm:$0xff] }
  0x37   :  { %149 = vperm.xlu0 %6620, %v75_v43   ;;  %v8059_v54 = vld [vmem:[%s10473_s1 + $0x40] sm:$0xff]   ;;  %v92_v55 = vld [vmem:[%s10474_s2 + $0xd8] sm:$0xff]  ;;  %v8073_v56 = vld [vmem:[%s10473_s1 + $0x48] sm:$0xff]  }
  0x38   :  { %154 = vperm.xlu1 %6621, %v76_v45   ;;  %v95_v57 = vld [vmem:[%s10474_s2 + $0xf0] sm:$0xff]  ;;  %v96_v58 = vld [vmem:[%s10474_s2 + $0xf8] sm:$0xff]  ;;  %v8112_v61 = vld [vmem:[%s10473_s1 + $0x60] sm:$0xff]  }
  0x39   :  { %5591 = vmatmul.mubr.msk.bf16.gmra.mrb[24].mxu0 %vm377_vm0, %v8013_v44  ;;  %5607 = vmatmul.mubr.msk.bf16.gmra.mrb[24].mxu1 %vm377_vm0, %v8013_v44  ;;  %v8090_v59 = vld [vmem:[%s10473_s1 + $0x50] sm:$0xff]   ;;  %v8101_v60 = vld [vmem:[%s10473_s1 + $0x58] sm:$0xff]   ;;  %v8123_v62 = vld [vmem:[%s10473_s1 + $0x68] sm:$0xff]  }
  0x3a   :  { %528 = vmatprep.mubr.bf16.mxu0 %v7813_v6  ;;  %721 = vmatprep.mubr.bf16.mxu1 %v7813_v6  ;;  %v8134_v63 = vld [vmem:[%s10473_s1 + $0x70] sm:$0xff]   ;;  %v8145_v0 = vld [vmem:[%s10473_s1 + $0x78] sm:$0xff]   ;;  %v5080_v1 = vld [vmem:[%s10477_s5 + $0x8] sm:$0xff] }
  0x3b   :  { %169 = vperm.xlu0 %6620, %v79_v46   ;;  %v5079_v2 = vld [vmem:[%s10477_s5] sm:$0xff]  ;;  %v5082_v3 = vld [vmem:[%s10477_s5 + $0x18] sm:$0xff]  ;;  %v5081_v4 = vld [vmem:[%s10477_s5 + $0x10] sm:$0xff] }
  0x3c   :  { %174 = vperm.xlu1 %6621, %v80_v47   ;;  %v5084_v5 = vld [vmem:[%s10477_s5 + $0x28] sm:$0xff]  ;;  %v5083_v7 = vld [vmem:[%s10477_s5 + $0x20] sm:$0xff]  ;;  %v5086_v8 = vld [vmem:[%s10477_s5 + $0x38] sm:$0xff] }
  0x3d   :  { %v5087_v11 = vld [vmem:[%s10477_s5 + $0x40] sm:$0xff]  ;;  %v5090_v12 = vld [vmem:[%s10477_s5 + $0x58] sm:$0xff]  ;;  %v5089_v13 = vld [vmem:[%s10477_s5 + $0x50] sm:$0xff] }
  0x3e   :  { %v5092_v14 = vld [vmem:[%s10477_s5 + $0x68] sm:$0xff]  ;;  %v5091_v15 = vld [vmem:[%s10477_s5 + $0x60] sm:$0xff]  ;;  %v5094_v16 = vld [vmem:[%s10477_s5 + $0x78] sm:$0xff] }
  0x3f   :  { %219 = vperm.xlu0 %6620, %v89_v48   ;;  %v5093_v17 = vld [vmem:[%s10477_s5 + $0x70] sm:$0xff] }
  0x40   :  { %224 = vperm.xlu1 %6621, %v90_v50  }
  0x41   :  { %5592 = vmatmul.mubr.msk.bf16.gmra.mrb[28].mxu0 %vm377_vm0, %v8036_v49  ;;  %5608 = vmatmul.mubr.msk.bf16.gmra.mrb[28].mxu1 %vm377_vm0, %v8036_v49 }
  0x42   :  { %538 = vmatprep.mubr.bf16.mxu0 %v7813_v6  ;;  %731 = vmatprep.mubr.bf16.mxu1 %v7813_v6 }
  0x43   :  { %239 = vperm.xlu0 %6620, %v93_v51  }
  0x44   :  { %244 = vperm.xlu1 %6621, %v94_v52  }
  0x47   :  { %229 = vperm.xlu0 %6620, %v91_v53  }
  0x48   :  { %234 = vperm.xlu1 %6621, %v92_v55  }
  0x49   :  { %5593 = vmatmul.mubr.msk.bf16.gmra.mrb[32].mxu0 %vm377_vm0, %v8059_v54  ;;  %5609 = vmatmul.mubr.msk.bf16.gmra.mrb[32].mxu1 %vm377_vm0, %v8059_v54 }
  0x4a   :  { %548 = vmatprep.mubr.bf16.mxu0 %v7813_v6  ;;  %741 = vmatprep.mubr.bf16.mxu1 %v7813_v6 }
  0x4b   :  { %249 = vperm.xlu0 %6620, %v95_v57  }
  0x4c   :  { %254 = vperm.xlu1 %6621, %v96_v58  }
  0x4f   :  { %5097 = vperm.xlu0 %6620, %v5079_v2  }
  0x50   :  { %5102 = vperm.xlu1 %6621, %v5080_v1  }
  0x51   :  { %5594 = vmatmul.mubr.msk.bf16.gmra.mrb[36].mxu0 %vm377_vm0, %v8073_v56  ;;  %5610 = vmatmul.mubr.msk.bf16.gmra.mrb[36].mxu1 %vm377_vm0, %v8073_v56 }
  0x52   :  { %558 = vmatprep.mubr.bf16.mxu0 %v7813_v6  ;;  %751 = vmatprep.mubr.bf16.mxu1 %v7813_v6 }
  0x53   :  { %5107 = vperm.xlu0 %6620, %v5081_v4  }
  0x54   :  { %5112 = vperm.xlu1 %6621, %v5082_v3  }
  0x57   :  { %5117 = vperm.xlu0 %6620, %v5083_v7   ;;  %v6641_v7 = vld [vmem:[%s10475_s3 + $0x18] sm:$0xff]  }
  0x58   :  { %5122 = vperm.xlu1 %6621, %v5084_v5  }
  0x59   :  { %5595 = vmatmul.mubr.msk.bf16.gmra.mrb[40].mxu0 %vm377_vm0, %v8090_v59  ;;  %5611 = vmatmul.mubr.msk.bf16.gmra.mrb[40].mxu1 %vm377_vm0, %v8090_v59 }
  0x5a   :  { %568 = vmatprep.mubr.bf16.mxu0 %v7813_v6  ;;  %761 = vmatprep.mubr.bf16.mxu1 %v7813_v6 }
  0x5c   :  { %5132 = vperm.xlu1 %6621, %v5086_v8  }
  0x61   :  { %5596 = vmatmul.mubr.msk.bf16.gmra.mrb[44].mxu0 %vm377_vm0, %v8101_v60  ;;  %5612 = vmatmul.mubr.msk.bf16.gmra.mrb[44].mxu1 %vm377_vm0, %v8101_v60 }
  0x62   :  { %578 = vmatprep.mubr.bf16.mxu0 %v7813_v6  ;;  %771 = vmatprep.mubr.bf16.mxu1 %v7813_v6 }
  0x69   :  { %5597 = vmatmul.mubr.msk.bf16.gmra.mrb[48].mxu0 %vm377_vm0, %v8112_v61  ;;  %5613 = vmatmul.mubr.msk.bf16.gmra.mrb[48].mxu1 %vm377_vm0, %v8112_v61 }
  0x6a   :  { %588 = vmatprep.mubr.bf16.mxu0 %v7813_v6  ;;  %781 = vmatprep.mubr.bf16.mxu1 %v7813_v6 }
  0x71   :  { %5598 = vmatmul.mubr.msk.bf16.gmra.mrb[52].mxu0 %vm377_vm0, %v8123_v62  ;;  %5614 = vmatmul.mubr.msk.bf16.gmra.mrb[52].mxu1 %vm377_vm0, %v8123_v62 }
  0x72   :  { %598 = vmatprep.mubr.bf16.mxu0 %v7813_v6  ;;  %791 = vmatprep.mubr.bf16.mxu1 %v7813_v6 }
  0x79   :  { %5599 = vmatmul.mubr.msk.bf16.gmra.mrb[56].mxu0 %vm377_vm0, %v8134_v63  ;;  %5615 = vmatmul.mubr.msk.bf16.gmra.mrb[56].mxu1 %vm377_vm0, %v8134_v63 }
  0x7a   :  { %608 = vmatprep.mubr.bf16.mxu0 %v7813_v6  ;;  %801 = vmatprep.mubr.bf16.mxu1 %v7813_v6 }
  0x81   :  { %5600 = vmatmul.mubr.msk.bf16.gmra.mrb[60].mxu0 %vm377_vm0, %v8145_v0  ;;  %5616 = vmatmul.mubr.msk.bf16.gmra.mrb[60].mxu1 %vm377_vm0, %v8145_v0 }
  0x82   :  { %844 = vmatprep.mubr.bf16.mxu0 %v7813_v6  ;;  %1037 = vmatprep.mubr.bf16.mxu1 %v7813_v6 }
  0x89   :  { %5617 = vmatmul.mubr.msk.bf16.vlgmr.msra.gmra.mrb[64].mxu0 %vm377_vm0, %v7871_v9  ;;  %5633 = vmatmul.mubr.msk.bf16.vlgmr.msra.gmra.mrb[64].mxu1 %vm377_vm0, %v7871_v9  ;;  %v5085_v9 = vld [vmem:[%s10477_s5 + $0x30] sm:$0xff] }
  0x8a   :  { %854 = vmatprep.mubr.bf16.mxu0 %v7813_v6  ;;  %1047 = vmatprep.mubr.bf16.mxu1 %v7813_v6 }
  0x8b   :  { %6303 = vmatpush3.bf16.msra.mxu0 %v7813_v6  ;;  %5127 = vperm.xlu0 %6620, %v5085_v9  }
  0x8f   :  { %5137 = vperm.xlu0 %6620, %v5087_v11  }
  0x91   :  { %5618 = vmatmul.mubr.msk.bf16.gmra.mrb[68].mxu0 %vm377_vm0, %v7882_v10  ;;  %5634 = vmatmul.mubr.msk.bf16.gmra.mrb[68].mxu1 %vm377_vm0, %v7882_v10  ;;  %v5088_v10 = vld [vmem:[%s10477_s5 + $0x48] sm:$0xff] }
  0x92   :  { %864 = vmatprep.mubr.bf16.mxu0 %v7813_v6  ;;  %1057 = vmatprep.mubr.bf16.mxu1 %v7813_v6 }
  0x93   :  { %5142 = vperm.xlu1 %6621, %v5088_v10   ;;  %5147 = vperm.xlu0 %6620, %v5089_v13   ;;  %v6642_v10 = vld [vmem:[%s10475_s3 + $0x20] sm:$0xff]  }
  0x97   :  { %5152 = vperm.xlu1 %6621, %v5090_v12   ;;  %5157 = vperm.xlu0 %6620, %v5091_v15  }
  0x99   :  { %5619 = vmatmul.mubr.msk.bf16.gmra.mrb[72].mxu0 %vm377_vm0, %v7914_v20  ;;  %5635 = vmatmul.mubr.msk.bf16.gmra.mrb[72].mxu1 %vm377_vm0, %v7914_v20 }
  0x9a   :  { %874 = vmatprep.mubr.bf16.mxu0 %v7813_v6  ;;  %1067 = vmatprep.mubr.bf16.mxu1 %v7813_v6 }
  0x9b   :  { %5162 = vperm.xlu1 %6621, %v5092_v14   ;;  %5167 = vperm.xlu0 %6620, %v5093_v17   ;;  %v6643_v17 = vld [vmem:[%s10475_s3 + $0x28] sm:$0xff]  }
  0x9f   :  { %5172 = vperm.xlu1 %6621, %v5094_v16  }
  0xa1   :  { %5620 = vmatmul.mubr.msk.bf16.gmra.mrb[76].mxu0 %vm377_vm0, %v7935_v24  ;;  %5636 = vmatmul.mubr.msk.bf16.gmra.mrb[76].mxu1 %vm377_vm0, %v7935_v24 }
  0xa2   :  { %884 = vmatprep.mubr.bf16.mxu0 %v7813_v6  ;;  %1077 = vmatprep.mubr.bf16.mxu1 %v7813_v6 }
  0xa9   :  { %5621 = vmatmul.mubr.msk.bf16.gmra.mrb[80].mxu0 %vm377_vm0, %v7967_v34  ;;  %5637 = vmatmul.mubr.msk.bf16.gmra.mrb[80].mxu1 %vm377_vm0, %v7967_v34 }
  0xaa   :  { %894 = vmatprep.mubr.bf16.mxu0 %v7813_v6  ;;  %1087 = vmatprep.mubr.bf16.mxu1 %v7813_v6 }
  0xb1   :  { %5622 = vmatmul.mubr.msk.bf16.gmra.mrb[84].mxu0 %vm377_vm0, %v7990_v39  ;;  %5638 = vmatmul.mubr.msk.bf16.gmra.mrb[84].mxu1 %vm377_vm0, %v7990_v39 }
  0xb2   :  { %904 = vmatprep.mubr.bf16.mxu0 %v7813_v6  ;;  %1097 = vmatprep.mubr.bf16.mxu1 %v7813_v6 }
  0xb9   :  { %5623 = vmatmul.mubr.msk.bf16.gmra.mrb[88].mxu0 %vm377_vm0, %v8013_v44  ;;  %5639 = vmatmul.mubr.msk.bf16.gmra.mrb[88].mxu1 %vm377_vm0, %v8013_v44 }
  0xba   :  { %914 = vmatprep.mubr.bf16.mxu0 %v7813_v6  ;;  %1107 = vmatprep.mubr.bf16.mxu1 %v7813_v6 }
  0xc1   :  { %5624 = vmatmul.mubr.msk.bf16.gmra.mrb[92].mxu0 %vm377_vm0, %v8036_v49  ;;  %5640 = vmatmul.mubr.msk.bf16.gmra.mrb[92].mxu1 %vm377_vm0, %v8036_v49 }
  0xc2   :  { %924 = vmatprep.mubr.bf16.mxu0 %v7813_v6  ;;  %1117 = vmatprep.mubr.bf16.mxu1 %v7813_v6 }
  0xc9   :  { %5625 = vmatmul.mubr.msk.bf16.gmra.mrb[96].mxu0 %vm377_vm0, %v8059_v54  ;;  %5641 = vmatmul.mubr.msk.bf16.gmra.mrb[96].mxu1 %vm377_vm0, %v8059_v54  ;;  %v8367_v54 = vld [vmem:[%s10475_s3] sm:$0xff]  }
  0xca   :  { %934 = vmatprep.mubr.bf16.mxu0 %v7813_v6  ;;  %1127 = vmatprep.mubr.bf16.mxu1 %v7813_v6 }
  0xd1   :  { %5626 = vmatmul.mubr.msk.bf16.gmra.mrb[100].mxu0 %vm377_vm0, %v8073_v56  ;;  %5642 = vmatmul.mubr.msk.bf16.gmra.mrb[100].mxu1 %vm377_vm0, %v8073_v56 }
  0xd2   :  { %944 = vmatprep.mubr.bf16.mxu0 %v7813_v6  ;;  %1137 = vmatprep.mubr.bf16.mxu1 %v7813_v6 }
  0xd9   :  { %5627 = vmatmul.mubr.msk.bf16.gmra.mrb[104].mxu0 %vm377_vm0, %v8090_v59  ;;  %5643 = vmatmul.mubr.msk.bf16.gmra.mrb[104].mxu1 %vm377_vm0, %v8090_v59 }
  0xda   :  { %954 = vmatprep.mubr.bf16.mxu0 %v7813_v6  ;;  %1147 = vmatprep.mubr.bf16.mxu1 %v7813_v6 }
  0xdc   :  { %v8268_v18 = vpop.f32.mrb[0].mxu0  ;;  %v8272_v20 = vpop.f32.mrb[0].mxu1 }
  0xdd   :  { %v8270_v19 = vpop.f32.mrb[1].mxu0  ;;  %10588 = vst [vmem:[#allocation8_spill] sm:$0xff] %v8272_v20  ;;  %v8276_v22 = vpop.f32.mrb[1].mxu1 }
  0xde   :  { %10587 = vst [vmem:[#allocation7_spill] sm:$0xff] %v8270_v19  ;;  %v8274_v21 = vpop.f32.mrb[2].mxu0  ;;  %10589 = vst [vmem:[#allocation9_spill] sm:$0xff] %v8276_v22  ;;  %v8280_v24 = vpop.f32.mrb[2].mxu1 }
  0xdf   :  { %v8278_v23 = vpop.f32.mrb[3].mxu0  ;;  %10591 = vst [vmem:[#allocation11_spill] sm:$0xff] %v8280_v24  ;;  %v8282_v25 = vpop.f32.mrb[3].mxu1 }
  0xe0   :  { %10590 = vst [vmem:[#allocation10_spill] sm:$0xff] %v8278_v23  ;;  %10592 = vst [vmem:[#allocation12_spill] sm:$0xff] %v8282_v25 }
  0xe1   :  { %5628 = vmatmul.mubr.msk.bf16.gmra.mrb[108].mxu0 %vm377_vm0, %v8101_v60  ;;  %5644 = vmatmul.mubr.msk.bf16.gmra.mrb[108].mxu1 %vm377_vm0, %v8101_v60  ;;  %v6639_v60 = vld [vmem:[%s10475_s3 + $0x8] sm:$0xff]  }
  0xe2   :  { %964 = vmatprep.mubr.bf16.mxu0 %v7813_v6  ;;  %1157 = vmatprep.mubr.bf16.mxu1 %v7813_v6 }
  0xe4   :  { %v8290_v26 = vpop.f32.mrb[4].mxu0  ;;  %v8294_v28 = vpop.f32.mrb[4].mxu1 }
  0xe5   :  { %v8292_v27 = vpop.f32.mrb[5].mxu0  ;;  %10594 = vst [vmem:[#allocation14_spill] sm:$0xff] %v8294_v28  ;;  %v8298_v30 = vpop.f32.mrb[5].mxu1 }
  0xe6   :  { %10593 = vst [vmem:[#allocation13_spill] sm:$0xff] %v8292_v27  ;;  %v8296_v29 = vpop.f32.mrb[6].mxu0  ;;  %10595 = vst [vmem:[#allocation15_spill] sm:$0xff] %v8298_v30  ;;  %v8302_v32 = vpop.f32.mrb[6].mxu1 }
  0xe7   :  { %v8300_v31 = vpop.f32.mrb[7].mxu0  ;;  %10597 = vst [vmem:[#allocation17_spill] sm:$0xff] %v8302_v32  ;;  %v8304_v33 = vpop.f32.mrb[7].mxu1 }
  0xe8   :  { %10596 = vst [vmem:[#allocation16_spill] sm:$0xff] %v8300_v31  ;;  %10598 = vst [vmem:[#allocation18_spill] sm:$0xff] %v8304_v33 }
  0xe9   :  { %5629 = vmatmul.mubr.msk.bf16.gmra.mrb[112].mxu0 %vm377_vm0, %v8112_v61  ;;  %5645 = vmatmul.mubr.msk.bf16.gmra.mrb[112].mxu1 %vm377_vm0, %v8112_v61 }
  0xea   :  { %974 = vmatprep.mubr.bf16.mxu0 %v7813_v6  ;;  %1167 = vmatprep.mubr.bf16.mxu1 %v7813_v6 }
  0xec   :  { %v8312_v34 = vpop.f32.mrb[8].mxu0  ;;  %v8316_v36 = vpop.f32.mrb[8].mxu1 }
  0xed   :  { %v8314_v35 = vpop.f32.mrb[9].mxu0  ;;  %10600 = vst [vmem:[#allocation20_spill] sm:$0xff] %v8316_v36  ;;  %v8320_v38 = vpop.f32.mrb[9].mxu1 }
  0xee   :  { %10599 = vst [vmem:[#allocation19_spill] sm:$0xff] %v8314_v35  ;;  %v8318_v37 = vpop.f32.mrb[10].mxu0  ;;  %10601 = vst [vmem:[#allocation21_spill] sm:$0xff] %v8320_v38  ;;  %v8324_v40 = vpop.f32.mrb[10].mxu1 }
  0xef   :  { %v8322_v39 = vpop.f32.mrb[11].mxu0  ;;  %10603 = vst [vmem:[#allocation23_spill] sm:$0xff] %v8324_v40  ;;  %v8326_v41 = vpop.f32.mrb[11].mxu1 }
  0xf0   :  { %10602 = vst [vmem:[#allocation22_spill] sm:$0xff] %v8322_v39  ;;  %10604 = vst [vmem:[#allocation24_spill] sm:$0xff] %v8326_v41 }
  0xf1   :  { %5630 = vmatmul.mubr.msk.bf16.gmra.mrb[116].mxu0 %vm377_vm0, %v8123_v62  ;;  %5646 = vmatmul.mubr.msk.bf16.gmra.mrb[116].mxu1 %vm377_vm0, %v8123_v62 }
  0xf2   :  { %984 = vmatprep.mubr.bf16.mxu0 %v7813_v6  ;;  %1177 = vmatprep.mubr.bf16.mxu1 %v7813_v6 }
  0xf4   :  { %v8334_v42 = vpop.f32.mrb[12].mxu0  ;;  %v8338_v44 = vpop.f32.mrb[12].mxu1 }
  0xf5   :  { %v8336_v43 = vpop.f32.mrb[13].mxu0  ;;  %10606 = vst [vmem:[#allocation26_spill] sm:$0xff] %v8338_v44  ;;  %v8342_v46 = vpop.f32.mrb[13].mxu1 }
  0xf6   :  { %10605 = vst [vmem:[#allocation25_spill] sm:$0xff] %v8336_v43  ;;  %v8340_v45 = vpop.f32.mrb[14].mxu0  ;;  %10607 = vst [vmem:[#allocation27_spill] sm:$0xff] %v8342_v46  ;;  %v8346_v48 = vpop.f32.mrb[14].mxu1 }
  0xf7   :  { %v8344_v47 = vpop.f32.mrb[15].mxu0  ;;  %10609 = vst [vmem:[#allocation29_spill] sm:$0xff] %v8346_v48  ;;  %v8348_v49 = vpop.f32.mrb[15].mxu1 }
  0xf8   :  { %10608 = vst [vmem:[#allocation28_spill] sm:$0xff] %v8344_v47  ;;  %10610 = vst [vmem:[#allocation30_spill] sm:$0xff] %v8348_v49 }
  0xf9   :  { %5631 = vmatmul.mubr.msk.bf16.gmra.mrb[120].mxu0 %vm377_vm0, %v8134_v63  ;;  %5647 = vmatmul.mubr.msk.bf16.gmra.mrb[120].mxu1 %vm377_vm0, %v8134_v63  ;;  %v6640_v63 = vld [vmem:[%s10475_s3 + $0x10] sm:$0xff]  }
  0xfa   :  { %994 = vmatprep.mubr.bf16.mxu0 %v7813_v6  ;;  %1187 = vmatprep.mubr.bf16.mxu1 %v7813_v6 }
  0xfc   :  { %v8356_v50 = vpop.f32.mrb[16].mxu0  ;;  %v8360_v52 = vpop.f32.mrb[16].mxu1 }
  0xfd   :  { %v8358_v51 = vpop.f32.mrb[17].mxu0  ;;  %10612 = vst [vmem:[#allocation32_spill] sm:$0xff] %v8360_v52  ;;  %v8369_v55 = vpop.f32.mrb[17].mxu1 }
  0xfe   :  { %10611 = vst [vmem:[#allocation31_spill] sm:$0xff] %v8358_v51  ;;  %v8362_v53 = vpop.f32.mrb[18].mxu0  ;;  %10613 = vst [vmem:[#allocation33_spill] sm:$0xff] %v8369_v55  ;;  %v8373_v57 = vpop.f32.mrb[18].mxu1 }
  0xff   :  { %v8371_v56 = vpop.f32.mrb[19].mxu0  ;;  %10615 = vst [vmem:[#allocation35_spill] sm:$0xff] %v8373_v57  ;;  %v8375_v6 = vpop.f32.mrb[19].mxu1 }
 0x100   :  { %10614 = vst [vmem:[#allocation34_spill] sm:$0xff] %v8371_v56  ;;  %10616 = vst [vmem:[#allocation36_spill] sm:$0xff] %v8375_v6 }
 0x101   :  { %5632 = vmatmul.mubr.msk.bf16.gmra.mrb[124].mxu0 %vm377_vm0, %v8145_v0  ;;  %5648 = vmatmul.mubr.msk.bf16.gmra.mrb[124].mxu1 %vm377_vm0, %v8145_v0 }
 0x102   :  { %6304 = vmatprep.mubr.msk.bf16.mxu0 %vm1598_vm1, %v8367_v54  ;;  %6344 = vmatprep.mubr.msk.bf16.mxu1 %vm1598_vm1, %v8367_v54 }
 0x104   :  { %v8385_v58 = vpop.f32.mrb[20].mxu0  ;;  %v8392_v61 = vpop.f32.mrb[20].mxu1 }
 0x105   :  { %v8387_v59 = vpop.f32.mrb[21].mxu0  ;;  %10618 = vst [vmem:[#allocation38_spill] sm:$0xff] %v8392_v61  ;;  %v8399_v0 = vpop.f32.mrb[21].mxu1 }
 0x106   :  { %10617 = vst [vmem:[#allocation37_spill] sm:$0xff] %v8387_v59  ;;  %v8394_v62 = vpop.f32.mrb[22].mxu0  ;;  %10619 = vst [vmem:[#allocation39_spill] sm:$0xff] %v8399_v0  ;;  %v8403_v2 = vpop.f32.mrb[22].mxu1  ;;  %v6645_v0 = vld [vmem:[%s10475_s3 + $0x38] sm:$0xff]  }
 0x107   :  { %v8401_v1 = vpop.f32.mrb[23].mxu0  ;;  %10621 = vst [vmem:[#allocation41_spill] sm:$0xff] %v8403_v2  ;;  %v8405_v3 = vpop.f32.mrb[23].mxu1 }
 0x108   :  { %10620 = vst [vmem:[#allocation40_spill] sm:$0xff] %v8401_v1  ;;  %10622 = vst [vmem:[#allocation42_spill] sm:$0xff] %v8405_v3 }
 0x109   :  { %6305 = vmatmul.mubr.msk.bf16.vlgmr.msra.gmra.mrb[128].mxu0 %vm1598_vm1, %v6639_v60 }
 0x10a   :  { %6308 = vmatprep.mubr.msk.bf16.mxu0 %vm1598_vm1, %v6640_v63 }
 0x10c   :  { %v8409_v4 = vpop.f32.mrb[24].mxu0  ;;  %v8416_v8 = vpop.f32.mrb[24].mxu1 }
 0x10d   :  { %v8411_v5 = vpop.f32.mrb[25].mxu0  ;;  %10624 = vst [vmem:[#allocation44_spill] sm:$0xff] %v8416_v8  ;;  %v8423_v11 = vpop.f32.mrb[25].mxu1 }
 0x10e   :  { %10623 = vst [vmem:[#allocation43_spill] sm:$0xff] %v8411_v5  ;;  %v8418_v9 = vpop.f32.mrb[26].mxu0  ;;  %10625 = vst [vmem:[#allocation45_spill] sm:$0xff] %v8423_v11  ;;  %v8427_v13 = vpop.f32.mrb[26].mxu1 }
 0x10f   :  { %v8425_v12 = vpop.f32.mrb[27].mxu0  ;;  %10627 = vst [vmem:[#allocation47_spill] sm:$0xff] %v8427_v13  ;;  %v8429_v14 = vpop.f32.mrb[27].mxu1 }
 0x110   :  { %10626 = vst [vmem:[#allocation46_spill] sm:$0xff] %v8425_v12  ;;  %10628 = vst [vmem:[#allocation48_spill] sm:$0xff] %v8429_v14  ;;  %v6644_v14 = vld [vmem:[%s10475_s3 + $0x30] sm:$0xff]  }
 0x111   :  { %6309 = vmatmul.mubr.msk.bf16.gmra.mrb[132].mxu0 %vm1598_vm1, %v6641_v7 }
 0x112   :  { %6312 = vmatprep.mubr.msk.bf16.mxu0 %vm1598_vm1, %v6642_v10 }
 0x114   :  { %v8433_v15 = vpop.f32.mrb[28].mxu0  ;;  %v8440_v60 = vpop.f32.mrb[28].mxu1 }
 0x115   :  { %v8435_v16 = vpop.f32.mrb[29].mxu0  ;;  %10630 = vst [vmem:[#allocation50_spill] sm:$0xff] %v8440_v60  ;;  %v8447_v11 = vpop.f32.mrb[29].mxu1 }
 0x116   :  { %10629 = vst [vmem:[#allocation49_spill] sm:$0xff] %v8435_v16  ;;  %v8442_v63 = vpop.f32.mrb[30].mxu0  ;;  %10631 = vst [vmem:[#allocation51_spill] sm:$0xff] %v8447_v11  ;;  %v8451_v10 = vpop.f32.mrb[30].mxu1 }
 0x117   :  { %v8449_v7 = vpop.f32.mrb[31].mxu0  ;;  %10633 = vst [vmem:[#allocation53_spill] sm:$0xff] %v8451_v10  ;;  %v8453_v6 = vpop.f32.mrb[31].mxu1 }
 0x118   :  { %10632 = vst [vmem:[#allocation52_spill] sm:$0xff] %v8449_v7  ;;  %10634 = vst [vmem:[#allocation54_spill] sm:$0xff] %v8453_v6  ;;  %v6646_v6 = vld [vmem:[%s10475_s3 + $0x40] sm:$0xff]  }
 0x119   :  { %6313 = vmatmul.mubr.msk.bf16.gmra.mrb[136].mxu0 %vm1598_vm1, %v6643_v17 }
 0x11a   :  { %6316 = vmatprep.mubr.msk.bf16.mxu0 %vm1598_vm1, %v6644_v14 }
 0x11c   :  { %v8457_v3 = vpop.f32.mrb[32].mxu0  ;;  %v8464_v41 = vpop.f32.mrb[32].mxu1 }
 0x11d   :  { %10635 = vst [vmem:[#allocation55_spill] sm:$0xff] %v8457_v3  ;;  %v8459_v55 = vpop.f32.mrb[33].mxu0  ;;  %10637 = vst [vmem:[#allocation57_spill] sm:$0xff] %v8464_v41  ;;  %v8471_v49 = vpop.f32.mrb[33].mxu1 }
 0x11e   :  { %10636 = vst [vmem:[#allocation56_spill] sm:$0xff] %v8459_v55  ;;  %v8466_v11 = vpop.f32.mrb[34].mxu0  ;;  %10639 = vst [vmem:[#allocation59_spill] sm:$0xff] %v8471_v49  ;;  %v8475_v14 = vpop.f32.mrb[34].mxu1 }
 0x11f   :  { %10638 = vst [vmem:[#allocation58_spill] sm:$0xff] %v8466_v11  ;;  %v8473_v17 = vpop.f32.mrb[35].mxu0  ;;  %10641 = vst [vmem:[#allocation61_spill] sm:$0xff] %v8475_v14  ;;  %v8477_v3 = vpop.f32.mrb[35].mxu1  ;;  %v6647_v11 = vld [vmem:[%s10475_s3 + $0x48] sm:$0xff]  }
 0x120   :  { %10640 = vst [vmem:[#allocation60_spill] sm:$0xff] %v8473_v17  ;;  %10642 = vst [vmem:[#allocation62_spill] sm:$0xff] %v8477_v3  ;;  %v6648_v17 = vld [vmem:[%s10475_s3 + $0x50] sm:$0xff]  }
 0x121   :  { %6317 = vmatmul.mubr.msk.bf16.gmra.mrb[140].mxu0 %vm1598_vm1, %v6645_v0 }
 0x122   :  { %6320 = vmatprep.mubr.msk.bf16.mxu0 %vm1598_vm1, %v6646_v6 }
 0x124   :  { %v8481_v55 = vpop.f32.mrb[36].mxu0  ;;  %v8488_v38 = vpop.f32.mrb[36].mxu1 }
 0x125   :  { %10643 = vst [vmem:[#allocation63_spill] sm:$0xff] %v8481_v55  ;;  %v8483_v41 = vpop.f32.mrb[37].mxu0  ;;  %10645 = vst [vmem:[#allocation65_spill] sm:$0xff] %v8488_v38  ;;  %v8495_v14 = vpop.f32.mrb[37].mxu1 }
 0x126   :  { %10644 = vst [vmem:[#allocation64_spill] sm:$0xff] %v8483_v41  ;;  %v8490_v49 = vpop.f32.mrb[38].mxu0  ;;  %10647 = vst [vmem:[#allocation67_spill] sm:$0xff] %v8495_v14  ;;  %v8499_v6 = vpop.f32.mrb[38].mxu1 }
 0x127   :  { %10646 = vst [vmem:[#allocation66_spill] sm:$0xff] %v8490_v49  ;;  %v8497_v0 = vpop.f32.mrb[39].mxu0  ;;  %10649 = vst [vmem:[#allocation69_spill] sm:$0xff] %v8499_v6  ;;  %v8501_v55 = vpop.f32.mrb[39].mxu1  ;;  %v6649_v49 = vld [vmem:[%s10475_s3 + $0x58] sm:$0xff]  }
 0x128   :  { %10648 = vst [vmem:[#allocation68_spill] sm:$0xff] %v8497_v0  ;;  %10650 = vst [vmem:[#allocation70_spill] sm:$0xff] %v8501_v55  ;;  %v6650_v0 = vld [vmem:[%s10475_s3 + $0x60] sm:$0xff]  }
 0x129   :  { %6321 = vmatmul.mubr.msk.bf16.gmra.mrb[144].mxu0 %vm1598_vm1, %v6647_v11 }
 0x12a   :  { %6324 = vmatprep.mubr.msk.bf16.mxu0 %vm1598_vm1, %v6648_v17 }
 0x12c   :  { %v8505_v41 = vpop.f32.mrb[40].mxu0  ;;  %v8512_v3 = vpop.f32.mrb[40].mxu1 }
 0x12d   :  { %10651 = vst [vmem:[#allocation71_spill] sm:$0xff] %v8505_v41  ;;  %v8507_v38 = vpop.f32.mrb[41].mxu0  ;;  %10653 = vst [vmem:[#allocation73_spill] sm:$0xff] %v8512_v3  ;;  %v8519_v6 = vpop.f32.mrb[41].mxu1 }
 0x12e   :  { %10652 = vst [vmem:[#allocation72_spill] sm:$0xff] %v8507_v38  ;;  %v8514_v14 = vpop.f32.mrb[42].mxu0  ;;  %10655 = vst [vmem:[#allocation75_spill] sm:$0xff] %v8519_v6  ;;  %v8523_v17 = vpop.f32.mrb[42].mxu1 }
 0x12f   :  { %10654 = vst [vmem:[#allocation74_spill] sm:$0xff] %v8514_v14  ;;  %v8521_v11 = vpop.f32.mrb[43].mxu0  ;;  %10657 = vst [vmem:[#allocation77_spill] sm:$0xff] %v8523_v17  ;;  %v8525_v41 = vpop.f32.mrb[43].mxu1  ;;  %v6651_v14 = vld [vmem:[%s10475_s3 + $0x68] sm:$0xff]  }
 0x130   :  { %10656 = vst [vmem:[#allocation76_spill] sm:$0xff] %v8521_v11  ;;  %10658 = vst [vmem:[#allocation78_spill] sm:$0xff] %v8525_v41  ;;  %v6652_v11 = vld [vmem:[%s10475_s3 + $0x70] sm:$0xff]  }
 0x131   :  { %6325 = vmatmul.mubr.msk.bf16.gmra.mrb[148].mxu0 %vm1598_vm1, %v6649_v49 }
 0x132   :  { %6328 = vmatprep.mubr.msk.bf16.mxu0 %vm1598_vm1, %v6650_v0 }
 0x134   :  { %v8529_v38 = vpop.f32.mrb[44].mxu0  ;;  %v8536_v55 = vpop.f32.mrb[44].mxu1 }
 0x135   :  { %10659 = vst [vmem:[#allocation79_spill] sm:$0xff] %v8529_v38  ;;  %v8531_v3 = vpop.f32.mrb[45].mxu0  ;;  %10661 = vst [vmem:[#allocation81_spill] sm:$0xff] %v8536_v55  ;;  %v8543_v17 = vpop.f32.mrb[45].mxu1 }
 0x136   :  { %10660 = vst [vmem:[#allocation80_spill] sm:$0xff] %v8531_v3  ;;  %v8538_v6 = vpop.f32.mrb[46].mxu0  ;;  %10663 = vst [vmem:[#allocation83_spill] sm:$0xff] %v8543_v17  ;;  %v8547_v0 = vpop.f32.mrb[46].mxu1 }
 0x137   :  { %10662 = vst [vmem:[#allocation82_spill] sm:$0xff] %v8538_v6  ;;  %v8545_v49 = vpop.f32.mrb[47].mxu0  ;;  %10665 = vst [vmem:[#allocation85_spill] sm:$0xff] %v8547_v0  ;;  %v8549_v38 = vpop.f32.mrb[47].mxu1  ;;  %v6653_v6 = vld [vmem:[%s10475_s3 + $0x78] sm:$0xff]  }
 0x138   :  { %10664 = vst [vmem:[#allocation84_spill] sm:$0xff] %v8545_v49  ;;  %10666 = vst [vmem:[#allocation86_spill] sm:$0xff] %v8549_v38 }
 0x139   :  { %6329 = vmatmul.mubr.msk.bf16.gmra.mrb[152].mxu0 %vm1598_vm1, %v6651_v14 }
 0x13a   :  { %6332 = vmatprep.mubr.msk.bf16.mxu0 %vm1598_vm1, %v6652_v11 }
 0x13c   :  { %v8553_v3 = vpop.f32.mrb[48].mxu0  ;;  %v8560_v41 = vpop.f32.mrb[48].mxu1 }
 0x13d   :  { %10667 = vst [vmem:[#allocation87_spill] sm:$0xff] %v8553_v3  ;;  %v8555_v55 = vpop.f32.mrb[49].mxu0  ;;  %10669 = vst [vmem:[#allocation89_spill] sm:$0xff] %v8560_v41  ;;  %v8564_v49 = vpop.f32.mrb[49].mxu1 }
 0x13e   :  { %10668 = vst [vmem:[#allocation88_spill] sm:$0xff] %v8555_v55  ;;  %v8562_v17 = vpop.f32.mrb[50].mxu0  ;;  %10671 = vst [vmem:[#allocation91_spill] sm:$0xff] %v8564_v49  ;;  %v8568_v38 = vpop.f32.mrb[50].mxu1 }
 0x13f   :  { %10670 = vst [vmem:[#allocation90_spill] sm:$0xff] %v8562_v17  ;;  %v8566_v0 = vpop.f32.mrb[51].mxu0  ;;  %10673 = vst [vmem:[#allocation93_spill] sm:$0xff] %v8568_v38  ;;  %v8570_v14 = vpop.f32.mrb[51].mxu1 }
 0x140   :  { %10672 = vst [vmem:[#allocation92_spill] sm:$0xff] %v8566_v0  ;;  %10674 = vst [vmem:[#allocation94_spill] sm:$0xff] %v8570_v14 }
 0x141   :  { %6333 = vmatmul.mubr.msk.bf16.gmra.mrb[156].mxu0 %vm1598_vm1, %v6653_v6 }
 0x142   :  { %6384 = vmatprep.mubr.msk.bf16.mxu0 %vm1598_vm1, %v8367_v54 }
 0x144   :  { %v8575_v11 = vpop.f32.mrb[52].mxu0  ;;  %v8579_v55 = vpop.f32.mrb[52].mxu1 }
 0x145   :  { %10675 = vst [vmem:[#allocation95_spill] sm:$0xff] %v8575_v11  ;;  %v8577_v3 = vpop.f32.mrb[53].mxu0  ;;  %10677 = vst [vmem:[#allocation97_spill] sm:$0xff] %v8579_v55  ;;  %v8583_v41 = vpop.f32.mrb[53].mxu1 }
 0x146   :  { %10676 = vst [vmem:[#allocation96_spill] sm:$0xff] %v8577_v3  ;;  %v8581_v17 = vpop.f32.mrb[54].mxu0  ;;  %10679 = vst [vmem:[#allocation99_spill] sm:$0xff] %v8583_v41  ;;  %v8587_v38 = vpop.f32.mrb[54].mxu1 }
 0x147   :  { %10678 = vst [vmem:[#allocation98_spill] sm:$0xff] %v8581_v17  ;;  %v8585_v0 = vpop.f32.mrb[55].mxu0  ;;  %10681 = vst [vmem:[#allocation101_spill] sm:$0xff] %v8587_v38  ;;  %v8589_v14 = vpop.f32.mrb[55].mxu1 }
 0x148   :  { %10680 = vst [vmem:[#allocation100_spill] sm:$0xff] %v8585_v0  ;;  %10682 = vst [vmem:[#allocation102_spill] sm:$0xff] %v8589_v14 }
 0x14c   :  { %v8591_v6 = vpop.f32.mrb[56].mxu0  ;;  %v8595_v54 = vpop.f32.mrb[56].mxu1 }
 0x14d   :  { %10683 = vst [vmem:[#allocation103_spill] sm:$0xff] %v8591_v6  ;;  %v8593_v49 = vpop.f32.mrb[57].mxu0  ;;  %10685 = vst [vmem:[#allocation105_spill] sm:$0xff] %v8595_v54  ;;  %v8599_v3 = vpop.f32.mrb[57].mxu1 }
 0x14e   :  { %10684 = vst [vmem:[#allocation104_spill] sm:$0xff] %v8593_v49  ;;  %v8597_v11 = vpop.f32.mrb[58].mxu0  ;;  %10687 = vst [vmem:[#allocation107_spill] sm:$0xff] %v8599_v3  ;;  %v8603_v17 = vpop.f32.mrb[58].mxu1 }
 0x14f   :  { %10686 = vst [vmem:[#allocation106_spill] sm:$0xff] %v8597_v11  ;;  %v8601_v55 = vpop.f32.mrb[59].mxu0  ;;  %10689 = vst [vmem:[#allocation109_spill] sm:$0xff] %v8603_v17  ;;  %v8605_v41 = vpop.f32.mrb[59].mxu1 }
 0x150   :  { %10688 = vst [vmem:[#allocation108_spill] sm:$0xff] %v8601_v55  ;;  %10690 = vst [vmem:[#allocation110_spill] sm:$0xff] %v8605_v41 }
 0x154   :  { %v8607_v0 = vpop.f32.mrb[60].mxu0  ;;  %v8611_v14 = vpop.f32.mrb[60].mxu1 }
 0x155   :  { %10691 = vst [vmem:[#allocation111_spill] sm:$0xff] %v8607_v0  ;;  %v8609_v38 = vpop.f32.mrb[61].mxu0  ;;  %10693 = vst [vmem:[#allocation113_spill] sm:$0xff] %v8611_v14  ;;  %v8615_v49 = vpop.f32.mrb[61].mxu1 }
 0x156   :  { %10692 = vst [vmem:[#allocation112_spill] sm:$0xff] %v8609_v38  ;;  %v8613_v6 = vpop.f32.mrb[62].mxu0  ;;  %10695 = vst [vmem:[#allocation115_spill] sm:$0xff] %v8615_v49  ;;  %v8619_v11 = vpop.f32.mrb[62].mxu1 }
 0x157   :  { %10694 = vst [vmem:[#allocation114_spill] sm:$0xff] %v8613_v6  ;;  %v8617_v54 = vpop.f32.mrb[63].mxu0  ;;  %10697 = vst [vmem:[#allocation117_spill] sm:$0xff] %v8619_v11  ;;  %v8621_v3 = vpop.f32.mrb[63].mxu1 }
 0x158   :  { %10696 = vst [vmem:[#allocation116_spill] sm:$0xff] %v8617_v54  ;;  %10698 = vst [vmem:[#allocation118_spill] sm:$0xff] %v8621_v3 }
 0x15c   :  { %v8623_v55 = vpop.f32.mrb[64].mxu0  ;;  %v8627_v41 = vpop.f32.mrb[64].mxu1 }
 0x15d   :  { %10699 = vst [vmem:[#allocation119_spill] sm:$0xff] %v8623_v55  ;;  %v8625_v17 = vpop.f32.mrb[65].mxu0  ;;  %10701 = vst [vmem:[#allocation121_spill] sm:$0xff] %v8627_v41  ;;  %v8631_v38 = vpop.f32.mrb[65].mxu1 }
 0x15e   :  { %10700 = vst [vmem:[#allocation120_spill] sm:$0xff] %v8625_v17  ;;  %v8629_v0 = vpop.f32.mrb[66].mxu0  ;;  %10703 = vst [vmem:[#allocation123_spill] sm:$0xff] %v8631_v38  ;;  %v8635_v6 = vpop.f32.mrb[66].mxu1 }
 0x15f   :  { %10702 = vst [vmem:[#allocation122_spill] sm:$0xff] %v8629_v0  ;;  %v8633_v14 = vpop.f32.mrb[67].mxu0  ;;  %10705 = vst [vmem:[#allocation125_spill] sm:$0xff] %v8635_v6  ;;  %v8637_v49 = vpop.f32.mrb[67].mxu1 }
 0x160   :  { %10704 = vst [vmem:[#allocation124_spill] sm:$0xff] %v8633_v14  ;;  %10706 = vst [vmem:[#allocation126_spill] sm:$0xff] %v8637_v49 }
 0x164   :  { %v8639_v54 = vpop.f32.mrb[68].mxu0  ;;  %v8643_v3 = vpop.f32.mrb[68].mxu1 }
 0x165   :  { %10707 = vst [vmem:[#allocation127_spill] sm:$0xff] %v8639_v54  ;;  %v8641_v11 = vpop.f32.mrb[69].mxu0  ;;  %10709 = vst [vmem:[#allocation129_spill] sm:$0xff] %v8643_v3  ;;  %v8647_v17 = vpop.f32.mrb[69].mxu1 }
 0x166   :  { %10708 = vst [vmem:[#allocation128_spill] sm:$0xff] %v8641_v11  ;;  %v8645_v55 = vpop.f32.mrb[70].mxu0  ;;  %10711 = vst [vmem:[#allocation131_spill] sm:$0xff] %v8647_v17  ;;  %v8651_v0 = vpop.f32.mrb[70].mxu1 }
 0x167   :  { %10710 = vst [vmem:[#allocation130_spill] sm:$0xff] %v8645_v55  ;;  %v8649_v41 = vpop.f32.mrb[71].mxu0  ;;  %10713 = vst [vmem:[#allocation133_spill] sm:$0xff] %v8651_v0  ;;  %v8653_v38 = vpop.f32.mrb[71].mxu1 }
 0x168   :  { %10712 = vst [vmem:[#allocation132_spill] sm:$0xff] %v8649_v41  ;;  %10714 = vst [vmem:[#allocation134_spill] sm:$0xff] %v8653_v38 }
 0x16c   :  { %v8655_v14 = vpop.f32.mrb[72].mxu0  ;;  %v8659_v49 = vpop.f32.mrb[72].mxu1 }
 0x16d   :  { %10715 = vst [vmem:[#allocation135_spill] sm:$0xff] %v8655_v14  ;;  %v8657_v6 = vpop.f32.mrb[73].mxu0  ;;  %10717 = vst [vmem:[#allocation137_spill] sm:$0xff] %v8659_v49  ;;  %v8663_v11 = vpop.f32.mrb[73].mxu1 }
 0x16e   :  { %10716 = vst [vmem:[#allocation136_spill] sm:$0xff] %v8657_v6  ;;  %v8661_v54 = vpop.f32.mrb[74].mxu0  ;;  %10719 = vst [vmem:[#allocation139_spill] sm:$0xff] %v8663_v11  ;;  %v8667_v55 = vpop.f32.mrb[74].mxu1 }
 0x16f   :  { %10718 = vst [vmem:[#allocation138_spill] sm:$0xff] %v8661_v54  ;;  %v8665_v3 = vpop.f32.mrb[75].mxu0  ;;  %10721 = vst [vmem:[#allocation141_spill] sm:$0xff] %v8667_v55  ;;  %v8669_v17 = vpop.f32.mrb[75].mxu1 }
 0x170   :  { %10720 = vst [vmem:[#allocation140_spill] sm:$0xff] %v8665_v3  ;;  %10722 = vst [vmem:[#allocation142_spill] sm:$0xff] %v8669_v17 }
 0x174   :  { %v8671_v41 = vpop.f32.mrb[76].mxu0  ;;  %v8675_v38 = vpop.f32.mrb[76].mxu1 }
 0x175   :  { %10723 = vst [vmem:[#allocation143_spill] sm:$0xff] %v8671_v41  ;;  %v8673_v0 = vpop.f32.mrb[77].mxu0  ;;  %10725 = vst [vmem:[#allocation145_spill] sm:$0xff] %v8675_v38  ;;  %v8679_v6 = vpop.f32.mrb[77].mxu1 }
 0x176   :  { %10724 = vst [vmem:[#allocation144_spill] sm:$0xff] %v8673_v0  ;;  %v8677_v14 = vpop.f32.mrb[78].mxu0  ;;  %10727 = vst [vmem:[#allocation147_spill] sm:$0xff] %v8679_v6  ;;  %v8683_v54 = vpop.f32.mrb[78].mxu1 }
 0x177   :  { %10726 = vst [vmem:[#allocation146_spill] sm:$0xff] %v8677_v14  ;;  %v8681_v49 = vpop.f32.mrb[79].mxu0  ;;  %10729 = vst [vmem:[#allocation149_spill] sm:$0xff] %v8683_v54  ;;  %v8685_v11 = vpop.f32.mrb[79].mxu1 }
 0x178   :  { %10728 = vst [vmem:[#allocation148_spill] sm:$0xff] %v8681_v49  ;;  %10730 = vst [vmem:[#allocation150_spill] sm:$0xff] %v8685_v11 }
 0x17c   :  { %v8687_v3 = vpop.f32.mrb[80].mxu0  ;;  %v8691_v17 = vpop.f32.mrb[80].mxu1 }
 0x17d   :  { %10731 = vst [vmem:[#allocation151_spill] sm:$0xff] %v8687_v3  ;;  %v8689_v55 = vpop.f32.mrb[81].mxu0  ;;  %10733 = vst [vmem:[#allocation153_spill] sm:$0xff] %v8691_v17  ;;  %v8695_v0 = vpop.f32.mrb[81].mxu1 }
 0x17e   :  { %10732 = vst [vmem:[#allocation152_spill] sm:$0xff] %v8689_v55  ;;  %v8693_v41 = vpop.f32.mrb[82].mxu0  ;;  %10735 = vst [vmem:[#allocation155_spill] sm:$0xff] %v8695_v0  ;;  %v8699_v14 = vpop.f32.mrb[82].mxu1 }
 0x17f   :  { %10734 = vst [vmem:[#allocation154_spill] sm:$0xff] %v8693_v41  ;;  %v8697_v38 = vpop.f32.mrb[83].mxu0  ;;  %10737 = vst [vmem:[#allocation157_spill] sm:$0xff] %v8699_v14  ;;  %v8701_v6 = vpop.f32.mrb[83].mxu1 }
 0x180   :  { %10736 = vst [vmem:[#allocation156_spill] sm:$0xff] %v8697_v38  ;;  %10738 = vst [vmem:[#allocation158_spill] sm:$0xff] %v8701_v6 }
 0x184   :  { %v8703_v49 = vpop.f32.mrb[84].mxu0  ;;  %v8707_v11 = vpop.f32.mrb[84].mxu1 }
 0x185   :  { %10739 = vst [vmem:[#allocation159_spill] sm:$0xff] %v8703_v49  ;;  %v8705_v54 = vpop.f32.mrb[85].mxu0  ;;  %10741 = vst [vmem:[#allocation161_spill] sm:$0xff] %v8707_v11  ;;  %v8711_v55 = vpop.f32.mrb[85].mxu1 }
 0x186   :  { %10740 = vst [vmem:[#allocation160_spill] sm:$0xff] %v8705_v54  ;;  %v8709_v3 = vpop.f32.mrb[86].mxu0  ;;  %10743 = vst [vmem:[#allocation163_spill] sm:$0xff] %v8711_v55  ;;  %v8715_v41 = vpop.f32.mrb[86].mxu1 }
 0x187   :  { %10742 = vst [vmem:[#allocation162_spill] sm:$0xff] %v8709_v3  ;;  %v8713_v17 = vpop.f32.mrb[87].mxu0  ;;  %10745 = vst [vmem:[#allocation165_spill] sm:$0xff] %v8715_v41  ;;  %v8717_v0 = vpop.f32.mrb[87].mxu1 }
 0x188   :  { %10744 = vst [vmem:[#allocation164_spill] sm:$0xff] %v8713_v17  ;;  %10746 = vst [vmem:[#allocation166_spill] sm:$0xff] %v8717_v0 }
 0x18c   :  { %v8719_v38 = vpop.f32.mrb[88].mxu0  ;;  %v8723_v6 = vpop.f32.mrb[88].mxu1 }
 0x18d   :  { %10747 = vst [vmem:[#allocation167_spill] sm:$0xff] %v8719_v38  ;;  %v8721_v14 = vpop.f32.mrb[89].mxu0  ;;  %10749 = vst [vmem:[#allocation169_spill] sm:$0xff] %v8723_v6  ;;  %v8727_v54 = vpop.f32.mrb[89].mxu1 }
 0x18e   :  { %10748 = vst [vmem:[#allocation168_spill] sm:$0xff] %v8721_v14  ;;  %v8725_v49 = vpop.f32.mrb[90].mxu0  ;;  %10751 = vst [vmem:[#allocation171_spill] sm:$0xff] %v8727_v54  ;;  %v8731_v3 = vpop.f32.mrb[90].mxu1 }
 0x18f   :  { %10750 = vst [vmem:[#allocation170_spill] sm:$0xff] %v8725_v49  ;;  %v8729_v11 = vpop.f32.mrb[91].mxu0  ;;  %10753 = vst [vmem:[#allocation173_spill] sm:$0xff] %v8731_v3  ;;  %v8733_v55 = vpop.f32.mrb[91].mxu1 }
 0x190   :  { %10752 = vst [vmem:[#allocation172_spill] sm:$0xff] %v8729_v11  ;;  %10754 = vst [vmem:[#allocation174_spill] sm:$0xff] %v8733_v55 }
 0x194   :  { %v8735_v17 = vpop.f32.mrb[92].mxu0  ;;  %v8739_v0 = vpop.f32.mrb[92].mxu1 }
 0x195   :  { %10755 = vst [vmem:[#allocation175_spill] sm:$0xff] %v8735_v17  ;;  %v8737_v41 = vpop.f32.mrb[93].mxu0  ;;  %10757 = vst [vmem:[#allocation177_spill] sm:$0xff] %v8739_v0  ;;  %v8743_v14 = vpop.f32.mrb[93].mxu1 }
 0x196   :  { %10756 = vst [vmem:[#allocation176_spill] sm:$0xff] %v8737_v41  ;;  %v8741_v38 = vpop.f32.mrb[94].mxu0  ;;  %10759 = vst [vmem:[#allocation179_spill] sm:$0xff] %v8743_v14  ;;  %v8747_v49 = vpop.f32.mrb[94].mxu1 }
 0x197   :  { %10758 = vst [vmem:[#allocation178_spill] sm:$0xff] %v8741_v38  ;;  %v8745_v6 = vpop.f32.mrb[95].mxu0  ;;  %10761 = vst [vmem:[#allocation181_spill] sm:$0xff] %v8747_v49  ;;  %v8749_v54 = vpop.f32.mrb[95].mxu1 }
 0x198   :  { %10760 = vst [vmem:[#allocation180_spill] sm:$0xff] %v8745_v6  ;;  %10762 = vst [vmem:[#allocation182_spill] sm:$0xff] %v8749_v54  ;;  %v8767_v6 = vpop.permute.xlu0 %99  ;;  %v8769_v49 = vpop.permute.xlu1 %119 }
 0x199   :  { %10769 = vst [vmem:[#allocation189_spill] sm:$0xff] %v8767_v6  ;;  %10770 = vst [vmem:[#allocation190_spill] sm:$0xff] %v8769_v49 }
 0x19c   :  { %v8751_v11 = vpop.f32.mrb[96].mxu0  ;;  %v8755_v55 = vpop.f32.mrb[96].mxu1 }
 0x19d   :  { %10763 = vst [vmem:[#allocation183_spill] sm:$0xff] %v8751_v11  ;;  %v8753_v3 = vpop.f32.mrb[97].mxu0  ;;  %10765 = vst [vmem:[#allocation185_spill] sm:$0xff] %v8755_v55  ;;  %v8759_v41 = vpop.f32.mrb[97].mxu1 }
 0x19e   :  { %10764 = vst [vmem:[#allocation184_spill] sm:$0xff] %v8753_v3  ;;  %v8757_v17 = vpop.f32.mrb[98].mxu0  ;;  %v8763_v38 = vpop.f32.mrb[98].mxu1 }
 0x19f   :  { %10766 = vst [vmem:[#allocation186_spill] sm:$0xff] %v8757_v17  ;;  %v8761_v0 = vpop.f32.mrb[99].mxu0  ;;  %10768 = vst [vmem:[#allocation188_spill] sm:$0xff] %v8763_v38  ;;  %v8765_v14 = vpop.f32.mrb[99].mxu1 }
 0x1a0   :  { %10767 = vst [vmem:[#allocation187_spill] sm:$0xff] %v8761_v0  ;;  %v8785_v30 = vpop.permute.xlu0 %104  ;;  %v8789_v3 = vpop.permute.xlu1 %124 }
 0x1a1   :  { %10777 = vst [vmem:[#allocation197_spill] sm:$0xff] %v8789_v3  ;;  %v465_v35 = vadd.f32 %v8274_v21, %v8785_v30  ;;  %v481_v21 = vadd.f32 %v8312_v34, %v8769_v49 }
 0x1a4   :  { %v8771_v54 = vpop.f32.mrb[100].mxu0  ;;  %v8775_v46 = vpop.f32.mrb[100].mxu1 }
 0x1a5   :  { %10771 = vst [vmem:[#allocation191_spill] sm:$0xff] %v8771_v54  ;;  %v8773_v11 = vpop.f32.mrb[101].mxu0  ;;  %10773 = vst [vmem:[#allocation193_spill] sm:$0xff] %v8775_v46  ;;  %v8779_v17 = vpop.f32.mrb[101].mxu1 }
 0x1a6   :  { %10772 = vst [vmem:[#allocation192_spill] sm:$0xff] %v8773_v11  ;;  %v8777_v25 = vpop.f32.mrb[102].mxu0  ;;  %v8783_v22 = vpop.f32.mrb[102].mxu1 }
 0x1a7   :  { %10774 = vst [vmem:[#allocation194_spill] sm:$0xff] %v8777_v25  ;;  %v8781_v33 = vpop.f32.mrb[103].mxu0  ;;  %10776 = vst [vmem:[#allocation196_spill] sm:$0xff] %v8783_v22  ;;  %v8787_v0 = vpop.f32.mrb[103].mxu1 }
 0x1a8   :  { %10775 = vst [vmem:[#allocation195_spill] sm:$0xff] %v8781_v33  ;;  %v8791_v13 = vpop.permute.xlu0 %109  ;;  %v8809_v2 = vpop.permute.xlu1 %114 }
 0x1a9   :  { %10778 = vst [vmem:[#allocation198_spill] sm:$0xff] %v8791_v13  ;;  %v471_v51 = vadd.f32 %v8290_v26, %v8791_v13 }
 0x1ac   :  { %v8793_v54 = vpop.f32.mrb[104].mxu0  ;;  %v8797_v10 = vpop.f32.mrb[104].mxu1 }
 0x1ad   :  { %10779 = vst [vmem:[#allocation199_spill] sm:$0xff] %v8793_v54  ;;  %v8795_v11 = vpop.f32.mrb[105].mxu0  ;;  %10781 = vst [vmem:[#allocation201_spill] sm:$0xff] %v8797_v10  ;;  %v8801_v8 = vpop.f32.mrb[105].mxu1 }
 0x1ae   :  { %10780 = vst [vmem:[#allocation200_spill] sm:$0xff] %v8795_v11  ;;  %v8799_v25 = vpop.f32.mrb[106].mxu0  ;;  %v8805_v60 = vpop.f32.mrb[106].mxu1 }
 0x1af   :  { %10782 = vst [vmem:[#allocation202_spill] sm:$0xff] %v8799_v25  ;;  %v8803_v33 = vpop.f32.mrb[107].mxu0  ;;  %10784 = vst [vmem:[#allocation204_spill] sm:$0xff] %v8805_v60  ;;  %v8807_v57 = vpop.f32.mrb[107].mxu1 }
 0x1b0   :  { %10783 = vst [vmem:[#allocation203_spill] sm:$0xff] %v8803_v33  ;;  %v8811_v52 = vpop.permute.xlu0 %129  ;;  %v8829_v44 = vpop.permute.xlu1 %134 }
 0x1b1   :  { %10785 = vst [vmem:[#allocation205_spill] sm:$0xff] %v8811_v52  ;;  %10792 = vst [vmem:[#allocation212_spill] sm:$0xff] %v8829_v44 }
 0x1b4   :  { %v8813_v61 = vpop.f32.mrb[108].mxu0  ;;  %v8817_v11 = vpop.f32.mrb[108].mxu1 }
 0x1b5   :  { %10786 = vst [vmem:[#allocation206_spill] sm:$0xff] %v8813_v61  ;;  %v8815_v54 = vpop.f32.mrb[109].mxu0  ;;  %10788 = vst [vmem:[#allocation208_spill] sm:$0xff] %v8817_v11  ;;  %v8821_v25 = vpop.f32.mrb[109].mxu1 }
 0x1b6   :  { %10787 = vst [vmem:[#allocation207_spill] sm:$0xff] %v8815_v54  ;;  %v8819_v40 = vpop.f32.mrb[110].mxu0  ;;  %v8825_v33 = vpop.f32.mrb[110].mxu1 }
 0x1b7   :  { %10789 = vst [vmem:[#allocation209_spill] sm:$0xff] %v8819_v40  ;;  %v8823_v48 = vpop.f32.mrb[111].mxu0  ;;  %10791 = vst [vmem:[#allocation211_spill] sm:$0xff] %v8825_v33  ;;  %v8827_v36 = vpop.f32.mrb[111].mxu1 }
 0x1b8   :  { %10790 = vst [vmem:[#allocation210_spill] sm:$0xff] %v8823_v48  ;;  %v8831_v24 = vpop.permute.xlu0 %179  ;;  %v8849_v11 = vpop.permute.xlu1 %184 }
 0x1b9   :  { %10793 = vst [vmem:[#allocation213_spill] sm:$0xff] %v8831_v24  ;;  %10800 = vst [vmem:[#allocation220_spill] sm:$0xff] %v8849_v11 }
 0x1bc   :  { %v8833_v32 = vpop.f32.mrb[112].mxu0  ;;  %v8837_v54 = vpop.f32.mrb[112].mxu1 }
 0x1bd   :  { %10794 = vst [vmem:[#allocation214_spill] sm:$0xff] %v8833_v32  ;;  %v8835_v61 = vpop.f32.mrb[113].mxu0  ;;  %10796 = vst [vmem:[#allocation216_spill] sm:$0xff] %v8837_v54  ;;  %v8841_v40 = vpop.f32.mrb[113].mxu1 }
 0x1be   :  { %10795 = vst [vmem:[#allocation215_spill] sm:$0xff] %v8835_v61  ;;  %v8839_v20 = vpop.f32.mrb[114].mxu0  ;;  %v8845_v48 = vpop.f32.mrb[114].mxu1 }
 0x1bf   :  { %10797 = vst [vmem:[#allocation217_spill] sm:$0xff] %v8839_v20  ;;  %v8843_v28 = vpop.f32.mrb[115].mxu0  ;;  %10799 = vst [vmem:[#allocation219_spill] sm:$0xff] %v8845_v48  ;;  %v8847_v33 = vpop.f32.mrb[115].mxu1 }
 0x1c0   :  { %10798 = vst [vmem:[#allocation218_spill] sm:$0xff] %v8843_v28  ;;  %v8851_v60 = vpop.permute.xlu0 %199  ;;  %v8869_v22 = vpop.permute.xlu1 %204 }
 0x1c1   :  { %10801 = vst [vmem:[#allocation221_spill] sm:$0xff] %v8851_v60  ;;  %10808 = vst [vmem:[#allocation228_spill] sm:$0xff] %v8869_v22 }
 0x1c4   :  { %v8853_v10 = vpop.f32.mrb[116].mxu0  ;;  %v8857_v61 = vpop.f32.mrb[116].mxu1 }
 0x1c5   :  { %10802 = vst [vmem:[#allocation222_spill] sm:$0xff] %v8853_v10  ;;  %v8855_v32 = vpop.f32.mrb[117].mxu0  ;;  %10804 = vst [vmem:[#allocation224_spill] sm:$0xff] %v8857_v61  ;;  %v8861_v20 = vpop.f32.mrb[117].mxu1 }
 0x1c6   :  { %10803 = vst [vmem:[#allocation223_spill] sm:$0xff] %v8855_v32  ;;  %v8859_v54 = vpop.f32.mrb[118].mxu0  ;;  %v8865_v28 = vpop.f32.mrb[118].mxu1 }
 0x1c7   :  { %10805 = vst [vmem:[#allocation225_spill] sm:$0xff] %v8859_v54  ;;  %v8863_v38 = vpop.f32.mrb[119].mxu0  ;;  %10807 = vst [vmem:[#allocation227_spill] sm:$0xff] %v8865_v28  ;;  %v8867_v48 = vpop.f32.mrb[119].mxu1 }
 0x1c8   :  { %10806 = vst [vmem:[#allocation226_spill] sm:$0xff] %v8863_v38  ;;  %v8871_v55 = vpop.permute.xlu0 %189  ;;  %v8889_v7 = vpop.permute.xlu1 %194 }
 0x1c9   :  { %10809 = vst [vmem:[#allocation229_spill] sm:$0xff] %v8871_v55  ;;  %10816 = vst [vmem:[#allocation236_spill] sm:$0xff] %v8889_v7 }
 0x1cc   :  { %v8873_v46 = vpop.f32.mrb[120].mxu0  ;;  %v8877_v32 = vpop.f32.mrb[120].mxu1 }
 0x1cd   :  { %10810 = vst [vmem:[#allocation230_spill] sm:$0xff] %v8873_v46  ;;  %v8875_v10 = vpop.f32.mrb[121].mxu0  ;;  %10812 = vst [vmem:[#allocation232_spill] sm:$0xff] %v8877_v32  ;;  %v8881_v54 = vpop.f32.mrb[121].mxu1 }
 0x1ce   :  { %10811 = vst [vmem:[#allocation231_spill] sm:$0xff] %v8875_v10  ;;  %v8879_v61 = vpop.f32.mrb[122].mxu0  ;;  %v8885_v38 = vpop.f32.mrb[122].mxu1 }
 0x1cf   :  { %10813 = vst [vmem:[#allocation233_spill] sm:$0xff] %v8879_v61  ;;  %v8883_v12 = vpop.f32.mrb[123].mxu0  ;;  %10815 = vst [vmem:[#allocation235_spill] sm:$0xff] %v8885_v38  ;;  %v8887_v28 = vpop.f32.mrb[123].mxu1 }
 0x1d0   :  { %10814 = vst [vmem:[#allocation234_spill] sm:$0xff] %v8883_v12  ;;  %v8891_v5 = vpop.permute.xlu0 %209  ;;  %v8907_v38 = vpop.permute.xlu1 %214 }
 0x1d1   :  { %10817 = vst [vmem:[#allocation237_spill] sm:$0xff] %v8891_v5 }
 0x1d4   :  { %v8893_v16 = vpop.f32.mrb[124].mxu0  ;;  %v8895_v46 = vpop.f32.mrb[124].mxu1 }
 0x1d5   :  { %10818 = vst [vmem:[#allocation238_spill] sm:$0xff] %v8893_v16  ;;  %10819 = vst [vmem:[#allocation239_spill] sm:$0xff] %v8895_v46  ;;  %v8897_v10 = vpop.f32.mrb[125].mxu0  ;;  %v8899_v32 = vpop.f32.mrb[125].mxu1 }
 0x1d6   :  { %10820 = vst [vmem:[#allocation240_spill] sm:$0xff] %v8897_v10  ;;  %v8901_v61 = vpop.f32.mrb[126].mxu0  ;;  %v8903_v56 = vpop.f32.mrb[126].mxu1  ;;  %v461_v10 = vadd.f32 %v8268_v18, %v8767_v6 }
 0x1d7   :  { %10821 = vst [vmem:[#allocation241_spill] sm:$0xff] %v8901_v61  ;;  %10822 = vst [vmem:[#allocation242_spill] sm:$0xff] %v8903_v56  ;;  %v8905_v12 = vpop.f32.mrb[127].mxu0  ;;  %v8909_v1 = vpop.f32.mrb[127].mxu1  ;;  %v475_v61 = vadd.f32 %v8296_v29, %v8809_v2  ;;  %v491_v29 = vadd.f32 %v8334_v42, %v8811_v52 }
 0x1d8   :  { %10823 = vst [vmem:[#allocation243_spill] sm:$0xff] %v8905_v12  ;;  %v8913_v16 = vpop.permute.xlu0 %139  ;;  %v8919_v56 = vpop.permute.xlu1 %144 }
 0x1d9   :  { %10824 = vst [vmem:[#allocation244_spill] sm:$0xff] %v8913_v16  ;;  %10825 = vst [vmem:[#allocation245_spill] sm:$0xff] %v8919_v56 }
 0x1dc   :  { %v6306_v46 = vpop.f32.mrb[128].mxu0  ;;  %v8923_v18 = vpop.permute.xlu0 %159 }
 0x1dd   :  { %v1810_v59 = vadd.f32 %v6306_v46, %v471_v51  ;;  %v1681_v39 = vpop.f32.mrb[129].mxu0  ;;  %10826 = vst [vmem:[#allocation246_spill] sm:$0xff] %v8923_v18 }
 0x1de   :  { %v1808_v12 = vadd.f32 %v1681_v39, %v461_v10  ;;  %v6307_v47 = vpop.f32.mrb[130].mxu0  ;;  %v8927_v39 = vpop.permute.xlu1 %164 }
 0x1df   :  { %v5683_v43 = vmul.f32 -1.442695, %v1810_v59  ;;  %v1811_v26 = vadd.f32 %v6307_v47, %v475_v61  ;;  %v1684_v23 = vpop.f32.mrb[131].mxu0  ;;  %10827 = vst [vmem:[#allocation247_spill] sm:$0xff] %v8927_v39 }
 0x1e0   :  { %v5681_v31 = vmul.f32 -1.442695, %v1808_v12  ;;  %v1809_v19 = vadd.f32 %v1684_v23, %v465_v35  ;;  %v495_v23 = vadd.f32 %v8340_v45, %v8829_v44  ;;  %v8935_v61 = vpop.permute.xlu0 %149 }
 0x1e1   :  { %6702 = vpow2.f32 %v5683_v43  ;;  %v5684_v27 = vmul.f32 -1.442695, %v1811_v26  ;;  %10828 = vst [vmem:[#allocation248_spill] sm:$0xff] %v8935_v61  ;;  %v511_v45 = vadd.f32 %v8385_v58, %v8935_v61  ;;  %v505_v58 = vadd.f32 %v8362_v53, %v8919_v56 }
 0x1e2   :  { %6704 = vpow2.f32 %v5681_v31  ;;  %v5682_v46 = vmul.f32 -1.442695, %v1809_v19  ;;  %v485_v19 = vadd.f32 %v8318_v37, %v8789_v3  ;;  %v8937_v34 = vpop.permute.xlu1 %154 }
 0x1e3   :  { %6706 = vpow2.f32 %v5684_v27  ;;  %10829 = vst [vmem:[#allocation249_spill] sm:$0xff] %v8937_v34 }
 0x1e4   :  { %6708 = vpow2.f32 %v5682_v46  ;;  %v6310_v51 = vpop.f32.mrb[132].mxu0 }
 0x1e5   :  { %v1814_v47 = vadd.f32 %v6310_v51, %v491_v29  ;;  %v1697_v59 = vpop.f32.mrb[133].mxu0 }
 0x1e6   :  { %v1812_v35 = vadd.f32 %v1697_v59, %v481_v21  ;;  %v6311_v43 = vpop.f32.mrb[134].mxu0 }
 0x1e7   :  { %v5687_v27 = vmul.f32 -1.442695, %v1814_v47  ;;  %v1815_v31 = vadd.f32 %v6311_v43, %v495_v23  ;;  %v1700_v42 = vpop.f32.mrb[135].mxu0  ;;  %v501_v47 = vadd.f32 %v8356_v50, %v8913_v16 }
 0x1e8   :  { %v5685_v12 = vmul.f32 -1.442695, %v1812_v35  ;;  %v1813_v10 = vadd.f32 %v1700_v42, %v485_v19  ;;  %v515_v19 = vadd.f32 %v8394_v62, %v8937_v34 }
 0x1e9   :  { %6710 = vpow2.f32 %v5687_v27  ;;  %v5688_v26 = vmul.f32 -1.442695, %v1815_v31 }
 0x1ea   :  { %6712 = vpow2.f32 %v5685_v12  ;;  %v5686_v46 = vmul.f32 -1.442695, %v1813_v10 }
 0x1eb   :  { %v6703_v29 = vpop.eup %6702  ;;  %6714 = vpow2.f32 %v5688_v26 }
 0x1ec   :  { %v6705_v51 = vpop.eup %6704  ;;  %v1878_v37 = vadd.f32 1.0, %v6703_v29  ;;  %6716 = vpow2.f32 %v5686_v46  ;;  %v6314_v21 = vpop.f32.mrb[136].mxu0 }
 0x1ed   :  { %v6707_v59 = vpop.eup %6706  ;;  %v1876_v23 = vadd.f32 1.0, %v6705_v51  ;;  %v1818_v35 = vadd.f32 %v6314_v21, %v511_v45  ;;  %v1713_v43 = vpop.f32.mrb[137].mxu0 }
 0x1ee   :  { %v6709_v27 = vpop.eup %6708  ;;  %6718 = vrcp.f32 %v1878_v37  ;;  %v1879_v31 = vadd.f32 1.0, %v6707_v59  ;;  %v1816_v42 = vadd.f32 %v1713_v43, %v501_v47  ;;  %v6315_v12 = vpop.f32.mrb[138].mxu0  ;;  %v521_v43 = vadd.f32 %v8409_v4, %v8923_v18 }
 0x1ef   :  { %6720 = vrcp.f32 %v1876_v23  ;;  %v1877_v10 = vadd.f32 1.0, %v6709_v27  ;;  %v5691_v26 = vmul.f32 -1.442695, %v1818_v35  ;;  %v1819_v46 = vadd.f32 %v6315_v12, %v515_v19  ;;  %v1716_v50 = vpop.f32.mrb[139].mxu0  ;;  %v8947_v29 = vpop.permute.xlu0 %169 }
 0x1f0   :  { %10830 = vst [vmem:[#allocation250_spill] sm:$0xff] %v8947_v29  ;;  %6722 = vrcp.f32 %v1879_v31  ;;  %v5689_v45 = vmul.f32 -1.442695, %v1816_v42  ;;  %v1817_v51 = vadd.f32 %v1716_v50, %v505_v58  ;;  %v8949_v21 = vpop.permute.xlu1 %174  ;;  %v531_v53 = vadd.f32 %v8433_v15, %v8947_v29 }
 0x1f1   :  { %6724 = vrcp.f32 %v1877_v10  ;;  %v5692_v62 = vmul.f32 -1.442695, %v1819_v46  ;;  %10831 = vst [vmem:[#allocation251_spill] sm:$0xff] %v8949_v21  ;;  %v535_v12 = vadd.f32 %v8442_v63, %v8949_v21  ;;  %v525_v46 = vadd.f32 %v8418_v9, %v8927_v39 }
 0x1f2   :  { %6726 = vpow2.f32 %v5691_v26  ;;  %v5690_v37 = vmul.f32 -1.442695, %v1817_v51  ;;  %v1122_v9 = vadd.f32 %v8759_v41, %v8831_v24 }
 0x1f3   :  { %v6711_v47 = vpop.eup %6710  ;;  %6728 = vpow2.f32 %v5689_v45 }
 0x1f4   :  { %v6713_v59 = vpop.eup %6712  ;;  %v1882_v23 = vadd.f32 1.0, %v6711_v47  ;;  %6730 = vpow2.f32 %v5692_v62  ;;  %v6318_v35 = vpop.f32.mrb[140].mxu0 }
 0x1f5   :  { %v6715_v19 = vpop.eup %6714  ;;  %v1880_v27 = vadd.f32 1.0, %v6713_v59  ;;  %6732 = vpow2.f32 %v5690_v37  ;;  %v1822_v31 = vadd.f32 %v6318_v35, %v531_v53  ;;  %v1729_v42 = vpop.f32.mrb[141].mxu0  ;;  %v1132_v53 = vadd.f32 %v8779_v17, %v8871_v55 }
 0x1f6   :  { %v6717_v58 = vpop.eup %6716  ;;  %6734 = vrcp.f32 %v1882_v23  ;;  %v1883_v10 = vadd.f32 1.0, %v6715_v19  ;;  %v1820_v26 = vadd.f32 %v1729_v42, %v521_v43  ;;  %v6319_v15 = vpop.f32.mrb[142].mxu0  ;;  %v1136_v43 = vadd.f32 %v8787_v0, %v8889_v7 }
 0x1f7   :  { %6736 = vrcp.f32 %v1880_v27  ;;  %v1881_v50 = vadd.f32 1.0, %v6717_v58  ;;  %v1823_v45 = vadd.f32 %v6319_v15, %v535_v12  ;;  %v1732_v4 = vpop.f32.mrb[143].mxu0  ;;  %v8969_v12 = vpop.permute.xlu0 %219  ;;  %v1126_v17 = vadd.f32 %v8765_v14, %v8849_v11 }
 0x1f8   :  { %v6719_v51 = vpop.eup %6718  ;;  %6738 = vrcp.f32 %v1883_v10  ;;  %v1821_v62 = vadd.f32 %v1732_v4, %v525_v46  ;;  %10832 = vst [vmem:[#allocation252_spill] sm:$0xff] %v8969_v12  ;;  %v8973_v4 = vpop.permute.xlu1 %224  ;;  %v1142_v7 = vadd.f32 %v8801_v8, %v8851_v60  ;;  %v1146_v14 = vadd.f32 %v8807_v57, %v8869_v22 }
 0x1f9   :  { %v6721_v37 = vpop.eup %6720  ;;  %6740 = vrcp.f32 %v1881_v50  ;;  %10833 = vst [vmem:[#allocation253_spill] sm:$0xff] %v8973_v4 }
 0x1fa   :  { %v8959_v47 = vpop.eup %6722  ;;  %6742 = vtanh.f32 %v1822_v31 }
 0x1fb   :  { %v8961_v63 = vpop.eup %6724  ;;  %6744 = vtanh.f32 %v1820_v26 }
 0x1fc   :  { %v6727_v59 = vpop.eup %6726  ;;  %6746 = vtanh.f32 %v1823_v45  ;;  %v6322_v23 = vpop.f32.mrb[144].mxu0 }
 0x1fd   :  { %v6729_v35 = vpop.eup %6728  ;;  %v1886_v19 = vadd.f32 1.0, %v6727_v59  ;;  %6748 = vtanh.f32 %v1821_v62  ;;  %v1826_v27 = vadd.f32 %v6322_v23, %v1132_v53  ;;  %v1745_v31 = vpop.f32.mrb[145].mxu0 }
 0x1fe   :  { %v6731_v42 = vpop.eup %6730  ;;  %v1884_v58 = vadd.f32 1.0, %v6729_v35  ;;  %v1824_v10 = vadd.f32 %v1745_v31, %v1122_v9  ;;  %v6323_v26 = vpop.f32.mrb[146].mxu0 }
 0x1ff   :  { %v6733_v41 = vpop.eup %6732  ;;  %v5695_v15 = vmul.f32 -1.442695, %v1826_v27  ;;  %v1827_v46 = vadd.f32 %v6323_v26, %v1136_v43  ;;  %v1748_v50 = vpop.f32.mrb[147].mxu0  ;;  %6750 = vrcp.f32 %v1886_v19  ;;  %v1152_v43 = vadd.f32 %v8821_v25, %v8891_v5 }
 0x200   :  { %v6735_v45 = vpop.eup %6734  ;;  %v5693_v0 = vmul.f32 -1.442695, %v1824_v10  ;;  %v1825_v62 = vadd.f32 %v1748_v50, %v1126_v17  ;;  %6752 = vrcp.f32 %v1884_v58  ;;  %v1887_v31 = vadd.f32 1.0, %v6731_v42  ;;  %v8981_v10 = vpop.permute.xlu0 %239 }
 0x201   :  { %v6737_v53 = vpop.eup %6736  ;;  %v5696_v59 = vmul.f32 -1.442695, %v1827_v46  ;;  %v1994_v27 = vmul.f32 0.0, %v6735_v45  ;;  %6754 = vpow2.f32 %v5695_v15  ;;  %10834 = vst [vmem:[#allocation254_spill] sm:$0xff] %v8981_v10  ;;  %v1156_v19 = vadd.f32 %v8827_v36, %v8907_v38  ;;  %v8985_v45 = vpop.permute.xlu1 %244 }
 0x202   :  { %v6739_v23 = vpop.eup %6738  ;;  %v5694_v9 = vmul.f32 -1.442695, %v1825_v62  ;;  %v1992_v26 = vmul.f32 0.0, %v6737_v53  ;;  %v1885_v8 = vadd.f32 1.0, %v6733_v41  ;;  %6756 = vpow2.f32 %v5693_v0  ;;  %10835 = vst [vmem:[#allocation255_spill] sm:$0xff] %v8985_v45 }
 0x203   :  { %v6741_v35 = vpop.eup %6740  ;;  %v1995_v58 = vmul.f32 0.0, %v6739_v23  ;;  %6758 = vpow2.f32 %v5696_v59 }
 0x204   :  { %v6743_v17 = vpop.eup %6742  ;;  %v6326_v46 = vpop.f32.mrb[148].mxu0  ;;  %v1993_v42 = vmul.f32 0.0, %v6741_v35  ;;  %6760 = vpow2.f32 %v5694_v9 }
 0x205   :  { %v6745_v57 = vpop.eup %6744  ;;  %v1998_v50 = vmul.f32 %v6743_v17, %v6719_v51  ;;  %v1830_v62 = vadd.f32 %v6326_v46, %v1152_v43  ;;  %v1761_v22 = vpop.f32.mrb[149].mxu0  ;;  %6762 = vrcp.f32 %v1887_v31  ;;  %v1162_v43 = vadd.f32 %v8841_v40, %v8969_v12 }
 0x206   :  { %v6747_v25 = vpop.eup %6746  ;;  %v1996_v15 = vmul.f32 %v6745_v57, %v6721_v37  ;;  %v1828_v5 = vadd.f32 %v1761_v22, %v1142_v7  ;;  %v6327_v60 = vpop.f32.mrb[150].mxu0  ;;  %6764 = vrcp.f32 %v1885_v8 }
 0x207   :  { %v6749_v11 = vpop.eup %6748  ;;  %v8987_v36 = vadd.f32 %v1998_v50, %v1994_v27  ;;  %v1999_v41 = vmul.f32 %v6747_v25, %v8959_v47  ;;  %v1831_v0 = vadd.f32 %v6327_v60, %v1156_v19  ;;  %v1764_v53 = vpop.f32.mrb[151].mxu0  ;;  %v5699_v22 = vmul.f32 -1.442695, %v1830_v62 }
 0x208   :  { %v8990_v51 = vadd.f32 %v1996_v15, %v1992_v26  ;;  %v1997_v59 = vmul.f32 %v6749_v11, %v8961_v63  ;;  %v1829_v23 = vadd.f32 %v1764_v53, %v1146_v14  ;;  %v8996_v7 = vpop.permute.xlu0 %229  ;;  %v5697_v47 = vmul.f32 -1.442695, %v1828_v5  ;;  %v9004_v14 = vpop.permute.xlu1 %234 }
 0x209   :  { %6766 = vtanh.f32 %v8987_v36  ;;  %v8994_v37 = vadd.f32 %v1999_v41, %v1995_v58  ;;  %v6751_v60 = vpop.eup %6750  ;;  %v1172_v35 = vadd.f32 %v8861_v20, %v8996_v7  ;;  %v5700_v11 = vmul.f32 -1.442695, %v1831_v0  ;;  %10836 = vst [vmem:[#allocation256_spill] sm:$0xff] %v9004_v14 }
 0x20a   :  { %6768 = vtanh.f32 %v8990_v51  ;;  %v8999_v9 = vadd.f32 %v1997_v59, %v1993_v42  ;;  %v6753_v63 = vpop.eup %6752  ;;  %v1176_v5 = vadd.f32 %v8867_v48, %v9004_v14  ;;  %v1166_v26 = vadd.f32 %v8847_v33, %v8973_v4 }
 0x20b   :  { %6770 = vtanh.f32 %v8994_v37  ;;  %v6755_v31 = vpop.eup %6754  ;;  %v5698_v48 = vmul.f32 -1.442695, %v1829_v23  ;;  %v1182_v23 = vadd.f32 %v8881_v54, %v8981_v10 }
 0x20c   :  { %6772 = vtanh.f32 %v8999_v9  ;;  %v6330_v27 = vpop.f32.mrb[152].mxu0  ;;  %v6757_v20 = vpop.eup %6756  ;;  %v1950_v8 = vadd.f32 1.0, %v6755_v31 }
 0x20d   :  { %6774 = vpow2.f32 %v5699_v22  ;;  %v1834_v17 = vadd.f32 %v6330_v27, %v1172_v35  ;;  %v1777_v19 = vpop.f32.mrb[153].mxu0  ;;  %v6759_v58 = vpop.eup %6758  ;;  %v1948_v40 = vadd.f32 1.0, %v6757_v20 }
 0x20e   :  { %6776 = vpow2.f32 %v5697_v47  ;;  %v1832_v46 = vadd.f32 %v1777_v19, %v1162_v43  ;;  %v6331_v57 = vpop.f32.mrb[154].mxu0  ;;  %v6761_v25 = vpop.eup %6760  ;;  %v1951_v42 = vadd.f32 1.0, %v6759_v58  ;;  %v1186_v19 = vadd.f32 %v8887_v28, %v8985_v45 }
 0x20f   :  { %6778 = vpow2.f32 %v5700_v11  ;;  %v1835_v50 = vadd.f32 %v6331_v57, %v1176_v5  ;;  %v1780_v62 = vpop.f32.mrb[155].mxu0  ;;  %v6763_v41 = vpop.eup %6762  ;;  %v1949_v0 = vadd.f32 1.0, %v6761_v25  ;;  %v5703_v53 = vmul.f32 -1.442695, %v1834_v17 }
 0x210   :  { %6780 = vrcp.f32 %v1950_v8  ;;  %v1833_v15 = vadd.f32 %v1780_v62, %v1166_v26  ;;  %v6765_v59 = vpop.eup %6764  ;;  %v9013_v33 = vpop.permute.xlu0 %249  ;;  %v5701_v22 = vmul.f32 -1.442695, %v1832_v46 }
 0x211   :  { %6782 = vrcp.f32 %v1948_v40  ;;  %10837 = vst [vmem:[#allocation257_spill] sm:$0xff] %v9013_v33  ;;  %v1192_v35 = vadd.f32 %v8899_v32, %v9013_v33  ;;  %v5704_v11 = vmul.f32 -1.442695, %v1835_v50  ;;  %v9017_v27 = vpop.permute.xlu1 %254 }
 0x212   :  { %6784 = vrcp.f32 %v1951_v42  ;;  %v5702_v31 = vmul.f32 -1.442695, %v1833_v15  ;;  %v1196_v20 = vadd.f32 %v8909_v1, %v9017_v27 }
 0x213   :  { %v6767_v47 = vpop.eup %6766  ;;  %6786 = vrcp.f32 %v1949_v0 }
 0x214   :  { %v6769_v43 = vpop.eup %6768  ;;  %6788 = vpow2.f32 %v5698_v48  ;;  %v6334_v5 = vpop.f32.mrb[156].mxu0  ;;  %v2022_v58 = vmul.f32 %v6767_v47, %v6751_v60 }
 0x215   :  { %v6771_v17 = vpop.eup %6770  ;;  %6790 = vpow2.f32 %v5703_v53  ;;  %v1838_v32 = vadd.f32 %v6334_v5, %v1192_v35  ;;  %v1793_v26 = vpop.f32.mrb[157].mxu0  ;;  %v2020_v25 = vmul.f32 %v6769_v43, %v6753_v63 }
 0x216   :  { %v6773_v8 = vpop.eup %6772  ;;  %6792 = vpow2.f32 %v5701_v22  ;;  %v1836_v46 = vadd.f32 %v1793_v26, %v1182_v23  ;;  %v6335_v57 = vpop.f32.mrb[158].mxu0  ;;  %v2023_v40 = vmul.f32 %v6771_v17, %v6763_v41 }
 0x217   :  { %v6775_v54 = vpop.eup %6774  ;;  %6794 = vpow2.f32 %v5704_v11  ;;  %v1839_v50 = vadd.f32 %v6335_v57, %v1196_v20  ;;  %v1796_v62 = vpop.f32.mrb[159].mxu0  ;;  %v2021_v42 = vmul.f32 %v6773_v8, %v6765_v59 }
 0x218   :  { %v6777_v48 = vpop.eup %6776  ;;  %v1954_v28 = vadd.f32 1.0, %v6775_v54  ;;  %6796 = vpow2.f32 %v5702_v31  ;;  %v1837_v15 = vadd.f32 %v1796_v62, %v1186_v19  ;;  %v9025_v1 = vpack.c.bf16 %v2023_v40, %v2022_v58 }
 0x219   :  { %v6779_v0 = vpop.eup %6778  ;;  %v1952_v53 = vadd.f32 1.0, %v6777_v48  ;;  %6798 = vtanh.f32 %v1838_v32  ;;  %v9027_v22 = vpack.c.bf16 %v2021_v42, %v2020_v25 }
 0x21a   :  { %10838 = vst [vmem:[#allocation258_spill] sm:$0xff] %v9025_v1  ;;  %v6781_v35 = vpop.eup %6780  ;;  %6800 = vrcp.f32 %v1954_v28  ;;  %v1955_v60 = vadd.f32 1.0, %v6779_v0 }
 0x21b   :  { %10839 = vst [vmem:[#allocation259_spill] sm:$0xff] %v9027_v22  ;;  %v6783_v41 = vpop.eup %6782  ;;  %6802 = vrcp.f32 %v1952_v53  ;;  %6336 = vmatprep.subr.bf16.mxu1 %v9027_v22 }
 0x21c   :  { %v6785_v63 = vpop.eup %6784  ;;  %6804 = vrcp.f32 %v1955_v60  ;;  %6337 = vmatpush3.bf16.msra.mxu1 %v9027_v22 }
 0x21d   :  { %v6787_v59 = vpop.eup %6786  ;;  %6806 = vtanh.f32 %v1836_v46  ;;  %6338 = vmatprep.subr.bf16.mxu1 %v9025_v1 }
 0x21e   :  { %v6789_v47 = vpop.eup %6788  ;;  %6808 = vtanh.f32 %v1839_v50 }
 0x21f   :  { %v6791_v11 = vpop.eup %6790  ;;  %v1953_v43 = vadd.f32 1.0, %v6789_v47  ;;  %6810 = vtanh.f32 %v1837_v15 }
 0x220   :  { %v6793_v23 = vpop.eup %6792  ;;  %6339 = vmatpush3.bf16.msra.mxu1 %v9025_v1  ;;  %v1958_v8 = vadd.f32 1.0, %v6791_v11  ;;  %v10850_v1 = vld [vmem:[#allocation10_spill] sm:$0xff] }
 0x221   :  { %v6795_v31 = vpop.eup %6794  ;;  %6812 = vrcp.f32 %v1953_v43  ;;  %v1956_v58 = vadd.f32 1.0, %v6793_v23  ;;  %v467_v22 = vadd.f32 %v10850_v1, %v8785_v30 }
 0x222   :  { %v6797_v5 = vpop.eup %6796  ;;  %v1959_v25 = vadd.f32 1.0, %v6795_v31  ;;  %6814 = vrcp.f32 %v1958_v8 }
 0x223   :  { %v6799_v17 = vpop.eup %6798  ;;  %6816 = vrcp.f32 %v1956_v58  ;;  %v9063_v58 = vld [vmem:[%s10475_s3 + $0x10] sm:$0xff]  }
 0x224   :  { %v6801_v19 = vpop.eup %6800  ;;  %v2010_v20 = vmul.f32 %v6799_v17, %v6781_v35  ;;  %v1957_v35 = vadd.f32 1.0, %v6797_v5 }
 0x225   :  { %v6803_v32 = vpop.eup %6802  ;;  %v2006_v26 = vmul.f32 0.0, %v6801_v19 }
 0x226   :  { %v6805_v46 = vpop.eup %6804  ;;  %v2004_v57 = vmul.f32 0.0, %v6803_v32 }
 0x227   :  { %v6807_v40 = vpop.eup %6806  ;;  %v2007_v54 = vmul.f32 0.0, %v6805_v46  ;;  %v9033_v50 = vadd.f32 %v2010_v20, %v2006_v26 }
 0x228   :  { %v6809_v62 = vpop.eup %6808  ;;  %v2008_v42 = vmul.f32 %v6807_v40, %v6783_v41  ;;  %v9070_v40 = vld [vmem:[%s10475_s3 + $0x18] sm:$0xff]  }
 0x229   :  { %v6811_v48 = vpop.eup %6810  ;;  %v2011_v28 = vmul.f32 %v6809_v62, %v6785_v63  ;;  %6818 = vtanh.f32 %v9033_v50  ;;  %v9084_v62 = vld [vmem:[%s10475_s3 + $0x28] sm:$0xff]  }
 0x22a   :  { %v9035_v15 = vadd.f32 %v2008_v42, %v2004_v57  ;;  %v2009_v0 = vmul.f32 %v6811_v48, %v6787_v59  ;;  %6820 = vrcp.f32 %v1959_v25  ;;  %v9056_v57 = vld [vmem:[%s10475_s3 + $0x8] sm:$0xff]   ;;  %v9091_v25 = vld [vmem:[%s10475_s3 + $0x30] sm:$0xff]   ;;  %v9098_v42 = vld [vmem:[%s10475_s3 + $0x38] sm:$0xff]  }
 0x22b   :  { %v6813_v53 = vpop.eup %6812  ;;  %v9038_v60 = vadd.f32 %v2011_v28, %v2007_v54  ;;  %v9077_v54 = vld [vmem:[%s10475_s3 + $0x20] sm:$0xff]   ;;  %v9112_v28 = vld [vmem:[%s10475_s3 + $0x48] sm:$0xff]  }
 0x22c   :  { %v2005_v47 = vmul.f32 0.0, %v6813_v53  ;;  %v6815_v63 = vpop.eup %6814  ;;  %v9105_v48 = vld [vmem:[%s10475_s3 + $0x40] sm:$0xff]   ;;  %v9126_v53 = vld [vmem:[%s10475_s3 + $0x58] sm:$0xff]  }
 0x22d   :  { %6822 = vtanh.f32 %v9038_v60  ;;  %v6817_v11 = vpop.eup %6816 }
 0x22e   :  { %6824 = vtanh.f32 %v9035_v15  ;;  %v9042_v41 = vadd.f32 %v2009_v0, %v2005_v47  ;;  %v9119_v0 = vld [vmem:[%s10475_s3 + $0x50] sm:$0xff]   ;;  %v9140_v47 = vld [vmem:[%s10475_s3 + $0x68] sm:$0xff]  }
 0x22f   :  { %6826 = vrcp.f32 %v1957_v35  ;;  %v9133_v35 = vld [vmem:[%s10475_s3 + $0x60] sm:$0xff]   ;;  %10843 = vst [vmem:[#allocation263_spill] sm:$0xff] %v9140_v47 }
 0x230   :  { %6828 = vtanh.f32 %v9042_v41  ;;  %10842 = vst [vmem:[#allocation262_spill] sm:$0xff] %v9133_v35 }
 0x233   :  { %v6819_v59 = vpop.eup %6818 }
 0x234   :  { %v6821_v43 = vpop.eup %6820  ;;  %v2032_v5 = vmul.f32 %v6819_v59, %v6815_v63  ;;  %v9147_v63 = vld [vmem:[%s10475_s3 + $0x70] sm:$0xff]   ;;  %v9161_v59 = vld [vmem:[%s10475_s3] sm:$0xff]  }
 0x235   :  { %10844 = vst [vmem:[#allocation264_spill] sm:$0xff] %v9147_v63  ;;  %10846 = vst [vmem:[#allocation266_spill] sm:$0xff] %v9161_v59 }
 0x237   :  { %v6823_v23 = vpop.eup %6822 }
 0x238   :  { %v6825_v31 = vpop.eup %6824  ;;  %v2033_v17 = vmul.f32 %v6823_v23, %v6821_v43  ;;  %v10847_v43 = vld [vmem:[#allocation13_spill] sm:$0xff] }
 0x239   :  { %v6827_v19 = vpop.eup %6826  ;;  %v2030_v26 = vmul.f32 %v6825_v31, %v6817_v11  ;;  %v9154_v11 = vld [vmem:[%s10475_s3 + $0x78] sm:$0xff]   ;;  %v473_v23 = vadd.f32 %v10847_v43, %v8791_v13 }
 0x23a   :  { %v6829_v20 = vpop.eup %6828  ;;  %v9045_v32 = vpack.c.bf16 %v2033_v17, %v2032_v5  ;;  %10845 = vst [vmem:[#allocation265_spill] sm:$0xff] %v9154_v11  ;;  %v10848_v5 = vld [vmem:[#allocation7_spill] sm:$0xff] }
 0x23b   :  { %v2031_v8 = vmul.f32 %v6829_v20, %v6827_v19  ;;  %v463_v17 = vadd.f32 %v10848_v5, %v8767_v6 }
 0x23c   :  { %10840 = vst [vmem:[#allocation260_spill] sm:$0xff] %v9045_v32 }
 0x23d   :  { %v9047_v46 = vpack.c.bf16 %v2031_v8, %v2030_v26  ;;  %v10849_v26 = vld [vmem:[#allocation16_spill] sm:$0xff] }
 0x23e   :  { %v477_v8 = vadd.f32 %v10849_v26, %v8809_v2 }
 0x23f   :  { %10841 = vst [vmem:[#allocation261_spill] sm:$0xff] %v9047_v46  ;;  %6340 = vmatprep.subr.bf16.mxu1 %v9047_v46 }
 0x240   :  { %6341 = vmatpush3.bf16.msra.mxu1 %v9047_v46 }
 0x241   :  { %6342 = vmatprep.subr.bf16.mxu1 %v9045_v32 }
 0x244   :  { %6343 = vmatpush3.bf16.msra.mxu1 %v9045_v32 }
 0x247   :  { %6345 = vmatmul.mubr.msk.bf16.vlgmr.msra.gmra.mrb[128].mxu1 %vm1598_vm1, %v9056_v57 }
 0x248   :  { %6348 = vmatprep.mubr.msk.bf16.mxu1 %vm1598_vm1, %v9063_v58 }
 0x24f   :  { %6349 = vmatmul.mubr.msk.bf16.gmra.mrb[132].mxu1 %vm1598_vm1, %v9070_v40 }
 0x250   :  { %6352 = vmatprep.mubr.msk.bf16.mxu1 %vm1598_vm1, %v9077_v54 }
 0x257   :  { %6353 = vmatmul.mubr.msk.bf16.gmra.mrb[136].mxu1 %vm1598_vm1, %v9084_v62 }
 0x258   :  { %6356 = vmatprep.mubr.msk.bf16.mxu1 %vm1598_vm1, %v9091_v25 }
 0x25f   :  { %6357 = vmatmul.mubr.msk.bf16.gmra.mrb[140].mxu1 %vm1598_vm1, %v9098_v42 }
 0x260   :  { %6360 = vmatprep.mubr.msk.bf16.mxu1 %vm1598_vm1, %v9105_v48 }
 0x267   :  { %6361 = vmatmul.mubr.msk.bf16.gmra.mrb[144].mxu1 %vm1598_vm1, %v9112_v28 }
 0x268   :  { %6364 = vmatprep.mubr.msk.bf16.mxu1 %vm1598_vm1, %v9119_v0 }
 0x26f   :  { %6365 = vmatmul.mubr.msk.bf16.gmra.mrb[148].mxu1 %vm1598_vm1, %v9126_v53 }
 0x270   :  { %6368 = vmatprep.mubr.msk.bf16.mxu1 %vm1598_vm1, %v9133_v35 }
 0x277   :  { %6369 = vmatmul.mubr.msk.bf16.gmra.mrb[152].mxu1 %vm1598_vm1, %v9140_v47 }
 0x278   :  { %6372 = vmatprep.mubr.msk.bf16.mxu1 %vm1598_vm1, %v9147_v63 }
 0x27f   :  { %6373 = vmatmul.mubr.msk.bf16.gmra.mrb[156].mxu1 %vm1598_vm1, %v9154_v11 }
 0x280   :  { %6424 = vmatprep.mubr.msk.bf16.mxu1 %vm1598_vm1, %v9161_v59 }
 0x31a   :  { %v6346_v31 = vpop.f32.mrb[128].mxu1 }
 0x31b   :  { %v2235_v19 = vadd.f32 %v6346_v31, %v473_v23  ;;  %v2106_v20 = vpop.f32.mrb[129].mxu1  ;;  %v10851_v23 = vld [vmem:[#allocation25_spill] sm:$0xff] }
 0x31c   :  { %v2233_v32 = vadd.f32 %v2106_v20, %v463_v17  ;;  %v6347_v46 = vpop.f32.mrb[130].mxu1  ;;  %v493_v31 = vadd.f32 %v10851_v23, %v8811_v52  ;;  %v10852_v17 = vld [vmem:[#allocation19_spill] sm:$0xff] }
 0x31d   :  { %v5723_v11 = vmul.f32 -1.442695, %v2235_v19  ;;  %v2236_v63 = vadd.f32 %v6347_v46, %v477_v8  ;;  %v2109_v59 = vpop.f32.mrb[131].mxu1  ;;  %v483_v20 = vadd.f32 %v10852_v17, %v8769_v49  ;;  %v10853_v46 = vld [vmem:[#allocation28_spill] sm:$0xff] }
 0x31e   :  { %v5721_v47 = vmul.f32 -1.442695, %v2233_v32  ;;  %v2234_v35 = vadd.f32 %v2109_v59, %v467_v22  ;;  %v497_v19 = vadd.f32 %v10853_v46, %v8829_v44  ;;  %v10872_v49 = vld [vmem:[#allocation204_spill] sm:$0xff] }
 0x31f   :  { %6830 = vpow2.f32 %v5723_v11  ;;  %v5724_v43 = vmul.f32 -1.442695, %v2236_v63  ;;  %v10854_v63 = vld [vmem:[#allocation22_spill] sm:$0xff] }
 0x320   :  { %6832 = vpow2.f32 %v5721_v47  ;;  %v5722_v13 = vmul.f32 -1.442695, %v2234_v35  ;;  %v487_v47 = vadd.f32 %v10854_v63, %v8789_v3  ;;  %v10856_v63 = vld [vmem:[#allocation31_spill] sm:$0xff] }
 0x321   :  { %6834 = vpow2.f32 %v5724_v43 }
 0x322   :  { %6836 = vpow2.f32 %v5722_v13  ;;  %v6350_v5 = vpop.f32.mrb[132].mxu1 }
 0x323   :  { %v2239_v26 = vadd.f32 %v6350_v5, %v493_v31  ;;  %v2122_v1 = vpop.f32.mrb[133].mxu1  ;;  %v10855_v31 = vld [vmem:[#allocation37_spill] sm:$0xff] }
 0x324   :  { %v2237_v32 = vadd.f32 %v2122_v1, %v483_v20  ;;  %v6351_v22 = vpop.f32.mrb[134].mxu1  ;;  %v513_v5 = vadd.f32 %v10855_v31, %v8935_v61  ;;  %v10858_v31 = vld [vmem:[#allocation34_spill] sm:$0xff] }
 0x325   :  { %v5727_v35 = vmul.f32 -1.442695, %v2239_v26  ;;  %v2240_v11 = vadd.f32 %v6351_v22, %v497_v19  ;;  %v2125_v59 = vpop.f32.mrb[135].mxu1  ;;  %v503_v26 = vadd.f32 %v10856_v63, %v8913_v16 }
 0x326   :  { %v5725_v8 = vmul.f32 -1.442695, %v2237_v32  ;;  %v2238_v43 = vadd.f32 %v2125_v59, %v487_v47 }
 0x327   :  { %6838 = vpow2.f32 %v5727_v35  ;;  %v5728_v13 = vmul.f32 -1.442695, %v2240_v11  ;;  %v10857_v35 = vld [vmem:[#allocation40_spill] sm:$0xff] }
 0x328   :  { %6840 = vpow2.f32 %v5725_v8  ;;  %v5726_v23 = vmul.f32 -1.442695, %v2238_v43  ;;  %v517_v11 = vadd.f32 %v10857_v35, %v8937_v34 }
 0x329   :  { %v6831_v17 = vpop.eup %6830  ;;  %6842 = vpow2.f32 %v5728_v13 }
 0x32a   :  { %v6833_v46 = vpop.eup %6832  ;;  %v2303_v20 = vadd.f32 1.0, %v6831_v17  ;;  %6844 = vpow2.f32 %v5726_v23  ;;  %v6354_v1 = vpop.f32.mrb[136].mxu1  ;;  %v507_v17 = vadd.f32 %v10858_v31, %v8919_v56 }
 0x32b   :  { %v6835_v19 = vpop.eup %6834  ;;  %v2301_v22 = vadd.f32 1.0, %v6833_v46  ;;  %v2243_v32 = vadd.f32 %v6354_v1, %v513_v5  ;;  %v2138_v47 = vpop.f32.mrb[137].mxu1 }
 0x32c   :  { %v6837_v59 = vpop.eup %6836  ;;  %6846 = vrcp.f32 %v2303_v20  ;;  %v2304_v8 = vadd.f32 1.0, %v6835_v19  ;;  %v2241_v43 = vadd.f32 %v2138_v47, %v503_v26  ;;  %v6355_v13 = vpop.f32.mrb[138].mxu1  ;;  %v10859_v20 = vld [vmem:[#allocation49_spill] sm:$0xff] }
 0x32d   :  { %6848 = vrcp.f32 %v2301_v22  ;;  %v2302_v23 = vadd.f32 1.0, %v6837_v59  ;;  %v5731_v61 = vmul.f32 -1.442695, %v2243_v32  ;;  %v2244_v3 = vadd.f32 %v6355_v13, %v517_v11  ;;  %v2141_v63 = vpop.f32.mrb[139].mxu1  ;;  %v10860_v32 = vld [vmem:[#allocation43_spill] sm:$0xff] }
 0x32e   :  { %6850 = vrcp.f32 %v2304_v8  ;;  %v5729_v46 = vmul.f32 -1.442695, %v2241_v43  ;;  %v2242_v5 = vadd.f32 %v2141_v63, %v507_v17  ;;  %v533_v26 = vadd.f32 %v10859_v20, %v8947_v29 }
 0x32f   :  { %6852 = vrcp.f32 %v2302_v23  ;;  %v5732_v1 = vmul.f32 -1.442695, %v2244_v3  ;;  %v523_v11 = vadd.f32 %v10860_v32, %v8923_v18  ;;  %v10861_v3 = vld [vmem:[#allocation52_spill] sm:$0xff] }
 0x330   :  { %6854 = vpow2.f32 %v5731_v61  ;;  %v5730_v35 = vmul.f32 -1.442695, %v2242_v5  ;;  %v537_v61 = vadd.f32 %v10861_v3, %v8949_v21 }
 0x331   :  { %v6839_v34 = vpop.eup %6838  ;;  %6856 = vpow2.f32 %v5729_v46 }
 0x332   :  { %v6841_v19 = vpop.eup %6840  ;;  %v2307_v47 = vadd.f32 1.0, %v6839_v34  ;;  %6858 = vpow2.f32 %v5732_v1  ;;  %v6358_v22 = vpop.f32.mrb[140].mxu1  ;;  %v10862_v34 = vld [vmem:[#allocation46_spill] sm:$0xff] }
 0x333   :  { %v6843_v59 = vpop.eup %6842  ;;  %v2305_v8 = vadd.f32 1.0, %v6841_v19  ;;  %6860 = vpow2.f32 %v5730_v35  ;;  %v2247_v43 = vadd.f32 %v6358_v22, %v533_v26  ;;  %v2154_v13 = vpop.f32.mrb[141].mxu1  ;;  %v527_v46 = vadd.f32 %v10862_v34, %v8927_v39  ;;  %v10868_v39 = vld [vmem:[#allocation188_spill] sm:$0xff] }
 0x334   :  { %v6845_v31 = vpop.eup %6844  ;;  %6862 = vrcp.f32 %v2307_v47  ;;  %v2308_v17 = vadd.f32 1.0, %v6843_v59  ;;  %v2245_v23 = vadd.f32 %v2154_v13, %v523_v11  ;;  %v6359_v63 = vpop.f32.mrb[142].mxu1  ;;  %v10863_v47 = vld [vmem:[#allocation193_spill] sm:$0xff] }
 0x335   :  { %6864 = vrcp.f32 %v2305_v8  ;;  %v2306_v5 = vadd.f32 1.0, %v6845_v31  ;;  %v2248_v1 = vadd.f32 %v6359_v63, %v537_v61  ;;  %v2157_v20 = vpop.f32.mrb[143].mxu1  ;;  %v1130_v11 = vadd.f32 %v10863_v47, %v8871_v55  ;;  %v10864_v13 = vld [vmem:[#allocation185_spill] sm:$0xff]  ;;  %v10865_v31 = vld [vmem:[#allocation236_spill] sm:$0xff] }
 0x336   :  { %v6847_v32 = vpop.eup %6846  ;;  %6866 = vrcp.f32 %v2308_v17  ;;  %v2246_v35 = vadd.f32 %v2157_v20, %v527_v46  ;;  %v1120_v8 = vadd.f32 %v10864_v13, %v8831_v24  ;;  %v10866_v17 = vld [vmem:[#allocation196_spill] sm:$0xff] }
 0x337   :  { %v6849_v26 = vpop.eup %6848  ;;  %6868 = vrcp.f32 %v2306_v5  ;;  %v1134_v63 = vadd.f32 %v10866_v17, %v10865_v31  ;;  %v10867_v20 = vld [vmem:[#allocation220_spill] sm:$0xff] }
 0x338   :  { %v6851_v19 = vpop.eup %6850  ;;  %6870 = vtanh.f32 %v2247_v43  ;;  %v1124_v21 = vadd.f32 %v10868_v39, %v10867_v20  ;;  %v10871_v31 = vld [vmem:[#allocation228_spill] sm:$0xff] }
 0x339   :  { %v9197_v22 = vpop.eup %6852  ;;  %6872 = vtanh.f32 %v2245_v23  ;;  %v1144_v39 = vadd.f32 %v10872_v49, %v10871_v31 }
 0x33a   :  { %v6855_v59 = vpop.eup %6854  ;;  %6874 = vtanh.f32 %v2248_v1  ;;  %v6362_v3 = vpop.f32.mrb[144].mxu1 }
 0x33b   :  { %v6857_v61 = vpop.eup %6856  ;;  %v2311_v34 = vadd.f32 1.0, %v6855_v59  ;;  %6876 = vtanh.f32 %v2246_v35  ;;  %v2251_v46 = vadd.f32 %v6362_v3, %v1130_v11  ;;  %v2170_v43 = vpop.f32.mrb[145].mxu1  ;;  %v10869_v11 = vld [vmem:[#allocation221_spill] sm:$0xff] }
 0x33c   :  { %v6859_v5 = vpop.eup %6858  ;;  %v2309_v47 = vadd.f32 1.0, %v6857_v61  ;;  %v2249_v23 = vadd.f32 %v2170_v43, %v1120_v8  ;;  %v6363_v55 = vpop.f32.mrb[146].mxu1  ;;  %v10870_v3 = vld [vmem:[#allocation201_spill] sm:$0xff] }
 0x33d   :  { %v6861_v18 = vpop.eup %6860  ;;  %v5735_v29 = vmul.f32 -1.442695, %v2251_v46  ;;  %v2252_v13 = vadd.f32 %v6363_v55, %v1134_v63  ;;  %v2173_v1 = vpop.f32.mrb[147].mxu1  ;;  %6878 = vrcp.f32 %v2311_v34  ;;  %v1140_v17 = vadd.f32 %v10870_v3, %v10869_v11  ;;  %v10873_v43 = vld [vmem:[#allocation237_spill] sm:$0xff]  ;;  %v10874_v46 = vld [vmem:[#allocation208_spill] sm:$0xff]  ;;  %v10875_v34 = vld [vmem:[#allocation211_spill] sm:$0xff] }
 0x33e   :  { %v6863_v24 = vpop.eup %6862  ;;  %v5733_v56 = vmul.f32 -1.442695, %v2249_v23  ;;  %v2250_v16 = vadd.f32 %v2173_v1, %v1124_v21  ;;  %6880 = vrcp.f32 %v2309_v47  ;;  %v1150_v55 = vadd.f32 %v10874_v46, %v10873_v43 }
 0x33f   :  { %v6865_v44 = vpop.eup %6864  ;;  %v5736_v59 = vmul.f32 -1.442695, %v2252_v13  ;;  %v2419_v63 = vmul.f32 %v6863_v24, %v8987_v36  ;;  %v2312_v23 = vadd.f32 1.0, %v6859_v5  ;;  %6882 = vpow2.f32 %v5735_v29 }
 0x340   :  { %v6867_v35 = vpop.eup %6866  ;;  %v5734_v8 = vmul.f32 -1.442695, %v2250_v16  ;;  %v1154_v13 = vadd.f32 %v10875_v34, %v8907_v38  ;;  %v2417_v1 = vmul.f32 %v6865_v44, %v8990_v51  ;;  %v2310_v3 = vadd.f32 1.0, %v6861_v18 }
 0x341   :  { %v6869_v61 = vpop.eup %6868  ;;  %6884 = vpow2.f32 %v5733_v56  ;;  %v2420_v16 = vmul.f32 %v6867_v35, %v8994_v37 }
 0x342   :  { %v6871_v21 = vpop.eup %6870  ;;  %v6366_v11 = vpop.f32.mrb[148].mxu1  ;;  %6886 = vpow2.f32 %v5736_v59  ;;  %v2418_v24 = vmul.f32 %v6869_v61, %v8999_v9 }
 0x343   :  { %v6873_v49 = vpop.eup %6872  ;;  %v2423_v47 = vmul.f32 %v6871_v21, %v6847_v32  ;;  %v2255_v31 = vadd.f32 %v6366_v11, %v1150_v55  ;;  %v2186_v46 = vpop.f32.mrb[149].mxu1  ;;  %6888 = vpow2.f32 %v5734_v8 }
 0x344   :  { %v6875_v43 = vpop.eup %6874  ;;  %v2421_v29 = vmul.f32 %v6873_v49, %v6849_v26  ;;  %v2253_v36 = vadd.f32 %v2186_v46, %v1140_v17  ;;  %v6367_v5 = vpop.f32.mrb[150].mxu1  ;;  %6890 = vrcp.f32 %v2312_v23 }
 0x345   :  { %v6877_v34 = vpop.eup %6876  ;;  %v9219_v44 = vadd.f32 %v2423_v47, %v2419_v63  ;;  %v2424_v56 = vmul.f32 %v6875_v43, %v6851_v19  ;;  %v2256_v18 = vadd.f32 %v6367_v5, %v1154_v13  ;;  %v2189_v51 = vpop.f32.mrb[151].mxu1  ;;  %6892 = vrcp.f32 %v2310_v3  ;;  %v10876_v19 = vld [vmem:[#allocation224_spill] sm:$0xff]  ;;  %v10878_v63 = vld [vmem:[#allocation227_spill] sm:$0xff] }
 0x346   :  { %v9221_v37 = vadd.f32 %v2421_v29, %v2417_v1  ;;  %v2422_v32 = vmul.f32 %v6877_v34, %v9197_v22  ;;  %v2254_v59 = vadd.f32 %v2189_v51, %v1144_v39  ;;  %v5739_v26 = vmul.f32 -1.442695, %v2255_v31  ;;  %v10877_v22 = vld [vmem:[#allocation216_spill] sm:$0xff]  ;;  %v10879_v3 = vld [vmem:[#allocation219_spill] sm:$0xff] }
 0x347   :  { %6894 = vtanh.f32 %v9219_v44  ;;  %v9225_v9 = vadd.f32 %v2424_v56, %v2420_v16  ;;  %v5737_v11 = vmul.f32 -1.442695, %v2253_v36  ;;  %v6879_v17 = vpop.eup %6878  ;;  %v1170_v8 = vadd.f32 %v10876_v19, %v8996_v7 }
 0x348   :  { %6896 = vtanh.f32 %v9221_v37  ;;  %v9228_v35 = vadd.f32 %v2422_v32, %v2418_v24  ;;  %v5740_v61 = vmul.f32 -1.442695, %v2256_v18  ;;  %v6881_v43 = vpop.eup %6880  ;;  %v1160_v39 = vadd.f32 %v10877_v22, %v8969_v12 }
 0x349   :  { %6898 = vtanh.f32 %v9225_v9  ;;  %v6883_v31 = vpop.eup %6882  ;;  %v1174_v23 = vadd.f32 %v10878_v63, %v9004_v14  ;;  %v1164_v49 = vadd.f32 %v10879_v3, %v8973_v4  ;;  %v5738_v18 = vmul.f32 -1.442695, %v2254_v59  ;;  %v10881_v63 = vld [vmem:[#allocation232_spill] sm:$0xff]  ;;  %v10882_v3 = vld [vmem:[#allocation235_spill] sm:$0xff] }
 0x34a   :  { %6900 = vtanh.f32 %v9228_v35  ;;  %v6370_v55 = vpop.f32.mrb[152].mxu1  ;;  %v2375_v16 = vadd.f32 1.0, %v6883_v31 }
 0x34b   :  { %6902 = vpow2.f32 %v5739_v26  ;;  %v2259_v21 = vadd.f32 %v6370_v55, %v1170_v8  ;;  %v2202_v13 = vpop.f32.mrb[153].mxu1  ;;  %v6885_v1 = vpop.eup %6884 }
 0x34c   :  { %6904 = vpow2.f32 %v5737_v11  ;;  %v2257_v47 = vadd.f32 %v2202_v13, %v1160_v39  ;;  %v6371_v46 = vpop.f32.mrb[154].mxu1  ;;  %v6887_v24 = vpop.eup %6886  ;;  %v2373_v29 = vadd.f32 1.0, %v6885_v1  ;;  %v10880_v39 = vld [vmem:[#allocation239_spill] sm:$0xff] }
 0x34d   :  { %6906 = vpow2.f32 %v5740_v61  ;;  %v2260_v36 = vadd.f32 %v6371_v46, %v1174_v23  ;;  %v2205_v5 = vpop.f32.mrb[155].mxu1  ;;  %v6889_v34 = vpop.eup %6888  ;;  %v2376_v56 = vadd.f32 1.0, %v6887_v24  ;;  %v5743_v19 = vmul.f32 -1.442695, %v2259_v21 }
 0x34e   :  { %6908 = vrcp.f32 %v2375_v16  ;;  %v2258_v51 = vadd.f32 %v2205_v5, %v1164_v49  ;;  %v6891_v32 = vpop.eup %6890  ;;  %v2374_v26 = vadd.f32 1.0, %v6889_v34  ;;  %v5741_v22 = vmul.f32 -1.442695, %v2257_v47  ;;  %v10883_v49 = vld [vmem:[#allocation242_spill] sm:$0xff] }
 0x34f   :  { %6910 = vrcp.f32 %v2373_v29  ;;  %v6893_v8 = vpop.eup %6892  ;;  %v1190_v55 = vadd.f32 %v10880_v39, %v9013_v33  ;;  %v5744_v61 = vmul.f32 -1.442695, %v2260_v36  ;;  %v1180_v23 = vadd.f32 %v10881_v63, %v8981_v10 }
 0x350   :  { %6912 = vrcp.f32 %v2376_v56  ;;  %v5742_v59 = vmul.f32 -1.442695, %v2258_v51  ;;  %v1184_v21 = vadd.f32 %v10882_v3, %v8985_v45  ;;  %v1194_v16 = vadd.f32 %v10883_v49, %v9017_v27 }
 0x351   :  { %v6895_v11 = vpop.eup %6894  ;;  %6914 = vrcp.f32 %v2374_v26 }
 0x352   :  { %v6897_v31 = vpop.eup %6896  ;;  %6916 = vpow2.f32 %v5738_v18  ;;  %v6374_v13 = vpop.f32.mrb[156].mxu1  ;;  %v2447_v5 = vmul.f32 %v6895_v11, %v6879_v17 }
 0x353   :  { %v6899_v1 = vpop.eup %6898  ;;  %6918 = vpow2.f32 %v5743_v19  ;;  %v2263_v47 = vadd.f32 %v6374_v13, %v1190_v55  ;;  %v2218_v46 = vpop.f32.mrb[157].mxu1  ;;  %v2445_v26 = vmul.f32 %v6897_v31, %v6881_v43 }
 0x354   :  { %v6901_v24 = vpop.eup %6900  ;;  %6920 = vpow2.f32 %v5741_v22  ;;  %v2261_v29 = vadd.f32 %v2218_v46, %v1180_v23  ;;  %v6375_v36 = vpop.f32.mrb[158].mxu1  ;;  %v2448_v34 = vmul.f32 %v6899_v1, %v6891_v32 }
 0x355   :  { %v6903_v56 = vpop.eup %6902  ;;  %6922 = vpow2.f32 %v5744_v61  ;;  %v2264_v18 = vadd.f32 %v6375_v36, %v1194_v16  ;;  %v2221_v51 = vpop.f32.mrb[159].mxu1  ;;  %v2446_v39 = vmul.f32 %v6901_v24, %v6893_v8 }
 0x356   :  { %v6905_v63 = vpop.eup %6904  ;;  %v2379_v3 = vadd.f32 1.0, %v6903_v56  ;;  %6924 = vpow2.f32 %v5742_v59  ;;  %v2262_v45 = vadd.f32 %v2221_v51, %v1184_v21  ;;  %v9248_v49 = vpack.c.bf16 %v2448_v34, %v2447_v5 }
 0x357   :  { %v6907_v19 = vpop.eup %6906  ;;  %v2377_v55 = vadd.f32 1.0, %v6905_v63  ;;  %6926 = vtanh.f32 %v2263_v47  ;;  %v9250_v22 = vpack.c.bf16 %v2446_v39, %v2445_v26 }
 0x358   :  { %10884 = vst [vmem:[#allocation13_spill] sm:$0xff] %v9248_v49  ;;  %v6909_v23 = vpop.eup %6908  ;;  %6928 = vrcp.f32 %v2379_v3  ;;  %v2380_v17 = vadd.f32 1.0, %v6907_v19 }
 0x359   :  { %10885 = vst [vmem:[#allocation7_spill] sm:$0xff] %v9250_v22  ;;  %v6911_v32 = vpop.eup %6910  ;;  %6930 = vrcp.f32 %v2377_v55  ;;  %6376 = vmatprep.subr.bf16.mxu0 %v9250_v22 }
 0x35a   :  { %v6913_v43 = vpop.eup %6912  ;;  %6932 = vrcp.f32 %v2380_v17  ;;  %6377 = vmatpush3.bf16.msra.mxu0 %v9250_v22 }
 0x35b   :  { %v6915_v8 = vpop.eup %6914  ;;  %6934 = vtanh.f32 %v2261_v29  ;;  %6378 = vmatprep.subr.bf16.mxu0 %v9248_v49 }
 0x35c   :  { %v6917_v11 = vpop.eup %6916  ;;  %6936 = vtanh.f32 %v2264_v18 }
 0x35d   :  { %v6919_v61 = vpop.eup %6918  ;;  %v2378_v31 = vadd.f32 1.0, %v6917_v11  ;;  %6938 = vtanh.f32 %v2262_v45 }
 0x35e   :  { %v6921_v59 = vpop.eup %6920  ;;  %6379 = vmatpush3.bf16.msra.mxu0 %v9248_v49  ;;  %v2383_v29 = vadd.f32 1.0, %v6919_v61 }
 0x35f   :  { %v6923_v13 = vpop.eup %6922  ;;  %6940 = vrcp.f32 %v2378_v31  ;;  %v2381_v34 = vadd.f32 1.0, %v6921_v59 }
 0x360   :  { %v6925_v1 = vpop.eup %6924  ;;  %v2384_v26 = vadd.f32 1.0, %v6923_v13  ;;  %6942 = vrcp.f32 %v2383_v29 }
 0x361   :  { %v6927_v21 = vpop.eup %6926  ;;  %6944 = vrcp.f32 %v2381_v34 }
 0x362   :  { %v6929_v16 = vpop.eup %6928  ;;  %v2435_v47 = vmul.f32 %v6927_v21, %v6909_v23  ;;  %v2382_v23 = vadd.f32 1.0, %v6925_v1 }
 0x363   :  { %v6931_v46 = vpop.eup %6930  ;;  %v2431_v24 = vmul.f32 %v6929_v16, %v9033_v50 }
 0x364   :  { %v6933_v36 = vpop.eup %6932  ;;  %v2429_v5 = vmul.f32 %v6931_v46, %v9035_v15 }
 0x365   :  { %v6935_v56 = vpop.eup %6934  ;;  %v2432_v45 = vmul.f32 %v6933_v36, %v9038_v60  ;;  %v9259_v18 = vadd.f32 %v2435_v47, %v2431_v24  ;;  %v10896_v36 = vld [vmem:[#allocation17_spill] sm:$0xff] }
 0x366   :  { %v6937_v51 = vpop.eup %6936  ;;  %v2433_v39 = vmul.f32 %v6935_v56, %v6911_v32 }
 0x367   :  { %v6939_v63 = vpop.eup %6938  ;;  %v2436_v3 = vmul.f32 %v6937_v51, %v6913_v43  ;;  %6946 = vtanh.f32 %v9259_v18 }
 0x368   :  { %v9261_v19 = vadd.f32 %v2433_v39, %v2429_v5  ;;  %v2434_v50 = vmul.f32 %v6939_v63, %v6915_v8  ;;  %6948 = vrcp.f32 %v2384_v26  ;;  %v668_v5 = vadd.f32 %v10896_v36, %v8809_v2  ;;  %v10906_v36 = vld [vmem:[#allocation38_spill] sm:$0xff] }
 0x369   :  { %v6941_v55 = vpop.eup %6940  ;;  %v9264_v15 = vadd.f32 %v2436_v3, %v2432_v45  ;;  %v10897_v45 = vld [vmem:[#allocation11_spill] sm:$0xff] }
 0x36a   :  { %v2430_v60 = vmul.f32 %v6941_v55, %v9042_v41  ;;  %v6943_v32 = vpop.eup %6942  ;;  %v658_v51 = vadd.f32 %v10897_v45, %v8785_v30 }
 0x36b   :  { %6950 = vtanh.f32 %v9264_v15  ;;  %v6945_v43 = vpop.eup %6944 }
 0x36c   :  { %6952 = vtanh.f32 %v9261_v19  ;;  %v9269_v17 = vadd.f32 %v2434_v50, %v2430_v60  ;;  %v10898_v60 = vld [vmem:[#allocation26_spill] sm:$0xff] }
 0x36d   :  { %6954 = vrcp.f32 %v2382_v23 }
 0x36e   :  { %6956 = vtanh.f32 %v9269_v17 }
 0x371   :  { %v6947_v8 = vpop.eup %6946 }
 0x372   :  { %v6949_v11 = vpop.eup %6948  ;;  %v2457_v59 = vmul.f32 %v6947_v8, %v6943_v32  ;;  %v684_v32 = vadd.f32 %v10898_v60, %v8811_v52  ;;  %v10899_v8 = vld [vmem:[#allocation190_spill] sm:$0xff]  ;;  %v10910_v60 = vld [vmem:[#allocation41_spill] sm:$0xff] }
 0x375   :  { %v6951_v61 = vpop.eup %6950 }
 0x376   :  { %v6953_v31 = vpop.eup %6952  ;;  %v2458_v13 = vmul.f32 %v6951_v61, %v6949_v11  ;;  %v10900_v11 = vld [vmem:[#allocation20_spill] sm:$0xff] }
 0x377   :  { %v6955_v1 = vpop.eup %6954  ;;  %v2455_v16 = vmul.f32 %v6953_v31, %v6945_v43  ;;  %v674_v61 = vadd.f32 %v10900_v11, %v10899_v8 }
 0x378   :  { %v6957_v41 = vpop.eup %6956  ;;  %v9272_v21 = vpack.c.bf16 %v2458_v13, %v2457_v59  ;;  %v10901_v13 = vld [vmem:[#allocation212_spill] sm:$0xff] }
 0x379   :  { %v2456_v47 = vmul.f32 %v6957_v41, %v6955_v1  ;;  %v10902_v1 = vld [vmem:[#allocation29_spill] sm:$0xff] }
 0x37a   :  { %10886 = vst [vmem:[#allocation16_spill] sm:$0xff] %v9272_v21  ;;  %v688_v41 = vadd.f32 %v10902_v1, %v10901_v13  ;;  %v10912_v1 = vld [vmem:[#allocation35_spill] sm:$0xff] }
 0x37b   :  { %v9274_v46 = vpack.c.bf16 %v2456_v47, %v2455_v16 }
 0x37d   :  { %10887 = vst [vmem:[#allocation10_spill] sm:$0xff] %v9274_v46  ;;  %6380 = vmatprep.subr.bf16.mxu0 %v9274_v46 }
 0x37e   :  { %6381 = vmatpush3.bf16.msra.mxu0 %v9274_v46 }
 0x37f   :  { %6382 = vmatprep.subr.bf16.mxu0 %v9272_v21 }
 0x382   :  { %6383 = vmatpush3.bf16.msra.mxu0 %v9272_v21 }
 0x385   :  { %6385 = vmatmul.mubr.msk.bf16.vlgmr.msra.gmra.mrb[160].mxu0 %vm1598_vm1, %v9056_v57  ;;  %v10888_v57 = vld [vmem:[#allocation262_spill] sm:$0xff] }
 0x386   :  { %6388 = vmatprep.mubr.msk.bf16.mxu0 %vm1598_vm1, %v9063_v58  ;;  %v10889_v58 = vld [vmem:[#allocation263_spill] sm:$0xff] }
 0x38d   :  { %6389 = vmatmul.mubr.msk.bf16.gmra.mrb[164].mxu0 %vm1598_vm1, %v9070_v40  ;;  %v10890_v40 = vld [vmem:[#allocation264_spill] sm:$0xff] }
 0x38e   :  { %6392 = vmatprep.mubr.msk.bf16.mxu0 %vm1598_vm1, %v9077_v54  ;;  %v10891_v54 = vld [vmem:[#allocation265_spill] sm:$0xff] }
 0x395   :  { %6393 = vmatmul.mubr.msk.bf16.gmra.mrb[168].mxu0 %vm1598_vm1, %v9084_v62  ;;  %v10892_v62 = vld [vmem:[#allocation266_spill] sm:$0xff] }
 0x396   :  { %6396 = vmatprep.mubr.msk.bf16.mxu0 %vm1598_vm1, %v9091_v25  ;;  %v10893_v25 = vld [vmem:[#allocation198_spill] sm:$0xff] }
 0x39d   :  { %6397 = vmatmul.mubr.msk.bf16.gmra.mrb[172].mxu0 %vm1598_vm1, %v9098_v42  ;;  %v10894_v42 = vld [vmem:[#allocation14_spill] sm:$0xff] }
 0x39e   :  { %6400 = vmatprep.mubr.msk.bf16.mxu0 %vm1598_vm1, %v9105_v48  ;;  %v664_v48 = vadd.f32 %v10894_v42, %v10893_v25 }
 0x3a5   :  { %6401 = vmatmul.mubr.msk.bf16.gmra.mrb[176].mxu0 %vm1598_vm1, %v9112_v28 }
 0x3a6   :  { %6404 = vmatprep.mubr.msk.bf16.mxu0 %vm1598_vm1, %v9119_v0  ;;  %v10895_v0 = vld [vmem:[#allocation8_spill] sm:$0xff] }
 0x3ad   :  { %6405 = vmatmul.mubr.msk.bf16.gmra.mrb[180].mxu0 %vm1598_vm1, %v9126_v53  ;;  %v654_v53 = vadd.f32 %v10895_v0, %v8767_v6 }
 0x3ae   :  { %6408 = vmatprep.mubr.msk.bf16.mxu0 %vm1598_vm1, %v10888_v57  ;;  %v10903_v57 = vld [vmem:[#allocation197_spill] sm:$0xff] }
 0x3b5   :  { %6409 = vmatmul.mubr.msk.bf16.gmra.mrb[184].mxu0 %vm1598_vm1, %v10889_v58  ;;  %v10904_v58 = vld [vmem:[#allocation23_spill] sm:$0xff] }
 0x3b6   :  { %6412 = vmatprep.mubr.msk.bf16.mxu0 %vm1598_vm1, %v10890_v40  ;;  %v678_v40 = vadd.f32 %v10904_v58, %v10903_v57 }
 0x3bd   :  { %6413 = vmatmul.mubr.msk.bf16.gmra.mrb[188].mxu0 %vm1598_vm1, %v10891_v54 }
 0x3be   :  { %6464 = vmatprep.mubr.msk.bf16.mxu0 %vm1598_vm1, %v10892_v62 }
 0x458   :  { %v6386_v28 = vpop.f32.mrb[160].mxu0 }
 0x459   :  { %v2660_v24 = vadd.f32 %v6386_v28, %v664_v48  ;;  %v2531_v29 = vpop.f32.mrb[161].mxu0 }
 0x45a   :  { %v2658_v34 = vadd.f32 %v2531_v29, %v654_v53  ;;  %v6387_v56 = vpop.f32.mrb[162].mxu0  ;;  %v10905_v29 = vld [vmem:[#allocation248_spill] sm:$0xff] }
 0x45b   :  { %v5763_v26 = vmul.f32 -1.442695, %v2660_v24  ;;  %v2661_v39 = vadd.f32 %v6387_v56, %v668_v5  ;;  %v2534_v63 = vpop.f32.mrb[163].mxu0  ;;  %v704_v5 = vadd.f32 %v10906_v36, %v10905_v29 }
 0x45c   :  { %v5761_v3 = vmul.f32 -1.442695, %v2658_v34  ;;  %v2659_v50 = vadd.f32 %v2534_v63, %v658_v51  ;;  %v10907_v51 = vld [vmem:[#allocation244_spill] sm:$0xff] }
 0x45d   :  { %6958 = vpow2.f32 %v5763_v26  ;;  %v5764_v55 = vmul.f32 -1.442695, %v2661_v39  ;;  %v10908_v26 = vld [vmem:[#allocation32_spill] sm:$0xff] }
 0x45e   :  { %6960 = vpow2.f32 %v5761_v3  ;;  %v5762_v23 = vmul.f32 -1.442695, %v2659_v50  ;;  %v694_v39 = vadd.f32 %v10908_v26, %v10907_v51 }
 0x45f   :  { %6962 = vpow2.f32 %v5764_v55 }
 0x460   :  { %6964 = vpow2.f32 %v5762_v23  ;;  %v6390_v43 = vpop.f32.mrb[164].mxu0  ;;  %v10909_v23 = vld [vmem:[#allocation249_spill] sm:$0xff] }
 0x461   :  { %v2664_v31 = vadd.f32 %v6390_v43, %v684_v32  ;;  %v2547_v59 = vpop.f32.mrb[165].mxu0  ;;  %v708_v32 = vadd.f32 %v10910_v60, %v10909_v23  ;;  %v10918_v60 = vld [vmem:[#allocation53_spill] sm:$0xff] }
 0x462   :  { %v2662_v16 = vadd.f32 %v2547_v59, %v674_v61  ;;  %v6391_v47 = vpop.f32.mrb[166].mxu0  ;;  %v10911_v59 = vld [vmem:[#allocation245_spill] sm:$0xff] }
 0x463   :  { %v5767_v54 = vmul.f32 -1.442695, %v2664_v31  ;;  %v2665_v62 = vadd.f32 %v6391_v47, %v688_v41  ;;  %v2550_v42 = vpop.f32.mrb[167].mxu0  ;;  %v698_v41 = vadd.f32 %v10912_v1, %v10911_v59  ;;  %v10919_v1 = vld [vmem:[#allocation247_spill] sm:$0xff] }
 0x464   :  { %v5765_v48 = vmul.f32 -1.442695, %v2662_v16  ;;  %v2663_v28 = vadd.f32 %v2550_v42, %v678_v40 }
 0x465   :  { %6966 = vpow2.f32 %v5767_v54  ;;  %v5768_v0 = vmul.f32 -1.442695, %v2665_v62 }
 0x466   :  { %6968 = vpow2.f32 %v5765_v48  ;;  %v5766_v53 = vmul.f32 -1.442695, %v2663_v28 }
 0x467   :  { %v6959_v24 = vpop.eup %6958  ;;  %6970 = vpow2.f32 %v5768_v0  ;;  %v10913_v0 = vld [vmem:[#allocation250_spill] sm:$0xff] }
 0x468   :  { %v6961_v34 = vpop.eup %6960  ;;  %v2728_v56 = vadd.f32 1.0, %v6959_v24  ;;  %6972 = vpow2.f32 %v5766_v53  ;;  %v6394_v45 = vpop.f32.mrb[168].mxu0  ;;  %v10914_v53 = vld [vmem:[#allocation50_spill] sm:$0xff] }
 0x469   :  { %v6963_v63 = vpop.eup %6962  ;;  %v2726_v3 = vadd.f32 1.0, %v6961_v34  ;;  %v2668_v50 = vadd.f32 %v6394_v45, %v704_v5  ;;  %v2563_v55 = vpop.f32.mrb[169].mxu0  ;;  %v724_v24 = vadd.f32 %v10914_v53, %v10913_v0  ;;  %v10916_v45 = vld [vmem:[#allocation44_spill] sm:$0xff]  ;;  %v10921_v53 = vld [vmem:[#allocation229_spill] sm:$0xff] }
 0x46a   :  { %v6965_v43 = vpop.eup %6964  ;;  %6974 = vrcp.f32 %v2728_v56  ;;  %v2729_v11 = vadd.f32 1.0, %v6963_v63  ;;  %v2666_v61 = vadd.f32 %v2563_v55, %v694_v39  ;;  %v6395_v31 = vpop.f32.mrb[170].mxu0  ;;  %v10915_v56 = vld [vmem:[#allocation246_spill] sm:$0xff]  ;;  %v10917_v55 = vld [vmem:[#allocation251_spill] sm:$0xff] }
 0x46b   :  { %6976 = vrcp.f32 %v2726_v3  ;;  %v2727_v16 = vadd.f32 1.0, %v6965_v43  ;;  %v5771_v47 = vmul.f32 -1.442695, %v2668_v50  ;;  %v2669_v58 = vadd.f32 %v6395_v31, %v708_v32  ;;  %v2566_v40 = vpop.f32.mrb[171].mxu0 }
 0x46c   :  { %6978 = vrcp.f32 %v2729_v11  ;;  %v5769_v54 = vmul.f32 -1.442695, %v2666_v61  ;;  %v2667_v62 = vadd.f32 %v2566_v40, %v698_v41  ;;  %v714_v26 = vadd.f32 %v10916_v45, %v10915_v56  ;;  %v10920_v41 = vld [vmem:[#allocation47_spill] sm:$0xff]  ;;  %v10924_v45 = vld [vmem:[#allocation184_spill] sm:$0xff] }
 0x46d   :  { %6980 = vrcp.f32 %v2727_v16  ;;  %v5772_v42 = vmul.f32 -1.442695, %v2669_v58  ;;  %v728_v32 = vadd.f32 %v10918_v60, %v10917_v55  ;;  %v718_v16 = vadd.f32 %v10920_v41, %v10919_v1  ;;  %v10926_v60 = vld [vmem:[#allocation195_spill] sm:$0xff] }
 0x46e   :  { %6982 = vpow2.f32 %v5771_v47  ;;  %v5770_v48 = vmul.f32 -1.442695, %v2667_v62  ;;  %v10927_v41 = vld [vmem:[#allocation187_spill] sm:$0xff] }
 0x46f   :  { %v6967_v28 = vpop.eup %6966  ;;  %6984 = vpow2.f32 %v5769_v54 }
 0x470   :  { %v6969_v36 = vpop.eup %6968  ;;  %v2732_v5 = vadd.f32 1.0, %v6967_v28  ;;  %6986 = vpow2.f32 %v5772_v42  ;;  %v6398_v34 = vpop.f32.mrb[172].mxu0 }
 0x471   :  { %v6971_v39 = vpop.eup %6970  ;;  %v2730_v63 = vadd.f32 1.0, %v6969_v36  ;;  %6988 = vpow2.f32 %v5770_v48  ;;  %v2672_v3 = vadd.f32 %v6398_v34, %v724_v24  ;;  %v2579_v50 = vpop.f32.mrb[173].mxu0  ;;  %v10922_v24 = vld [vmem:[#allocation192_spill] sm:$0xff]  ;;  %v10923_v34 = vld [vmem:[#allocation213_spill] sm:$0xff] }
 0x472   :  { %v6973_v43 = vpop.eup %6972  ;;  %6990 = vrcp.f32 %v2732_v5  ;;  %v2733_v11 = vadd.f32 1.0, %v6971_v39  ;;  %v2670_v61 = vadd.f32 %v2579_v50, %v714_v26  ;;  %v6399_v31 = vpop.f32.mrb[174].mxu0  ;;  %v939_v36 = vadd.f32 %v10922_v24, %v10921_v53  ;;  %v10925_v50 = vld [vmem:[#allocation236_spill] sm:$0xff]  ;;  %v10931_v53 = vld [vmem:[#allocation203_spill] sm:$0xff] }
 0x473   :  { %6992 = vrcp.f32 %v2730_v63  ;;  %v2731_v47 = vadd.f32 1.0, %v6973_v43  ;;  %v2673_v58 = vadd.f32 %v6399_v31, %v728_v32  ;;  %v2582_v40 = vpop.f32.mrb[175].mxu0  ;;  %v929_v26 = vadd.f32 %v10924_v45, %v10923_v34 }
 0x474   :  { %v6975_v54 = vpop.eup %6974  ;;  %6994 = vrcp.f32 %v2733_v11  ;;  %v2671_v62 = vadd.f32 %v2582_v40, %v718_v16  ;;  %v943_v32 = vadd.f32 %v10926_v60, %v10925_v50  ;;  %v933_v16 = vadd.f32 %v10927_v41, %v10867_v20  ;;  %v10930_v50 = vld [vmem:[#allocation228_spill] sm:$0xff] }
 0x475   :  { %v6977_v42 = vpop.eup %6976  ;;  %6996 = vrcp.f32 %v2731_v47  ;;  %v953_v41 = vadd.f32 %v10931_v53, %v10930_v50 }
 0x476   :  { %v6979_v48 = vpop.eup %6978  ;;  %6998 = vtanh.f32 %v2672_v3 }
 0x477   :  { %v9344_v28 = vpop.eup %6980  ;;  %7000 = vtanh.f32 %v2670_v61 }
 0x478   :  { %v6983_v5 = vpop.eup %6982  ;;  %7002 = vtanh.f32 %v2673_v58  ;;  %v6402_v39 = vpop.f32.mrb[176].mxu0 }
 0x479   :  { %v6985_v63 = vpop.eup %6984  ;;  %v2736_v43 = vadd.f32 1.0, %v6983_v5  ;;  %7004 = vtanh.f32 %v2671_v62  ;;  %v2676_v11 = vadd.f32 %v6402_v39, %v939_v36  ;;  %v2595_v3 = vpop.f32.mrb[177].mxu0  ;;  %v10928_v36 = vld [vmem:[#allocation221_spill] sm:$0xff]  ;;  %v10929_v39 = vld [vmem:[#allocation200_spill] sm:$0xff] }
 0x47a   :  { %v6987_v31 = vpop.eup %6986  ;;  %v2734_v47 = vadd.f32 1.0, %v6985_v63  ;;  %v2674_v61 = vadd.f32 %v2595_v3, %v929_v26  ;;  %v6403_v40 = vpop.f32.mrb[178].mxu0  ;;  %v949_v60 = vadd.f32 %v10929_v39, %v10928_v36  ;;  %v10932_v3 = vld [vmem:[#allocation237_spill] sm:$0xff] }
 0x47b   :  { %v6989_v24 = vpop.eup %6988  ;;  %v5775_v49 = vmul.f32 -1.442695, %v2676_v11  ;;  %v2677_v45 = vadd.f32 %v6403_v40, %v943_v32  ;;  %v2598_v58 = vpop.f32.mrb[179].mxu0  ;;  %7006 = vrcp.f32 %v2736_v43  ;;  %v10933_v11 = vld [vmem:[#allocation207_spill] sm:$0xff]  ;;  %v10934_v43 = vld [vmem:[#allocation210_spill] sm:$0xff] }
 0x47c   :  { %v6991_v22 = vpop.eup %6990  ;;  %v5773_v21 = vmul.f32 -1.442695, %v2674_v61  ;;  %v2675_v46 = vadd.f32 %v2598_v58, %v933_v16  ;;  %7008 = vrcp.f32 %v2734_v47  ;;  %v959_v32 = vadd.f32 %v10933_v11, %v10932_v3 }
 0x47d   :  { %v6993_v34 = vpop.eup %6992  ;;  %v5776_v5 = vmul.f32 -1.442695, %v2677_v45  ;;  %v2844_v40 = vmul.f32 %v6991_v22, %v9219_v44  ;;  %v2737_v61 = vadd.f32 1.0, %v6987_v31  ;;  %7010 = vpow2.f32 %v5775_v49 }
 0x47e   :  { %v6995_v62 = vpop.eup %6994  ;;  %v5774_v26 = vmul.f32 -1.442695, %v2675_v46  ;;  %v963_v45 = vadd.f32 %v10934_v43, %v8907_v38  ;;  %v2842_v58 = vmul.f32 %v6993_v34, %v9221_v37  ;;  %v2735_v39 = vadd.f32 1.0, %v6989_v24 }
 0x47f   :  { %v6997_v63 = vpop.eup %6996  ;;  %7012 = vpow2.f32 %v5773_v21  ;;  %v2845_v46 = vmul.f32 %v6995_v62, %v9225_v9 }
 0x480   :  { %v6999_v16 = vpop.eup %6998  ;;  %v6406_v36 = vpop.f32.mrb[180].mxu0  ;;  %7014 = vpow2.f32 %v5776_v5  ;;  %v2843_v44 = vmul.f32 %v6997_v63, %v9228_v35 }
 0x481   :  { %v7001_v53 = vpop.eup %7000  ;;  %v2848_v47 = vmul.f32 %v6999_v16, %v6975_v54  ;;  %v2680_v50 = vadd.f32 %v6406_v36, %v959_v32  ;;  %v2611_v11 = vpop.f32.mrb[181].mxu0  ;;  %7016 = vpow2.f32 %v5774_v26 }
 0x482   :  { %v7003_v3 = vpop.eup %7002  ;;  %v2846_v49 = vmul.f32 %v7001_v53, %v6977_v42  ;;  %v2678_v22 = vadd.f32 %v2611_v11, %v949_v60  ;;  %v6407_v31 = vpop.f32.mrb[182].mxu0  ;;  %7018 = vrcp.f32 %v2737_v61 }
 0x483   :  { %v7005_v43 = vpop.eup %7004  ;;  %v9366_v37 = vadd.f32 %v2848_v47, %v2844_v40  ;;  %v2849_v21 = vmul.f32 %v7003_v3, %v6979_v48  ;;  %v2681_v34 = vadd.f32 %v6407_v31, %v963_v45  ;;  %v2614_v24 = vpop.f32.mrb[183].mxu0  ;;  %7020 = vrcp.f32 %v2735_v39  ;;  %v10935_v48 = vld [vmem:[#allocation223_spill] sm:$0xff]  ;;  %v10937_v40 = vld [vmem:[#allocation226_spill] sm:$0xff] }
 0x484   :  { %v9368_v9 = vadd.f32 %v2846_v49, %v2842_v58  ;;  %v2847_v54 = vmul.f32 %v7005_v43, %v9344_v28  ;;  %v2679_v5 = vadd.f32 %v2614_v24, %v953_v41  ;;  %v5779_v42 = vmul.f32 -1.442695, %v2680_v50  ;;  %v10936_v28 = vld [vmem:[#allocation215_spill] sm:$0xff]  ;;  %v10938_v39 = vld [vmem:[#allocation218_spill] sm:$0xff] }
 0x485   :  { %7022 = vtanh.f32 %v9366_v37  ;;  %v9372_v35 = vadd.f32 %v2849_v21, %v2845_v46  ;;  %v5777_v36 = vmul.f32 -1.442695, %v2678_v22  ;;  %v7007_v60 = vpop.eup %7006  ;;  %v979_v26 = vadd.f32 %v10935_v48, %v8996_v7 }
 0x486   :  { %7024 = vtanh.f32 %v9368_v9  ;;  %v9375_v62 = vadd.f32 %v2847_v54, %v2843_v44  ;;  %v5780_v63 = vmul.f32 -1.442695, %v2681_v34  ;;  %v7009_v3 = vpop.eup %7008  ;;  %v969_v41 = vadd.f32 %v10936_v28, %v8969_v12 }
 0x487   :  { %7026 = vtanh.f32 %v9372_v35  ;;  %v7011_v50 = vpop.eup %7010  ;;  %v983_v61 = vadd.f32 %v10937_v40, %v9004_v14  ;;  %v973_v53 = vadd.f32 %v10938_v39, %v8973_v4  ;;  %v5778_v34 = vmul.f32 -1.442695, %v2679_v5  ;;  %v10940_v40 = vld [vmem:[#allocation231_spill] sm:$0xff] }
 0x488   :  { %7028 = vtanh.f32 %v9375_v62  ;;  %v6410_v32 = vpop.f32.mrb[184].mxu0  ;;  %v2800_v46 = vadd.f32 1.0, %v7011_v50  ;;  %v10941_v39 = vld [vmem:[#allocation255_spill] sm:$0xff] }
 0x489   :  { %7030 = vpow2.f32 %v5779_v42  ;;  %v2684_v16 = vadd.f32 %v6410_v32, %v979_v26  ;;  %v2627_v45 = vpop.f32.mrb[185].mxu0  ;;  %v7013_v58 = vpop.eup %7012 }
 0x48a   :  { %7032 = vpow2.f32 %v5777_v36  ;;  %v2682_v47 = vadd.f32 %v2627_v45, %v969_v41  ;;  %v6411_v11 = vpop.f32.mrb[186].mxu0  ;;  %v7015_v44 = vpop.eup %7014  ;;  %v2798_v49 = vadd.f32 1.0, %v7013_v58  ;;  %v10939_v41 = vld [vmem:[#allocation240_spill] sm:$0xff] }
 0x48b   :  { %7034 = vpow2.f32 %v5780_v63  ;;  %v2685_v22 = vadd.f32 %v6411_v11, %v983_v61  ;;  %v2630_v31 = vpop.f32.mrb[187].mxu0  ;;  %v7017_v43 = vpop.eup %7016  ;;  %v2801_v21 = vadd.f32 1.0, %v7015_v44  ;;  %v5783_v48 = vmul.f32 -1.442695, %v2684_v16 }
 0x48c   :  { %7036 = vrcp.f32 %v2800_v46  ;;  %v2683_v24 = vadd.f32 %v2630_v31, %v973_v53  ;;  %v7019_v54 = vpop.eup %7018  ;;  %v2799_v42 = vadd.f32 1.0, %v7017_v43  ;;  %v5781_v28 = vmul.f32 -1.442695, %v2682_v47  ;;  %v10942_v53 = vld [vmem:[#allocation234_spill] sm:$0xff]  ;;  %v10943_v46 = vld [vmem:[#allocation243_spill] sm:$0xff] }
 0x48d   :  { %7038 = vrcp.f32 %v2798_v49  ;;  %v7021_v26 = vpop.eup %7020  ;;  %v999_v32 = vadd.f32 %v10939_v41, %v9013_v33  ;;  %v5784_v63 = vmul.f32 -1.442695, %v2685_v22  ;;  %v989_v61 = vadd.f32 %v10940_v40, %v8981_v10 }
 0x48e   :  { %7040 = vrcp.f32 %v2801_v21  ;;  %v5782_v5 = vmul.f32 -1.442695, %v2683_v24  ;;  %v993_v16 = vadd.f32 %v10942_v53, %v10941_v39  ;;  %v1003_v47 = vadd.f32 %v10943_v46, %v9017_v27 }
 0x48f   :  { %v7023_v36 = vpop.eup %7022  ;;  %7042 = vrcp.f32 %v2799_v42 }
 0x490   :  { %v7025_v50 = vpop.eup %7024  ;;  %7044 = vpow2.f32 %v5778_v34  ;;  %v6414_v45 = vpop.f32.mrb[188].mxu0  ;;  %v2872_v43 = vmul.f32 %v7023_v36, %v7007_v60 }
 0x491   :  { %v7027_v58 = vpop.eup %7026  ;;  %7046 = vpow2.f32 %v5783_v48  ;;  %v2688_v11 = vadd.f32 %v6414_v45, %v999_v32  ;;  %v2643_v44 = vpop.f32.mrb[189].mxu0  ;;  %v2870_v41 = vmul.f32 %v7025_v50, %v7009_v3 }
 0x492   :  { %v7029_v49 = vpop.eup %7028  ;;  %7048 = vpow2.f32 %v5781_v28  ;;  %v2686_v22 = vadd.f32 %v2643_v44, %v989_v61  ;;  %v6415_v31 = vpop.f32.mrb[190].mxu0  ;;  %v2873_v21 = vmul.f32 %v7027_v58, %v7019_v54 }
 0x493   :  { %v7031_v42 = vpop.eup %7030  ;;  %7050 = vpow2.f32 %v5784_v63  ;;  %v2689_v34 = vadd.f32 %v6415_v31, %v1003_v47  ;;  %v2646_v24 = vpop.f32.mrb[191].mxu0  ;;  %v2871_v40 = vmul.f32 %v7029_v49, %v7021_v26 }
 0x494   :  { %v7033_v10 = vpop.eup %7032  ;;  %v2804_v53 = vadd.f32 1.0, %v7031_v42  ;;  %7052 = vpow2.f32 %v5782_v5  ;;  %v2687_v39 = vadd.f32 %v2646_v24, %v993_v16  ;;  %v9395_v46 = vpack.c.bf16 %v2873_v21, %v2872_v43 }
 0x495   :  { %v7035_v48 = vpop.eup %7034  ;;  %v2802_v32 = vadd.f32 1.0, %v7033_v10  ;;  %7054 = vtanh.f32 %v2688_v11  ;;  %v9397_v28 = vpack.c.bf16 %v2871_v40, %v2870_v41 }
 0x496   :  { %10944 = vst [vmem:[#allocation25_spill] sm:$0xff] %v9395_v46  ;;  %v7037_v61 = vpop.eup %7036  ;;  %7056 = vrcp.f32 %v2804_v53  ;;  %v2805_v60 = vadd.f32 1.0, %v7035_v48 }
 0x497   :  { %10945 = vst [vmem:[#allocation19_spill] sm:$0xff] %v9397_v28  ;;  %v7039_v54 = vpop.eup %7038  ;;  %7058 = vrcp.f32 %v2802_v32  ;;  %6416 = vmatprep.subr.bf16.mxu1 %v9397_v28 }
 0x498   :  { %v7041_v3 = vpop.eup %7040  ;;  %7060 = vrcp.f32 %v2805_v60  ;;  %6417 = vmatpush3.bf16.msra.mxu1 %v9397_v28 }
 0x499   :  { %v7043_v26 = vpop.eup %7042  ;;  %7062 = vtanh.f32 %v2686_v22  ;;  %6418 = vmatprep.subr.bf16.mxu1 %v9395_v46 }
 0x49a   :  { %v7045_v36 = vpop.eup %7044  ;;  %7064 = vtanh.f32 %v2689_v34 }
 0x49b   :  { %v7047_v10 = vpop.eup %7046  ;;  %v2803_v63 = vadd.f32 1.0, %v7045_v36  ;;  %7066 = vtanh.f32 %v2687_v39 }
 0x49c   :  { %v7049_v50 = vpop.eup %7048  ;;  %6419 = vmatpush3.bf16.msra.mxu1 %v9395_v46  ;;  %v2808_v49 = vadd.f32 1.0, %v7047_v10 }
 0x49d   :  { %v7051_v5 = vpop.eup %7050  ;;  %7068 = vrcp.f32 %v2803_v63  ;;  %v2806_v43 = vadd.f32 1.0, %v7049_v50 }
 0x49e   :  { %v7053_v45 = vpop.eup %7052  ;;  %v2809_v24 = vadd.f32 1.0, %v7051_v5  ;;  %7070 = vrcp.f32 %v2808_v49  ;;  %v9437_v49 = vld [vmem:[%s10475_s3 + $0x10] sm:$0xff]  }
 0x49f   :  { %v7055_v58 = vpop.eup %7054  ;;  %7072 = vrcp.f32 %v2806_v43  ;;  %v9458_v43 = vld [vmem:[%s10475_s3 + $0x28] sm:$0xff]  }
 0x4a0   :  { %v7057_v16 = vpop.eup %7056  ;;  %v2860_v47 = vmul.f32 %v7055_v58, %v7037_v61  ;;  %v2807_v61 = vadd.f32 1.0, %v7053_v45 }
 0x4a1   :  { %v7059_v11 = vpop.eup %7058  ;;  %v2856_v44 = vmul.f32 %v7057_v16, %v9259_v18 }
 0x4a2   :  { %v7061_v22 = vpop.eup %7060  ;;  %v2854_v31 = vmul.f32 %v7059_v11, %v9261_v19 }
 0x4a3   :  { %v7063_v21 = vpop.eup %7062  ;;  %v2857_v39 = vmul.f32 %v7061_v22, %v9264_v15  ;;  %v9406_v42 = vadd.f32 %v2860_v47, %v2856_v44  ;;  %v9430_v44 = vld [vmem:[%s10475_s3 + $0x8] sm:$0xff]   ;;  %v9444_v22 = vld [vmem:[%s10475_s3 + $0x18] sm:$0xff]  }
 0x4a4   :  { %v7065_v34 = vpop.eup %7064  ;;  %v2858_v41 = vmul.f32 %v7063_v21, %v7039_v54  ;;  %v9465_v21 = vld [vmem:[%s10475_s3 + $0x30] sm:$0xff]  }
 0x4a5   :  { %v7067_v40 = vpop.eup %7066  ;;  %v2861_v53 = vmul.f32 %v7065_v34, %v7041_v3  ;;  %7074 = vtanh.f32 %v9406_v42  ;;  %v9479_v34 = vld [vmem:[%s10475_s3 + $0x40] sm:$0xff]  }
 0x4a6   :  { %v9408_v48 = vadd.f32 %v2858_v41, %v2854_v31  ;;  %v2859_v18 = vmul.f32 %v7067_v40, %v7043_v26  ;;  %7076 = vrcp.f32 %v2809_v24  ;;  %v9451_v31 = vld [vmem:[%s10475_s3 + $0x20] sm:$0xff]   ;;  %v9486_v24 = vld [vmem:[%s10475_s3 + $0x48] sm:$0xff]   ;;  %v9493_v41 = vld [vmem:[%s10475_s3 + $0x50] sm:$0xff]  }
 0x4a7   :  { %v7069_v32 = vpop.eup %7068  ;;  %v9411_v19 = vadd.f32 %v2861_v53, %v2857_v39  ;;  %v9472_v39 = vld [vmem:[%s10475_s3 + $0x38] sm:$0xff]   ;;  %v9507_v53 = vld [vmem:[%s10475_s3 + $0x60] sm:$0xff]  }
 0x4a8   :  { %v2855_v15 = vmul.f32 %v7069_v32, %v9269_v17  ;;  %v7071_v54 = vpop.eup %7070  ;;  %v9500_v40 = vld [vmem:[%s10475_s3 + $0x58] sm:$0xff]   ;;  %v9521_v32 = vld [vmem:[%s10475_s3 + $0x70] sm:$0xff]  }
 0x4a9   :  { %7078 = vtanh.f32 %v9411_v19  ;;  %v7073_v3 = vpop.eup %7072 }
 0x4aa   :  { %7080 = vtanh.f32 %v9408_v48  ;;  %v9416_v60 = vadd.f32 %v2859_v18, %v2855_v15  ;;  %v9514_v18 = vld [vmem:[%s10475_s3 + $0x68] sm:$0xff]   ;;  %v9535_v15 = vld [vmem:[%s10475_s3] sm:$0xff]  }
 0x4ab   :  { %7082 = vrcp.f32 %v2807_v61  ;;  %v9528_v61 = vld [vmem:[%s10475_s3 + $0x78] sm:$0xff]   ;;  %10949 = vst [vmem:[#allocation31_spill] sm:$0xff] %v9535_v15 }
 0x4ac   :  { %7084 = vtanh.f32 %v9416_v60  ;;  %10948 = vst [vmem:[#allocation37_spill] sm:$0xff] %v9528_v61 }
 0x4af   :  { %v7075_v26 = vpop.eup %7074 }
 0x4b0   :  { %v7077_v36 = vpop.eup %7076  ;;  %v2882_v50 = vmul.f32 %v7075_v26, %v7071_v54  ;;  %v10950_v54 = vld [vmem:[#allocation15_spill] sm:$0xff] }
 0x4b3   :  { %v7079_v10 = vpop.eup %7078 }
 0x4b4   :  { %v7081_v63 = vpop.eup %7080  ;;  %v2883_v5 = vmul.f32 %v7079_v10, %v7077_v36  ;;  %v10951_v36 = vld [vmem:[#allocation9_spill] sm:$0xff] }
 0x4b5   :  { %v7083_v45 = vpop.eup %7082  ;;  %v2880_v16 = vmul.f32 %v7081_v63, %v7073_v3  ;;  %v666_v3 = vadd.f32 %v10950_v54, %v10893_v25  ;;  %v656_v10 = vadd.f32 %v10951_v36, %v8767_v6 }
 0x4b6   :  { %v7085_v17 = vpop.eup %7084  ;;  %v9419_v58 = vpack.c.bf16 %v2883_v5, %v2882_v50  ;;  %v10952_v5 = vld [vmem:[#allocation18_spill] sm:$0xff] }
 0x4b7   :  { %v2881_v47 = vmul.f32 %v7085_v17, %v7083_v45  ;;  %v670_v45 = vadd.f32 %v10952_v5, %v8809_v2 }
 0x4b8   :  { %10946 = vst [vmem:[#allocation28_spill] sm:$0xff] %v9419_v58 }
 0x4b9   :  { %v9421_v11 = vpack.c.bf16 %v2881_v47, %v2880_v16  ;;  %v10953_v47 = vld [vmem:[#allocation12_spill] sm:$0xff] }
 0x4bb   :  { %10947 = vst [vmem:[#allocation22_spill] sm:$0xff] %v9421_v11  ;;  %6420 = vmatprep.subr.bf16.mxu1 %v9421_v11 }
 0x4bc   :  { %6421 = vmatpush3.bf16.msra.mxu1 %v9421_v11 }
 0x4bd   :  { %6422 = vmatprep.subr.bf16.mxu1 %v9419_v58 }
 0x4c0   :  { %6423 = vmatpush3.bf16.msra.mxu1 %v9419_v58  ;;  %v660_v58 = vadd.f32 %v10953_v47, %v8785_v30 }
 0x4c3   :  { %6425 = vmatmul.mubr.msk.bf16.vlgmr.msra.gmra.mrb[160].mxu1 %vm1598_vm1, %v9430_v44 }
 0x4c4   :  { %6428 = vmatprep.mubr.msk.bf16.mxu1 %vm1598_vm1, %v9437_v49 }
 0x4cb   :  { %6429 = vmatmul.mubr.msk.bf16.gmra.mrb[164].mxu1 %vm1598_vm1, %v9444_v22 }
 0x4cc   :  { %6432 = vmatprep.mubr.msk.bf16.mxu1 %vm1598_vm1, %v9451_v31 }
 0x4d3   :  { %6433 = vmatmul.mubr.msk.bf16.gmra.mrb[168].mxu1 %vm1598_vm1, %v9458_v43 }
 0x4d4   :  { %6436 = vmatprep.mubr.msk.bf16.mxu1 %vm1598_vm1, %v9465_v21 }
 0x4db   :  { %6437 = vmatmul.mubr.msk.bf16.gmra.mrb[172].mxu1 %vm1598_vm1, %v9472_v39 }
 0x4dc   :  { %6440 = vmatprep.mubr.msk.bf16.mxu1 %vm1598_vm1, %v9479_v34 }
 0x4e3   :  { %6441 = vmatmul.mubr.msk.bf16.gmra.mrb[176].mxu1 %vm1598_vm1, %v9486_v24 }
 0x4e4   :  { %6444 = vmatprep.mubr.msk.bf16.mxu1 %vm1598_vm1, %v9493_v41 }
 0x4eb   :  { %6445 = vmatmul.mubr.msk.bf16.gmra.mrb[180].mxu1 %vm1598_vm1, %v9500_v40 }
 0x4ec   :  { %6448 = vmatprep.mubr.msk.bf16.mxu1 %vm1598_vm1, %v9507_v53 }
 0x4f3   :  { %6449 = vmatmul.mubr.msk.bf16.gmra.mrb[184].mxu1 %vm1598_vm1, %v9514_v18 }
 0x4f4   :  { %6452 = vmatprep.mubr.msk.bf16.mxu1 %vm1598_vm1, %v9521_v32 }
 0x4fb   :  { %6453 = vmatmul.mubr.msk.bf16.gmra.mrb[188].mxu1 %vm1598_vm1, %v9528_v61 }
 0x4fc   :  { %6504 = vmatprep.mubr.msk.bf16.mxu1 %vm1598_vm1, %v9535_v15 }
 0x596   :  { %v6426_v26 = vpop.f32.mrb[160].mxu1 }
 0x597   :  { %v3085_v63 = vadd.f32 %v6426_v26, %v666_v3  ;;  %v2956_v50 = vpop.f32.mrb[161].mxu1  ;;  %v10954_v3 = vld [vmem:[#allocation27_spill] sm:$0xff] }
 0x598   :  { %v3083_v17 = vadd.f32 %v2956_v50, %v656_v10  ;;  %v6427_v16 = vpop.f32.mrb[162].mxu1  ;;  %v686_v26 = vadd.f32 %v10954_v3, %v8811_v52  ;;  %v10955_v10 = vld [vmem:[#allocation21_spill] sm:$0xff]  ;;  %v10976_v52 = vld [vmem:[#allocation202_spill] sm:$0xff] }
 0x599   :  { %v5803_v11 = vmul.f32 -1.442695, %v3085_v63  ;;  %v3086_v46 = vadd.f32 %v6427_v16, %v670_v45  ;;  %v2959_v28 = vpop.f32.mrb[163].mxu1  ;;  %v676_v50 = vadd.f32 %v10955_v10, %v10899_v8  ;;  %v10956_v63 = vld [vmem:[#allocation30_spill] sm:$0xff] }
 0x59a   :  { %v5801_v15 = vmul.f32 -1.442695, %v3083_v17  ;;  %v3084_v61 = vadd.f32 %v2959_v28, %v660_v58  ;;  %v690_v45 = vadd.f32 %v10956_v63, %v10901_v13 }
 0x59b   :  { %7086 = vpow2.f32 %v5803_v11  ;;  %v5804_v54 = vmul.f32 -1.442695, %v3086_v46  ;;  %v10957_v46 = vld [vmem:[#allocation24_spill] sm:$0xff] }
 0x59c   :  { %7088 = vpow2.f32 %v5801_v15  ;;  %v5802_v25 = vmul.f32 -1.442695, %v3084_v61  ;;  %v680_v58 = vadd.f32 %v10957_v46, %v10903_v57  ;;  %v10959_v46 = vld [vmem:[#allocation33_spill] sm:$0xff] }
 0x59d   :  { %7090 = vpow2.f32 %v5804_v54 }
 0x59e   :  { %7092 = vpow2.f32 %v5802_v25  ;;  %v6430_v36 = vpop.f32.mrb[164].mxu1 }
 0x59f   :  { %v3089_v5 = vadd.f32 %v6430_v36, %v686_v26  ;;  %v2972_v47 = vpop.f32.mrb[165].mxu1  ;;  %v10958_v26 = vld [vmem:[#allocation39_spill] sm:$0xff] }
 0x5a0   :  { %v3087_v17 = vadd.f32 %v2972_v47, %v676_v50  ;;  %v6431_v28 = vpop.f32.mrb[166].mxu1  ;;  %v706_v36 = vadd.f32 %v10958_v26, %v10905_v29  ;;  %v10961_v26 = vld [vmem:[#allocation36_spill] sm:$0xff] }
 0x5a1   :  { %v5807_v11 = vmul.f32 -1.442695, %v3089_v5  ;;  %v3090_v61 = vadd.f32 %v6431_v28, %v690_v45  ;;  %v2975_v15 = vpop.f32.mrb[167].mxu1  ;;  %v696_v5 = vadd.f32 %v10959_v46, %v10907_v51 }
 0x5a2   :  { %v5805_v16 = vmul.f32 -1.442695, %v3087_v17  ;;  %v3088_v54 = vadd.f32 %v2975_v15, %v680_v58 }
 0x5a3   :  { %7094 = vpow2.f32 %v5807_v11  ;;  %v5808_v25 = vmul.f32 -1.442695, %v3090_v61  ;;  %v10960_v11 = vld [vmem:[#allocation42_spill] sm:$0xff] }
 0x5a4   :  { %7096 = vpow2.f32 %v5805_v16  ;;  %v5806_v3 = vmul.f32 -1.442695, %v3088_v54  ;;  %v710_v61 = vadd.f32 %v10960_v11, %v10909_v23 }
 0x5a5   :  { %v7087_v10 = vpop.eup %7086  ;;  %7098 = vpow2.f32 %v5808_v25 }
 0x5a6   :  { %v7089_v63 = vpop.eup %7088  ;;  %v3153_v50 = vadd.f32 1.0, %v7087_v10  ;;  %7100 = vpow2.f32 %v5806_v3  ;;  %v6434_v47 = vpop.f32.mrb[168].mxu1  ;;  %v700_v10 = vadd.f32 %v10961_v26, %v10911_v59 }
 0x5a7   :  { %v7091_v45 = vpop.eup %7090  ;;  %v3151_v28 = vadd.f32 1.0, %v7089_v63  ;;  %v3093_v17 = vadd.f32 %v6434_v47, %v706_v36  ;;  %v2988_v58 = vpop.f32.mrb[169].mxu1 }
 0x5a8   :  { %v7093_v15 = vpop.eup %7092  ;;  %7102 = vrcp.f32 %v3153_v50  ;;  %v3154_v16 = vadd.f32 1.0, %v7091_v45  ;;  %v3091_v54 = vadd.f32 %v2988_v58, %v696_v5  ;;  %v6435_v25 = vpop.f32.mrb[170].mxu1  ;;  %v10962_v50 = vld [vmem:[#allocation51_spill] sm:$0xff] }
 0x5a9   :  { %7104 = vrcp.f32 %v3151_v28  ;;  %v3152_v3 = vadd.f32 1.0, %v7093_v15  ;;  %v5811_v29 = vmul.f32 -1.442695, %v3093_v17  ;;  %v3094_v57 = vadd.f32 %v6435_v25, %v710_v61  ;;  %v2991_v46 = vpop.f32.mrb[171].mxu1  ;;  %v10963_v17 = vld [vmem:[#allocation45_spill] sm:$0xff] }
 0x5aa   :  { %7106 = vrcp.f32 %v3154_v16  ;;  %v5809_v63 = vmul.f32 -1.442695, %v3091_v54  ;;  %v3092_v36 = vadd.f32 %v2991_v46, %v700_v10  ;;  %v726_v5 = vadd.f32 %v10962_v50, %v10913_v0 }
 0x5ab   :  { %7108 = vrcp.f32 %v3152_v3  ;;  %v5812_v47 = vmul.f32 -1.442695, %v3094_v57  ;;  %v716_v61 = vadd.f32 %v10963_v17, %v10915_v56  ;;  %v10964_v57 = vld [vmem:[#allocation54_spill] sm:$0xff] }
 0x5ac   :  { %7110 = vpow2.f32 %v5811_v29  ;;  %v5810_v11 = vmul.f32 -1.442695, %v3092_v36  ;;  %v730_v29 = vadd.f32 %v10964_v57, %v10917_v55  ;;  %v10968_v57 = vld [vmem:[#allocation213_spill] sm:$0xff]  ;;  %v10972_v55 = vld [vmem:[#allocation186_spill] sm:$0xff] }
 0x5ad   :  { %v7095_v23 = vpop.eup %7094  ;;  %7112 = vpow2.f32 %v5809_v63  ;;  %v931_v56 = vadd.f32 %v10972_v55, %v10867_v20 }
 0x5ae   :  { %v7097_v45 = vpop.eup %7096  ;;  %v3157_v58 = vadd.f32 1.0, %v7095_v23  ;;  %7114 = vpow2.f32 %v5812_v47  ;;  %v6438_v28 = vpop.f32.mrb[172].mxu1  ;;  %v10965_v23 = vld [vmem:[#allocation48_spill] sm:$0xff] }
 0x5af   :  { %v7099_v15 = vpop.eup %7098  ;;  %v3155_v16 = vadd.f32 1.0, %v7097_v45  ;;  %7116 = vpow2.f32 %v5810_v11  ;;  %v3097_v54 = vadd.f32 %v6438_v28, %v726_v5  ;;  %v3004_v25 = vpop.f32.mrb[173].mxu1  ;;  %v720_v63 = vadd.f32 %v10965_v23, %v10919_v1  ;;  %v10969_v23 = vld [vmem:[#allocation183_spill] sm:$0xff] }
 0x5b0   :  { %v7101_v26 = vpop.eup %7100  ;;  %7118 = vrcp.f32 %v3157_v58  ;;  %v3158_v10 = vadd.f32 1.0, %v7099_v15  ;;  %v3095_v3 = vadd.f32 %v3004_v25, %v716_v61  ;;  %v6439_v46 = vpop.f32.mrb[174].mxu1  ;;  %v10966_v58 = vld [vmem:[#allocation229_spill] sm:$0xff]  ;;  %v10967_v15 = vld [vmem:[#allocation191_spill] sm:$0xff] }
 0x5b1   :  { %7120 = vrcp.f32 %v3155_v16  ;;  %v3156_v36 = vadd.f32 1.0, %v7101_v26  ;;  %v3098_v47 = vadd.f32 %v6439_v46, %v730_v29  ;;  %v3007_v50 = vpop.f32.mrb[175].mxu1  ;;  %v937_v61 = vadd.f32 %v10967_v15, %v10966_v58  ;;  %v10970_v46 = vld [vmem:[#allocation236_spill] sm:$0xff] }
 0x5b2   :  { %v7103_v17 = vpop.eup %7102  ;;  %7122 = vrcp.f32 %v3158_v10  ;;  %v3096_v11 = vadd.f32 %v3007_v50, %v720_v63  ;;  %v927_v16 = vadd.f32 %v10969_v23, %v10968_v57  ;;  %v10971_v10 = vld [vmem:[#allocation194_spill] sm:$0xff] }
 0x5b3   :  { %v7105_v5 = vpop.eup %7104  ;;  %7124 = vrcp.f32 %v3156_v36  ;;  %v941_v63 = vadd.f32 %v10971_v10, %v10970_v46  ;;  %v10975_v46 = vld [vmem:[#allocation228_spill] sm:$0xff] }
 0x5b4   :  { %v7107_v45 = vpop.eup %7106  ;;  %7126 = vtanh.f32 %v3097_v54  ;;  %v951_v55 = vadd.f32 %v10976_v52, %v10975_v46 }
 0x5b5   :  { %v9571_v28 = vpop.eup %7108  ;;  %7128 = vtanh.f32 %v3095_v3 }
 0x5b6   :  { %v7111_v25 = vpop.eup %7110  ;;  %7130 = vtanh.f32 %v3098_v47  ;;  %v6442_v29 = vpop.f32.mrb[176].mxu1 }
 0x5b7   :  { %v7113_v26 = vpop.eup %7112  ;;  %v3161_v50 = vadd.f32 1.0, %v7111_v25  ;;  %7132 = vtanh.f32 %v3096_v11  ;;  %v3101_v36 = vadd.f32 %v6442_v29, %v937_v61  ;;  %v3020_v54 = vpop.f32.mrb[177].mxu1  ;;  %v10973_v61 = vld [vmem:[#allocation221_spill] sm:$0xff]  ;;  %v10974_v29 = vld [vmem:[#allocation199_spill] sm:$0xff] }
 0x5b8   :  { %v7115_v1 = vpop.eup %7114  ;;  %v3159_v15 = vadd.f32 1.0, %v7113_v26  ;;  %v3099_v3 = vadd.f32 %v3020_v54, %v927_v16  ;;  %v6443_v58 = vpop.f32.mrb[178].mxu1  ;;  %v947_v10 = vadd.f32 %v10974_v29, %v10973_v61  ;;  %v10977_v54 = vld [vmem:[#allocation237_spill] sm:$0xff] }
 0x5b9   :  { %v7117_v0 = vpop.eup %7116  ;;  %v5815_v59 = vmul.f32 -1.442695, %v3101_v36  ;;  %v3102_v23 = vadd.f32 %v6443_v58, %v941_v63  ;;  %v3023_v47 = vpop.f32.mrb[179].mxu1  ;;  %7134 = vrcp.f32 %v3161_v50  ;;  %v10978_v36 = vld [vmem:[#allocation206_spill] sm:$0xff]  ;;  %v10979_v50 = vld [vmem:[#allocation209_spill] sm:$0xff] }
 0x5ba   :  { %v7119_v57 = vpop.eup %7118  ;;  %v5813_v51 = vmul.f32 -1.442695, %v3099_v3  ;;  %v3100_v13 = vadd.f32 %v3023_v47, %v931_v56  ;;  %7136 = vrcp.f32 %v3159_v15  ;;  %v957_v58 = vadd.f32 %v10978_v36, %v10977_v54 }
 0x5bb   :  { %v7121_v8 = vpop.eup %7120  ;;  %v5816_v25 = vmul.f32 -1.442695, %v3102_v23  ;;  %v3269_v63 = vmul.f32 %v7119_v57, %v9366_v37  ;;  %v3162_v3 = vadd.f32 1.0, %v7115_v1  ;;  %7138 = vpow2.f32 %v5815_v59 }
 0x5bc   :  { %v7123_v11 = vpop.eup %7122  ;;  %v5814_v16 = vmul.f32 -1.442695, %v3100_v13  ;;  %v961_v23 = vadd.f32 %v10979_v50, %v8907_v38  ;;  %v3267_v47 = vmul.f32 %v7121_v8, %v9368_v9  ;;  %v3160_v29 = vadd.f32 1.0, %v7117_v0 }
 0x5bd   :  { %v7125_v26 = vpop.eup %7124  ;;  %7140 = vpow2.f32 %v5813_v51  ;;  %v3270_v13 = vmul.f32 %v7123_v11, %v9372_v35 }
 0x5be   :  { %v7127_v56 = vpop.eup %7126  ;;  %v6446_v61 = vpop.f32.mrb[180].mxu1  ;;  %7142 = vpow2.f32 %v5816_v25  ;;  %v3268_v1 = vmul.f32 %v7125_v26, %v9375_v62 }
 0x5bf   :  { %v7129_v52 = vpop.eup %7128  ;;  %v3273_v15 = vmul.f32 %v7127_v56, %v7103_v17  ;;  %v3105_v46 = vadd.f32 %v6446_v61, %v957_v58  ;;  %v3036_v36 = vpop.f32.mrb[181].mxu1  ;;  %7144 = vpow2.f32 %v5814_v16 }
 0x5c0   :  { %v7131_v54 = vpop.eup %7130  ;;  %v3271_v59 = vmul.f32 %v7129_v52, %v7105_v5  ;;  %v3103_v37 = vadd.f32 %v3036_v36, %v947_v10  ;;  %v6447_v57 = vpop.f32.mrb[182].mxu1  ;;  %7146 = vrcp.f32 %v3162_v3 }
 0x5c1   :  { %v7133_v50 = vpop.eup %7132  ;;  %v9593_v8 = vadd.f32 %v3273_v15, %v3269_v63  ;;  %v3274_v51 = vmul.f32 %v7131_v54, %v7107_v45  ;;  %v3106_v0 = vadd.f32 %v6447_v57, %v961_v23  ;;  %v3039_v9 = vpop.f32.mrb[183].mxu1  ;;  %7148 = vrcp.f32 %v3160_v29  ;;  %v10980_v45 = vld [vmem:[#allocation222_spill] sm:$0xff]  ;;  %v10982_v63 = vld [vmem:[#allocation225_spill] sm:$0xff] }
 0x5c2   :  { %v9595_v35 = vadd.f32 %v3271_v59, %v3267_v47  ;;  %v3272_v17 = vmul.f32 %v7133_v50, %v9571_v28  ;;  %v3104_v25 = vadd.f32 %v3039_v9, %v951_v55  ;;  %v5819_v5 = vmul.f32 -1.442695, %v3105_v46  ;;  %v10981_v28 = vld [vmem:[#allocation214_spill] sm:$0xff]  ;;  %v10983_v29 = vld [vmem:[#allocation217_spill] sm:$0xff] }
 0x5c3   :  { %7150 = vtanh.f32 %v9593_v8  ;;  %v9599_v62 = vadd.f32 %v3274_v51, %v3270_v13  ;;  %v5817_v61 = vmul.f32 -1.442695, %v3103_v37  ;;  %v7135_v10 = vpop.eup %7134  ;;  %v977_v16 = vadd.f32 %v10980_v45, %v8996_v7 }
 0x5c4   :  { %7152 = vtanh.f32 %v9595_v35  ;;  %v9602_v11 = vadd.f32 %v3272_v17, %v3268_v1  ;;  %v5820_v26 = vmul.f32 -1.442695, %v3106_v0  ;;  %v7137_v54 = vpop.eup %7136  ;;  %v967_v55 = vadd.f32 %v10981_v28, %v8969_v12 }
 0x5c5   :  { %7154 = vtanh.f32 %v9599_v62  ;;  %v7139_v46 = vpop.eup %7138  ;;  %v981_v3 = vadd.f32 %v10982_v63, %v9004_v14  ;;  %v971_v52 = vadd.f32 %v10983_v29, %v8973_v4  ;;  %v5818_v0 = vmul.f32 -1.442695, %v3104_v25  ;;  %v10985_v63 = vld [vmem:[#allocation254_spill] sm:$0xff] }
 0x5c6   :  { %7156 = vtanh.f32 %v9602_v11  ;;  %v6450_v58 = vpop.f32.mrb[184].mxu1  ;;  %v3225_v13 = vadd.f32 1.0, %v7139_v46 }
 0x5c7   :  { %7158 = vpow2.f32 %v5819_v5  ;;  %v3109_v56 = vadd.f32 %v6450_v58, %v977_v16  ;;  %v3052_v23 = vpop.f32.mrb[185].mxu1  ;;  %v7141_v47 = vpop.eup %7140 }
 0x5c8   :  { %7160 = vpow2.f32 %v5817_v61  ;;  %v3107_v15 = vadd.f32 %v3052_v23, %v967_v55  ;;  %v6451_v36 = vpop.f32.mrb[186].mxu1  ;;  %v7143_v1 = vpop.eup %7142  ;;  %v3223_v59 = vadd.f32 1.0, %v7141_v47  ;;  %v10984_v55 = vld [vmem:[#allocation238_spill] sm:$0xff] }
 0x5c9   :  { %7162 = vpow2.f32 %v5820_v26  ;;  %v3110_v37 = vadd.f32 %v6451_v36, %v981_v3  ;;  %v3055_v57 = vpop.f32.mrb[187].mxu1  ;;  %v7145_v50 = vpop.eup %7144  ;;  %v3226_v51 = vadd.f32 1.0, %v7143_v1  ;;  %v5823_v45 = vmul.f32 -1.442695, %v3109_v56  ;;  %v10986_v3 = vld [vmem:[#allocation230_spill] sm:$0xff]  ;;  %v10989_v36 = vld [vmem:[#allocation241_spill] sm:$0xff] }
 0x5ca   :  { %7164 = vrcp.f32 %v3225_v13  ;;  %v3108_v9 = vadd.f32 %v3055_v57, %v971_v52  ;;  %v7147_v17 = vpop.eup %7146  ;;  %v3224_v5 = vadd.f32 1.0, %v7145_v50  ;;  %v5821_v28 = vmul.f32 -1.442695, %v3107_v15  ;;  %v10987_v52 = vld [vmem:[#allocation255_spill] sm:$0xff]  ;;  %v10988_v13 = vld [vmem:[#allocation233_spill] sm:$0xff] }
 0x5cb   :  { %7166 = vrcp.f32 %v3223_v59  ;;  %v7149_v16 = vpop.eup %7148  ;;  %v997_v58 = vadd.f32 %v10984_v55, %v9013_v33  ;;  %v5824_v26 = vmul.f32 -1.442695, %v3110_v37  ;;  %v987_v23 = vadd.f32 %v10986_v3, %v10985_v63 }
 0x5cc   :  { %7168 = vrcp.f32 %v3226_v51  ;;  %v5822_v25 = vmul.f32 -1.442695, %v3108_v9  ;;  %v991_v56 = vadd.f32 %v10988_v13, %v10987_v52  ;;  %v1001_v15 = vadd.f32 %v10989_v36, %v9017_v27 }
 0x5cd   :  { %v7151_v61 = vpop.eup %7150  ;;  %7170 = vrcp.f32 %v3224_v5 }
 0x5ce   :  { %v7153_v46 = vpop.eup %7152  ;;  %7172 = vpow2.f32 %v5818_v0  ;;  %v6454_v47 = vpop.f32.mrb[188].mxu1  ;;  %v3297_v51 = vmul.f32 %v7151_v61, %v7135_v10 }
 0x5cf   :  { %v7155_v29 = vpop.eup %7154  ;;  %7174 = vpow2.f32 %v5823_v45  ;;  %v3113_v1 = vadd.f32 %v6454_v47, %v997_v58  ;;  %v3068_v59 = vpop.f32.mrb[189].mxu1  ;;  %v3295_v3 = vmul.f32 %v7153_v46, %v7137_v54 }
 0x5d0   :  { %v7157_v57 = vpop.eup %7156  ;;  %7176 = vpow2.f32 %v5821_v28  ;;  %v3111_v37 = vadd.f32 %v3068_v59, %v987_v23  ;;  %v6455_v50 = vpop.f32.mrb[190].mxu1  ;;  %v3298_v5 = vmul.f32 %v7155_v29, %v7147_v17 }
 0x5d1   :  { %v7159_v55 = vpop.eup %7158  ;;  %7178 = vpow2.f32 %v5824_v26  ;;  %v3114_v0 = vadd.f32 %v6455_v50, %v1001_v15  ;;  %v3071_v9 = vpop.f32.mrb[191].mxu1  ;;  %v3296_v63 = vmul.f32 %v7157_v57, %v7149_v16 }
 0x5d2   :  { %v7161_v33 = vpop.eup %7160  ;;  %v3229_v13 = vadd.f32 1.0, %v7159_v55  ;;  %7180 = vpow2.f32 %v5822_v25  ;;  %v3112_v52 = vadd.f32 %v3071_v9, %v991_v56  ;;  %v9622_v36 = vpack.c.bf16 %v3298_v5, %v3297_v51 }
 0x5d3   :  { %v7163_v45 = vpop.eup %7162  ;;  %v3227_v58 = vadd.f32 1.0, %v7161_v33  ;;  %7182 = vtanh.f32 %v3113_v1  ;;  %v9624_v28 = vpack.c.bf16 %v3296_v63, %v3295_v3 }
 0x5d4   :  { %10990 = vst [vmem:[#allocation40_spill] sm:$0xff] %v9622_v36  ;;  %v7165_v23 = vpop.eup %7164  ;;  %7184 = vrcp.f32 %v3229_v13  ;;  %v3230_v10 = vadd.f32 1.0, %v7163_v45 }
 0x5d5   :  { %10991 = vst [vmem:[#allocation34_spill] sm:$0xff] %v9624_v28  ;;  %v7167_v17 = vpop.eup %7166  ;;  %7186 = vrcp.f32 %v3227_v58  ;;  %6456 = vmatprep.subr.bf16.mxu0 %v9624_v28 }
 0x5d6   :  { %v7169_v54 = vpop.eup %7168  ;;  %7188 = vrcp.f32 %v3230_v10  ;;  %6457 = vmatpush3.bf16.msra.mxu0 %v9624_v28 }
 0x5d7   :  { %v7171_v16 = vpop.eup %7170  ;;  %7190 = vtanh.f32 %v3111_v37  ;;  %6458 = vmatprep.subr.bf16.mxu0 %v9622_v36 }
 0x5d8   :  { %v7173_v61 = vpop.eup %7172  ;;  %7192 = vtanh.f32 %v3114_v0 }
 0x5d9   :  { %v7175_v33 = vpop.eup %7174  ;;  %v3228_v26 = vadd.f32 1.0, %v7173_v61  ;;  %7194 = vtanh.f32 %v3112_v52 }
 0x5da   :  { %v7177_v46 = vpop.eup %7176  ;;  %6459 = vmatpush3.bf16.msra.mxu0 %v9622_v36  ;;  %v3233_v59 = vadd.f32 1.0, %v7175_v33 }
 0x5db   :  { %v7179_v63 = vpop.eup %7178  ;;  %7196 = vrcp.f32 %v3228_v26  ;;  %v3231_v50 = vadd.f32 1.0, %v7177_v46 }
 0x5dc   :  { %v7181_v25 = vpop.eup %7180  ;;  %v3234_v0 = vadd.f32 1.0, %v7179_v63  ;;  %7198 = vrcp.f32 %v3233_v59 }
 0x5dd   :  { %v7183_v47 = vpop.eup %7182  ;;  %7200 = vrcp.f32 %v3231_v50 }
 0x5de   :  { %v7185_v29 = vpop.eup %7184  ;;  %v3285_v56 = vmul.f32 %v7183_v47, %v7165_v23  ;;  %v3232_v23 = vadd.f32 1.0, %v7181_v25 }
 0x5df   :  { %v7187_v15 = vpop.eup %7186  ;;  %v3281_v1 = vmul.f32 %v7185_v29, %v9406_v42 }
 0x5e0   :  { %v7189_v57 = vpop.eup %7188  ;;  %v3279_v37 = vmul.f32 %v7187_v15, %v9408_v48 }
 0x5e1   :  { %v7191_v51 = vpop.eup %7190  ;;  %v3282_v52 = vmul.f32 %v7189_v57, %v9411_v19  ;;  %v9633_v5 = vadd.f32 %v3285_v56, %v3281_v1 }
 0x5e2   :  { %v7193_v55 = vpop.eup %7192  ;;  %v3283_v9 = vmul.f32 %v7191_v51, %v7167_v17 }
 0x5e3   :  { %v7195_v3 = vpop.eup %7194  ;;  %v3286_v13 = vmul.f32 %v7193_v55, %v7169_v54  ;;  %7202 = vtanh.f32 %v9633_v5 }
 0x5e4   :  { %v9635_v45 = vadd.f32 %v3283_v9, %v3279_v37  ;;  %v3284_v42 = vmul.f32 %v7195_v3, %v7171_v16  ;;  %7204 = vrcp.f32 %v3234_v0  ;;  %v11001_v9 = vld [vmem:[#allocation205_spill] sm:$0xff]  ;;  %v11002_v3 = vld [vmem:[#allocation143_spill] sm:$0xff] }
 0x5e5   :  { %v7197_v58 = vpop.eup %7196  ;;  %v9638_v48 = vadd.f32 %v3286_v13, %v3282_v52  ;;  %v877_v13 = vadd.f32 %v11002_v3, %v11001_v9 }
 0x5e6   :  { %v3280_v19 = vmul.f32 %v7197_v58, %v9416_v60  ;;  %v7199_v17 = vpop.eup %7198  ;;  %v11004_v58 = vld [vmem:[#allocation135_spill] sm:$0xff] }
 0x5e7   :  { %7206 = vtanh.f32 %v9638_v48  ;;  %v7201_v54 = vpop.eup %7200 }
 0x5e8   :  { %7208 = vtanh.f32 %v9635_v45  ;;  %v9643_v10 = vadd.f32 %v3284_v42, %v3280_v19  ;;  %v11003_v42 = vld [vmem:[#allocation190_spill] sm:$0xff] }
 0x5e9   :  { %7210 = vrcp.f32 %v3232_v23  ;;  %v867_v23 = vadd.f32 %v11004_v58, %v11003_v42  ;;  %v11016_v58 = vld [vmem:[#allocation154_spill] sm:$0xff] }
 0x5ea   :  { %7212 = vtanh.f32 %v9643_v10 }
 0x5ed   :  { %v7203_v16 = vpop.eup %7202 }
 0x5ee   :  { %v7205_v61 = vpop.eup %7204  ;;  %v3307_v46 = vmul.f32 %v7203_v16, %v7199_v17  ;;  %v11005_v17 = vld [vmem:[#allocation212_spill] sm:$0xff] }
 0x5f1   :  { %v7207_v33 = vpop.eup %7206 }
 0x5f2   :  { %v7209_v26 = vpop.eup %7208  ;;  %v3308_v63 = vmul.f32 %v7207_v33, %v7205_v61 }
 0x5f3   :  { %v7211_v25 = vpop.eup %7210  ;;  %v3305_v29 = vmul.f32 %v7209_v26, %v7201_v54  ;;  %v11006_v54 = vld [vmem:[#allocation146_spill] sm:$0xff]  ;;  %v11007_v26 = vld [vmem:[#allocation197_spill] sm:$0xff] }
 0x5f4   :  { %v7213_v60 = vpop.eup %7212  ;;  %v9646_v47 = vpack.c.bf16 %v3308_v63, %v3307_v46  ;;  %v881_v16 = vadd.f32 %v11006_v54, %v11005_v17  ;;  %v11008_v46 = vld [vmem:[#allocation138_spill] sm:$0xff] }
 0x5f5   :  { %v3306_v56 = vmul.f32 %v7213_v60, %v7211_v25  ;;  %v871_v63 = vadd.f32 %v11008_v46, %v11007_v26 }
 0x5f6   :  { %10992 = vst [vmem:[#allocation49_spill] sm:$0xff] %v9646_v47 }
 0x5f7   :  { %v9648_v15 = vpack.c.bf16 %v3306_v56, %v3305_v29 }
 0x5f9   :  { %10993 = vst [vmem:[#allocation43_spill] sm:$0xff] %v9648_v15  ;;  %6460 = vmatprep.subr.bf16.mxu0 %v9648_v15 }
 0x5fa   :  { %6461 = vmatpush3.bf16.msra.mxu0 %v9648_v15  ;;  %v11034_v15 = vld [vmem:[#allocation228_spill] sm:$0xff] }
 0x5fb   :  { %6462 = vmatprep.subr.bf16.mxu0 %v9646_v47 }
 0x5fe   :  { %6463 = vmatpush3.bf16.msra.mxu0 %v9646_v47 }
 0x601   :  { %6465 = vmatmul.mubr.msk.bf16.vlgmr.msra.gmra.mrb[192].mxu0 %vm1598_vm1, %v9430_v44  ;;  %v10994_v44 = vld [vmem:[#allocation37_spill] sm:$0xff] }
 0x602   :  { %6468 = vmatprep.mubr.msk.bf16.mxu0 %vm1598_vm1, %v9437_v49  ;;  %v10995_v49 = vld [vmem:[#allocation31_spill] sm:$0xff] }
 0x609   :  { %6469 = vmatmul.mubr.msk.bf16.gmra.mrb[196].mxu0 %vm1598_vm1, %v9444_v22  ;;  %v10996_v22 = vld [vmem:[#allocation198_spill] sm:$0xff] }
 0x60a   :  { %6472 = vmatprep.mubr.msk.bf16.mxu0 %vm1598_vm1, %v9451_v31  ;;  %v10997_v31 = vld [vmem:[#allocation127_spill] sm:$0xff] }
 0x611   :  { %6473 = vmatmul.mubr.msk.bf16.gmra.mrb[200].mxu0 %vm1598_vm1, %v9458_v43  ;;  %v857_v43 = vadd.f32 %v10997_v31, %v10996_v22 }
 0x612   :  { %6476 = vmatprep.mubr.msk.bf16.mxu0 %vm1598_vm1, %v9465_v21  ;;  %v10998_v21 = vld [vmem:[#allocation119_spill] sm:$0xff] }
 0x619   :  { %6477 = vmatmul.mubr.msk.bf16.gmra.mrb[204].mxu0 %vm1598_vm1, %v9472_v39  ;;  %v847_v39 = vadd.f32 %v10998_v21, %v8767_v6 }
 0x61a   :  { %6480 = vmatprep.mubr.msk.bf16.mxu0 %vm1598_vm1, %v9479_v34 }
 0x621   :  { %6481 = vmatmul.mubr.msk.bf16.gmra.mrb[208].mxu0 %vm1598_vm1, %v9486_v24  ;;  %v10999_v24 = vld [vmem:[#allocation130_spill] sm:$0xff] }
 0x622   :  { %6484 = vmatprep.mubr.msk.bf16.mxu0 %vm1598_vm1, %v9493_v41  ;;  %v861_v41 = vadd.f32 %v10999_v24, %v8809_v2  ;;  %v11010_v24 = vld [vmem:[#allocation159_spill] sm:$0xff] }
 0x629   :  { %6485 = vmatmul.mubr.msk.bf16.gmra.mrb[212].mxu0 %vm1598_vm1, %v9500_v40 }
 0x62a   :  { %6488 = vmatprep.mubr.msk.bf16.mxu0 %vm1598_vm1, %v9507_v53 }
 0x631   :  { %6489 = vmatmul.mubr.msk.bf16.gmra.mrb[216].mxu0 %vm1598_vm1, %v9514_v18  ;;  %v11000_v18 = vld [vmem:[#allocation122_spill] sm:$0xff] }
 0x632   :  { %6492 = vmatprep.mubr.msk.bf16.mxu0 %vm1598_vm1, %v9521_v32  ;;  %v851_v32 = vadd.f32 %v11000_v18, %v8785_v30  ;;  %v11012_v18 = vld [vmem:[#allocation151_spill] sm:$0xff] }
 0x639   :  { %6493 = vmatmul.mubr.msk.bf16.gmra.mrb[220].mxu0 %vm1598_vm1, %v10994_v44 }
 0x63a   :  { %6544 = vmatprep.mubr.msk.bf16.mxu0 %vm1598_vm1, %v10995_v49 }
 0x6d4   :  { %v6466_v34 = vpop.f32.mrb[192].mxu0 }
 0x6d5   :  { %v3510_v40 = vadd.f32 %v6466_v34, %v857_v43  ;;  %v3381_v53 = vpop.f32.mrb[193].mxu0  ;;  %v11009_v34 = vld [vmem:[#allocation248_spill] sm:$0xff] }
 0x6d6   :  { %v3508_v1 = vadd.f32 %v3381_v53, %v847_v39  ;;  %v6467_v59 = vpop.f32.mrb[194].mxu0  ;;  %v11011_v53 = vld [vmem:[#allocation244_spill] sm:$0xff] }
 0x6d7   :  { %v5843_v57 = vmul.f32 -1.442695, %v3510_v40  ;;  %v3511_v37 = vadd.f32 %v6467_v59, %v861_v41  ;;  %v3384_v50 = vpop.f32.mrb[195].mxu0  ;;  %v897_v41 = vadd.f32 %v11010_v24, %v11009_v34  ;;  %v11020_v24 = vld [vmem:[#allocation167_spill] sm:$0xff] }
 0x6d8   :  { %v5841_v51 = vmul.f32 -1.442695, %v3508_v1  ;;  %v3509_v52 = vadd.f32 %v3384_v50, %v851_v32  ;;  %v887_v32 = vadd.f32 %v11012_v18, %v11011_v53  ;;  %v11014_v50 = vld [vmem:[#allocation162_spill] sm:$0xff] }
 0x6d9   :  { %7214 = vpow2.f32 %v5843_v57  ;;  %v5844_v55 = vmul.f32 -1.442695, %v3511_v37  ;;  %v11013_v37 = vld [vmem:[#allocation249_spill] sm:$0xff] }
 0x6da   :  { %7216 = vpow2.f32 %v5841_v51  ;;  %v5842_v0 = vmul.f32 -1.442695, %v3509_v52  ;;  %v901_v51 = vadd.f32 %v11014_v50, %v11013_v37 }
 0x6db   :  { %7218 = vpow2.f32 %v5844_v55 }
 0x6dc   :  { %7220 = vpow2.f32 %v5842_v0  ;;  %v6470_v19 = vpop.f32.mrb[196].mxu0 }
 0x6dd   :  { %v3514_v61 = vadd.f32 %v6470_v19, %v877_v13  ;;  %v3397_v33 = vpop.f32.mrb[197].mxu0  ;;  %v11015_v13 = vld [vmem:[#allocation245_spill] sm:$0xff] }
 0x6de   :  { %v3512_v25 = vadd.f32 %v3397_v33, %v867_v23  ;;  %v6471_v60 = vpop.f32.mrb[198].mxu0  ;;  %v891_v23 = vadd.f32 %v11016_v58, %v11015_v13 }
 0x6df   :  { %v5847_v29 = vmul.f32 -1.442695, %v3514_v61  ;;  %v3515_v56 = vadd.f32 %v6471_v60, %v881_v16  ;;  %v3400_v44 = vpop.f32.mrb[199].mxu0 }
 0x6e0   :  { %v5845_v49 = vmul.f32 -1.442695, %v3512_v25  ;;  %v3513_v31 = vadd.f32 %v3400_v44, %v871_v63 }
 0x6e1   :  { %7222 = vpow2.f32 %v5847_v29  ;;  %v5848_v43 = vmul.f32 -1.442695, %v3515_v56 }
 0x6e2   :  { %7224 = vpow2.f32 %v5845_v49  ;;  %v5846_v21 = vmul.f32 -1.442695, %v3513_v31  ;;  %v11017_v49 = vld [vmem:[#allocation250_spill] sm:$0xff]  ;;  %v11018_v31 = vld [vmem:[#allocation175_spill] sm:$0xff] }
 0x6e3   :  { %v7215_v39 = vpop.eup %7214  ;;  %7226 = vpow2.f32 %v5848_v43  ;;  %v917_v43 = vadd.f32 %v11018_v31, %v11017_v49 }
 0x6e4   :  { %v7217_v40 = vpop.eup %7216  ;;  %v3578_v1 = vadd.f32 1.0, %v7215_v39  ;;  %7228 = vpow2.f32 %v5846_v21  ;;  %v6474_v59 = vpop.f32.mrb[200].mxu0  ;;  %v11019_v39 = vld [vmem:[#allocation246_spill] sm:$0xff] }
 0x6e5   :  { %v7219_v57 = vpop.eup %7218  ;;  %v3576_v52 = vadd.f32 1.0, %v7217_v40  ;;  %v3518_v55 = vadd.f32 %v6474_v59, %v897_v41  ;;  %v3413_v0 = vpop.f32.mrb[201].mxu0  ;;  %v907_v41 = vadd.f32 %v11020_v24, %v11019_v39  ;;  %v11022_v59 = vld [vmem:[#allocation178_spill] sm:$0xff]  ;;  %v11028_v24 = vld [vmem:[#allocation59_spill] sm:$0xff] }
 0x6e6   :  { %v7221_v3 = vpop.eup %7220  ;;  %7230 = vrcp.f32 %v3578_v1  ;;  %v3579_v19 = vadd.f32 1.0, %v7219_v57  ;;  %v3516_v54 = vadd.f32 %v3413_v0, %v887_v32  ;;  %v6475_v16 = vpop.f32.mrb[202].mxu0  ;;  %v11021_v1 = vld [vmem:[#allocation251_spill] sm:$0xff] }
 0x6e7   :  { %7232 = vrcp.f32 %v3576_v52  ;;  %v3577_v61 = vadd.f32 1.0, %v7221_v3  ;;  %v5851_v33 = vmul.f32 -1.442695, %v3518_v55  ;;  %v3519_v46 = vadd.f32 %v6475_v16, %v901_v51  ;;  %v3416_v63 = vpop.f32.mrb[203].mxu0  ;;  %v11023_v0 = vld [vmem:[#allocation247_spill] sm:$0xff]  ;;  %v11024_v3 = vld [vmem:[#allocation170_spill] sm:$0xff] }
 0x6e8   :  { %7234 = vrcp.f32 %v3579_v19  ;;  %v5849_v25 = vmul.f32 -1.442695, %v3516_v54  ;;  %v3517_v60 = vadd.f32 %v3416_v63, %v891_v23  ;;  %v921_v57 = vadd.f32 %v11022_v59, %v11021_v1  ;;  %v11030_v59 = vld [vmem:[#allocation70_spill] sm:$0xff] }
 0x6e9   :  { %7236 = vrcp.f32 %v3577_v61  ;;  %v5852_v29 = vmul.f32 -1.442695, %v3519_v46  ;;  %v911_v58 = vadd.f32 %v11024_v3, %v11023_v0  ;;  %v11031_v3 = vld [vmem:[#allocation62_spill] sm:$0xff] }
 0x6ea   :  { %7238 = vpow2.f32 %v5851_v33  ;;  %v5850_v56 = vmul.f32 -1.442695, %v3517_v60 }
 0x6eb   :  { %v7223_v44 = vpop.eup %7222  ;;  %7240 = vpow2.f32 %v5849_v25 }
 0x6ec   :  { %v7225_v21 = vpop.eup %7224  ;;  %v3582_v40 = vadd.f32 1.0, %v7223_v44  ;;  %7242 = vpow2.f32 %v5852_v29  ;;  %v6478_v18 = vpop.f32.mrb[204].mxu0  ;;  %v11026_v44 = vld [vmem:[#allocation67_spill] sm:$0xff] }
 0x6ed   :  { %v7227_v32 = vpop.eup %7226  ;;  %v3580_v50 = vadd.f32 1.0, %v7225_v21  ;;  %7244 = vpow2.f32 %v5850_v56  ;;  %v3522_v51 = vadd.f32 %v6478_v18, %v917_v43  ;;  %v3429_v52 = vpop.f32.mrb[205].mxu0  ;;  %v11025_v56 = vld [vmem:[#allocation229_spill] sm:$0xff] }
 0x6ee   :  { %v7229_v55 = vpop.eup %7228  ;;  %7246 = vrcp.f32 %v3582_v40  ;;  %v3583_v23 = vadd.f32 1.0, %v7227_v32  ;;  %v3520_v19 = vadd.f32 %v3429_v52, %v907_v41  ;;  %v6479_v54 = vpop.f32.mrb[206].mxu0  ;;  %v746_v31 = vadd.f32 %v11026_v44, %v11025_v56  ;;  %v11027_v21 = vld [vmem:[#allocation213_spill] sm:$0xff]  ;;  %v11029_v32 = vld [vmem:[#allocation236_spill] sm:$0xff] }
 0x6ef   :  { %7248 = vrcp.f32 %v3580_v50  ;;  %v3581_v16 = vadd.f32 1.0, %v7229_v55  ;;  %v3523_v61 = vadd.f32 %v6479_v54, %v921_v57  ;;  %v3432_v33 = vpop.f32.mrb[207].mxu0  ;;  %v736_v41 = vadd.f32 %v11028_v24, %v11027_v21 }
 0x6f0   :  { %v7231_v46 = vpop.eup %7230  ;;  %7250 = vrcp.f32 %v3583_v23  ;;  %v3521_v63 = vadd.f32 %v3432_v33, %v911_v58  ;;  %v750_v57 = vadd.f32 %v11030_v59, %v11029_v32  ;;  %v740_v58 = vadd.f32 %v11031_v3, %v10867_v20  ;;  %v11035_v32 = vld [vmem:[#allocation78_spill] sm:$0xff] }
 0x6f1   :  { %v7233_v25 = vpop.eup %7232  ;;  %7252 = vrcp.f32 %v3581_v16  ;;  %v760_v3 = vadd.f32 %v11035_v32, %v11034_v15 }
 0x6f2   :  { %v7235_v60 = vpop.eup %7234  ;;  %7254 = vtanh.f32 %v3522_v51 }
 0x6f3   :  { %v9718_v29 = vpop.eup %7236  ;;  %7256 = vtanh.f32 %v3520_v19 }
 0x6f4   :  { %v7239_v43 = vpop.eup %7238  ;;  %7258 = vtanh.f32 %v3523_v61  ;;  %v6482_v40 = vpop.f32.mrb[208].mxu0 }
 0x6f5   :  { %v7241_v18 = vpop.eup %7240  ;;  %v3586_v50 = vadd.f32 1.0, %v7239_v43  ;;  %7260 = vtanh.f32 %v3521_v63  ;;  %v3526_v52 = vadd.f32 %v6482_v40, %v746_v31  ;;  %v3445_v51 = vpop.f32.mrb[209].mxu0  ;;  %v11032_v31 = vld [vmem:[#allocation221_spill] sm:$0xff]  ;;  %v11033_v40 = vld [vmem:[#allocation75_spill] sm:$0xff] }
 0x6f6   :  { %v7243_v55 = vpop.eup %7242  ;;  %v3584_v23 = vadd.f32 1.0, %v7241_v18  ;;  %v3524_v19 = vadd.f32 %v3445_v51, %v736_v41  ;;  %v6483_v54 = vpop.f32.mrb[210].mxu0  ;;  %v756_v59 = vadd.f32 %v11033_v40, %v11032_v31  ;;  %v11036_v51 = vld [vmem:[#allocation237_spill] sm:$0xff] }
 0x6f7   :  { %v7245_v16 = vpop.eup %7244  ;;  %v5855_v33 = vmul.f32 -1.442695, %v3526_v52  ;;  %v3527_v44 = vadd.f32 %v6483_v54, %v750_v57  ;;  %v3448_v61 = vpop.f32.mrb[211].mxu0  ;;  %7262 = vrcp.f32 %v3586_v50  ;;  %v11037_v52 = vld [vmem:[#allocation83_spill] sm:$0xff]  ;;  %v11038_v50 = vld [vmem:[#allocation86_spill] sm:$0xff] }
 0x6f8   :  { %v7247_v24 = vpop.eup %7246  ;;  %v5853_v36 = vmul.f32 -1.442695, %v3524_v19  ;;  %v3525_v28 = vadd.f32 %v3448_v61, %v740_v58  ;;  %7264 = vrcp.f32 %v3584_v23  ;;  %v766_v57 = vadd.f32 %v11037_v52, %v11036_v51 }
 0x6f9   :  { %v7249_v47 = vpop.eup %7248  ;;  %v5856_v43 = vmul.f32 -1.442695, %v3527_v44  ;;  %v3694_v54 = vmul.f32 %v7247_v24, %v9593_v8  ;;  %v3587_v19 = vadd.f32 1.0, %v7243_v55  ;;  %7266 = vpow2.f32 %v5855_v33 }
 0x6fa   :  { %v7251_v63 = vpop.eup %7250  ;;  %v5854_v41 = vmul.f32 -1.442695, %v3525_v28  ;;  %v770_v44 = vadd.f32 %v11038_v50, %v8907_v38  ;;  %v3692_v61 = vmul.f32 %v7249_v47, %v9595_v35  ;;  %v3585_v40 = vadd.f32 1.0, %v7245_v16 }
 0x6fb   :  { %v7253_v18 = vpop.eup %7252  ;;  %7268 = vpow2.f32 %v5853_v36  ;;  %v3695_v28 = vmul.f32 %v7251_v63, %v9599_v62 }
 0x6fc   :  { %v7255_v58 = vpop.eup %7254  ;;  %v6486_v31 = vpop.f32.mrb[212].mxu0  ;;  %7270 = vpow2.f32 %v5856_v43  ;;  %v3693_v8 = vmul.f32 %v7253_v18, %v9602_v11 }
 0x6fd   :  { %v7257_v32 = vpop.eup %7256  ;;  %v3698_v23 = vmul.f32 %v7255_v58, %v7231_v46  ;;  %v3530_v15 = vadd.f32 %v6486_v31, %v766_v57  ;;  %v3461_v52 = vpop.f32.mrb[213].mxu0  ;;  %7272 = vpow2.f32 %v5854_v41 }
 0x6fe   :  { %v7259_v51 = vpop.eup %7258  ;;  %v3696_v55 = vmul.f32 %v7257_v32, %v7233_v25  ;;  %v3528_v33 = vadd.f32 %v3461_v52, %v756_v59  ;;  %v6487_v24 = vpop.f32.mrb[214].mxu0  ;;  %7274 = vrcp.f32 %v3587_v19 }
 0x6ff   :  { %v7261_v50 = vpop.eup %7260  ;;  %v9740_v35 = vadd.f32 %v3698_v23, %v3694_v54  ;;  %v3699_v36 = vmul.f32 %v7259_v51, %v7235_v60  ;;  %v3531_v47 = vadd.f32 %v6487_v24, %v770_v44  ;;  %v3464_v16 = vpop.f32.mrb[215].mxu0  ;;  %7276 = vrcp.f32 %v3585_v40  ;;  %v11039_v60 = vld [vmem:[#allocation99_spill] sm:$0xff]  ;;  %v11041_v54 = vld [vmem:[#allocation102_spill] sm:$0xff] }
 0x700   :  { %v9742_v62 = vadd.f32 %v3696_v55, %v3692_v61  ;;  %v3697_v46 = vmul.f32 %v7261_v50, %v9718_v29  ;;  %v3529_v43 = vadd.f32 %v3464_v16, %v760_v3  ;;  %v5859_v25 = vmul.f32 -1.442695, %v3530_v15  ;;  %v11040_v29 = vld [vmem:[#allocation91_spill] sm:$0xff]  ;;  %v11042_v40 = vld [vmem:[#allocation94_spill] sm:$0xff] }
 0x701   :  { %7278 = vtanh.f32 %v9740_v35  ;;  %v9746_v11 = vadd.f32 %v3699_v36, %v3695_v28  ;;  %v5857_v31 = vmul.f32 -1.442695, %v3528_v33  ;;  %v7263_v59 = vpop.eup %7262  ;;  %v786_v41 = vadd.f32 %v11039_v60, %v8996_v7 }
 0x702   :  { %7280 = vtanh.f32 %v9742_v62  ;;  %v9749_v63 = vadd.f32 %v3697_v46, %v3693_v8  ;;  %v5860_v18 = vmul.f32 -1.442695, %v3531_v47  ;;  %v7265_v51 = vpop.eup %7264  ;;  %v776_v3 = vadd.f32 %v11040_v29, %v8969_v12 }
 0x703   :  { %7282 = vtanh.f32 %v9746_v11  ;;  %v7267_v15 = vpop.eup %7266  ;;  %v790_v19 = vadd.f32 %v11041_v54, %v9004_v14  ;;  %v780_v32 = vadd.f32 %v11042_v40, %v8973_v4  ;;  %v5858_v47 = vmul.f32 -1.442695, %v3529_v43 }
 0x704   :  { %7284 = vtanh.f32 %v9749_v63  ;;  %v6490_v57 = vpop.f32.mrb[216].mxu0  ;;  %v3650_v28 = vadd.f32 1.0, %v7267_v15 }
 0x705   :  { %7286 = vpow2.f32 %v5859_v25  ;;  %v3534_v58 = vadd.f32 %v6490_v57, %v786_v41  ;;  %v3477_v44 = vpop.f32.mrb[217].mxu0  ;;  %v7269_v61 = vpop.eup %7268  ;;  %v11044_v57 = vld [vmem:[#allocation115_spill] sm:$0xff] }
 0x706   :  { %7288 = vpow2.f32 %v5857_v31  ;;  %v3532_v23 = vadd.f32 %v3477_v44, %v776_v3  ;;  %v6491_v52 = vpop.f32.mrb[218].mxu0  ;;  %v7271_v8 = vpop.eup %7270  ;;  %v3648_v55 = vadd.f32 1.0, %v7269_v61  ;;  %v11043_v3 = vld [vmem:[#allocation257_spill] sm:$0xff]  ;;  %v11046_v44 = vld [vmem:[#allocation107_spill] sm:$0xff] }
 0x707   :  { %7290 = vpow2.f32 %v5860_v18  ;;  %v3535_v33 = vadd.f32 %v6491_v52, %v790_v19  ;;  %v3480_v24 = vpop.f32.mrb[219].mxu0  ;;  %v7273_v50 = vpop.eup %7272  ;;  %v3651_v36 = vadd.f32 1.0, %v7271_v8  ;;  %v5863_v60 = vmul.f32 -1.442695, %v3534_v58  ;;  %v11045_v19 = vld [vmem:[#allocation254_spill] sm:$0xff] }
 0x708   :  { %7292 = vrcp.f32 %v3650_v28  ;;  %v3533_v16 = vadd.f32 %v3480_v24, %v780_v32  ;;  %v7275_v46 = vpop.eup %7274  ;;  %v3649_v25 = vadd.f32 1.0, %v7273_v50  ;;  %v5861_v29 = vmul.f32 -1.442695, %v3532_v23  ;;  %v11047_v28 = vld [vmem:[#allocation255_spill] sm:$0xff]  ;;  %v11048_v52 = vld [vmem:[#allocation110_spill] sm:$0xff] }
 0x709   :  { %7294 = vrcp.f32 %v3648_v55  ;;  %v7277_v41 = vpop.eup %7276  ;;  %v806_v15 = vadd.f32 %v11044_v57, %v11043_v3  ;;  %v5864_v18 = vmul.f32 -1.442695, %v3535_v33  ;;  %v796_v61 = vadd.f32 %v11046_v44, %v11045_v19  ;;  %v11049_v8 = vld [vmem:[#allocation118_spill] sm:$0xff] }
 0x70a   :  { %7296 = vrcp.f32 %v3651_v36  ;;  %v5862_v43 = vmul.f32 -1.442695, %v3533_v16  ;;  %v800_v58 = vadd.f32 %v11048_v52, %v11047_v28  ;;  %v810_v23 = vadd.f32 %v11049_v8, %v9017_v27 }
 0x70b   :  { %v7279_v31 = vpop.eup %7278  ;;  %7298 = vrcp.f32 %v3649_v25 }
 0x70c   :  { %v7281_v54 = vpop.eup %7280  ;;  %7300 = vpow2.f32 %v5858_v47  ;;  %v6494_v40 = vpop.f32.mrb[220].mxu0  ;;  %v3722_v25 = vmul.f32 %v7279_v31, %v7263_v59 }
 0x70d   :  { %v7283_v32 = vpop.eup %7282  ;;  %7302 = vpow2.f32 %v5863_v60  ;;  %v3538_v55 = vadd.f32 %v6494_v40, %v806_v15  ;;  %v3493_v24 = vpop.f32.mrb[221].mxu0  ;;  %v3720_v19 = vmul.f32 %v7281_v54, %v7265_v51 }
 0x70e   :  { %v7285_v50 = vpop.eup %7284  ;;  %7304 = vpow2.f32 %v5861_v29  ;;  %v3536_v33 = vadd.f32 %v3493_v24, %v796_v61  ;;  %v6495_v36 = vpop.f32.mrb[222].mxu0  ;;  %v3723_v57 = vmul.f32 %v7283_v32, %v7275_v46 }
 0x70f   :  { %v7287_v44 = vpop.eup %7286  ;;  %7306 = vpow2.f32 %v5864_v18  ;;  %v3539_v47 = vadd.f32 %v6495_v36, %v810_v23  ;;  %v3496_v16 = vpop.f32.mrb[223].mxu0  ;;  %v3721_v3 = vmul.f32 %v7285_v50, %v7277_v41 }
 0x710   :  { %v7289_v4 = vpop.eup %7288  ;;  %v3654_v52 = vadd.f32 1.0, %v7287_v44  ;;  %7308 = vpow2.f32 %v5862_v43  ;;  %v3537_v28 = vadd.f32 %v3496_v16, %v800_v58  ;;  %v9769_v8 = vpack.c.bf16 %v3723_v57, %v3722_v25 }
 0x711   :  { %v7291_v60 = vpop.eup %7290  ;;  %v3652_v15 = vadd.f32 1.0, %v7289_v4  ;;  %7310 = vtanh.f32 %v3538_v55  ;;  %v9771_v29 = vpack.c.bf16 %v3721_v3, %v3720_v19 }
 0x712   :  { %11050 = vst [vmem:[#allocation52_spill] sm:$0xff] %v9769_v8  ;;  %v7293_v61 = vpop.eup %7292  ;;  %7312 = vrcp.f32 %v3654_v52  ;;  %v3655_v59 = vadd.f32 1.0, %v7291_v60 }
 0x713   :  { %11051 = vst [vmem:[#allocation46_spill] sm:$0xff] %v9771_v29  ;;  %v7295_v46 = vpop.eup %7294  ;;  %7314 = vrcp.f32 %v3652_v15  ;;  %6496 = vmatprep.subr.bf16.mxu1 %v9771_v29 }
 0x714   :  { %v7297_v51 = vpop.eup %7296  ;;  %7316 = vrcp.f32 %v3655_v59  ;;  %6497 = vmatpush3.bf16.msra.mxu1 %v9771_v29 }
 0x715   :  { %v7299_v41 = vpop.eup %7298  ;;  %7318 = vtanh.f32 %v3536_v33  ;;  %6498 = vmatprep.subr.bf16.mxu1 %v9769_v8 }
 0x716   :  { %v7301_v31 = vpop.eup %7300  ;;  %7320 = vtanh.f32 %v3539_v47 }
 0x717   :  { %v7303_v4 = vpop.eup %7302  ;;  %v3653_v3 = vadd.f32 1.0, %v7301_v31  ;;  %7322 = vtanh.f32 %v3537_v28 }
 0x718   :  { %v7305_v18 = vpop.eup %7304  ;;  %6499 = vmatpush3.bf16.msra.mxu1 %v9769_v8  ;;  %v3658_v55 = vadd.f32 1.0, %v7303_v4 }
 0x719   :  { %v7307_v54 = vpop.eup %7306  ;;  %7324 = vrcp.f32 %v3653_v3  ;;  %v3656_v33 = vadd.f32 1.0, %v7305_v18 }
 0x71a   :  { %v7309_v19 = vpop.eup %7308  ;;  %v3659_v44 = vadd.f32 1.0, %v7307_v54  ;;  %7326 = vrcp.f32 %v3658_v55  ;;  %v9811_v55 = vld [vmem:[%s10475_s3 + $0x10] sm:$0xff]  }
 0x71b   :  { %v7311_v43 = vpop.eup %7310  ;;  %7328 = vrcp.f32 %v3656_v33  ;;  %v9832_v33 = vld [vmem:[%s10475_s3 + $0x28] sm:$0xff]  }
 0x71c   :  { %v7313_v40 = vpop.eup %7312  ;;  %v3710_v32 = vmul.f32 %v7311_v43, %v7293_v61  ;;  %v3657_v61 = vadd.f32 1.0, %v7309_v19 }
 0x71d   :  { %v7315_v58 = vpop.eup %7314  ;;  %v3706_v23 = vmul.f32 %v7313_v40, %v9633_v5 }
 0x71e   :  { %v7317_v24 = vpop.eup %7316  ;;  %v3704_v50 = vmul.f32 %v7315_v58, %v9635_v45 }
 0x71f   :  { %v7319_v36 = vpop.eup %7318  ;;  %v3707_v28 = vmul.f32 %v7317_v24, %v9638_v48  ;;  %v9780_v25 = vadd.f32 %v3710_v32, %v3706_v23  ;;  %v9804_v23 = vld [vmem:[%s10475_s3 + $0x8] sm:$0xff]   ;;  %v9818_v24 = vld [vmem:[%s10475_s3 + $0x18] sm:$0xff]  }
 0x720   :  { %v7321_v57 = vpop.eup %7320  ;;  %v3708_v47 = vmul.f32 %v7319_v36, %v7295_v46  ;;  %v9839_v36 = vld [vmem:[%s10475_s3 + $0x30] sm:$0xff]  }
 0x721   :  { %v7323_v16 = vpop.eup %7322  ;;  %v3711_v52 = vmul.f32 %v7321_v57, %v7297_v51  ;;  %7330 = vtanh.f32 %v9780_v25  ;;  %v9853_v57 = vld [vmem:[%s10475_s3 + $0x40] sm:$0xff]  }
 0x722   :  { %v9782_v60 = vadd.f32 %v3708_v47, %v3704_v50  ;;  %v3709_v5 = vmul.f32 %v7323_v16, %v7299_v41  ;;  %7332 = vrcp.f32 %v3659_v44  ;;  %v9825_v50 = vld [vmem:[%s10475_s3 + $0x20] sm:$0xff]   ;;  %v9860_v44 = vld [vmem:[%s10475_s3 + $0x48] sm:$0xff]   ;;  %v9867_v47 = vld [vmem:[%s10475_s3 + $0x50] sm:$0xff]  }
 0x723   :  { %v7325_v15 = vpop.eup %7324  ;;  %v9785_v45 = vadd.f32 %v3711_v52, %v3707_v28  ;;  %v9846_v28 = vld [vmem:[%s10475_s3 + $0x38] sm:$0xff]   ;;  %v9881_v52 = vld [vmem:[%s10475_s3 + $0x60] sm:$0xff]  }
 0x724   :  { %v3705_v48 = vmul.f32 %v7325_v15, %v9643_v10  ;;  %v7327_v46 = vpop.eup %7326  ;;  %v9874_v16 = vld [vmem:[%s10475_s3 + $0x58] sm:$0xff]   ;;  %v9895_v15 = vld [vmem:[%s10475_s3 + $0x70] sm:$0xff]  }
 0x725   :  { %7334 = vtanh.f32 %v9785_v45  ;;  %v7329_v51 = vpop.eup %7328 }
 0x726   :  { %7336 = vtanh.f32 %v9782_v60  ;;  %v9790_v59 = vadd.f32 %v3709_v5, %v3705_v48  ;;  %v9888_v5 = vld [vmem:[%s10475_s3 + $0x68] sm:$0xff]   ;;  %v7773_v48 = vld [vmem:[%s10475_s3] sm:$0xff]  }
 0x727   :  { %7338 = vrcp.f32 %v3657_v61  ;;  %v9902_v61 = vld [vmem:[%s10475_s3 + $0x78] sm:$0xff]  }
 0x728   :  { %7340 = vtanh.f32 %v9790_v59  ;;  %11054 = vst [vmem:[#allocation196_spill] sm:$0xff] %v9902_v61 }
 0x72b   :  { %v7331_v41 = vpop.eup %7330 }
 0x72c   :  { %v7333_v31 = vpop.eup %7332  ;;  %v3732_v18 = vmul.f32 %v7331_v41, %v7327_v46  ;;  %v11055_v46 = vld [vmem:[#allocation128_spill] sm:$0xff] }
 0x72d   :  { %v11056_v41 = vld [vmem:[#allocation120_spill] sm:$0xff] }
 0x72f   :  { %v7335_v4 = vpop.eup %7334 }
 0x730   :  { %v7337_v3 = vpop.eup %7336  ;;  %v3733_v54 = vmul.f32 %v7335_v4, %v7333_v31  ;;  %v849_v31 = vadd.f32 %v11056_v41, %v8767_v6  ;;  %v11059_v6 = vld [vmem:[#allocation144_spill] sm:$0xff] }
 0x731   :  { %v7339_v19 = vpop.eup %7338  ;;  %v3730_v40 = vmul.f32 %v7337_v3, %v7329_v51  ;;  %v859_v51 = vadd.f32 %v11055_v46, %v10996_v22  ;;  %v11057_v3 = vld [vmem:[#allocation132_spill] sm:$0xff]  ;;  %v879_v22 = vadd.f32 %v11059_v6, %v11001_v9 }
 0x732   :  { %v7341_v10 = vpop.eup %7340  ;;  %v9793_v43 = vpack.c.bf16 %v3733_v54, %v3732_v18  ;;  %v863_v18 = vadd.f32 %v11057_v3, %v8809_v2 }
 0x733   :  { %v3731_v32 = vmul.f32 %v7341_v10, %v7339_v19  ;;  %v11058_v10 = vld [vmem:[#allocation124_spill] sm:$0xff] }
 0x734   :  { %11052 = vst [vmem:[#allocation193_spill] sm:$0xff] %v9793_v43 }
 0x735   :  { %v9795_v58 = vpack.c.bf16 %v3731_v32, %v3730_v40  ;;  %v853_v40 = vadd.f32 %v11058_v10, %v8785_v30 }
 0x737   :  { %11053 = vst [vmem:[#allocation185_spill] sm:$0xff] %v9795_v58  ;;  %6500 = vmatprep.subr.bf16.mxu1 %v9795_v58 }
 0x738   :  { %6501 = vmatpush3.bf16.msra.mxu1 %v9795_v58 }
 0x739   :  { %6502 = vmatprep.subr.bf16.mxu1 %v9793_v43 }
 0x73c   :  { %6503 = vmatpush3.bf16.msra.mxu1 %v9793_v43 }
 0x73f   :  { %6505 = vmatmul.mubr.msk.bf16.vlgmr.msra.gmra.mrb[192].mxu1 %vm1598_vm1, %v9804_v23 }
 0x740   :  { %6508 = vmatprep.mubr.msk.bf16.mxu1 %vm1598_vm1, %v9811_v55 }
 0x747   :  { %6509 = vmatmul.mubr.msk.bf16.gmra.mrb[196].mxu1 %vm1598_vm1, %v9818_v24 }
 0x748   :  { %6512 = vmatprep.mubr.msk.bf16.mxu1 %vm1598_vm1, %v9825_v50 }
 0x74f   :  { %6513 = vmatmul.mubr.msk.bf16.gmra.mrb[200].mxu1 %vm1598_vm1, %v9832_v33 }
 0x750   :  { %6516 = vmatprep.mubr.msk.bf16.mxu1 %vm1598_vm1, %v9839_v36 }
 0x757   :  { %6517 = vmatmul.mubr.msk.bf16.gmra.mrb[204].mxu1 %vm1598_vm1, %v9846_v28 }
 0x758   :  { %6520 = vmatprep.mubr.msk.bf16.mxu1 %vm1598_vm1, %v9853_v57 }
 0x75f   :  { %6521 = vmatmul.mubr.msk.bf16.gmra.mrb[208].mxu1 %vm1598_vm1, %v9860_v44 }
 0x760   :  { %6524 = vmatprep.mubr.msk.bf16.mxu1 %vm1598_vm1, %v9867_v47 }
 0x767   :  { %6525 = vmatmul.mubr.msk.bf16.gmra.mrb[212].mxu1 %vm1598_vm1, %v9874_v16 }
 0x768   :  { %6528 = vmatprep.mubr.msk.bf16.mxu1 %vm1598_vm1, %v9881_v52 }
 0x76f   :  { %6529 = vmatmul.mubr.msk.bf16.gmra.mrb[216].mxu1 %vm1598_vm1, %v9888_v5 }
 0x770   :  { %6532 = vmatprep.mubr.msk.bf16.mxu1 %vm1598_vm1, %v9895_v15 }
 0x777   :  { %6533 = vmatmul.mubr.msk.bf16.gmra.mrb[220].mxu1 %vm1598_vm1, %v9902_v61 }
 0x778   :  { %6584 = vmatprep.mubr.msk.bf16.mxu1 %vm1598_vm1, %v7773_v48 }
 0x812   :  { %v6506_v4 = vpop.f32.mrb[192].mxu1 }
 0x813   :  { %v3935_v54 = vadd.f32 %v6506_v4, %v859_v51  ;;  %v3806_v19 = vpop.f32.mrb[193].mxu1  ;;  %v11060_v51 = vld [vmem:[#allocation136_spill] sm:$0xff] }
 0x814   :  { %v3933_v32 = vadd.f32 %v3806_v19, %v849_v31  ;;  %v6507_v43 = vpop.f32.mrb[194].mxu1  ;;  %v869_v4 = vadd.f32 %v11060_v51, %v11003_v42  ;;  %v11061_v31 = vld [vmem:[#allocation148_spill] sm:$0xff] }
 0x815   :  { %v5883_v58 = vmul.f32 -1.442695, %v3935_v54  ;;  %v3936_v8 = vadd.f32 %v6507_v43, %v863_v18  ;;  %v3809_v48 = vpop.f32.mrb[195].mxu1  ;;  %v883_v54 = vadd.f32 %v11061_v31, %v11005_v17  ;;  %v11062_v19 = vld [vmem:[#allocation140_spill] sm:$0xff] }
 0x816   :  { %v5881_v29 = vmul.f32 -1.442695, %v3933_v32  ;;  %v3934_v61 = vadd.f32 %v3809_v48, %v853_v40  ;;  %v11063_v51 = vld [vmem:[#allocation160_spill] sm:$0xff] }
 0x817   :  { %7342 = vpow2.f32 %v5883_v58  ;;  %v5884_v46 = vmul.f32 -1.442695, %v3936_v8  ;;  %v873_v58 = vadd.f32 %v11062_v19, %v11007_v26  ;;  %v899_v31 = vadd.f32 %v11063_v51, %v11009_v34 }
 0x818   :  { %7344 = vpow2.f32 %v5881_v29  ;;  %v5882_v41 = vmul.f32 -1.442695, %v3934_v61 }
 0x819   :  { %7346 = vpow2.f32 %v5884_v46 }
 0x81a   :  { %7348 = vpow2.f32 %v5882_v41  ;;  %v6510_v3 = vpop.f32.mrb[196].mxu1 }
 0x81b   :  { %v3939_v43 = vadd.f32 %v6510_v3, %v879_v22  ;;  %v3822_v18 = vpop.f32.mrb[197].mxu1  ;;  %v11064_v3 = vld [vmem:[#allocation152_spill] sm:$0xff] }
 0x81c   :  { %v3937_v8 = vadd.f32 %v3822_v18, %v869_v4  ;;  %v6511_v29 = vpop.f32.mrb[198].mxu1  ;;  %v889_v19 = vadd.f32 %v11064_v3, %v11011_v53  ;;  %v11065_v18 = vld [vmem:[#allocation164_spill] sm:$0xff] }
 0x81d   :  { %v5887_v61 = vmul.f32 -1.442695, %v3939_v43  ;;  %v3940_v10 = vadd.f32 %v6511_v29, %v883_v54  ;;  %v3825_v40 = vpop.f32.mrb[199].mxu1 }
 0x81e   :  { %v5885_v6 = vmul.f32 -1.442695, %v3937_v8  ;;  %v3938_v32 = vadd.f32 %v3825_v40, %v873_v58  ;;  %v903_v58 = vadd.f32 %v11065_v18, %v11013_v37  ;;  %v11066_v40 = vld [vmem:[#allocation156_spill] sm:$0xff]  ;;  %v11079_v37 = vld [vmem:[#allocation77_spill] sm:$0xff] }
 0x81f   :  { %7350 = vpow2.f32 %v5887_v61  ;;  %v5888_v48 = vmul.f32 -1.442695, %v3940_v10  ;;  %v11067_v18 = vld [vmem:[#allocation176_spill] sm:$0xff] }
 0x820   :  { %7352 = vpow2.f32 %v5885_v6  ;;  %v5886_v46 = vmul.f32 -1.442695, %v3938_v32  ;;  %v893_v6 = vadd.f32 %v11066_v40, %v11015_v13  ;;  %v919_v40 = vadd.f32 %v11067_v18, %v11017_v49 }
 0x821   :  { %v7343_v41 = vpop.eup %7342  ;;  %7354 = vpow2.f32 %v5888_v48 }
 0x822   :  { %v7345_v22 = vpop.eup %7344  ;;  %v4003_v4 = vadd.f32 1.0, %v7343_v41  ;;  %7356 = vpow2.f32 %v5886_v46  ;;  %v6514_v43 = vpop.f32.mrb[200].mxu1 }
 0x823   :  { %v7347_v54 = vpop.eup %7346  ;;  %v4001_v8 = vadd.f32 1.0, %v7345_v22  ;;  %v3943_v29 = vadd.f32 %v6514_v43, %v899_v31  ;;  %v3838_v61 = vpop.f32.mrb[201].mxu1 }
 0x824   :  { %v7349_v10 = vpop.eup %7348  ;;  %7358 = vrcp.f32 %v4003_v4  ;;  %v4004_v32 = vadd.f32 1.0, %v7347_v54  ;;  %v3941_v48 = vadd.f32 %v3838_v61, %v889_v19  ;;  %v6515_v51 = vpop.f32.mrb[202].mxu1  ;;  %v11068_v19 = vld [vmem:[#allocation168_spill] sm:$0xff] }
 0x825   :  { %7360 = vrcp.f32 %v4001_v8  ;;  %v4002_v3 = vadd.f32 1.0, %v7349_v10  ;;  %v5891_v41 = vmul.f32 -1.442695, %v3943_v29  ;;  %v3944_v46 = vadd.f32 %v6515_v51, %v903_v58  ;;  %v3841_v53 = vpop.f32.mrb[203].mxu1  ;;  %v11069_v61 = vld [vmem:[#allocation180_spill] sm:$0xff] }
 0x826   :  { %7362 = vrcp.f32 %v4004_v32  ;;  %v5889_v34 = vmul.f32 -1.442695, %v3941_v48  ;;  %v3942_v26 = vadd.f32 %v3841_v53, %v893_v6  ;;  %v909_v54 = vadd.f32 %v11068_v19, %v11019_v39  ;;  %v11070_v48 = vld [vmem:[#allocation172_spill] sm:$0xff] }
 0x827   :  { %7364 = vrcp.f32 %v4002_v3  ;;  %v5892_v22 = vmul.f32 -1.442695, %v3944_v46  ;;  %v923_v53 = vadd.f32 %v11069_v61, %v11021_v1  ;;  %v913_v51 = vadd.f32 %v11070_v48, %v11023_v0 }
 0x828   :  { %7366 = vpow2.f32 %v5891_v41  ;;  %v5890_v31 = vmul.f32 -1.442695, %v3942_v26 }
 0x829   :  { %v7351_v43 = vpop.eup %7350  ;;  %7368 = vpow2.f32 %v5889_v34 }
 0x82a   :  { %v7353_v4 = vpop.eup %7352  ;;  %v4007_v8 = vadd.f32 1.0, %v7351_v43  ;;  %7370 = vpow2.f32 %v5892_v22  ;;  %v6518_v58 = vpop.f32.mrb[204].mxu1 }
 0x82b   :  { %v7355_v29 = vpop.eup %7354  ;;  %v4005_v10 = vadd.f32 1.0, %v7353_v4  ;;  %7372 = vpow2.f32 %v5890_v31  ;;  %v3947_v6 = vadd.f32 %v6518_v58, %v919_v40  ;;  %v3854_v26 = vpop.f32.mrb[205].mxu1  ;;  %v11071_v4 = vld [vmem:[#allocation65_spill] sm:$0xff] }
 0x82c   :  { %v7357_v32 = vpop.eup %7356  ;;  %7374 = vrcp.f32 %v4007_v8  ;;  %v4008_v34 = vadd.f32 1.0, %v7355_v29  ;;  %v3945_v3 = vadd.f32 %v3854_v26, %v909_v54  ;;  %v6519_v41 = vpop.f32.mrb[206].mxu1  ;;  %v744_v58 = vadd.f32 %v11071_v4, %v11025_v56  ;;  %v11072_v54 = vld [vmem:[#allocation57_spill] sm:$0xff]  ;;  %v11073_v26 = vld [vmem:[#allocation236_spill] sm:$0xff] }
 0x82d   :  { %7376 = vrcp.f32 %v4005_v10  ;;  %v4006_v46 = vadd.f32 1.0, %v7357_v32  ;;  %v3948_v22 = vadd.f32 %v6519_v41, %v923_v53  ;;  %v3857_v43 = vpop.f32.mrb[207].mxu1  ;;  %v734_v29 = vadd.f32 %v11072_v54, %v11027_v21  ;;  %v11074_v32 = vld [vmem:[#allocation69_spill] sm:$0xff] }
 0x82e   :  { %v7359_v18 = vpop.eup %7358  ;;  %7378 = vrcp.f32 %v4008_v34  ;;  %v3946_v19 = vadd.f32 %v3857_v43, %v913_v51  ;;  %v748_v48 = vadd.f32 %v11074_v32, %v11073_v26  ;;  %v11078_v26 = vld [vmem:[#allocation228_spill] sm:$0xff] }
 0x82f   :  { %v7361_v61 = vpop.eup %7360  ;;  %7380 = vrcp.f32 %v4006_v46  ;;  %v11075_v46 = vld [vmem:[#allocation61_spill] sm:$0xff] }
 0x830   :  { %v7363_v31 = vpop.eup %7362  ;;  %7382 = vtanh.f32 %v3947_v6  ;;  %v738_v43 = vadd.f32 %v11075_v46, %v10867_v20  ;;  %v758_v46 = vadd.f32 %v11079_v37, %v11078_v26 }
 0x831   :  { %v9942_v40 = vpop.eup %7364  ;;  %7384 = vtanh.f32 %v3945_v3 }
 0x832   :  { %v7367_v8 = vpop.eup %7366  ;;  %7386 = vtanh.f32 %v3948_v22  ;;  %v6522_v53 = vpop.f32.mrb[208].mxu1 }
 0x833   :  { %v7369_v10 = vpop.eup %7368  ;;  %v4011_v51 = vadd.f32 1.0, %v7367_v8  ;;  %7388 = vtanh.f32 %v3946_v19  ;;  %v3951_v34 = vadd.f32 %v6522_v53, %v744_v58  ;;  %v3870_v6 = vpop.f32.mrb[209].mxu1  ;;  %v11076_v58 = vld [vmem:[#allocation221_spill] sm:$0xff] }
 0x834   :  { %v7371_v41 = vpop.eup %7370  ;;  %v4009_v4 = vadd.f32 1.0, %v7369_v10  ;;  %v3949_v3 = vadd.f32 %v3870_v6, %v734_v29  ;;  %v6523_v56 = vpop.f32.mrb[210].mxu1  ;;  %v11077_v53 = vld [vmem:[#allocation73_spill] sm:$0xff] }
 0x835   :  { %v7373_v0 = vpop.eup %7372  ;;  %v5895_v1 = vmul.f32 -1.442695, %v3951_v34  ;;  %v3952_v54 = vadd.f32 %v6523_v56, %v748_v48  ;;  %v3873_v22 = vpop.f32.mrb[211].mxu1  ;;  %7390 = vrcp.f32 %v4011_v51  ;;  %v754_v32 = vadd.f32 %v11077_v53, %v11076_v58  ;;  %v11080_v6 = vld [vmem:[#allocation237_spill] sm:$0xff] }
 0x836   :  { %v7375_v21 = vpop.eup %7374  ;;  %v5893_v39 = vmul.f32 -1.442695, %v3949_v3  ;;  %v3950_v49 = vadd.f32 %v3873_v22, %v738_v43  ;;  %7392 = vrcp.f32 %v4009_v4  ;;  %v11081_v34 = vld [vmem:[#allocation81_spill] sm:$0xff]  ;;  %v4012_v3 = vadd.f32 1.0, %v7371_v41 }
 0x837   :  { %v7377_v13 = vpop.eup %7376  ;;  %v5896_v8 = vmul.f32 -1.442695, %v3952_v54  ;;  %v764_v56 = vadd.f32 %v11081_v34, %v11080_v6  ;;  %v4119_v48 = vmul.f32 %v7375_v21, %v9740_v35  ;;  %7394 = vpow2.f32 %v5895_v1  ;;  %v11082_v51 = vld [vmem:[#allocation85_spill] sm:$0xff] }
 0x838   :  { %v7379_v19 = vpop.eup %7378  ;;  %v5894_v29 = vmul.f32 -1.442695, %v3950_v49  ;;  %v768_v54 = vadd.f32 %v11082_v51, %v8907_v38  ;;  %v4117_v22 = vmul.f32 %v7377_v13, %v9742_v62  ;;  %v4010_v53 = vadd.f32 1.0, %v7373_v0 }
 0x839   :  { %v7381_v10 = vpop.eup %7380  ;;  %7396 = vpow2.f32 %v5893_v39  ;;  %v4120_v49 = vmul.f32 %v7379_v19, %v9746_v11 }
 0x83a   :  { %v7383_v43 = vpop.eup %7382  ;;  %v6526_v58 = vpop.f32.mrb[212].mxu1  ;;  %7398 = vpow2.f32 %v5896_v8  ;;  %v4118_v21 = vmul.f32 %v7381_v10, %v9749_v63 }
 0x83b   :  { %v7385_v37 = vpop.eup %7384  ;;  %v4123_v4 = vmul.f32 %v7383_v43, %v7359_v18  ;;  %v3955_v26 = vadd.f32 %v6526_v58, %v764_v56  ;;  %v3886_v34 = vpop.f32.mrb[213].mxu1  ;;  %7400 = vpow2.f32 %v5894_v29 }
 0x83c   :  { %v7387_v6 = vpop.eup %7386  ;;  %v4121_v1 = vmul.f32 %v7385_v37, %v7361_v61  ;;  %v3953_v35 = vadd.f32 %v3886_v34, %v754_v32  ;;  %v6527_v41 = vpop.f32.mrb[214].mxu1  ;;  %7402 = vrcp.f32 %v4012_v3  ;;  %v11087_v37 = vld [vmem:[#allocation93_spill] sm:$0xff] }
 0x83d   :  { %v7389_v51 = vpop.eup %7388  ;;  %v9964_v13 = vadd.f32 %v4123_v4, %v4119_v48  ;;  %v4124_v39 = vmul.f32 %v7387_v6, %v7363_v31  ;;  %v3956_v0 = vadd.f32 %v6527_v41, %v768_v54  ;;  %v3889_v62 = vpop.f32.mrb[215].mxu1  ;;  %7404 = vrcp.f32 %v4010_v53  ;;  %v11083_v31 = vld [vmem:[#allocation97_spill] sm:$0xff] }
 0x83e   :  { %v9966_v11 = vadd.f32 %v4121_v1, %v4117_v22  ;;  %v4122_v18 = vmul.f32 %v7389_v51, %v9942_v40  ;;  %v3954_v8 = vadd.f32 %v3889_v62, %v758_v46  ;;  %v5899_v61 = vmul.f32 -1.442695, %v3955_v26  ;;  %v11084_v40 = vld [vmem:[#allocation89_spill] sm:$0xff] }
 0x83f   :  { %7406 = vtanh.f32 %v9964_v13  ;;  %v9970_v63 = vadd.f32 %v4124_v39, %v4120_v49  ;;  %v5897_v58 = vmul.f32 -1.442695, %v3953_v35  ;;  %v7391_v32 = vpop.eup %7390  ;;  %v784_v29 = vadd.f32 %v11083_v31, %v8996_v7  ;;  %v11085_v48 = vld [vmem:[#allocation101_spill] sm:$0xff] }
 0x840   :  { %7408 = vtanh.f32 %v9966_v11  ;;  %v9973_v19 = vadd.f32 %v4122_v18, %v4118_v21  ;;  %v5900_v10 = vmul.f32 -1.442695, %v3956_v0  ;;  %v7393_v6 = vpop.eup %7392  ;;  %v774_v46 = vadd.f32 %v11084_v40, %v8969_v12  ;;  %v11086_v53 = vld [vmem:[#allocation253_spill] sm:$0xff] }
 0x841   :  { %7410 = vtanh.f32 %v9970_v63  ;;  %v7395_v26 = vpop.eup %7394  ;;  %v788_v3 = vadd.f32 %v11085_v48, %v9004_v14  ;;  %v778_v49 = vadd.f32 %v11087_v37, %v11086_v53  ;;  %v5898_v62 = vmul.f32 -1.442695, %v3954_v8 }
 0x842   :  { %7412 = vtanh.f32 %v9973_v19  ;;  %v6530_v56 = vpop.f32.mrb[216].mxu1  ;;  %v4075_v4 = vadd.f32 1.0, %v7395_v26  ;;  %v11089_v26 = vld [vmem:[#allocation113_spill] sm:$0xff] }
 0x843   :  { %7414 = vpow2.f32 %v5899_v61  ;;  %v3959_v43 = vadd.f32 %v6530_v56, %v784_v29  ;;  %v3902_v54 = vpop.f32.mrb[217].mxu1  ;;  %v7397_v22 = vpop.eup %7396 }
 0x844   :  { %7416 = vpow2.f32 %v5897_v58  ;;  %v3957_v34 = vadd.f32 %v3902_v54, %v774_v46  ;;  %v6531_v21 = vpop.f32.mrb[218].mxu1  ;;  %v7399_v1 = vpop.eup %7398  ;;  %v4073_v35 = vadd.f32 1.0, %v7397_v22  ;;  %v11088_v46 = vld [vmem:[#allocation257_spill] sm:$0xff]  ;;  %v11090_v54 = vld [vmem:[#allocation254_spill] sm:$0xff] }
 0x845   :  { %7418 = vpow2.f32 %v5900_v10  ;;  %v3960_v41 = vadd.f32 %v6531_v21, %v788_v3  ;;  %v3905_v51 = vpop.f32.mrb[219].mxu1  ;;  %v7401_v39 = vpop.eup %7400  ;;  %v4076_v0 = vadd.f32 1.0, %v7399_v1  ;;  %v5903_v29 = vmul.f32 -1.442695, %v3959_v43  ;;  %v11091_v22 = vld [vmem:[#allocation105_spill] sm:$0xff]  ;;  %v11092_v21 = vld [vmem:[#allocation255_spill] sm:$0xff] }
 0x846   :  { %7420 = vrcp.f32 %v4075_v4  ;;  %v3958_v18 = vadd.f32 %v3905_v51, %v778_v49  ;;  %v7403_v61 = vpop.eup %7402  ;;  %v4074_v31 = vadd.f32 1.0, %v7401_v39  ;;  %v5901_v56 = vmul.f32 -1.442695, %v3957_v34  ;;  %v11093_v1 = vld [vmem:[#allocation109_spill] sm:$0xff] }
 0x847   :  { %7422 = vrcp.f32 %v4073_v35  ;;  %v7405_v40 = vpop.eup %7404  ;;  %v804_v48 = vadd.f32 %v11089_v26, %v11088_v46  ;;  %v5904_v10 = vmul.f32 -1.442695, %v3960_v41  ;;  %v794_v37 = vadd.f32 %v11091_v22, %v11090_v54  ;;  %v11094_v35 = vld [vmem:[#allocation117_spill] sm:$0xff] }
 0x848   :  { %7424 = vrcp.f32 %v4076_v0  ;;  %v5902_v8 = vmul.f32 -1.442695, %v3958_v18  ;;  %v798_v43 = vadd.f32 %v11093_v1, %v11092_v21  ;;  %v808_v34 = vadd.f32 %v11094_v35, %v9017_v27 }
 0x849   :  { %v7407_v58 = vpop.eup %7406  ;;  %7426 = vrcp.f32 %v4074_v31 }
 0x84a   :  { %v7409_v3 = vpop.eup %7408  ;;  %7428 = vpow2.f32 %v5898_v62  ;;  %v6534_v49 = vpop.f32.mrb[220].mxu1  ;;  %v4147_v26 = vmul.f32 %v7407_v58, %v7391_v32 }
 0x84b   :  { %v7411_v4 = vpop.eup %7410  ;;  %7430 = vpow2.f32 %v5903_v29  ;;  %v3963_v51 = vadd.f32 %v6534_v49, %v804_v48  ;;  %v3918_v39 = vpop.f32.mrb[221].mxu1  ;;  %v4145_v54 = vmul.f32 %v7409_v3, %v7393_v6 }
 0x84c   :  { %v7413_v0 = vpop.eup %7412  ;;  %7432 = vpow2.f32 %v5901_v56  ;;  %v3961_v41 = vadd.f32 %v3918_v39, %v794_v37  ;;  %v6535_v31 = vpop.f32.mrb[222].mxu1  ;;  %v4148_v46 = vmul.f32 %v7411_v4, %v7403_v61 }
 0x84d   :  { %v7415_v22 = vpop.eup %7414  ;;  %7434 = vpow2.f32 %v5904_v10  ;;  %v3964_v62 = vadd.f32 %v6535_v31, %v808_v34  ;;  %v3921_v18 = vpop.f32.mrb[223].mxu1  ;;  %v4146_v53 = vmul.f32 %v7413_v0, %v7405_v40 }
 0x84e   :  { %v7417_v14 = vpop.eup %7416  ;;  %v4079_v1 = vadd.f32 1.0, %v7415_v22  ;;  %7436 = vpow2.f32 %v5902_v8  ;;  %v3962_v21 = vadd.f32 %v3921_v18, %v798_v43  ;;  %v9993_v35 = vpack.c.bf16 %v4148_v46, %v4147_v26 }
 0x84f   :  { %v7419_v29 = vpop.eup %7418  ;;  %v4077_v48 = vadd.f32 1.0, %v7417_v14  ;;  %7438 = vtanh.f32 %v3963_v51  ;;  %v9995_v56 = vpack.c.bf16 %v4146_v53, %v4145_v54 }
 0x850   :  { %11095 = vst [vmem:[#allocation220_spill] sm:$0xff] %v9993_v35  ;;  %v7421_v37 = vpop.eup %7420  ;;  %7440 = vrcp.f32 %v4079_v1  ;;  %v4080_v32 = vadd.f32 1.0, %v7419_v29 }
 0x851   :  { %11096 = vst [vmem:[#allocation188_spill] sm:$0xff] %v9995_v56  ;;  %v7423_v61 = vpop.eup %7422  ;;  %7442 = vrcp.f32 %v4077_v48  ;;  %6536 = vmatprep.subr.bf16.mxu0 %v9995_v56 }
 0x852   :  { %v7425_v6 = vpop.eup %7424  ;;  %7444 = vrcp.f32 %v4080_v32  ;;  %6537 = vmatpush3.bf16.msra.mxu0 %v9995_v56 }
 0x853   :  { %v7427_v40 = vpop.eup %7426  ;;  %7446 = vtanh.f32 %v3961_v41  ;;  %6538 = vmatprep.subr.bf16.mxu0 %v9993_v35 }
 0x854   :  { %v7429_v58 = vpop.eup %7428  ;;  %7448 = vtanh.f32 %v3964_v62 }
 0x855   :  { %v7431_v14 = vpop.eup %7430  ;;  %v4078_v53 = vadd.f32 1.0, %v7429_v58  ;;  %7450 = vtanh.f32 %v3962_v21 }
 0x856   :  { %v7433_v46 = vpop.eup %7432  ;;  %6539 = vmatpush3.bf16.msra.mxu0 %v9993_v35  ;;  %v4083_v34 = vadd.f32 1.0, %v7431_v14  ;;  %v11140_v35 = vld [vmem:[#allocation76_spill] sm:$0xff] }
 0x857   :  { %v7435_v10 = vpop.eup %7434  ;;  %7452 = vrcp.f32 %v4078_v53  ;;  %v4081_v0 = vadd.f32 1.0, %v7433_v46 }
 0x858   :  { %v7437_v3 = vpop.eup %7436  ;;  %v4084_v22 = vadd.f32 1.0, %v7435_v10  ;;  %7454 = vrcp.f32 %v4083_v34  ;;  %v11099_v34 = vld [vmem:[#allocation259_spill] sm:$0xff] }
 0x859   :  { %v7439_v54 = vpop.eup %7438  ;;  %7456 = vrcp.f32 %v4081_v0 }
 0x85a   :  { %v7441_v8 = vpop.eup %7440  ;;  %v4135_v49 = vmul.f32 %v7439_v54, %v7421_v37  ;;  %v4082_v37 = vadd.f32 1.0, %v7437_v3 }
 0x85b   :  { %v7443_v4 = vpop.eup %7442  ;;  %v4131_v43 = vmul.f32 %v7441_v8, %v9780_v25 }
 0x85c   :  { %v7445_v51 = vpop.eup %7444  ;;  %v4129_v39 = vmul.f32 %v7443_v4, %v9782_v60 }
 0x85d   :  { %v7447_v41 = vpop.eup %7446  ;;  %v4132_v21 = vmul.f32 %v7445_v51, %v9785_v45  ;;  %v10004_v31 = vadd.f32 %v4135_v49, %v4131_v43  ;;  %v11098_v43 = vld [vmem:[#allocation19_spill] sm:$0xff]  ;;  %v11100_v51 = vld [vmem:[#allocation25_spill] sm:$0xff] }
 0x85e   :  { %v7449_v26 = vpop.eup %7448  ;;  %v4133_v62 = vmul.f32 %v7447_v41, %v7423_v61 }
 0x85f   :  { %v7451_v18 = vpop.eup %7450  ;;  %v4136_v1 = vmul.f32 %v7449_v26, %v7425_v6  ;;  %7458 = vtanh.f32 %v10004_v31 }
 0x860   :  { %v10006_v29 = vadd.f32 %v4133_v62, %v4129_v39  ;;  %v4134_v25 = vmul.f32 %v7451_v18, %v7427_v40  ;;  %7460 = vrcp.f32 %v4084_v22  ;;  %v11101_v39 = vld [vmem:[#allocation258_spill] sm:$0xff] }
 0x861   :  { %v7453_v48 = vpop.eup %7452  ;;  %v10009_v60 = vadd.f32 %v4136_v1, %v4132_v21 }
 0x862   :  { %v4130_v45 = vmul.f32 %v7453_v48, %v9790_v59  ;;  %v7455_v61 = vpop.eup %7454  ;;  %v11109_v48 = vld [vmem:[#allocation145_spill] sm:$0xff] }
 0x863   :  { %7462 = vtanh.f32 %v10009_v60  ;;  %v7457_v6 = vpop.eup %7456 }
 0x864   :  { %7464 = vtanh.f32 %v10006_v29  ;;  %v10014_v32 = vadd.f32 %v4134_v25, %v4130_v45  ;;  %v11110_v45 = vld [vmem:[#allocation137_spill] sm:$0xff] }
 0x865   :  { %7466 = vrcp.f32 %v4082_v37  ;;  %v1070_v37 = vadd.f32 %v11109_v48, %v11001_v9 }
 0x866   :  { %7468 = vtanh.f32 %v10014_v32 }
 0x869   :  { %v7459_v40 = vpop.eup %7458 }
 0x86a   :  { %v7461_v58 = vpop.eup %7460  ;;  %v4157_v46 = vmul.f32 %v7459_v40, %v7455_v61  ;;  %v1060_v61 = vadd.f32 %v11110_v45, %v11003_v42  ;;  %v11111_v40 = vld [vmem:[#allocation149_spill] sm:$0xff] }
 0x86d   :  { %v7463_v14 = vpop.eup %7462 }
 0x86e   :  { %v7465_v53 = vpop.eup %7464  ;;  %v4158_v10 = vmul.f32 %v7463_v14, %v7461_v58  ;;  %v1074_v58 = vadd.f32 %v11111_v40, %v11005_v17 }
 0x86f   :  { %v7467_v3 = vpop.eup %7466  ;;  %v4155_v8 = vmul.f32 %v7465_v53, %v7457_v6 }
 0x870   :  { %v7469_v59 = vpop.eup %7468  ;;  %v10017_v54 = vpack.c.bf16 %v4158_v10, %v4157_v46  ;;  %v11112_v46 = vld [vmem:[#allocation197_spill] sm:$0xff] }
 0x871   :  { %v4156_v49 = vmul.f32 %v7469_v59, %v7467_v3  ;;  %v11113_v10 = vld [vmem:[#allocation141_spill] sm:$0xff] }
 0x872   :  { %11097 = vst [vmem:[#allocation201_spill] sm:$0xff] %v10017_v54  ;;  %v1064_v3 = vadd.f32 %v11113_v10, %v11112_v46 }
 0x873   :  { %v4159_v4 = vpack.c.bf16 %v4156_v49, %v4155_v8 }
 0x875   :  { %6540 = vmatprep.subr.bf16.mxu0 %v4159_v4 }
 0x876   :  { %6541 = vmatpush3.bf16.msra.mxu0 %v4159_v4 }
 0x877   :  { %6542 = vmatprep.subr.bf16.mxu0 %v10017_v54 }
 0x87a   :  { %6543 = vmatpush3.bf16.msra.mxu0 %v10017_v54  ;;  %v11139_v54 = vld [vmem:[#allocation228_spill] sm:$0xff] }
 0x87b   :  { %6174 = vmatprep.subr.bf16.mxu0 %v11098_v43 }
 0x87d   :  { %6545 = vmatmul.mubr.msk.bf16.vlgmr.msra.gmra.mrb[224].mxu0 %vm1598_vm1, %v9804_v23  ;;  %v11102_v23 = vld [vmem:[#allocation196_spill] sm:$0xff] }
 0x87e   :  { %6175 = vmatpush3.bf16.msra.mxu0 %v11099_v34  ;;  %6548 = vmatprep.mubr.msk.bf16.mxu0 %vm1598_vm1, %v9811_v55  ;;  %v11103_v55 = vld [vmem:[#allocation198_spill] sm:$0xff] }
 0x87f   :  { %6176 = vmatprep.subr.bf16.mxu0 %v11100_v51 }
 0x882   :  { %6177 = vmatpush3.bf16.msra.mxu0 %v11101_v39 }
 0x883   :  { %6178 = vmatprep.subr.bf16.mxu0 %v4159_v4 }
 0x885   :  { %6549 = vmatmul.mubr.msk.bf16.gmra.mrb[228].mxu0 %vm1598_vm1, %v9818_v24  ;;  %v11104_v24 = vld [vmem:[#allocation129_spill] sm:$0xff] }
 0x886   :  { %6552 = vmatprep.mubr.msk.bf16.mxu0 %vm1598_vm1, %v9825_v50  ;;  %v1050_v50 = vadd.f32 %v11104_v24, %v11103_v55 }
 0x88d   :  { %6553 = vmatmul.mubr.msk.bf16.gmra.mrb[232].mxu0 %vm1598_vm1, %v9832_v33  ;;  %v11105_v33 = vld [vmem:[#allocation189_spill] sm:$0xff] }
 0x88e   :  { %6556 = vmatprep.mubr.msk.bf16.mxu0 %vm1598_vm1, %v9839_v36  ;;  %v11106_v36 = vld [vmem:[#allocation121_spill] sm:$0xff] }
 0x895   :  { %6557 = vmatmul.mubr.msk.bf16.gmra.mrb[236].mxu0 %vm1598_vm1, %v9846_v28  ;;  %v1040_v28 = vadd.f32 %v11106_v36, %v11105_v33  ;;  %v11115_v36 = vld [vmem:[#allocation161_spill] sm:$0xff] }
 0x896   :  { %6560 = vmatprep.mubr.msk.bf16.mxu0 %vm1598_vm1, %v9853_v57 }
 0x89d   :  { %6561 = vmatmul.mubr.msk.bf16.gmra.mrb[240].mxu0 %vm1598_vm1, %v9860_v44  ;;  %v11107_v44 = vld [vmem:[#allocation133_spill] sm:$0xff] }
 0x89e   :  { %6564 = vmatprep.mubr.msk.bf16.mxu0 %vm1598_vm1, %v9867_v47  ;;  %v1054_v47 = vadd.f32 %v11107_v44, %v8809_v2  ;;  %v11116_v44 = vld [vmem:[#allocation244_spill] sm:$0xff] }
 0x8a5   :  { %6565 = vmatmul.mubr.msk.bf16.gmra.mrb[244].mxu0 %vm1598_vm1, %v9874_v16 }
 0x8a6   :  { %6568 = vmatprep.mubr.msk.bf16.mxu0 %vm1598_vm1, %v9881_v52 }
 0x8ad   :  { %6569 = vmatmul.mubr.msk.bf16.gmra.mrb[248].mxu0 %vm1598_vm1, %v9888_v5  ;;  %v11108_v5 = vld [vmem:[#allocation125_spill] sm:$0xff] }
 0x8ae   :  { %6572 = vmatprep.mubr.msk.bf16.mxu0 %vm1598_vm1, %v9895_v15  ;;  %v1044_v0 = vadd.f32 %v11108_v5, %v8785_v30 }
 0x8b5   :  { %6573 = vmatmul.mubr.msk.bf16.gmra.mrb[252].mxu0 %vm1598_vm1, %v11102_v23 }
 0x950   :  { %v6546_v57 = vpop.f32.mrb[224].mxu0 }
 0x951   :  { %v4360_v16 = vadd.f32 %v6546_v57, %v1050_v50  ;;  %v4231_v52 = vpop.f32.mrb[225].mxu0  ;;  %v11114_v50 = vld [vmem:[#allocation248_spill] sm:$0xff] }
 0x952   :  { %v4358_v41 = vadd.f32 %v4231_v52, %v1040_v28  ;;  %v6547_v15 = vpop.f32.mrb[226].mxu0  ;;  %v1090_v28 = vadd.f32 %v11115_v36, %v11114_v50 }
 0x953   :  { %v5923_v21 = vmul.f32 -1.442695, %v4360_v16  ;;  %v4361_v26 = vadd.f32 %v6547_v15, %v1054_v47  ;;  %v4234_v22 = vpop.f32.mrb[227].mxu0  ;;  %v11117_v47 = vld [vmem:[#allocation153_spill] sm:$0xff] }
 0x954   :  { %v5921_v62 = vmul.f32 -1.442695, %v4358_v41  ;;  %v4359_v18 = vadd.f32 %v4234_v22, %v1044_v0  ;;  %v1080_v16 = vadd.f32 %v11117_v47, %v11116_v44  ;;  %v11118_v41 = vld [vmem:[#allocation249_spill] sm:$0xff] }
 0x955   :  { %7470 = vpow2.f32 %v5923_v21  ;;  %v5924_v1 = vmul.f32 -1.442695, %v4361_v26  ;;  %v11119_v15 = vld [vmem:[#allocation165_spill] sm:$0xff] }
 0x956   :  { %7472 = vpow2.f32 %v5921_v62  ;;  %v5922_v25 = vmul.f32 -1.442695, %v4359_v18  ;;  %v1094_v21 = vadd.f32 %v11119_v15, %v11118_v41  ;;  %v11127_v47 = vld [vmem:[#allocation181_spill] sm:$0xff] }
 0x957   :  { %7474 = vpow2.f32 %v5924_v1  ;;  %v11120_v1 = vld [vmem:[#allocation245_spill] sm:$0xff] }
 0x958   :  { %7476 = vpow2.f32 %v5922_v25  ;;  %v6550_v6 = vpop.f32.mrb[228].mxu0  ;;  %v11121_v25 = vld [vmem:[#allocation157_spill] sm:$0xff] }
 0x959   :  { %v4364_v14 = vadd.f32 %v6550_v6, %v1070_v37  ;;  %v4247_v53 = vpop.f32.mrb[229].mxu0  ;;  %v1084_v48 = vadd.f32 %v11121_v25, %v11120_v1 }
 0x95a   :  { %v4362_v59 = vadd.f32 %v4247_v53, %v1060_v61  ;;  %v6551_v8 = vpop.f32.mrb[230].mxu0 }
 0x95b   :  { %v5927_v49 = vmul.f32 -1.442695, %v4364_v14  ;;  %v4365_v4 = vadd.f32 %v6551_v8, %v1074_v58  ;;  %v4250_v43 = vpop.f32.mrb[231].mxu0 }
 0x95c   :  { %v5925_v34 = vmul.f32 -1.442695, %v4362_v59  ;;  %v4363_v51 = vadd.f32 %v4250_v43, %v1064_v3 }
 0x95d   :  { %7478 = vpow2.f32 %v5927_v49  ;;  %v5928_v39 = vmul.f32 -1.442695, %v4365_v4  ;;  %v11122_v49 = vld [vmem:[#allocation250_spill] sm:$0xff]  ;;  %v11123_v4 = vld [vmem:[#allocation177_spill] sm:$0xff] }
 0x95e   :  { %7480 = vpow2.f32 %v5925_v34  ;;  %v5926_v23 = vmul.f32 -1.442695, %v4363_v51  ;;  %v1110_v43 = vadd.f32 %v11123_v4, %v11122_v49  ;;  %v11124_v51 = vld [vmem:[#allocation246_spill] sm:$0xff]  ;;  %v11133_v4 = vld [vmem:[#allocation56_spill] sm:$0xff] }
 0x95f   :  { %v7471_v24 = vpop.eup %7470  ;;  %7482 = vpow2.f32 %v5928_v39  ;;  %v11125_v39 = vld [vmem:[#allocation169_spill] sm:$0xff] }
 0x960   :  { %v7473_v57 = vpop.eup %7472  ;;  %v4428_v52 = vadd.f32 1.0, %v7471_v24  ;;  %7484 = vpow2.f32 %v5926_v23  ;;  %v6554_v5 = vpop.f32.mrb[232].mxu0  ;;  %v1100_v23 = vadd.f32 %v11125_v39, %v11124_v51 }
 0x961   :  { %v7475_v0 = vpop.eup %7474  ;;  %v4426_v26 = vadd.f32 1.0, %v7473_v57  ;;  %v4368_v22 = vadd.f32 %v6554_v5, %v1090_v28  ;;  %v4263_v62 = vpop.f32.mrb[233].mxu0  ;;  %v11126_v57 = vld [vmem:[#allocation251_spill] sm:$0xff] }
 0x962   :  { %v7477_v18 = vpop.eup %7476  ;;  %7486 = vrcp.f32 %v4428_v52  ;;  %v4429_v37 = vadd.f32 1.0, %v7475_v0  ;;  %v4366_v45 = vadd.f32 %v4263_v62, %v1080_v16  ;;  %v6555_v61 = vpop.f32.mrb[234].mxu0  ;;  %v1114_v16 = vadd.f32 %v11127_v47, %v11126_v57 }
 0x963   :  { %7488 = vrcp.f32 %v4426_v26  ;;  %v4427_v6 = vadd.f32 1.0, %v7477_v18  ;;  %v5931_v40 = vmul.f32 -1.442695, %v4368_v22  ;;  %v4369_v58 = vadd.f32 %v6555_v61, %v1094_v21  ;;  %v4266_v14 = vpop.f32.mrb[235].mxu0  ;;  %v11128_v21 = vld [vmem:[#allocation247_spill] sm:$0xff]  ;;  %v11129_v26 = vld [vmem:[#allocation173_spill] sm:$0xff] }
 0x964   :  { %7490 = vrcp.f32 %v4429_v37  ;;  %v5929_v53 = vmul.f32 -1.442695, %v4366_v45  ;;  %v4367_v10 = vadd.f32 %v4266_v14, %v1084_v48  ;;  %v1104_v22 = vadd.f32 %v11129_v26, %v11128_v21 }
 0x965   :  { %7492 = vrcp.f32 %v4427_v6  ;;  %v5932_v3 = vmul.f32 -1.442695, %v4369_v58 }
 0x966   :  { %7494 = vpow2.f32 %v5931_v40  ;;  %v5930_v59 = vmul.f32 -1.442695, %v4367_v10  ;;  %v11131_v10 = vld [vmem:[#allocation64_spill] sm:$0xff] }
 0x967   :  { %v7479_v8 = vpop.eup %7478  ;;  %7496 = vpow2.f32 %v5929_v53  ;;  %v11130_v53 = vld [vmem:[#allocation229_spill] sm:$0xff] }
 0x968   :  { %v7481_v34 = vpop.eup %7480  ;;  %v4432_v24 = vadd.f32 1.0, %v7479_v8  ;;  %7498 = vpow2.f32 %v5932_v3  ;;  %v6558_v36 = vpop.f32.mrb[236].mxu0  ;;  %v553_v3 = vadd.f32 %v11131_v10, %v11130_v53  ;;  %v11132_v8 = vld [vmem:[#allocation213_spill] sm:$0xff] }
 0x969   :  { %v7483_v28 = vpop.eup %7482  ;;  %v4430_v52 = vadd.f32 1.0, %v7481_v34  ;;  %7500 = vpow2.f32 %v5930_v59  ;;  %v4372_v5 = vadd.f32 %v6558_v36, %v1110_v43  ;;  %v4279_v0 = vpop.f32.mrb[237].mxu0  ;;  %v543_v43 = vadd.f32 %v11133_v4, %v11132_v8 }
 0x96a   :  { %v7485_v15 = vpop.eup %7484  ;;  %7502 = vrcp.f32 %v4432_v24  ;;  %v4433_v62 = vadd.f32 1.0, %v7483_v28  ;;  %v4370_v18 = vadd.f32 %v4279_v0, %v1100_v23  ;;  %v6559_v25 = vpop.f32.mrb[238].mxu0  ;;  %v11134_v23 = vld [vmem:[#allocation236_spill] sm:$0xff] }
 0x96b   :  { %7504 = vrcp.f32 %v4430_v52  ;;  %v4431_v48 = vadd.f32 1.0, %v7485_v15  ;;  %v4373_v37 = vadd.f32 %v6559_v25, %v1114_v16  ;;  %v4282_v45 = vpop.f32.mrb[239].mxu0  ;;  %v11135_v24 = vld [vmem:[#allocation68_spill] sm:$0xff] }
 0x96c   :  { %v7487_v61 = vpop.eup %7486  ;;  %7506 = vrcp.f32 %v4433_v62  ;;  %v4371_v6 = vadd.f32 %v4282_v45, %v1104_v22  ;;  %v557_v36 = vadd.f32 %v11135_v24, %v11134_v23 }
 0x96d   :  { %v7489_v40 = vpop.eup %7488  ;;  %7508 = vrcp.f32 %v4431_v48 }
 0x96e   :  { %v7491_v58 = vpop.eup %7490  ;;  %7510 = vtanh.f32 %v4372_v5  ;;  %v11136_v5 = vld [vmem:[#allocation60_spill] sm:$0xff] }
 0x96f   :  { %v10087_v14 = vpop.eup %7492  ;;  %7512 = vtanh.f32 %v4370_v18  ;;  %v547_v0 = vadd.f32 %v11136_v5, %v10867_v20  ;;  %v567_v5 = vadd.f32 %v11140_v35, %v11139_v54 }
 0x970   :  { %v7495_v59 = vpop.eup %7494  ;;  %7514 = vtanh.f32 %v4373_v37  ;;  %v6562_v34 = vpop.f32.mrb[240].mxu0 }
 0x971   :  { %v7497_v39 = vpop.eup %7496  ;;  %v4436_v28 = vadd.f32 1.0, %v7495_v59  ;;  %7516 = vtanh.f32 %v4371_v6  ;;  %v4376_v47 = vadd.f32 %v6562_v34, %v553_v3  ;;  %v4295_v16 = vpop.f32.mrb[241].mxu0  ;;  %v11137_v3 = vld [vmem:[#allocation221_spill] sm:$0xff]  ;;  %v11138_v34 = vld [vmem:[#allocation72_spill] sm:$0xff] }
 0x972   :  { %v7499_v52 = vpop.eup %7498  ;;  %v4434_v15 = vadd.f32 1.0, %v7497_v39  ;;  %v4374_v26 = vadd.f32 %v4295_v16, %v543_v43  ;;  %v6563_v22 = vpop.f32.mrb[242].mxu0  ;;  %v563_v24 = vadd.f32 %v11138_v34, %v11137_v3  ;;  %v11141_v16 = vld [vmem:[#allocation237_spill] sm:$0xff] }
 0x973   :  { %v7501_v62 = vpop.eup %7500  ;;  %v5935_v18 = vmul.f32 -1.442695, %v4376_v47  ;;  %v4377_v25 = vadd.f32 %v6563_v22, %v557_v36  ;;  %v4298_v48 = vpop.f32.mrb[243].mxu0  ;;  %7518 = vrcp.f32 %v4436_v28  ;;  %v11142_v47 = vld [vmem:[#allocation80_spill] sm:$0xff] }
 0x974   :  { %v7503_v37 = vpop.eup %7502  ;;  %v5933_v45 = vmul.f32 -1.442695, %v4374_v26  ;;  %v4375_v10 = vadd.f32 %v4298_v48, %v547_v0  ;;  %7520 = vrcp.f32 %v4434_v15  ;;  %v573_v36 = vadd.f32 %v11142_v47, %v11141_v16  ;;  %v11143_v28 = vld [vmem:[#allocation84_spill] sm:$0xff] }
 0x975   :  { %v7505_v4 = vpop.eup %7504  ;;  %v5936_v59 = vmul.f32 -1.442695, %v4377_v25  ;;  %v4544_v22 = vmul.f32 %v7503_v37, %v9964_v13  ;;  %v4437_v26 = vadd.f32 1.0, %v7499_v52  ;;  %7522 = vpow2.f32 %v5935_v18 }
 0x976   :  { %v7507_v6 = vpop.eup %7506  ;;  %v5934_v43 = vmul.f32 -1.442695, %v4375_v10  ;;  %v577_v25 = vadd.f32 %v11143_v28, %v8907_v38  ;;  %v4542_v48 = vmul.f32 %v7505_v4, %v9966_v11  ;;  %v4435_v34 = vadd.f32 1.0, %v7501_v62 }
 0x977   :  { %v7509_v39 = vpop.eup %7508  ;;  %7524 = vpow2.f32 %v5933_v45  ;;  %v4545_v15 = vmul.f32 %v7507_v6, %v9970_v63 }
 0x978   :  { %v7511_v0 = vpop.eup %7510  ;;  %v6566_v56 = vpop.f32.mrb[244].mxu0  ;;  %7526 = vpow2.f32 %v5936_v59  ;;  %v4543_v13 = vmul.f32 %v7509_v39, %v9973_v19 }
 0x979   :  { %v7513_v35 = vpop.eup %7512  ;;  %v4548_v10 = vmul.f32 %v7511_v0, %v7487_v61  ;;  %v4380_v54 = vadd.f32 %v6566_v56, %v573_v36  ;;  %v4311_v47 = vpop.f32.mrb[245].mxu0  ;;  %7528 = vpow2.f32 %v5934_v43 }
 0x97a   :  { %v7515_v16 = vpop.eup %7514  ;;  %v4546_v52 = vmul.f32 %v7513_v35, %v7489_v40  ;;  %v4378_v18 = vadd.f32 %v4311_v47, %v563_v24  ;;  %v6567_v37 = vpop.f32.mrb[246].mxu0  ;;  %7530 = vrcp.f32 %v4437_v26  ;;  %v11147_v26 = vld [vmem:[#allocation100_spill] sm:$0xff]  ;;  %v11148_v35 = vld [vmem:[#allocation253_spill] sm:$0xff] }
 0x97b   :  { %v7517_v28 = vpop.eup %7516  ;;  %v10109_v11 = vadd.f32 %v4548_v10, %v4544_v22  ;;  %v4549_v62 = vmul.f32 %v7515_v16, %v7491_v58  ;;  %v4381_v45 = vadd.f32 %v6567_v37, %v577_v25  ;;  %v4314_v4 = vpop.f32.mrb[247].mxu0  ;;  %7532 = vrcp.f32 %v4435_v34  ;;  %v11144_v58 = vld [vmem:[#allocation96_spill] sm:$0xff] }
 0x97c   :  { %v10111_v63 = vadd.f32 %v4546_v52, %v4542_v48  ;;  %v4547_v56 = vmul.f32 %v7517_v28, %v10087_v14  ;;  %v4379_v61 = vadd.f32 %v4314_v4, %v567_v5  ;;  %v5939_v40 = vmul.f32 -1.442695, %v4380_v54  ;;  %v11145_v14 = vld [vmem:[#allocation88_spill] sm:$0xff] }
 0x97d   :  { %7534 = vtanh.f32 %v10109_v11  ;;  %v10115_v19 = vadd.f32 %v4549_v62, %v4545_v15  ;;  %v5937_v6 = vmul.f32 -1.442695, %v4378_v18  ;;  %v7519_v24 = vpop.eup %7518  ;;  %v593_v43 = vadd.f32 %v11144_v58, %v8996_v7  ;;  %v11146_v22 = vld [vmem:[#allocation256_spill] sm:$0xff] }
 0x97e   :  { %7536 = vtanh.f32 %v10111_v63  ;;  %v10118_v59 = vadd.f32 %v4547_v56, %v4543_v13  ;;  %v5940_v39 = vmul.f32 -1.442695, %v4381_v45  ;;  %v7521_v16 = vpop.eup %7520  ;;  %v583_v5 = vadd.f32 %v11145_v14, %v8969_v12  ;;  %v11149_v15 = vld [vmem:[#allocation92_spill] sm:$0xff] }
 0x97f   :  { %7538 = vtanh.f32 %v10115_v19  ;;  %v7523_v54 = vpop.eup %7522  ;;  %v597_v0 = vadd.f32 %v11147_v26, %v11146_v22  ;;  %v587_v10 = vadd.f32 %v11149_v15, %v11148_v35  ;;  %v5938_v56 = vmul.f32 -1.442695, %v4379_v61  ;;  %v11151_v26 = vld [vmem:[#allocation112_spill] sm:$0xff] }
 0x980   :  { %7540 = vtanh.f32 %v10118_v59  ;;  %v6570_v36 = vpop.f32.mrb[248].mxu0  ;;  %v4500_v47 = vadd.f32 1.0, %v7523_v54  ;;  %v11153_v15 = vld [vmem:[#allocation104_spill] sm:$0xff] }
 0x981   :  { %7542 = vpow2.f32 %v5939_v40  ;;  %v4384_v25 = vadd.f32 %v6570_v36, %v593_v43  ;;  %v4327_v48 = vpop.f32.mrb[249].mxu0  ;;  %v7525_v34 = vpop.eup %7524 }
 0x982   :  { %7544 = vpow2.f32 %v5937_v6  ;;  %v4382_v13 = vadd.f32 %v4327_v48, %v583_v5  ;;  %v6571_v52 = vpop.f32.mrb[250].mxu0  ;;  %v7527_v18 = vpop.eup %7526  ;;  %v4498_v37 = vadd.f32 1.0, %v7525_v34  ;;  %v11150_v5 = vld [vmem:[#allocation257_spill] sm:$0xff]  ;;  %v11152_v34 = vld [vmem:[#allocation254_spill] sm:$0xff] }
 0x983   :  { %7546 = vpow2.f32 %v5940_v39  ;;  %v4385_v28 = vadd.f32 %v6571_v52, %v597_v0  ;;  %v4330_v62 = vpop.f32.mrb[251].mxu0  ;;  %v7529_v45 = vpop.eup %7528  ;;  %v4501_v4 = vadd.f32 1.0, %v7527_v18  ;;  %v5943_v14 = vmul.f32 -1.442695, %v4384_v25  ;;  %v11154_v18 = vld [vmem:[#allocation255_spill] sm:$0xff] }
 0x984   :  { %7548 = vrcp.f32 %v4500_v47  ;;  %v4383_v40 = vadd.f32 %v4330_v62, %v587_v10  ;;  %v7531_v58 = vpop.eup %7530  ;;  %v4499_v43 = vadd.f32 1.0, %v7529_v45  ;;  %v5941_v54 = vmul.f32 -1.442695, %v4382_v13  ;;  %v11156_v62 = vld [vmem:[#allocation116_spill] sm:$0xff] }
 0x985   :  { %7550 = vrcp.f32 %v4498_v37  ;;  %v7533_v36 = vpop.eup %7532  ;;  %v613_v48 = vadd.f32 %v11151_v26, %v11150_v5  ;;  %v5944_v39 = vmul.f32 -1.442695, %v4385_v28  ;;  %v603_v47 = vadd.f32 %v11153_v15, %v11152_v34  ;;  %v11155_v37 = vld [vmem:[#allocation108_spill] sm:$0xff] }
 0x986   :  { %7552 = vrcp.f32 %v4501_v4  ;;  %v5942_v61 = vmul.f32 -1.442695, %v4383_v40  ;;  %v607_v25 = vadd.f32 %v11155_v37, %v11154_v18  ;;  %v617_v13 = vadd.f32 %v11156_v62, %v9017_v27 }
 0x987   :  { %v7535_v6 = vpop.eup %7534  ;;  %7554 = vrcp.f32 %v4499_v43 }
 0x988   :  { %v7537_v0 = vpop.eup %7536  ;;  %7556 = vpow2.f32 %v5938_v56  ;;  %v6574_v10 = vpop.f32.mrb[252].mxu0  ;;  %v4572_v5 = vmul.f32 %v7535_v6, %v7519_v24 }
 0x989   :  { %v7539_v52 = vpop.eup %7538  ;;  %7558 = vpow2.f32 %v5943_v14  ;;  %v4388_v45 = vadd.f32 %v6574_v10, %v613_v48  ;;  %v4343_v4 = vpop.f32.mrb[253].mxu0  ;;  %v4570_v34 = vmul.f32 %v7537_v0, %v7521_v16 }
 0x98a   :  { %v7541_v26 = vpop.eup %7540  ;;  %7560 = vpow2.f32 %v5941_v54  ;;  %v4386_v28 = vadd.f32 %v4343_v4, %v603_v47  ;;  %v6575_v43 = vpop.f32.mrb[254].mxu0  ;;  %v4573_v35 = vmul.f32 %v7539_v52, %v7531_v58 }
 0x98b   :  { %v7543_v15 = vpop.eup %7542  ;;  %7562 = vpow2.f32 %v5944_v39  ;;  %v4389_v56 = vadd.f32 %v6575_v43, %v617_v13  ;;  %v4346_v40 = vpop.f32.mrb[255].mxu0  ;;  %v4571_v22 = vmul.f32 %v7541_v26, %v7533_v36 }
 0x98c   :  { %v7545_v12 = vpop.eup %7544  ;;  %v4504_v37 = vadd.f32 1.0, %v7543_v15  ;;  %7564 = vpow2.f32 %v5942_v61  ;;  %v4387_v18 = vadd.f32 %v4346_v40, %v607_v25  ;;  %v10138_v62 = vpack.c.bf16 %v4573_v35, %v4572_v5 }
 0x98d   :  { %v7547_v14 = vpop.eup %7546  ;;  %v4502_v48 = vadd.f32 1.0, %v7545_v12  ;;  %7566 = vtanh.f32 %v4388_v45  ;;  %v10140_v54 = vpack.c.bf16 %v4571_v22, %v4570_v34 }
 0x98e   :  { %v7549_v47 = vpop.eup %7548  ;;  %7568 = vrcp.f32 %v4504_v37  ;;  %v4505_v24 = vadd.f32 1.0, %v7547_v14 }
 0x98f   :  { %v7551_v58 = vpop.eup %7550  ;;  %7570 = vrcp.f32 %v4502_v48  ;;  %6576 = vmatprep.subr.bf16.mxu1 %v10140_v54 }
 0x990   :  { %v7553_v16 = vpop.eup %7552  ;;  %7572 = vrcp.f32 %v4505_v24  ;;  %6577 = vmatpush3.bf16.msra.mxu1 %v10140_v54 }
 0x991   :  { %v7555_v36 = vpop.eup %7554  ;;  %7574 = vtanh.f32 %v4386_v28  ;;  %6578 = vmatprep.subr.bf16.mxu1 %v10138_v62 }
 0x992   :  { %v7557_v35 = vpop.eup %7556  ;;  %7576 = vtanh.f32 %v4389_v56 }
 0x993   :  { %v7559_v12 = vpop.eup %7558  ;;  %v4503_v22 = vadd.f32 1.0, %v7557_v35  ;;  %7578 = vtanh.f32 %v4387_v18 }
 0x994   :  { %v7561_v6 = vpop.eup %7560  ;;  %6579 = vmatpush3.bf16.msra.mxu1 %v10138_v62  ;;  %v4508_v25 = vadd.f32 1.0, %v7559_v12 }
 0x995   :  { %v7563_v5 = vpop.eup %7562  ;;  %7580 = vrcp.f32 %v4503_v22  ;;  %v4506_v4 = vadd.f32 1.0, %v7561_v6 }
 0x996   :  { %v7565_v39 = vpop.eup %7564  ;;  %v4509_v15 = vadd.f32 1.0, %v7563_v5  ;;  %7582 = vrcp.f32 %v4508_v25  ;;  %v11157_v25 = vld [vmem:[#allocation46_spill] sm:$0xff] }
 0x997   :  { %v7567_v0 = vpop.eup %7566  ;;  %7584 = vrcp.f32 %v4506_v4  ;;  %v11159_v4 = vld [vmem:[#allocation10_spill] sm:$0xff] }
 0x998   :  { %v7569_v34 = vpop.eup %7568  ;;  %v4560_v61 = vmul.f32 %v7567_v0, %v7549_v47  ;;  %v4507_v47 = vadd.f32 1.0, %v7565_v39 }
 0x999   :  { %v7571_v10 = vpop.eup %7570  ;;  %v4556_v52 = vmul.f32 %v7569_v34, %v10004_v31 }
 0x99a   :  { %v7573_v13 = vpop.eup %7572  ;;  %v4554_v45 = vmul.f32 %v7571_v10, %v10006_v29 }
 0x99b   :  { %v7575_v26 = vpop.eup %7574  ;;  %v4557_v18 = vmul.f32 %v7573_v13, %v10009_v60  ;;  %v10149_v28 = vadd.f32 %v4560_v61, %v4556_v52  ;;  %v7774_v52 = vld [vmem:[%s10475_s3 + $0x8] sm:$0xff]   ;;  %v7775_v13 = vld [vmem:[%s10475_s3 + $0x10] sm:$0xff]  }
 0x99c   :  { %v7577_v43 = vpop.eup %7576  ;;  %v4558_v56 = vmul.f32 %v7575_v26, %v7551_v58  ;;  %v11160_v26 = vld [vmem:[#allocation43_spill] sm:$0xff] }
 0x99d   :  { %v7579_v40 = vpop.eup %7578  ;;  %v4561_v37 = vmul.f32 %v7577_v43, %v7553_v16  ;;  %7586 = vtanh.f32 %v10149_v28  ;;  %v11161_v43 = vld [vmem:[#allocation16_spill] sm:$0xff] }
 0x99e   :  { %v10151_v14 = vadd.f32 %v4558_v56, %v4554_v45  ;;  %v4559_v31 = vmul.f32 %v7579_v40, %v7555_v36  ;;  %7588 = vrcp.f32 %v4509_v15  ;;  %v11158_v45 = vld [vmem:[#allocation52_spill] sm:$0xff]  ;;  %v7779_v56 = vld [vmem:[%s10475_s3 + $0x30] sm:$0xff]   ;;  %v7780_v40 = vld [vmem:[%s10475_s3 + $0x38] sm:$0xff]  }
 0x99f   :  { %v7581_v48 = vpop.eup %7580  ;;  %v10154_v29 = vadd.f32 %v4561_v37, %v4557_v18  ;;  %v7777_v18 = vld [vmem:[%s10475_s3 + $0x20] sm:$0xff]   ;;  %v7778_v15 = vld [vmem:[%s10475_s3 + $0x28] sm:$0xff]  }
 0x9a0   :  { %v4555_v60 = vmul.f32 %v7581_v48, %v10014_v32  ;;  %v7583_v58 = vpop.eup %7582  ;;  %v7781_v37 = vld [vmem:[%s10475_s3 + $0x40] sm:$0xff]   ;;  %v7783_v48 = vld [vmem:[%s10475_s3 + $0x50] sm:$0xff]  }
 0x9a1   :  { %7590 = vtanh.f32 %v10154_v29  ;;  %v7585_v16 = vpop.eup %7584 }
 0x9a2   :  { %7592 = vtanh.f32 %v10151_v14  ;;  %v10159_v24 = vadd.f32 %v4559_v31, %v4555_v60  ;;  %v7782_v31 = vld [vmem:[%s10475_s3 + $0x48] sm:$0xff]   ;;  %v7785_v60 = vld [vmem:[%s10475_s3 + $0x60] sm:$0xff]  }
 0x9a3   :  { %7594 = vrcp.f32 %v4507_v47  ;;  %v7784_v47 = vld [vmem:[%s10475_s3 + $0x58] sm:$0xff]  }
 0x9a4   :  { %7596 = vtanh.f32 %v10159_v24 }
 0x9a7   :  { %v7587_v36 = vpop.eup %7586 }
 0x9a8   :  { %v7589_v35 = vpop.eup %7588  ;;  %v4582_v6 = vmul.f32 %v7587_v36, %v7583_v58  ;;  %v7786_v58 = vld [vmem:[%s10475_s3 + $0x68] sm:$0xff]   ;;  %v7788_v36 = vld [vmem:[%s10475_s3 + $0x78] sm:$0xff]  }
 0x9ab   :  { %v7591_v12 = vpop.eup %7590 }
 0x9ac   :  { %v7593_v22 = vpop.eup %7592  ;;  %v4583_v5 = vmul.f32 %v7591_v12, %v7589_v35  ;;  %v6656_v35 = vld [vmem:[%s10476_s4 + $0x4] ss:$16 sps:$4 sm:$0xff]   ;;  %v6659_v12 = vld [vmem:[%s10476_s4 + $0xc] ss:$16 sps:$4 sm:$0xff]  }
 0x9ad   :  { %v7595_v39 = vpop.eup %7594  ;;  %v4580_v34 = vmul.f32 %v7593_v22, %v7585_v16  ;;  %v7787_v16 = vld [vmem:[%s10475_s3 + $0x70] sm:$0xff]   ;;  %5367 = vmatprep.mubr.bf16.mxu0 %v6656_v35  ;;  %v11163_v22 = vld [vmem:[#allocation131_spill] sm:$0xff] }
 0x9ae   :  { %v7597_v32 = vpop.eup %7596  ;;  %v10162_v0 = vpack.c.bf16 %v4583_v5, %v4582_v6  ;;  %v1052_v6 = vadd.f32 %v11163_v22, %v11103_v55  ;;  %v11164_v5 = vld [vmem:[#allocation123_spill] sm:$0xff] }
 0x9af   :  { %v4581_v61 = vmul.f32 %v7597_v32, %v7595_v39  ;;  %v1042_v39 = vadd.f32 %v11164_v5, %v11105_v33 }
 0x9b1   :  { %v10164_v10 = vpack.c.bf16 %v4581_v61, %v4580_v34  ;;  %v11165_v34 = vld [vmem:[#allocation134_spill] sm:$0xff] }
 0x9b2   :  { %v1056_v61 = vadd.f32 %v11165_v34, %v8809_v2  ;;  %v11168_v2 = vld [vmem:[#allocation139_spill] sm:$0xff] }
 0x9b3   :  { %6580 = vmatprep.subr.bf16.mxu1 %v10164_v10  ;;  %v11171_v34 = vld [vmem:[#allocation163_spill] sm:$0xff] }
 0x9b4   :  { %6581 = vmatpush3.bf16.msra.mxu1 %v10164_v10 }
 0x9b5   :  { %6582 = vmatprep.subr.bf16.mxu1 %v10162_v0 }
 0x9b8   :  { %6583 = vmatpush3.bf16.msra.mxu1 %v10162_v0 }
 0x9b9   :  { %6238 = vmatprep.subr.bf16.mxu1 %v10140_v54  ;;  %v7776_v54 = vld [vmem:[%s10475_s3 + $0x18] sm:$0xff]  }
 0x9bb   :  { %6585 = vmatmul.mubr.msk.bf16.vlgmr.msra.gmra.mrb[224].mxu1 %vm1598_vm1, %v7774_v52 }
 0x9bc   :  { %6239 = vmatpush3.bf16.msra.mxu1 %v11157_v25  ;;  %6588 = vmatprep.mubr.msk.bf16.mxu1 %vm1598_vm1, %v7775_v13  ;;  %v11166_v13 = vld [vmem:[#allocation126_spill] sm:$0xff] }
 0x9bd   :  { %6240 = vmatprep.subr.bf16.mxu1 %v10138_v62  ;;  %v11162_v62 = vld [vmem:[#allocation49_spill] sm:$0xff] }
 0x9c0   :  { %6241 = vmatpush3.bf16.msra.mxu1 %v11158_v45  ;;  %v1046_v45 = vadd.f32 %v11166_v13, %v8785_v30 }
 0x9c1   :  { %6242 = vmatprep.subr.bf16.mxu1 %v11159_v4 }
 0x9c3   :  { %6589 = vmatmul.mubr.msk.bf16.gmra.mrb[228].mxu1 %vm1598_vm1, %v7776_v54 }
 0x9c4   :  { %6243 = vmatpush3.bf16.msra.mxu1 %v11160_v26  ;;  %6592 = vmatprep.mubr.msk.bf16.mxu1 %vm1598_vm1, %v7777_v18 }
 0x9c5   :  { %6244 = vmatprep.subr.bf16.mxu1 %v11161_v43 }
 0x9c8   :  { %6245 = vmatpush3.bf16.msra.mxu1 %v11162_v62 }
 0x9cb   :  { %6593 = vmatmul.mubr.msk.bf16.gmra.mrb[232].mxu1 %vm1598_vm1, %v7778_v15 }
 0x9cc   :  { %6596 = vmatprep.mubr.msk.bf16.mxu1 %vm1598_vm1, %v7779_v56  ;;  %v11167_v56 = vld [vmem:[#allocation147_spill] sm:$0xff] }
 0x9d3   :  { %6597 = vmatmul.mubr.msk.bf16.gmra.mrb[236].mxu1 %vm1598_vm1, %v7780_v40  ;;  %v1072_v40 = vadd.f32 %v11167_v56, %v11001_v9 }
 0x9d4   :  { %6600 = vmatprep.mubr.msk.bf16.mxu1 %vm1598_vm1, %v7781_v37  ;;  %v1062_v37 = vadd.f32 %v11168_v2, %v11003_v42 }
 0x9db   :  { %6601 = vmatmul.mubr.msk.bf16.gmra.mrb[240].mxu1 %vm1598_vm1, %v7782_v31  ;;  %v11169_v31 = vld [vmem:[#allocation150_spill] sm:$0xff] }
 0x9dc   :  { %6604 = vmatprep.mubr.msk.bf16.mxu1 %vm1598_vm1, %v7783_v48  ;;  %v1076_v48 = vadd.f32 %v11169_v31, %v11005_v17  ;;  %v1092_v17 = vadd.f32 %v11171_v34, %v11114_v50  ;;  %v11178_v34 = vld [vmem:[#allocation174_spill] sm:$0xff] }
 0x9e3   :  { %6605 = vmatmul.mubr.msk.bf16.gmra.mrb[244].mxu1 %vm1598_vm1, %v7784_v47 }
 0x9e4   :  { %6608 = vmatprep.mubr.msk.bf16.mxu1 %vm1598_vm1, %v7785_v60 }
 0x9eb   :  { %6609 = vmatmul.mubr.msk.bf16.gmra.mrb[248].mxu1 %vm1598_vm1, %v7786_v58  ;;  %v11170_v58 = vld [vmem:[#allocation142_spill] sm:$0xff] }
 0x9ec   :  { %6612 = vmatprep.mubr.msk.bf16.mxu1 %vm1598_vm1, %v7787_v16  ;;  %v1066_v16 = vadd.f32 %v11170_v58, %v11112_v46 }
 0x9f3   :  { %6613 = vmatmul.mubr.msk.bf16.gmra.mrb[252].mxu1 %vm1598_vm1, %v7788_v36 }
 0x9f4   :  { %5464 = vmatprep.mubr.bf16.mxu1 %v6659_v12 }
 0xa8e   :  { %v6586_v32 = vpop.f32.mrb[224].mxu1 }
 0xa8f   :  { %v4785_v52 = vadd.f32 %v6586_v32, %v1052_v6  ;;  %v4656_v25 = vpop.f32.mrb[225].mxu1 }
 0xa90   :  { %v4783_v4 = vadd.f32 %v4656_v25, %v1042_v39  ;;  %v6587_v54 = vpop.f32.mrb[226].mxu1 }
 0xa91   :  { %v5963_v26 = vmul.f32 -1.442695, %v4785_v52  ;;  %v4786_v18 = vadd.f32 %v6587_v54, %v1056_v61  ;;  %v4659_v43 = vpop.f32.mrb[227].mxu1  ;;  %v11172_v52 = vld [vmem:[#allocation155_spill] sm:$0xff] }
 0xa92   :  { %v5961_v62 = vmul.f32 -1.442695, %v4783_v4  ;;  %v4784_v15 = vadd.f32 %v4659_v43, %v1046_v45  ;;  %v1082_v46 = vadd.f32 %v11172_v52, %v11116_v44  ;;  %v11173_v4 = vld [vmem:[#allocation166_spill] sm:$0xff] }
 0xa93   :  { %7598 = vpow2.f32 %v5963_v26  ;;  %v5964_v55 = vmul.f32 -1.442695, %v4786_v18  ;;  %v1096_v54 = vadd.f32 %v11173_v4, %v11118_v41 }
 0xa94   :  { %7600 = vpow2.f32 %v5961_v62  ;;  %v5962_v33 = vmul.f32 -1.442695, %v4784_v15  ;;  %v11174_v15 = vld [vmem:[#allocation158_spill] sm:$0xff] }
 0xa95   :  { %7602 = vpow2.f32 %v5964_v55  ;;  %v1086_v55 = vadd.f32 %v11174_v15, %v11120_v1 }
 0xa96   :  { %7604 = vpow2.f32 %v5962_v33  ;;  %v6590_v30 = vpop.f32.mrb[228].mxu1 }
 0xa97   :  { %v4789_v47 = vadd.f32 %v6590_v30, %v1072_v40  ;;  %v4672_v60 = vpop.f32.mrb[229].mxu1 }
 0xa98   :  { %v4787_v36 = vadd.f32 %v4672_v60, %v1062_v37  ;;  %v6591_v35 = vpop.f32.mrb[230].mxu1  ;;  %v11175_v60 = vld [vmem:[#allocation179_spill] sm:$0xff] }
 0xa99   :  { %v5967_v12 = vmul.f32 -1.442695, %v4789_v47  ;;  %v4790_v22 = vadd.f32 %v6591_v35, %v1076_v48  ;;  %v4675_v6 = vpop.f32.mrb[231].mxu1  ;;  %v1112_v1 = vadd.f32 %v11175_v60, %v11122_v49  ;;  %v1106_v49 = vadd.f32 %v11178_v34, %v11128_v21 }
 0xa9a   :  { %v5965_v9 = vmul.f32 -1.442695, %v4787_v36  ;;  %v4788_v5 = vadd.f32 %v4675_v6, %v1066_v16  ;;  %v11176_v16 = vld [vmem:[#allocation171_spill] sm:$0xff]  ;;  %v11177_v6 = vld [vmem:[#allocation182_spill] sm:$0xff] }
 0xa9b   :  { %7606 = vpow2.f32 %v5967_v12  ;;  %v5968_v39 = vmul.f32 -1.442695, %v4790_v22  ;;  %v1102_v36 = vadd.f32 %v11176_v16, %v11124_v51 }
 0xa9c   :  { %7608 = vpow2.f32 %v5965_v9  ;;  %v5966_v42 = vmul.f32 -1.442695, %v4788_v5  ;;  %v1116_v9 = vadd.f32 %v11177_v6, %v11126_v57  ;;  %v11184_v6 = vld [vmem:[#allocation228_spill] sm:$0xff] }
 0xa9d   :  { %v7599_v32 = vpop.eup %7598  ;;  %7610 = vpow2.f32 %v5968_v39 }
 0xa9e   :  { %v7601_v61 = vpop.eup %7600  ;;  %v4853_v25 = vadd.f32 1.0, %v7599_v32  ;;  %7612 = vpow2.f32 %v5966_v42  ;;  %v6594_v13 = vpop.f32.mrb[232].mxu1 }
 0xa9f   :  { %v7603_v45 = vpop.eup %7602  ;;  %v4851_v26 = vadd.f32 1.0, %v7601_v61  ;;  %v4793_v18 = vadd.f32 %v6594_v13, %v1092_v17  ;;  %v4688_v43 = vpop.f32.mrb[233].mxu1 }
 0xaa0   :  { %v7605_v62 = vpop.eup %7604  ;;  %7614 = vrcp.f32 %v4853_v25  ;;  %v4854_v50 = vadd.f32 1.0, %v7603_v45  ;;  %v4791_v33 = vadd.f32 %v4688_v43, %v1082_v46  ;;  %v6595_v56 = vpop.f32.mrb[234].mxu1  ;;  %v11180_v43 = vld [vmem:[#allocation55_spill] sm:$0xff] }
 0xaa1   :  { %7616 = vrcp.f32 %v4851_v26  ;;  %v4852_v44 = vadd.f32 1.0, %v7605_v62  ;;  %v5971_v40 = vmul.f32 -1.442695, %v4793_v18  ;;  %v4794_v2 = vadd.f32 %v6595_v56, %v1096_v54  ;;  %v4691_v37 = vpop.f32.mrb[235].mxu1  ;;  %v11179_v26 = vld [vmem:[#allocation63_spill] sm:$0xff] }
 0xaa2   :  { %7618 = vrcp.f32 %v4854_v50  ;;  %v5969_v30 = vmul.f32 -1.442695, %v4791_v33  ;;  %v4792_v31 = vadd.f32 %v4691_v37, %v1086_v55  ;;  %v551_v21 = vadd.f32 %v11179_v26, %v11130_v53  ;;  %v11181_v50 = vld [vmem:[#allocation66_spill] sm:$0xff] }
 0xaa3   :  { %7620 = vrcp.f32 %v4852_v44  ;;  %v5972_v41 = vmul.f32 -1.442695, %v4794_v2  ;;  %v541_v62 = vadd.f32 %v11180_v43, %v11132_v8  ;;  %v555_v33 = vadd.f32 %v11181_v50, %v11134_v23  ;;  %v11182_v37 = vld [vmem:[#allocation58_spill] sm:$0xff] }
 0xaa4   :  { %7622 = vpow2.f32 %v5971_v40  ;;  %v5970_v48 = vmul.f32 -1.442695, %v4792_v31 }
 0xaa5   :  { %v7607_v47 = vpop.eup %7606  ;;  %7624 = vpow2.f32 %v5969_v30  ;;  %v545_v30 = vadd.f32 %v11182_v37, %v10867_v20 }
 0xaa6   :  { %v7609_v58 = vpop.eup %7608  ;;  %v4857_v35 = vadd.f32 1.0, %v7607_v47  ;;  %7626 = vpow2.f32 %v5972_v41  ;;  %v6598_v12 = vpop.f32.mrb[236].mxu1 }
 0xaa7   :  { %v7611_v22 = vpop.eup %7610  ;;  %v4855_v5 = vadd.f32 1.0, %v7609_v58  ;;  %7628 = vpow2.f32 %v5970_v48  ;;  %v4797_v39 = vadd.f32 %v6598_v12, %v1112_v1  ;;  %v4704_v42 = vpop.f32.mrb[237].mxu1  ;;  %v11183_v12 = vld [vmem:[#allocation71_spill] sm:$0xff] }
 0xaa8   :  { %v7613_v32 = vpop.eup %7612  ;;  %7630 = vrcp.f32 %v4857_v35  ;;  %v4858_v17 = vadd.f32 1.0, %v7611_v22  ;;  %v4795_v61 = vadd.f32 %v4704_v42, %v1102_v36  ;;  %v6599_v52 = vpop.f32.mrb[238].mxu1  ;;  %v561_v22 = vadd.f32 %v11183_v12, %v11137_v3  ;;  %v11186_v42 = vld [vmem:[#allocation237_spill] sm:$0xff] }
 0xaa9   :  { %7632 = vrcp.f32 %v4855_v5  ;;  %v4856_v51 = vadd.f32 1.0, %v7613_v32  ;;  %v4798_v46 = vadd.f32 %v6599_v52, %v1116_v9  ;;  %v4707_v25 = vpop.f32.mrb[239].mxu1  ;;  %v11185_v9 = vld [vmem:[#allocation74_spill] sm:$0xff]  ;;  %v11187_v32 = vld [vmem:[#allocation79_spill] sm:$0xff]  ;;  %v11194_v12 = vld [vmem:[#allocation253_spill] sm:$0xff] }
 0xaaa   :  { %v7615_v13 = vpop.eup %7614  ;;  %7634 = vrcp.f32 %v4858_v17  ;;  %v4796_v45 = vadd.f32 %v4707_v25, %v1106_v49  ;;  %v565_v20 = vadd.f32 %v11185_v9, %v11184_v6  ;;  %v571_v34 = vadd.f32 %v11187_v32, %v11186_v42  ;;  %v11188_v52 = vld [vmem:[#allocation82_spill] sm:$0xff] }
 0xaab   :  { %v7617_v57 = vpop.eup %7616  ;;  %7636 = vrcp.f32 %v4856_v51  ;;  %v575_v51 = vadd.f32 %v11188_v52, %v8907_v38 }
 0xaac   :  { %v7619_v4 = vpop.eup %7618  ;;  %7638 = vtanh.f32 %v4797_v39 }
 0xaad   :  { %v10276_v54 = vpop.eup %7620  ;;  %7640 = vtanh.f32 %v4795_v61 }
 0xaae   :  { %v7623_v18 = vpop.eup %7622  ;;  %7642 = vtanh.f32 %v4798_v46  ;;  %v6602_v15 = vpop.f32.mrb[240].mxu1 }
 0xaaf   :  { %v7625_v55 = vpop.eup %7624  ;;  %v4861_v56 = vadd.f32 1.0, %v7623_v18  ;;  %7644 = vtanh.f32 %v4796_v45  ;;  %v4801_v44 = vadd.f32 %v6602_v15, %v551_v21  ;;  %v4720_v40 = vpop.f32.mrb[241].mxu1 }
 0xab0   :  { %v7627_v2 = vpop.eup %7626  ;;  %v4859_v53 = vadd.f32 1.0, %v7625_v55  ;;  %v4799_v31 = vadd.f32 %v4720_v40, %v541_v62  ;;  %v6603_v41 = vpop.f32.mrb[242].mxu1 }
 0xab1   :  { %v7629_v48 = vpop.eup %7628  ;;  %v5975_v47 = vmul.f32 -1.442695, %v4801_v44  ;;  %v4802_v8 = vadd.f32 %v6603_v41, %v555_v33  ;;  %v4723_v60 = vpop.f32.mrb[243].mxu1  ;;  %7646 = vrcp.f32 %v4861_v56  ;;  %v4862_v17 = vadd.f32 1.0, %v7627_v2 }
 0xab2   :  { %v7631_v1 = vpop.eup %7630  ;;  %v5973_v58 = vmul.f32 -1.442695, %v4799_v31  ;;  %v4800_v16 = vadd.f32 %v4723_v60, %v545_v30  ;;  %7648 = vrcp.f32 %v4859_v53  ;;  %v4860_v3 = vadd.f32 1.0, %v7629_v48  ;;  %v11189_v53 = vld [vmem:[#allocation95_spill] sm:$0xff]  ;;  %v11190_v48 = vld [vmem:[#allocation252_spill] sm:$0xff] }
 0xab3   :  { %v7633_v36 = vpop.eup %7632  ;;  %v5976_v23 = vmul.f32 -1.442695, %v4802_v8  ;;  %v4969_v49 = vmul.f32 %v7631_v1, %v10109_v11  ;;  %7650 = vpow2.f32 %v5975_v47  ;;  %v591_v31 = vadd.f32 %v11189_v53, %v8996_v7  ;;  %v11191_v47 = vld [vmem:[#allocation87_spill] sm:$0xff]  ;;  %v11192_v1 = vld [vmem:[#allocation256_spill] sm:$0xff] }
 0xab4   :  { %v7635_v35 = vpop.eup %7634  ;;  %v5974_v5 = vmul.f32 -1.442695, %v4800_v16  ;;  %v4967_v46 = vmul.f32 %v7633_v36, %v10111_v63  ;;  %7652 = vpow2.f32 %v5973_v58  ;;  %v581_v8 = vadd.f32 %v11191_v47, %v11190_v48  ;;  %v11193_v58 = vld [vmem:[#allocation98_spill] sm:$0xff] }
 0xab5   :  { %v7637_v39 = vpop.eup %7636  ;;  %v4970_v26 = vmul.f32 %v7635_v35, %v10115_v19  ;;  %7654 = vpow2.f32 %v5976_v23  ;;  %v595_v16 = vadd.f32 %v11193_v58, %v11192_v1 }
 0xab6   :  { %v7639_v61 = vpop.eup %7638  ;;  %v6606_v25 = vpop.f32.mrb[244].mxu1  ;;  %v4968_v11 = vmul.f32 %v7637_v39, %v10118_v59  ;;  %7656 = vpow2.f32 %v5974_v5 }
 0xab7   :  { %v7641_v45 = vpop.eup %7640  ;;  %v4973_v21 = vmul.f32 %v7639_v61, %v7615_v13  ;;  %v4805_v18 = vadd.f32 %v6606_v25, %v571_v34  ;;  %v4736_v43 = vpop.f32.mrb[245].mxu1  ;;  %7658 = vrcp.f32 %v4862_v17 }
 0xab8   :  { %v7643_v62 = vpop.eup %7642  ;;  %v4971_v15 = vmul.f32 %v7641_v45, %v7617_v57  ;;  %v4803_v55 = vadd.f32 %v4736_v43, %v561_v22  ;;  %v6607_v50 = vpop.f32.mrb[246].mxu1  ;;  %7660 = vrcp.f32 %v4860_v3  ;;  %v11195_v22 = vld [vmem:[#allocation90_spill] sm:$0xff] }
 0xab9   :  { %v7645_v38 = vpop.eup %7644  ;;  %v4977_v63 = vadd.f32 %v4973_v21, %v4969_v49  ;;  %v4974_v33 = vmul.f32 %v7643_v62, %v7619_v4  ;;  %v4806_v56 = vadd.f32 %v6607_v50, %v575_v51  ;;  %v4739_v44 = vpop.f32.mrb[247].mxu1  ;;  %v5979_v37 = vmul.f32 -1.442695, %v4805_v18  ;;  %v11197_v21 = vld [vmem:[#allocation111_spill] sm:$0xff] }
 0xaba   :  { %v4975_v40 = vadd.f32 %v4971_v15, %v4967_v46  ;;  %v4972_v19 = vmul.f32 %v7645_v38, %v10276_v54  ;;  %v4804_v13 = vadd.f32 %v4739_v44, %v565_v20  ;;  %v5977_v57 = vmul.f32 -1.442695, %v4803_v55  ;;  %v11199_v15 = vld [vmem:[#allocation103_spill] sm:$0xff] }
 0xabb   :  { %7662 = vtanh.f32 %v4977_v63  ;;  %v4978_v2 = vadd.f32 %v4974_v33, %v4970_v26  ;;  %v7647_v30 = vpop.eup %7646  ;;  %v5980_v41 = vmul.f32 -1.442695, %v4806_v56  ;;  %v585_v6 = vadd.f32 %v11195_v22, %v11194_v12  ;;  %v11196_v26 = vld [vmem:[#allocation257_spill] sm:$0xff]  ;;  %v11200_v56 = vld [vmem:[#allocation114_spill] sm:$0xff]  ;;  %v11203_v22 = vld [vmem:[#allocation188_spill] sm:$0xff] }
 0xabc   :  { %7664 = vtanh.f32 %v4975_v40  ;;  %v4976_v59 = vadd.f32 %v4972_v19, %v4968_v11  ;;  %v7649_v4 = vpop.eup %7648  ;;  %v5978_v17 = vmul.f32 -1.442695, %v4804_v13  ;;  %v611_v18 = vadd.f32 %v11197_v21, %v11196_v26  ;;  %v11198_v11 = vld [vmem:[#allocation254_spill] sm:$0xff] }
 0xabd   :  { %7666 = vtanh.f32 %v4978_v2  ;;  %v7651_v54 = vpop.eup %7650  ;;  %v601_v55 = vadd.f32 %v11199_v15, %v11198_v11  ;;  %v615_v44 = vadd.f32 %v11200_v56, %v9017_v27  ;;  %v6657_v15 = vld [vmem:[%s10476_s4 + $0x8] ss:$16 sps:$4 sm:$0xff]  }
 0xabe   :  { %7668 = vtanh.f32 %v4976_v59  ;;  %v6610_v60 = vpop.f32.mrb[248].mxu1  ;;  %v7653_v35 = vpop.eup %7652  ;;  %v4925_v7 = vadd.f32 1.0, %v7651_v54  ;;  %v11202_v59 = vld [vmem:[#allocation106_spill] sm:$0xff] }
 0xabf   :  { %7670 = vpow2.f32 %v5979_v37  ;;  %v4809_v36 = vadd.f32 %v6610_v60, %v591_v31  ;;  %v4752_v23 = vpop.f32.mrb[249].mxu1  ;;  %v7655_v5 = vpop.eup %7654  ;;  %v4923_v39 = vadd.f32 1.0, %v7653_v35  ;;  %v11201_v37 = vld [vmem:[#allocation255_spill] sm:$0xff] }
 0xac0   :  { %7672 = vpow2.f32 %v5977_v57  ;;  %v4807_v9 = vadd.f32 %v4752_v23, %v581_v8  ;;  %v6611_v20 = vpop.f32.mrb[250].mxu1  ;;  %v7657_v34 = vpop.eup %7656  ;;  %v4926_v49 = vadd.f32 1.0, %v7655_v5  ;;  %v605_v57 = vadd.f32 %v11202_v59, %v11201_v37  ;;  %v6671_v37 = vld [vmem:[%s10476_s4 + $0x4c] ss:$16 sps:$4 sm:$0xff]  }
 0xac1   :  { %7674 = vpow2.f32 %v5980_v41  ;;  %v4810_v42 = vadd.f32 %v6611_v20, %v595_v16  ;;  %v4755_v32 = vpop.f32.mrb[251].mxu1  ;;  %v7659_v52 = vpop.eup %7658  ;;  %v4924_v51 = vadd.f32 1.0, %v7657_v34  ;;  %v5983_v46 = vmul.f32 -1.442695, %v4809_v36 }
 0xac2   :  { %7676 = vrcp.f32 %v4925_v7  ;;  %v4808_v61 = vadd.f32 %v4755_v32, %v585_v6  ;;  %v7661_v3 = vpop.eup %7660  ;;  %v5981_v25 = vmul.f32 -1.442695, %v4807_v9  ;;  %v11205_v32 = vld [vmem:[#allocation261_spill] sm:$0xff] }
 0xac3   :  { %7678 = vrcp.f32 %v4923_v39  ;;  %v5984_v43 = vmul.f32 -1.442695, %v4810_v42  ;;  %v11204_v39 = vld [vmem:[#allocation220_spill] sm:$0xff] }
 0xac4   :  { %7680 = vrcp.f32 %v4926_v49  ;;  %v5982_v50 = vmul.f32 -1.442695, %v4808_v61 }
 0xac5   :  { %v7663_v45 = vpop.eup %7662  ;;  %7682 = vrcp.f32 %v4924_v51  ;;  %v11206_v51 = vld [vmem:[#allocation22_spill] sm:$0xff] }
 0xac6   :  { %v7665_v62 = vpop.eup %7664  ;;  %7684 = vpow2.f32 %v5978_v17  ;;  %v6614_v38 = vpop.f32.mrb[252].mxu1  ;;  %v4997_v63 = vmul.f32 %v7663_v45, %v7647_v30 }
 0xac7   :  { %v7667_v33 = vpop.eup %7666  ;;  %7686 = vpow2.f32 %v5983_v46  ;;  %v4813_v40 = vadd.f32 %v6614_v38, %v611_v18  ;;  %v4768_v19 = vpop.f32.mrb[253].mxu1  ;;  %v4995_v13 = vmul.f32 %v7665_v62, %v7649_v4  ;;  %v11208_v38 = vld [vmem:[#allocation28_spill] sm:$0xff] }
 0xac8   :  { %v7669_v2 = vpop.eup %7668  ;;  %7688 = vpow2.f32 %v5981_v25  ;;  %v4811_v53 = vadd.f32 %v4768_v19, %v601_v55  ;;  %v6615_v31 = vpop.f32.mrb[254].mxu1  ;;  %v4998_v41 = vmul.f32 %v7667_v33, %v7659_v52  ;;  %v11207_v25 = vld [vmem:[#allocation260_spill] sm:$0xff] }
 0xac9   :  { %v7671_v48 = vpop.eup %7670  ;;  %7690 = vpow2.f32 %v5984_v43  ;;  %v4814_v47 = vadd.f32 %v6615_v31, %v615_v44  ;;  %v4771_v30 = vpop.f32.mrb[255].mxu1  ;;  %v4996_v8 = vmul.f32 %v7669_v2, %v7661_v3  ;;  %v6663_v2 = vld [vmem:[%s10476_s4 + $0x28] ss:$16 sps:$4 sm:$0xff]  }
 0xaca   :  { %v7673_v60 = vpop.eup %7672  ;;  %v4929_v54 = vadd.f32 1.0, %v7671_v48  ;;  %7692 = vpow2.f32 %v5982_v50  ;;  %v4812_v27 = vadd.f32 %v4771_v30, %v605_v57  ;;  %v5000_v1 = vpack.c.bf16 %v4998_v41, %v4997_v63  ;;  %v6669_v30 = vld [vmem:[%s10476_s4 + $0x48] ss:$16 sps:$4 sm:$0xff]  }
 0xacb   :  { %v7675_v58 = vpop.eup %7674  ;;  %v4927_v4 = vadd.f32 1.0, %v7673_v60  ;;  %7694 = vtanh.f32 %v4813_v40  ;;  %v4999_v16 = vpack.c.bf16 %v4996_v8, %v4995_v13  ;;  %v6677_v60 = vld [vmem:[%s10476_s4 + $0x6c] ss:$16 sps:$4 sm:$0xff]  }
 0xacc   :  { %v7677_v36 = vpop.eup %7676  ;;  %7696 = vrcp.f32 %v4929_v54  ;;  %v4930_v23 = vadd.f32 1.0, %v7675_v58 }
 0xacd   :  { %v7679_v35 = vpop.eup %7678  ;;  %7698 = vrcp.f32 %v4927_v4  ;;  %6246 = vmatprep.subr.bf16.mxu1 %v4999_v16  ;;  %v6675_v16 = vld [vmem:[%s10476_s4 + $0x68] ss:$16 sps:$4 sm:$0xff]  }
 0xace   :  { %v7681_v12 = vpop.eup %7680  ;;  %7700 = vrcp.f32 %v4930_v23  ;;  %6247 = vmatpush3.bf16.msra.mxu1 %v11203_v22  ;;  %v6683_v23 = vld [vmem:[%s10476_s4 + $0x8c] ss:$16 sps:$4 sm:$0xff]   ;;  %v6681_v22 = vld [vmem:[%s10476_s4 + $0x88] ss:$16 sps:$4 sm:$0xff]  }
 0xacf   :  { %v7683_v6 = vpop.eup %7682  ;;  %7702 = vtanh.f32 %v4811_v53  ;;  %6248 = vmatprep.subr.bf16.mxu1 %v5000_v1 }
 0xad0   :  { %v7685_v7 = vpop.eup %7684  ;;  %7704 = vtanh.f32 %v4814_v47 }
 0xad1   :  { %v7687_v9 = vpop.eup %7686  ;;  %v4928_v20 = vadd.f32 1.0, %v7685_v7  ;;  %7706 = vtanh.f32 %v4812_v27  ;;  %v6689_v7 = vld [vmem:[%s10476_s4 + $0xac] ss:$16 sps:$4 sm:$0xff]  }
 0xad2   :  { %v7689_v5 = vpop.eup %7688  ;;  %6249 = vmatpush3.bf16.msra.mxu1 %v11204_v39  ;;  %v4933_v61 = vadd.f32 1.0, %v7687_v9  ;;  %v11213_v9 = vld [vmem:[#allocation13_spill] sm:$0xff] }
 0xad3   :  { %v7691_v42 = vpop.eup %7690  ;;  %7708 = vrcp.f32 %v4928_v20  ;;  %6250 = vmatprep.subr.bf16.mxu1 %v11205_v32  ;;  %v4931_v21 = vadd.f32 1.0, %v7689_v5  ;;  %v11214_v20 = vld [vmem:[#allocation185_spill] sm:$0xff]  ;;  %v6687_v5 = vld [vmem:[%s10476_s4 + $0xa8] ss:$16 sps:$4 sm:$0xff]  }
 0xad4   :  { %v7693_v34 = vpop.eup %7692  ;;  %v4934_v62 = vadd.f32 1.0, %v7691_v42  ;;  %7710 = vrcp.f32 %v4933_v61  ;;  %v11215_v39 = vld [vmem:[#allocation193_spill] sm:$0xff]  ;;  %v6695_v42 = vld [vmem:[%s10476_s4 + $0xcc] ss:$16 sps:$4 sm:$0xff]   ;;  %v6699_v61 = vld [vmem:[%s10476_s4 + $0xe8] ss:$16 sps:$4 sm:$0xff]  }
 0xad5   :  { %v7695_v49 = vpop.eup %7694  ;;  %v4932_v44 = vadd.f32 1.0, %v7693_v34  ;;  %v6654_v32 = vld [vmem:[%s10476_s4] ss:$16 sps:$4 sm:$0xff]   ;;  %v6693_v34 = vld [vmem:[%s10476_s4 + $0xc8] ss:$16 sps:$4 sm:$0xff]  }
 0xad6   :  { %v7697_v17 = vpop.eup %7696  ;;  %v4985_v52 = vmul.f32 %v7695_v49, %v7677_v36  ;;  %6251 = vmatpush3.bf16.msra.mxu1 %v11206_v51  ;;  %v11209_v36 = vld [vmem:[#allocation201_spill] sm:$0xff]  ;;  %v6701_v49 = vld [vmem:[%s10476_s4 + $0xec] ss:$16 sps:$4 sm:$0xff]  }
 0xad7   :  { %v7699_v46 = vpop.eup %7698  ;;  %v4981_v3 = vmul.f32 %v7697_v17, %v10149_v28  ;;  %6252 = vmatprep.subr.bf16.mxu1 %v11207_v25  ;;  %v6665_v28 = vld [vmem:[%s10476_s4 + $0x2c] ss:$16 sps:$4 sm:$0xff]   ;;  %v6668_v17 = vld [vmem:[%s10476_s4 + $0x44] ss:$16 sps:$4 sm:$0xff]   ;;  %v6678_v25 = vld [vmem:[%s10476_s4 + $0x80] ss:$16 sps:$4 sm:$0xff]  }
 0xad8   :  { %v7701_v45 = vpop.eup %7700  ;;  %v4979_v26 = vmul.f32 %v7699_v46, %v10151_v14  ;;  %v6674_v51 = vld [vmem:[%s10476_s4 + $0x64] ss:$16 sps:$4 sm:$0xff]   ;;  %v6672_v46 = vld [vmem:[%s10476_s4 + $0x60] ss:$16 sps:$4 sm:$0xff]  }
 0xad9   :  { %v7703_v18 = vpop.eup %7702  ;;  %v4982_v43 = vmul.f32 %v7701_v45, %v10154_v29  ;;  %v4989_v11 = vadd.f32 %v4985_v52, %v4981_v3  ;;  %v6666_v52 = vld [vmem:[%s10476_s4 + $0x40] ss:$16 sps:$4 sm:$0xff]   ;;  %v6680_v3 = vld [vmem:[%s10476_s4 + $0x84] ss:$16 sps:$4 sm:$0xff]  }
 0xada   :  { %v7705_v55 = vpop.eup %7704  ;;  %v4983_v50 = vmul.f32 %v7703_v18, %v7679_v35  ;;  %6253 = vmatpush3.bf16.msra.mxu1 %v11208_v38  ;;  %v11210_v35 = vld [vmem:[#allocation34_spill] sm:$0xff]  ;;  %v6686_v45 = vld [vmem:[%s10476_s4 + $0xa4] ss:$16 sps:$4 sm:$0xff]   ;;  %v6690_v18 = vld [vmem:[%s10476_s4 + $0xc0] ss:$16 sps:$4 sm:$0xff]  }
 0xadb   :  { %v7707_v14 = vpop.eup %7706  ;;  %7712 = vtanh.f32 %v4989_v11  ;;  %v4986_v63 = vmul.f32 %v7705_v55, %v7681_v12  ;;  %v11211_v12 = vld [vmem:[#allocation7_spill] sm:$0xff] }
 0xadc   :  { %7714 = vrcp.f32 %v4931_v21  ;;  %v4987_v29 = vadd.f32 %v4983_v50, %v4979_v26  ;;  %v4984_v33 = vmul.f32 %v7707_v14, %v7683_v6  ;;  %v11212_v6 = vld [vmem:[#allocation40_spill] sm:$0xff]  ;;  %v6684_v26 = vld [vmem:[%s10476_s4 + $0xa0] ss:$16 sps:$4 sm:$0xff]   ;;  %v6692_v21 = vld [vmem:[%s10476_s4 + $0xc4] ss:$16 sps:$4 sm:$0xff]  }
 0xadd   :  { %v7709_v56 = vpop.eup %7708  ;;  %7716 = vrcp.f32 %v4934_v62  ;;  %v4990_v40 = vadd.f32 %v4986_v63, %v4982_v43  ;;  %5465 = vmatmul.mubr.bf16.vlgmr.msra.gmra.mrb[0].mxu1 %v6657_v15  ;;  %v6698_v43 = vld [vmem:[%s10476_s4 + $0xe4] ss:$16 sps:$4 sm:$0xff]   ;;  %v6696_v62 = vld [vmem:[%s10476_s4 + $0xe0] ss:$16 sps:$4 sm:$0xff]  }
 0xade   :  { %v4980_v19 = vmul.f32 %v7709_v56, %v10159_v24  ;;  %7718 = vtanh.f32 %v4987_v29  ;;  %5472 = vmatprep.mubr.bf16.mxu1 %v6665_v28  ;;  %v7711_v59 = vpop.eup %7710 }
 0xadf   :  { %7720 = vtanh.f32 %v4990_v40 }
 0xae0   :  { %v4988_v13 = vadd.f32 %v4984_v33, %v4980_v19  ;;  %7722 = vrcp.f32 %v4932_v44 }
 0xae2   :  { %7724 = vtanh.f32 %v4988_v13 }
 0xae5   :  { %v7713_v57 = vpop.eup %7712  ;;  %5473 = vmatmul.mubr.bf16.gmra.mrb[4].mxu1 %v6663_v2 }
 0xae6   :  { %v7715_v53 = vpop.eup %7714  ;;  %v5007_v31 = vmul.f32 %v7713_v57, %v7711_v59  ;;  %5480 = vmatprep.mubr.bf16.mxu1 %v6671_v37 }
 0xae7   :  { %v7717_v24 = vpop.eup %7716 }
 0xae8   :  { %v7719_v41 = vpop.eup %7718 }
 0xae9   :  { %v7721_v48 = vpop.eup %7720  ;;  %v5005_v47 = vmul.f32 %v7719_v41, %v7715_v53 }
 0xaea   :  { %v5008_v8 = vmul.f32 %v7721_v48, %v7717_v24  ;;  %v7723_v54 = vpop.eup %7722 }
 0xaec   :  { %v7725_v27 = vpop.eup %7724  ;;  %v5010_v1 = vpack.c.bf16 %v5008_v8, %v5007_v31 }
 0xaed   :  { %v5006_v58 = vmul.f32 %v7725_v27, %v7723_v54  ;;  %5481 = vmatmul.mubr.bf16.gmra.mrb[8].mxu1 %v6669_v30 }
 0xaee   :  { %5488 = vmatprep.mubr.bf16.mxu1 %v6677_v60 }
 0xaef   :  { %v5009_v4 = vpack.c.bf16 %v5006_v58, %v5005_v47 }
 0xaf1   :  { %6179 = vmatpush3.bf16.msra.mxu0 %v5009_v4 }
 0xaf2   :  { %6180 = vmatprep.subr.bf16.mxu0 %v11209_v36 }
 0xaf5   :  { %6181 = vmatpush3.bf16.msra.mxu0 %v5010_v1  ;;  %5489 = vmatmul.mubr.bf16.gmra.mrb[12].mxu1 %v6675_v16 }
 0xaf6   :  { %6182 = vmatprep.subr.bf16.mxu0 %v11210_v35  ;;  %5496 = vmatprep.mubr.bf16.mxu1 %v6683_v23 }
 0xaf9   :  { %6183 = vmatpush3.bf16.msra.mxu0 %v11211_v12 }
 0xafa   :  { %6184 = vmatprep.subr.bf16.mxu0 %v11212_v6 }
 0xafd   :  { %6185 = vmatpush3.bf16.msra.mxu0 %v11213_v9  ;;  %5497 = vmatmul.mubr.bf16.gmra.mrb[16].mxu1 %v6681_v22 }
 0xafe   :  { %6186 = vmatprep.subr.bf16.mxu0 %v11214_v20  ;;  %5504 = vmatprep.mubr.bf16.mxu1 %v6689_v7  ;;  %v5098_v7 = vpop.permute.xlu0 %5097 }
 0xb01   :  { %6187 = vmatpush3.bf16.msra.mxu0 %v10164_v10  ;;  %v6662_v10 = vld [vmem:[%s10476_s4 + $0x24] ss:$16 sps:$4 sm:$0xff]  }
 0xb02   :  { %6188 = vmatprep.subr.bf16.mxu0 %v11215_v39  ;;  %v5103_v39 = vpop.permute.xlu1 %5102 }
 0xb05   :  { %6189 = vmatpush3.bf16.msra.mxu0 %v10162_v0  ;;  %5505 = vmatmul.mubr.bf16.gmra.mrb[20].mxu1 %v6687_v5  ;;  %v6660_v0 = vld [vmem:[%s10476_s4 + $0x20] ss:$16 sps:$4 sm:$0xff]   ;;  %s7814_s4 = smov [#allocation4]  }
 0xb06   :  { %5512 = vmatprep.mubr.bf16.mxu1 %v6695_v42  ;;  %s5550_s1 = sshll.u32 %s7814_s4, 4  ;;  %s5551_s1 = int_to_ptr.vmem [resolvable:$true] %s5550_s1 }
 0xb07   :  { %s7789_s9 = scalar_lea.vmem %s5551_s1, 2048  ;;  %p7794_p1 = scmp.lt.s32.totalorder %s5551_s1, %s5551_s1 }
 0xb08   :  { %5368 = vmatmul.mubr.bf16.vlgmr.msra.gmra.mrb[0].mxu0 %v6654_v32  ;;  %p7790_p0 = scmp.ne.s32.totalorder %s5551_s1, %s7789_s9  ;;  %p7795_p2 = scmp.lt.s32.totalorder %s7789_s9, %s7789_s9 }
 0xb09   :  { %5375 = vmatprep.mubr.bf16.mxu0 %v6662_v10 }
 0xb0a   :  { %p7796_p3 = por %p7795_p2, %p7794_p1 }
 0xb0c   :  { %p7797_p4 = pnand %p7796_p3, %p7790_p0 }
 0xb0d   :  { %5513 = vmatmul.mubr.bf16.gmra.mrb[24].mxu1 %v6693_v34 }
 0xb0e   :  { %5520 = vmatprep.mubr.bf16.mxu1 %v6701_v49 }
 0xb10   :  { %5376 = vmatmul.mubr.bf16.gmra.mrb[4].mxu0 %v6660_v0 }
 0xb11   :  { %5383 = vmatprep.mubr.bf16.mxu0 %v6668_v17 }
 0xb15   :  { %5521 = vmatmul.mubr.bf16.gmra.mrb[28].mxu1 %v6699_v61 }
 0xb18   :  { %5384 = vmatmul.mubr.bf16.gmra.mrb[8].mxu0 %v6666_v52 }
 0xb19   :  { %5391 = vmatprep.mubr.bf16.mxu0 %v6674_v51 }
 0xb20   :  { %5392 = vmatmul.mubr.bf16.gmra.mrb[12].mxu0 %v6672_v46 }
 0xb21   :  { %5399 = vmatprep.mubr.bf16.mxu0 %v6680_v3 }
 0xb28   :  { %5400 = vmatmul.mubr.bf16.gmra.mrb[16].mxu0 %v6678_v25 }
 0xb29   :  { %5407 = vmatprep.mubr.bf16.mxu0 %v6686_v45  ;;  %v5108_v45 = vpop.permute.xlu0 %5107 }
 0xb30   :  { %5408 = vmatmul.mubr.bf16.gmra.mrb[20].mxu0 %v6684_v26 }
 0xb31   :  { %5415 = vmatprep.mubr.bf16.mxu0 %v6692_v21 }
 0xb38   :  { %5416 = vmatmul.mubr.bf16.gmra.mrb[24].mxu0 %v6690_v18 }
 0xb39   :  { %5423 = vmatprep.mubr.bf16.mxu0 %v6698_v43  ;;  %v5113_v43 = vpop.permute.xlu1 %5112 }
 0xb40   :  { %5424 = vmatmul.mubr.bf16.gmra.mrb[28].mxu0 %v6696_v62 }
 0xbb0   :  { %v6254_v11 = vpop.f32.mrb[0].mxu1 }
 0xbb1   :  { %v6255_v15 = vpop.f32.mrb[1].mxu1 }
 0xbb2   :  { %v6256_v55 = vadd.f32 %v6255_v15, %v6254_v11  ;;  %v6257_v50 = vpop.f32.mrb[2].mxu1 }
 0xbb3   :  { %v6258_v38 = vpop.f32.mrb[3].mxu1 }
 0xbb4   :  { %v6259_v28 = vadd.f32 %v6258_v38, %v6257_v50 }
 0xbb8   :  { %v6260_v14 = vpop.f32.mrb[4].mxu1 }
 0xbb9   :  { %v6261_v63 = vpop.f32.mrb[5].mxu1 }
 0xbba   :  { %v6262_v29 = vadd.f32 %v6261_v63, %v6260_v14  ;;  %v6263_v33 = vpop.f32.mrb[6].mxu1 }
 0xbbb   :  { %v6264_v56 = vpop.f32.mrb[7].mxu1 }
 0xbbc   :  { %v6265_v44 = vadd.f32 %v6264_v56, %v6263_v33 }
 0xbc0   :  { %v6266_v40 = vpop.f32.mrb[8].mxu1 }
 0xbc1   :  { %v6267_v19 = vpop.f32.mrb[9].mxu1 }
 0xbc2   :  { %v10424_v13 = vadd.f32 %v6267_v19, %v6266_v40  ;;  %v6269_v2 = vpop.f32.mrb[10].mxu1 }
 0xbc3   :  { %v6270_v37 = vpop.f32.mrb[11].mxu1 }
 0xbc4   :  { %v10426_v59 = vadd.f32 %v6270_v37, %v6269_v2  ;;  %v5118_v2 = vpop.permute.xlu0 %5117 }
 0xbc8   :  { %v6272_v57 = vpop.f32.mrb[12].mxu1 }
 0xbc9   :  { %v6273_v53 = vpop.f32.mrb[13].mxu1 }
 0xbca   :  { %v10428_v31 = vadd.f32 %v6273_v53, %v6272_v57  ;;  %v6275_v24 = vpop.f32.mrb[14].mxu1 }
 0xbcb   :  { %v6276_v41 = vpop.f32.mrb[15].mxu1 }
 0xbcc   :  { %v10430_v48 = vadd.f32 %v6276_v41, %v6275_v24  ;;  %v5123_v24 = vpop.permute.xlu1 %5122 }
 0xbd0   :  { %v6278_v47 = vpop.f32.mrb[16].mxu1 }
 0xbd1   :  { %v6279_v30 = vpop.f32.mrb[17].mxu1 }
 0xbd2   :  { %v10432_v8 = vadd.f32 %v6279_v30, %v6278_v47  ;;  %v6281_v60 = vpop.f32.mrb[18].mxu1 }
 0xbd3   :  { %v6282_v54 = vpop.f32.mrb[19].mxu1 }
 0xbd4   :  { %v10434_v27 = vadd.f32 %v6282_v54, %v6281_v60 }
 0xbd8   :  { %v6284_v1 = vpop.f32.mrb[20].mxu1 }
 0xbd9   :  { %v6285_v58 = vpop.f32.mrb[21].mxu1 }
 0xbda   :  { %v10436_v4 = vadd.f32 %v6285_v58, %v6284_v1  ;;  %v6287_v16 = vpop.f32.mrb[22].mxu1  ;;  %v5128_v1 = vpop.permute.xlu0 %5127 }
 0xbdb   :  { %v6190_v36 = vpop.f32.mrb[0].mxu0  ;;  %v6288_v23 = vpop.f32.mrb[23].mxu1 }
 0xbdc   :  { %v6191_v35 = vpop.f32.mrb[1].mxu0  ;;  %v10438_v12 = vadd.f32 %v6288_v23, %v6287_v16  ;;  %v5133_v23 = vpop.permute.xlu1 %5132 }
 0xbdd   :  { %v6192_v22 = vadd.f32 %v6191_v35, %v6190_v36  ;;  %v6193_v6 = vpop.f32.mrb[2].mxu0 }
 0xbde   :  { %v6194_v9 = vpop.f32.mrb[3].mxu0 }
 0xbdf   :  { %v5370_v20 = vadd.f32 %v6192_v22, %v5098_v7  ;;  %v6195_v5 = vadd.f32 %v6194_v9, %v6193_v6 }
 0xbe0   :  { %v6290_v42 = vpop.f32.mrb[24].mxu1 }
 0xbe1   :  { %v5373_v32 = vadd.f32 %v6195_v5, %v5103_v39  ;;  %v5467_v10 = vadd.f32 %v6256_v55, %v5370_v20  ;;  %v6291_v34 = vpop.f32.mrb[25].mxu1  ;;  %v5138_v20 = vpop.permute.xlu0 %5137 }
 0xbe2   :  { %v10440_v49 = vadd.f32 %v6291_v34, %v6290_v42  ;;  %v6293_v0 = vpop.f32.mrb[26].mxu1 }
 0xbe3   :  { %5529 = vst [vmem:[#allocation4] sm:$0xff] %v5467_v10  ;;  %v5470_v17 = vadd.f32 %v6259_v28, %v5373_v32  ;;  %v6196_v61 = vpop.f32.mrb[4].mxu0  ;;  %v6294_v52 = vpop.f32.mrb[27].mxu1 }
 0xbe4   :  { %v6197_v51 = vpop.f32.mrb[5].mxu0  ;;  %v10442_v46 = vadd.f32 %v6294_v52, %v6293_v0  ;;  %v5143_v32 = vpop.permute.xlu1 %5142 }
 0xbe5   :  { %5530 = vst [vmem:[#allocation4 + $0x8] sm:$0xff] %v5470_v17  ;;  %v6198_v3 = vadd.f32 %v6197_v51, %v6196_v61  ;;  %v6199_v25 = vpop.f32.mrb[6].mxu0  ;;  %v5148_v52 = vpop.permute.xlu0 %5147 }
 0xbe6   :  { %v6200_v26 = vpop.f32.mrb[7].mxu0 }
 0xbe7   :  { %v5378_v21 = vadd.f32 %v6198_v3, %v5108_v45  ;;  %v6201_v18 = vadd.f32 %v6200_v26, %v6199_v25 }
 0xbe8   :  { %v6296_v62 = vpop.f32.mrb[28].mxu1  ;;  %v5153_v45 = vpop.permute.xlu1 %5152 }
 0xbe9   :  { %v5381_v11 = vadd.f32 %v6201_v18, %v5113_v43  ;;  %v5475_v15 = vadd.f32 %v6262_v29, %v5378_v21  ;;  %v6297_v55 = vpop.f32.mrb[29].mxu1 }
 0xbea   :  { %v10444_v50 = vadd.f32 %v6297_v55, %v6296_v62  ;;  %v6299_v38 = vpop.f32.mrb[30].mxu1 }
 0xbeb   :  { %5531 = vst [vmem:[#allocation4 + $0x10] sm:$0xff] %v5475_v15  ;;  %v5478_v28 = vadd.f32 %v6265_v44, %v5381_v11  ;;  %v6202_v14 = vpop.f32.mrb[8].mxu0  ;;  %v6300_v63 = vpop.f32.mrb[31].mxu1 }
 0xbec   :  { %v6203_v33 = vpop.f32.mrb[9].mxu0  ;;  %v10446_v56 = vadd.f32 %v6300_v63, %v6299_v38  ;;  %v5158_v11 = vpop.permute.xlu0 %5157 }
 0xbed   :  { %5532 = vst [vmem:[#allocation4 + $0x18] sm:$0xff] %v5478_v28  ;;  %v6204_v40 = vadd.f32 %v6203_v33, %v6202_v14  ;;  %v6205_v19 = vpop.f32.mrb[10].mxu0  ;;  %v5163_v28 = vpop.permute.xlu1 %5162 }
 0xbee   :  { %v6206_v37 = vpop.f32.mrb[11].mxu0 }
 0xbef   :  { %v5386_v57 = vadd.f32 %v6204_v40, %v5118_v2  ;;  %v6207_v53 = vadd.f32 %v6206_v37, %v6205_v19 }
 0xbf0   :  { %v5168_v2 = vpop.permute.xlu0 %5167 }
 0xbf1   :  { %v5389_v29 = vadd.f32 %v6207_v53, %v5123_v24  ;;  %v5483_v41 = vadd.f32 %v10424_v13, %v5386_v57  ;;  %v5173_v24 = vpop.permute.xlu1 %5172 }
 0xbf3   :  { %5533 = vst [vmem:[#allocation4 + $0x20] sm:$0xff] %v5483_v41  ;;  %v5486_v47 = vadd.f32 %v10426_v59, %v5389_v29  ;;  %v6208_v44 = vpop.f32.mrb[12].mxu0 }
 0xbf4   :  { %v6209_v30 = vpop.f32.mrb[13].mxu0 }
 0xbf5   :  { %5534 = vst [vmem:[#allocation4 + $0x28] sm:$0xff] %v5486_v47  ;;  %v6210_v60 = vadd.f32 %v6209_v30, %v6208_v44  ;;  %v6211_v54 = vpop.f32.mrb[14].mxu0 }
 0xbf6   :  { %v6212_v58 = vpop.f32.mrb[15].mxu0 }
 0xbf7   :  { %v5394_v16 = vadd.f32 %v6210_v60, %v5128_v1  ;;  %v6213_v36 = vadd.f32 %v6212_v58, %v6211_v54 }
 0xbf9   :  { %v5397_v35 = vadd.f32 %v6213_v36, %v5133_v23  ;;  %v5491_v22 = vadd.f32 %v10428_v31, %v5394_v16 }
 0xbfb   :  { %5535 = vst [vmem:[#allocation4 + $0x30] sm:$0xff] %v5491_v22  ;;  %v5494_v6 = vadd.f32 %v10430_v48, %v5397_v35  ;;  %v6214_v13 = vpop.f32.mrb[16].mxu0 }
 0xbfc   :  { %v6215_v7 = vpop.f32.mrb[17].mxu0 }
 0xbfd   :  { %5536 = vst [vmem:[#allocation4 + $0x38] sm:$0xff] %v5494_v6  ;;  %v6216_v59 = vadd.f32 %v6215_v7, %v6214_v13  ;;  %v6217_v9 = vpop.f32.mrb[18].mxu0 }
 0xbfe   :  { %v6218_v5 = vpop.f32.mrb[19].mxu0 }
 0xbff   :  { %v5402_v39 = vadd.f32 %v6216_v59, %v5138_v20  ;;  %v6219_v42 = vadd.f32 %v6218_v5, %v6217_v9 }
 0xc01   :  { %v5405_v10 = vadd.f32 %v6219_v42, %v5143_v32  ;;  %v5499_v34 = vadd.f32 %v10432_v8, %v5402_v39 }
 0xc03   :  { %5537 = vst [vmem:[#allocation4 + $0x40] sm:$0xff] %v5499_v34  ;;  %v5502_v0 = vadd.f32 %v10434_v27, %v5405_v10  ;;  %v6220_v31 = vpop.f32.mrb[20].mxu0 }
 0xc04   :  { %v6221_v17 = vpop.f32.mrb[21].mxu0 }
 0xc05   :  { %5538 = vst [vmem:[#allocation4 + $0x48] sm:$0xff] %v5502_v0  ;;  %v6222_v48 = vadd.f32 %v6221_v17, %v6220_v31  ;;  %v6223_v61 = vpop.f32.mrb[22].mxu0 }
 0xc06   :  { %v6224_v51 = vpop.f32.mrb[23].mxu0 }
 0xc07   :  { %v5410_v3 = vadd.f32 %v6222_v48, %v5148_v52  ;;  %v6225_v25 = vadd.f32 %v6224_v51, %v6223_v61 }
 0xc09   :  { %v5413_v26 = vadd.f32 %v6225_v25, %v5153_v45  ;;  %v5507_v21 = vadd.f32 %v10436_v4, %v5410_v3 }
 0xc0b   :  { %5539 = vst [vmem:[#allocation4 + $0x50] sm:$0xff] %v5507_v21  ;;  %v5510_v18 = vadd.f32 %v10438_v12, %v5413_v26  ;;  %v6226_v8 = vpop.f32.mrb[24].mxu0 }
 0xc0c   :  { %v6227_v43 = vpop.f32.mrb[25].mxu0 }
 0xc0d   :  { %5540 = vst [vmem:[#allocation4 + $0x58] sm:$0xff] %v5510_v18  ;;  %v6228_v27 = vadd.f32 %v6227_v43, %v6226_v8  ;;  %v6229_v62 = vpop.f32.mrb[26].mxu0 }
 0xc0e   :  { %v6230_v15 = vpop.f32.mrb[27].mxu0 }
 0xc0f   :  { %v5418_v55 = vadd.f32 %v6228_v27, %v5158_v11  ;;  %v6231_v38 = vadd.f32 %v6230_v15, %v6229_v62 }
 0xc11   :  { %v5421_v14 = vadd.f32 %v6231_v38, %v5163_v28  ;;  %v5515_v63 = vadd.f32 %v10440_v49, %v5418_v55 }
 0xc13   :  { %5541 = vst [vmem:[#allocation4 + $0x60] sm:$0xff] %v5515_v63  ;;  %v5518_v33 = vadd.f32 %v10442_v46, %v5421_v14  ;;  %v6232_v4 = vpop.f32.mrb[28].mxu0 }
 0xc14   :  { %v6233_v40 = vpop.f32.mrb[29].mxu0 }
 0xc15   :  { %5542 = vst [vmem:[#allocation4 + $0x68] sm:$0xff] %v5518_v33  ;;  %v6234_v12 = vadd.f32 %v6233_v40, %v6232_v4  ;;  %v6235_v19 = vpop.f32.mrb[30].mxu0 }
 0xc16   :  { %v6236_v37 = vpop.f32.mrb[31].mxu0 }
 0xc17   :  { %v5426_v57 = vadd.f32 %v6234_v12, %v5168_v2  ;;  %v6237_v53 = vadd.f32 %v6236_v37, %v6235_v19 }
 0xc19   :  { %v5429_v29 = vadd.f32 %v6237_v53, %v5173_v24  ;;  %v5523_v41 = vadd.f32 %v10444_v50, %v5426_v57 }
 0xc1b   :  { %5543 = vst [vmem:[#allocation4 + $0x70] sm:$0xff] %v5523_v41  ;;  %v5526_v49 = vadd.f32 %v10446_v56, %v5429_v29 }
 0xc1d   :  { %5544 = vst [vmem:[#allocation4 + $0x78] sm:$0xff] %v5526_v49 }
 0xc1e   :  { %7800 = shalt.err (!%p7797_p4)
}
 0xc1f   :  { %s7801_s12 = scalar_lea.hbm %s10478_s6, 2048 }
 0xc20   :  { %p7802_p5 = scmp.ne.s32.totalorder %s10478_s6, %s7801_s12  ;;  %p7805_p6 = scmp.lt.u32.totalorder %s7801_s12, %s10478_s6 }
 0xc22   :  { %p7807_p7 = pnand %p7805_p6, %p7802_p5 }
 0xc24   :  { %7810 = shalt.err (!%p7807_p7)
}
 0xc25   :  { %s7815_s16 = smov 128   ;;  %s7816_s17 = smov 8  }
 0xc26   :  { %5556 = dma.vmem_to_hbm [thread:$0]  %s5551_s1, 2048, %s10478_s6, [#allocation5], %s7815_s16, %s7815_s16, %s7816_s17  }
 0xc27   :  { %7811 = dma.done.wait [#allocation5], 2048  }
 0xc28   :  { %7812 = vsyncadd [#allocation5], 4294965248 }
 0xc29   :  { %5560 = vsyncpa [#allocation5], 1 }

</bundles_post_ra>
